<compile_context>
chip_gen: v6e
topology: v6e:2x2x1
jax: 0.10.0
libtpu: 0.0.40
codegen_flags: <defaults>
</compile_context>

<pallas_src>
import functools

import jax
import jax.numpy as jnp
from jax.experimental import pallas as pl
from jax.experimental.pallas import tpu as pltpu


def _hw_tile(hw, cap=2048):
    """Largest multiple-of-128 divisor of hw (<= cap); falls back to full hw."""
    best = 0
    t = 128
    while t <= min(hw, cap):
        if hw % t == 0:
            best = t
        t += 128
    if best:
        return best
    # TODO(synk): pad HW to a multiple of 128 (masked ragged tail) instead of
    # falling back to a single full-HW block for awkward sizes.
    return hw


def _chan_tile(c, hw_elems, budget_elems=1 << 21):
    """Largest divisor of c keeping one (ct, H, W) f32 block <= ~8 MiB."""
    t = max(1, min(c, budget_elems // max(hw_elems, 1)))
    while c % t:
        t -= 1
    return t


# ----------------------------------------------------------------------------
# Kernel 1: WithBias-LayerNorm (over channels) fused with the qkv 1x1 conv.
# The LN affine is pre-folded into the conv weights on the host, so the
# kernel only centers and scales by rsqrt(var).  Layout: (C, T), lane = HW.
# ----------------------------------------------------------------------------
def ln_qkv_kernel(x_ref, w_ref, b_ref, o_ref):
    x = x_ref[...]                                         # (C, T)
    mu = jnp.mean(x, axis=0, keepdims=True)                # (1, T)
    var = jnp.mean((x - mu) ** 2, axis=0, keepdims=True)   # unbiased=False
    y = (x - mu) * jax.lax.rsqrt(var + 1e-5)
    o_ref[...] = (
        jnp.dot(w_ref[...], y, preferred_element_type=jnp.float32)
        + b_ref[...]                                       # (3C,1) broadcasts
    )


def ln_qkv(x_cf, w_fold, b_fold):
    B, C, HW = x_cf.shape
    C3 = w_fold.shape[0]
    T = _hw_tile(HW)
    return pl.pallas_call(
        ln_qkv_kernel,
        out_shape=jax.ShapeDtypeStruct((B, C3, HW), jnp.float32),
        grid=(B, HW // T),
        in_specs=[
            pl.BlockSpec((None, C, T), lambda b, j: (b, 0, j)),
            pl.BlockSpec((C3, C), lambda b, j: (0, 0)),
            pl.BlockSpec((C3, 1), lambda b, j: (0, 0)),
        ],
        out_specs=pl.BlockSpec((None, C3, T), lambda b, j: (b, 0, j)),
        compiler_params=pltpu.CompilerParams(
            dimension_semantics=("parallel", "parallel")),
    )(x_cf, w_fold, b_fold.reshape(C3, 1))


# ----------------------------------------------------------------------------
# Kernel 2: depthwise 3x3 conv, stride 1, padding=1, NO host pad.
# Halo handled in-kernel: three dx lane-rolls precomputed (XLU) + edge masks;
# dy sublane-rolls reused across the three dx taps.  Tiled over channels.
# TODO(synk): for very large images also tile H with a 1-row halo to respect
# the 64 MiB physical VMEM on v7x / 16 MiB default scope on v5e.
# ----------------------------------------------------------------------------
def dwconv_kernel(x_ref, w_ref, b_ref, o_ref):
    x = x_ref[...]                                         # (ct, H, W)
    wv = w_ref[...]                                        # (ct, 3, 3)
    _, H, W = x.shape
    row = jax.lax.broadcasted_iota(jnp.int32, (1, H, W), 1)
    col = jax.lax.broadcasted_iota(jnp.int32, (1, H, W), 2)

    # Pre-shift along the lane (W) axis once per dx and zero the wrapped edge.
    xs = []
    for dx in range(3):
        sh = (1 - dx) % W
        xv = pltpu.roll(x, sh, 2) if sh else x
        if dx == 0:
            xv = jnp.where(col >= 1, xv, 0.0)
        elif dx == 2:
            xv = jnp.where(col <= W - 2, xv, 0.0)
        xs.append(xv)

    acc = jnp.zeros(x.shape, jnp.float32)
    for dy in range(3):
        sh = (1 - dy) % H
        part = jnp.zeros(x.shape, jnp.float32)
        for dx in range(3):
            xv = pltpu.roll(xs[dx], sh, 1) if sh else xs[dx]
            part = part + xv * wv[:, dy:dy + 1, dx:dx + 1]
        if dy == 0:
            part = jnp.where(row >= 1, part, 0.0)
        elif dy == 2:
            part = jnp.where(row <= H - 2, part, 0.0)
        acc = acc + part
    o_ref[...] = acc + b_ref[...]


def dwconv3x3(x, w, b):
    B, C3, H, W = x.shape
    ct = _chan_tile(C3, H * W)
    return pl.pallas_call(
        dwconv_kernel,
        out_shape=jax.ShapeDtypeStruct((B, C3, H, W), jnp.float32),
        grid=(B, C3 // ct),
        in_specs=[
            pl.BlockSpec((None, ct, H, W), lambda b, c: (b, c, 0, 0)),
            pl.BlockSpec((ct, 3, 3), lambda b, c: (c, 0, 0)),
            pl.BlockSpec((ct, 1, 1), lambda b, c: (c, 0, 0)),
        ],
        out_specs=pl.BlockSpec((None, ct, H, W), lambda b, c: (b, c, 0, 0)),
        compiler_params=pltpu.CompilerParams(
            dimension_semantics=("parallel", "parallel")),
    )(x, w, b.reshape(C3, 1, 1))


# ----------------------------------------------------------------------------
# Kernel 3 (attention stage 1): accumulate raw channel-attention scores
# s = q @ k^T plus per-row sum-of-squares of q and k over HW tiles.
# q/k are read straight out of the fused qkv tensor (no host slices); the
# F.normalize rsqrt scaling + temperature are applied later on the tiny
# (B, NH, Cph, Cph) logits in XLA (mathematically identical).
# ----------------------------------------------------------------------------
def attn_scores_kernel(q_ref, k_ref, s_ref, qss_ref, kss_ref):
    @pl.when(pl.program_id(1) == 0)
    def _():
        s_ref[...] = jnp.zeros_like(s_ref)
        qss_ref[...] = jnp.zeros_like(qss_ref)
        kss_ref[...] = jnp.zeros_like(kss_ref)

    q = q_ref[...]                                         # (NH, Cph, T)
    k = k_ref[...]
    s_ref[...] += jnp.einsum("hcs,hds->hcd", q, k,
                             preferred_element_type=jnp.float32)
    qss_ref[...] += jnp.sum(q * q, axis=-1, keepdims=True)
    kss_ref[...] += jnp.sum(k * k, axis=-1, keepdims=True)


def attn_scores(qkv4h, num_heads):
    B, G, Cph, HW = qkv4h.shape                            # G = 3 * num_heads
    NH = num_heads
    T = _hw_tile(HW)
    return pl.pallas_call(
        attn_scores_kernel,
        out_shape=(
            jax.ShapeDtypeStruct((B, NH, Cph, Cph), jnp.float32),
            jax.ShapeDtypeStruct((B, NH, Cph, 1), jnp.float32),
            jax.ShapeDtypeStruct((B, NH, Cph, 1), jnp.float32),
        ),
        grid=(B, HW // T),
        in_specs=[
            pl.BlockSpec((None, NH, Cph, T), lambda b, j: (b, 0, 0, j)),  # q
            pl.BlockSpec((None, NH, Cph, T), lambda b, j: (b, 1, 0, j)),  # k
        ],
        out_specs=(
            pl.BlockSpec((None, NH, Cph, Cph), lambda b, j: (b, 0, 0, 0)),
            pl.BlockSpec((None, NH, Cph, 1), lambda b, j: (b, 0, 0, 0)),
            pl.BlockSpec((None, NH, Cph, 1), lambda b, j: (b, 0, 0, 0)),
        ),
        compiler_params=pltpu.CompilerParams(
            dimension_semantics=("parallel", "arbitrary")),
    )(qkv4h, qkv4h)


# ----------------------------------------------------------------------------
# Kernel 4 (attention stage 2, fused with project_out + residual):
#   y = x + proj_b + M[b] @ v
# where M[b] already contains (project_out ∘ weighted-sparse-softmax), so this
# is a single (C, C) @ (C, T) matmul per tile.  v is read straight out of the
# fused qkv tensor via the BlockSpec index_map.
# ----------------------------------------------------------------------------
def apply_proj_kernel(m_ref, v_ref, x_ref, pb_ref, o_ref):
    o_ref[...] = (
        x_ref[...]
        + jnp.dot(m_ref[...], v_ref[...], preferred_element_type=jnp.float32)
        + pb_ref[...]
    )


def attn_apply_proj(m, qkv_cf, x_cf, proj_b):
    B, C, HW = x_cf.shape
    T = _hw_tile(HW)
    blk = pl.BlockSpec((None, C, T), lambda b, j: (b, 0, j))
    return pl.pallas_call(
        apply_proj_kernel,
        out_shape=jax.ShapeDtypeStruct((B, C, HW), jnp.float32),
        grid=(B, HW // T),
        in_specs=[
            pl.BlockSpec((None, C, C), lambda b, j: (b, 0, 0)),   # M[b]
            pl.BlockSpec((None, C, T), lambda b, j: (b, 2, j)),   # v chunk
            blk,                                                  # residual x
            pl.BlockSpec((C, 1), lambda b, j: (0, 0)),            # proj bias
        ],
        out_specs=blk,
        compiler_params=pltpu.CompilerParams(
            dimension_semantics=("parallel", "parallel")),
    )(m, qkv_cf, x_cf, proj_b.reshape(C, 1))


# ----------------------------------------------------------------------------
# Full TransformerBlock forward.  Only free reshapes between kernels; all the
# top-k / softmax / weight-folding work runs on tiny (B,NH,Cph,Cph) tensors.
# ----------------------------------------------------------------------------
@functools.partial(jax.jit, static_argnums=(2,))
def transformer_block_forward(x, params, num_heads):
    B, C, H, W = x.shape
    HW = H * W
    NH = num_heads
    Cph = C // NH
    x_cf = x.reshape(B, C, HW)                                   # channel-first

    # Fold the LayerNorm affine into the qkv 1x1-conv weights (tiny, host-side).
    w_fold = params["qkv_w"] * params["ln_w"][None, :]
    b_fold = params["qkv_b"] + params["qkv_w"] @ params["ln_b"]

    # LayerNorm (WithBias, over channels) fused with the qkv 1x1 conv.
    qkv_cf = ln_qkv(x_cf, w_fold, b_fold)                        # (B, 3C, HW)

    # Depthwise 3x3 conv (padding=1), halo handled in-kernel.
    qkv_dw = dwconv3x3(qkv_cf.reshape(B, 3 * C, H, W),
                       params["dw_w"], params["dw_b"])           # (B, 3C, H, W)

    # Free reshaped views; kernels pick q/k/v via BlockSpec index_maps.
    qkv_cf2 = qkv_dw.reshape(B, 3 * C, HW)
    qkv4h = qkv_dw.reshape(B, 3 * NH, Cph, HW)

    # Stage 1: raw scores + sum-of-squares accumulated over HW tiles.
    s, qss, kss = attn_scores(qkv4h, NH)                         # tiny outputs

    # ---- tiny-tensor XLA stage (exact reference math) -----------------------
    # F.normalize scaling (eps=1e-12) + temperature.
    eps2 = 1e-24
    rq = jax.lax.rsqrt(jnp.maximum(qss, eps2))                   # (B,NH,Cph,1)
    rk = jax.lax.rsqrt(jnp.maximum(kss, eps2))
    attn = s * rq * jnp.swapaxes(rk, -1, -2)
    attn = attn * params["temperature"].reshape(1, NH, 1, 1)

    # TODO(synk): torch.topk/scatter has no Mosaic equivalent; the 4 exact
    # top-k masks + softmaxes run in XLA on the tiny logits.
    topks = (int(Cph / 2), int(Cph * 2 / 3), int(Cph * 3 / 4), int(Cph * 4 / 5))
    ws = params["attn_ws"]
    p = jnp.zeros_like(attn)
    for i, kk in enumerate(topks):
        idx = jax.lax.top_k(attn, kk)[1]                         # (B,NH,Cph,kk)
        mask = jax.nn.one_hot(idx, Cph, dtype=attn.dtype).sum(axis=-2) > 0
        ai = jnp.where(mask, attn, -jnp.inf)
        p = p + ws[i] * jax.nn.softmax(ai, axis=-1)

    # Fold project_out into the attention matrices:
    #   M[b, c, n*Cph+e] = sum_q proj_w[c, n*Cph+q] * P[b, n, q, e]
    pw = params["proj_w"].reshape(C, NH, Cph)
    m = jnp.einsum("cnq,bnqe->bcne", pw, p).reshape(B, C, C)

    # Stage 2: fused (attention-apply + project_out + residual) per HW tile.
    y = attn_apply_proj(m, qkv_cf2, x_cf, params["proj_b"])      # (B, C, HW)
    return y.reshape(B, C, H, W)


def init_params(key, dim, num_heads):
    ks = jax.random.split(key, 6)
    s = 0.1
    return {
        "ln_w": jnp.ones((dim,), jnp.float32),
        "ln_b": jnp.zeros((dim,), jnp.float32),
        # weights stored channel-first: out = W @ x  (Conv2d 1x1 orientation).
        "qkv_w": s * jax.random.normal(ks[0], (3 * dim, dim), jnp.float32),
        "qkv_b": s * jax.random.normal(ks[1], (3 * dim,), jnp.float32),
        "dw_w": s * jax.random.normal(ks[2], (3 * dim, 3, 3), jnp.float32),
        "dw_b": s * jax.random.normal(ks[3], (3 * dim,), jnp.float32),
        "proj_w": s * jax.random.normal(ks[4], (dim, dim), jnp.float32),
        "proj_b": s * jax.random.normal(ks[5], (dim,), jnp.float32),
        "temperature": jnp.ones((num_heads,), jnp.float32),
        "attn_ws": jnp.full((4,), 0.2, jnp.float32),
    }


if __name__ == "__main__":
    key = jax.random.PRNGKey(0)
    k_x, k_p = jax.random.split(key)

    B, dim, H, W = 2, 16, 8, 8
    num_heads = 2

    x = jax.random.normal(k_x, (B, dim, H, W), jnp.float32)
    params = init_params(k_p, dim, num_heads)

    out = transformer_block_forward(x, params, num_heads)
    out = jax.block_until_ready(out)
    assert out.shape == (B, dim, H, W) and out.dtype == jnp.float32
    assert bool(jnp.all(jnp.isfinite(out)))
    print("KERNEL_OK")
</pallas_src>

<mosaic_0001>
module attributes {stable_mosaic.version = 11 : i64} {
  func.func @ln_qkv_kernel(%arg0: i32, %arg1: i32, %arg2: memref<1x16x64xf32, #tpu.memory_space<vmem>>, %arg3: memref<48x16xf32, #tpu.memory_space<vmem>>, %arg4: memref<48x1xf32, #tpu.memory_space<vmem>>, %arg5: memref<1x48x64xf32, #tpu.memory_space<vmem>>) attributes {dimension_semantics = [#tpu.dimension_semantics<parallel>, #tpu.dimension_semantics<parallel>], iteration_bounds = array<i64: 2, 1>, scalar_prefetch = 0 : i64, scratch_operands = 0 : i64, tpu.core_type = #tpu.core_type<tc>, window_params = [{transform_indices = @transform_0, window_bounds = array<i64: 1, 16, 64>}, {pipeline_mode = #tpu.pipeline_mode<synchronous>, transform_indices = @transform_1, window_bounds = array<i64: 48, 16>}, {pipeline_mode = #tpu.pipeline_mode<synchronous>, transform_indices = @transform_2, window_bounds = array<i64: 48, 1>}, {transform_indices = @transform_3, window_bounds = array<i64: 1, 48, 64>}]} {
    %c0 = arith.constant 0 : index
    %c0_0 = arith.constant 0 : index
    %c0_1 = arith.constant 0 : index
    %0 = vector.load %arg2[%c0, %c0_0, %c0_1] : memref<1x16x64xf32, #tpu.memory_space<vmem>>, vector<1x16x64xf32>
    %1 = vector.shape_cast %0 : vector<1x16x64xf32> to vector<16x64xf32>
    %cst = arith.constant dense<0.000000e+00> : vector<64xf32>
    %2 = vector.multi_reduction <add>, %1, %cst [0] : vector<16x64xf32> to vector<64xf32>
    %3 = vector.shape_cast %2 : vector<64xf32> to vector<1x64xf32>
    %cst_2 = arith.constant 1.600000e+01 : f32
    %4 = vector.broadcast %cst_2 : f32 to vector<1x64xf32>
    %5 = arith.divf %3, %4 : vector<1x64xf32>
    %6 = vector.broadcast %5 : vector<1x64xf32> to vector<16x64xf32>
    %7 = arith.subf %1, %6 : vector<16x64xf32>
    %8 = arith.mulf %7, %7 : vector<16x64xf32>
    %cst_3 = arith.constant dense<0.000000e+00> : vector<64xf32>
    %9 = vector.multi_reduction <add>, %8, %cst_3 [0] : vector<16x64xf32> to vector<64xf32>
    %10 = vector.shape_cast %9 : vector<64xf32> to vector<1x64xf32>
    %cst_4 = arith.constant 1.600000e+01 : f32
    %11 = vector.broadcast %cst_4 : f32 to vector<1x64xf32>
    %12 = arith.divf %10, %11 : vector<1x64xf32>
    %13 = vector.broadcast %5 : vector<1x64xf32> to vector<16x64xf32>
    %14 = arith.subf %1, %13 : vector<16x64xf32>
    %cst_5 = arith.constant 9.99999974E-6 : f32
    %15 = vector.broadcast %cst_5 : f32 to vector<1x64xf32>
    %16 = arith.addf %12, %15 : vector<1x64xf32>
    %17 = math.rsqrt %16 : vector<1x64xf32>
    %18 = vector.broadcast %17 : vector<1x64xf32> to vector<16x64xf32>
    %19 = arith.mulf %14, %18 : vector<16x64xf32>
    %c0_6 = arith.constant 0 : index
    %c0_7 = arith.constant 0 : index
    %20 = vector.load %arg3[%c0_6, %c0_7] : memref<48x16xf32, #tpu.memory_space<vmem>>, vector<48x16xf32>
    %cst_8 = arith.constant dense<0.000000e+00> : vector<48x64xf32>
    %21 = tpu.matmul %20, %19, %cst_8 {dimension_numbers = #tpu.dot_dimension_numbers<[1], [0], [0], [1], [0, 0, 1, 1], [], []>} : vector<48x16xf32>, vector<16x64xf32>, vector<48x64xf32> -> vector<48x64xf32>
    %c0_9 = arith.constant 0 : index
    %c0_10 = arith.constant 0 : index
    %22 = vector.load %arg4[%c0_9, %c0_10] : memref<48x1xf32, #tpu.memory_space<vmem>>, vector<48x1xf32>
    %23 = vector.broadcast %22 : vector<48x1xf32> to vector<48x64xf32>
    %24 = arith.addf %21, %23 : vector<48x64xf32>
    %c0_11 = arith.constant 0 : index
    %c0_12 = arith.constant 0 : index
    %c0_13 = arith.constant 0 : index
    %25 = vector.load %arg5[%c0_11, %c0_12, %c0_13] : memref<1x48x64xf32, #tpu.memory_space<vmem>>, vector<1x48x64xf32>
    %26 = vector.shape_cast %25 : vector<1x48x64xf32> to vector<48x64xf32>
    %27 = vector.shape_cast %24 : vector<48x64xf32> to vector<1x48x64xf32>
    tpu.vector_store %arg5[%c0_11, %c0_12, %c0_13], %27 {strides = array<i32>} : memref<1x48x64xf32, #tpu.memory_space<vmem>>, vector<1x48x64xf32>,
    return
  }
  func.func @transform_0(%arg0: i32, %arg1: i32) -> (i32, i32, i32) {
    %c0_i32 = arith.constant 0 : i32
    %c0_i32_0 = arith.constant 0 : i32
    return %arg0, %c0_i32, %arg1 : i32, i32, i32
  }
  func.func @transform_1(%arg0: i32, %arg1: i32) -> (i32, i32) {
    %c0_i32 = arith.constant 0 : i32
    %c0_i32_0 = arith.constant 0 : i32
    %c0_i32_1 = arith.constant 0 : i32
    return %c0_i32, %c0_i32_0 : i32, i32
  }
  func.func @transform_2(%arg0: i32, %arg1: i32) -> (i32, i32) {
    %c0_i32 = arith.constant 0 : i32
    %c0_i32_0 = arith.constant 0 : i32
    %c0_i32_1 = arith.constant 0 : i32
    return %c0_i32, %c0_i32_0 : i32, i32
  }
  func.func @transform_3(%arg0: i32, %arg1: i32) -> (i32, i32, i32) {
    %c0_i32 = arith.constant 0 : i32
    %c0_i32_0 = arith.constant 0 : i32
    return %arg0, %c0_i32, %arg1 : i32, i32, i32
  }
}

module attributes {stable_mosaic.version = 11 : i64} {
  func.func @dwconv_kernel(%arg0: i32, %arg1: i32, %arg2: memref<1x48x8x8xf32, #tpu.memory_space<vmem>>, %arg3: memref<48x3x3xf32, #tpu.memory_space<vmem>>, %arg4: memref<48x1x1xf32, #tpu.memory_space<vmem>>, %arg5: memref<1x48x8x8xf32, #tpu.memory_space<vmem>>) attributes {dimension_semantics = [#tpu.dimension_semantics<parallel>, #tpu.dimension_semantics<parallel>], iteration_bounds = array<i64: 2, 1>, scalar_prefetch = 0 : i64, scratch_operands = 0 : i64, tpu.core_type = #tpu.core_type<tc>, window_params = [{transform_indices = @transform_0, window_bounds = array<i64: 1, 48, 8, 8>}, {transform_indices = @transform_1, window_bounds = array<i64: 48, 3, 3>}, {transform_indices = @transform_2, window_bounds = array<i64: 48, 1, 1>}, {transform_indices = @transform_3, window_bounds = array<i64: 1, 48, 8, 8>}]} {
    %c0 = arith.constant 0 : index
    %c0_0 = arith.constant 0 : index
    %c0_1 = arith.constant 0 : index
    %c0_2 = arith.constant 0 : index
    %0 = vector.load %arg2[%c0, %c0_0, %c0_1, %c0_2] : memref<1x48x8x8xf32, #tpu.memory_space<vmem>>, vector<1x48x8x8xf32>
    %1 = vector.shape_cast %0 : vector<1x48x8x8xf32> to vector<48x8x8xf32>
    %c0_3 = arith.constant 0 : index
    %c0_4 = arith.constant 0 : index
    %c0_5 = arith.constant 0 : index
    %2 = vector.load %arg3[%c0_3, %c0_4, %c0_5] : memref<48x3x3xf32, #tpu.memory_space<vmem>>, vector<48x3x3xf32>
    %3 = tpu.iota {dimensions = array<i32: 1>} : vector<1x8x8xi32>
    %4 = tpu.iota {dimensions = array<i32: 2>} : vector<1x8x8xi32>
    %c1_i32 = arith.constant 1 : i32
    %5 = tpu.dynamic_rotate %1 by %c1_i32 dim 2 : vector<48x8x8xf32>, i32 -> vector<48x8x8xf32>
    %c1_i32_6 = arith.constant 1 : i32
    %6 = vector.broadcast %c1_i32_6 : i32 to vector<1x8x8xi32>
    %7 = arith.cmpi sge, %4, %6 : vector<1x8x8xi32>
    %cst = arith.constant 0.000000e+00 : f32
    %8 = vector.shape_cast %7 : vector<1x8x8xi1> to vector<1x8x8xi1>
    %9 = vector.broadcast %8 : vector<1x8x8xi1> to vector<48x8x8xi1>
    %10 = vector.broadcast %cst : f32 to vector<48x8x8xf32>
    %11 = arith.select %9, %5, %10 : vector<48x8x8xi1>, vector<48x8x8xf32>
    %c7_i32 = arith.constant 7 : i32
    %12 = tpu.dynamic_rotate %1 by %c7_i32 dim 2 : vector<48x8x8xf32>, i32 -> vector<48x8x8xf32>
    %c6_i32 = arith.constant 6 : i32
    %13 = vector.broadcast %c6_i32 : i32 to vector<1x8x8xi32>
    %14 = arith.cmpi sle, %4, %13 : vector<1x8x8xi32>
    %cst_7 = arith.constant 0.000000e+00 : f32
    %15 = vector.shape_cast %14 : vector<1x8x8xi1> to vector<1x8x8xi1>
    %16 = vector.broadcast %15 : vector<1x8x8xi1> to vector<48x8x8xi1>
    %17 = vector.broadcast %cst_7 : f32 to vector<48x8x8xf32>
    %18 = arith.select %16, %12, %17 : vector<48x8x8xi1>, vector<48x8x8xf32>
    %cst_8 = arith.constant 0.000000e+00 : f32
    %19 = vector.broadcast %cst_8 : f32 to vector<48x8x8xf32>
    %cst_9 = arith.constant 0.000000e+00 : f32
    %20 = vector.broadcast %cst_9 : f32 to vector<48x8x8xf32>
    %c1_i32_10 = arith.constant 1 : i32
    %21 = tpu.dynamic_rotate %11 by %c1_i32_10 dim 1 : vector<48x8x8xf32>, i32 -> vector<48x8x8xf32>
    %22 = vector.extract_strided_slice %2 {offsets = [0, 0, 0], sizes = [48, 1, 1], strides = [1, 1, 1]} : vector<48x3x3xf32> to vector<48x1x1xf32>
    %23 = vector.broadcast %22 : vector<48x1x1xf32> to vector<48x8x8xf32>
    %24 = arith.mulf %21, %23 : vector<48x8x8xf32>
    %25 = arith.addf %20, %24 : vector<48x8x8xf32>
    %c1_i32_11 = arith.constant 1 : i32
    %26 = tpu.dynamic_rotate %1 by %c1_i32_11 dim 1 : vector<48x8x8xf32>, i32 -> vector<48x8x8xf32>
    %27 = vector.extract_strided_slice %2 {offsets = [0, 0, 1], sizes = [48, 1, 1], strides = [1, 1, 1]} : vector<48x3x3xf32> to vector<48x1x1xf32>
    %28 = vector.broadcast %27 : vector<48x1x1xf32> to vector<48x8x8xf32>
    %29 = arith.mulf %26, %28 : vector<48x8x8xf32>
    %30 = arith.addf %25, %29 : vector<48x8x8xf32>
    %c1_i32_12 = arith.constant 1 : i32
    %31 = tpu.dynamic_rotate %18 by %c1_i32_12 dim 1 : vector<48x8x8xf32>, i32 -> vector<48x8x8xf32>
    %32 = vector.extract_strided_slice %2 {offsets = [0, 0, 2], sizes = [48, 1, 1], strides = [1, 1, 1]} : vector<48x3x3xf32> to vector<48x1x1xf32>
    %33 = vector.broadcast %32 : vector<48x1x1xf32> to vector<48x8x8xf32>
    %34 = arith.mulf %31, %33 : vector<48x8x8xf32>
    %35 = arith.addf %30, %34 : vector<48x8x8xf32>
    %c1_i32_13 = arith.constant 1 : i32
    %36 = vector.broadcast %c1_i32_13 : i32 to vector<1x8x8xi32>
    %37 = arith.cmpi sge, %3, %36 : vector<1x8x8xi32>
    %cst_14 = arith.constant 0.000000e+00 : f32
    %38 = vector.shape_cast %37 : vector<1x8x8xi1> to vector<1x8x8xi1>
    %39 = vector.broadcast %38 : vector<1x8x8xi1> to vector<48x8x8xi1>
    %40 = vector.broadcast %cst_14 : f32 to vector<48x8x8xf32>
    %41 = arith.select %39, %35, %40 : vector<48x8x8xi1>, vector<48x8x8xf32>
    %42 = arith.addf %19, %41 : vector<48x8x8xf32>
    %cst_15 = arith.constant 0.000000e+00 : f32
    %43 = vector.broadcast %cst_15 : f32 to vector<48x8x8xf32>
    %44 = vector.extract_strided_slice %2 {offsets = [0, 1, 0], sizes = [48, 1, 1], strides = [1, 1, 1]} : vector<48x3x3xf32> to vector<48x1x1xf32>
    %45 = vector.broadcast %44 : vector<48x1x1xf32> to vector<48x8x8xf32>
    %46 = arith.mulf %11, %45 : vector<48x8x8xf32>
    %47 = arith.addf %43, %46 : vector<48x8x8xf32>
    %48 = vector.extract_strided_slice %2 {offsets = [0, 1, 1], sizes = [48, 1, 1], strides = [1, 1, 1]} : vector<48x3x3xf32> to vector<48x1x1xf32>
    %49 = vector.broadcast %48 : vector<48x1x1xf32> to vector<48x8x8xf32>
    %50 = arith.mulf %1, %49 : vector<48x8x8xf32>
    %51 = arith.addf %47, %50 : vector<48x8x8xf32>
    %52 = vector.extract_strided_slice %2 {offsets = [0, 1, 2], sizes = [48, 1, 1], strides = [1, 1, 1]} : vector<48x3x3xf32> to vector<48x1x1xf32>
    %53 = vector.broadcast %52 : vector<48x1x1xf32> to vector<48x8x8xf32>
    %54 = arith.mulf %18, %53 : vector<48x8x8xf32>
    %55 = arith.addf %51, %54 : vector<48x8x8xf32>
    %56 = arith.addf %42, %55 : vector<48x8x8xf32>
    %cst_16 = arith.constant 0.000000e+00 : f32
    %57 = vector.broadcast %cst_16 : f32 to vector<48x8x8xf32>
    %c7_i32_17 = arith.constant 7 : i32
    %58 = tpu.dynamic_rotate %11 by %c7_i32_17 dim 1 : vector<48x8x8xf32>, i32 -> vector<48x8x8xf32>
    %59 = vector.extract_strided_slice %2 {offsets = [0, 2, 0], sizes = [48, 1, 1], strides = [1, 1, 1]} : vector<48x3x3xf32> to vector<48x1x1xf32>
    %60 = vector.broadcast %59 : vector<48x1x1xf32> to vector<48x8x8xf32>
    %61 = arith.mulf %58, %60 : vector<48x8x8xf32>
    %62 = arith.addf %57, %61 : vector<48x8x8xf32>
    %c7_i32_18 = arith.constant 7 : i32
    %63 = tpu.dynamic_rotate %1 by %c7_i32_18 dim 1 : vector<48x8x8xf32>, i32 -> vector<48x8x8xf32>
    %64 = vector.extract_strided_slice %2 {offsets = [0, 2, 1], sizes = [48, 1, 1], strides = [1, 1, 1]} : vector<48x3x3xf32> to vector<48x1x1xf32>
    %65 = vector.broadcast %64 : vector<48x1x1xf32> to vector<48x8x8xf32>
    %66 = arith.mulf %63, %65 : vector<48x8x8xf32>
    %67 = arith.addf %62, %66 : vector<48x8x8xf32>
    %c7_i32_19 = arith.constant 7 : i32
    %68 = tpu.dynamic_rotate %18 by %c7_i32_19 dim 1 : vector<48x8x8xf32>, i32 -> vector<48x8x8xf32>
    %69 = vector.extract_strided_slice %2 {offsets = [0, 2, 2], sizes = [48, 1, 1], strides = [1, 1, 1]} : vector<48x3x3xf32> to vector<48x1x1xf32>
    %70 = vector.broadcast %69 : vector<48x1x1xf32> to vector<48x8x8xf32>
    %71 = arith.mulf %68, %70 : vector<48x8x8xf32>
    %72 = arith.addf %67, %71 : vector<48x8x8xf32>
    %c6_i32_20 = arith.constant 6 : i32
    %73 = vector.broadcast %c6_i32_20 : i32 to vector<1x8x8xi32>
    %74 = arith.cmpi sle, %3, %73 : vector<1x8x8xi32>
    %cst_21 = arith.constant 0.000000e+00 : f32
    %75 = vector.shape_cast %74 : vector<1x8x8xi1> to vector<1x8x8xi1>
    %76 = vector.broadcast %75 : vector<1x8x8xi1> to vector<48x8x8xi1>
    %77 = vector.broadcast %cst_21 : f32 to vector<48x8x8xf32>
    %78 = arith.select %76, %72, %77 : vector<48x8x8xi1>, vector<48x8x8xf32>
    %79 = arith.addf %56, %78 : vector<48x8x8xf32>
    %c0_22 = arith.constant 0 : index
    %c0_23 = arith.constant 0 : index
    %c0_24 = arith.constant 0 : index
    %80 = vector.load %arg4[%c0_22, %c0_23, %c0_24] : memref<48x1x1xf32, #tpu.memory_space<vmem>>, vector<48x1x1xf32>
    %81 = vector.broadcast %80 : vector<48x1x1xf32> to vector<48x8x8xf32>
    %82 = arith.addf %79, %81 : vector<48x8x8xf32>
    %c0_25 = arith.constant 0 : index
    %c0_26 = arith.constant 0 : index
    %c0_27 = arith.constant 0 : index
    %c0_28 = arith.constant 0 : index
    %83 = vector.load %arg5[%c0_25, %c0_26, %c0_27, %c0_28] : memref<1x48x8x8xf32, #tpu.memory_space<vmem>>, vector<1x48x8x8xf32>
    %84 = vector.shape_cast %83 : vector<1x48x8x8xf32> to vector<48x8x8xf32>
    %85 = vector.shape_cast %82 : vector<48x8x8xf32> to vector<1x48x8x8xf32>
    tpu.vector_store %arg5[%c0_25, %c0_26, %c0_27, %c0_28], %85 {strides = array<i32>} : memref<1x48x8x8xf32, #tpu.memory_space<vmem>>, vector<1x48x8x8xf32>,
    return
  }
  func.func @transform_0(%arg0: i32, %arg1: i32) -> (i32, i32, i32, i32) {
    %c0_i32 = arith.constant 0 : i32
    %c0_i32_0 = arith.constant 0 : i32
    %c0_i32_1 = arith.constant 0 : i32
    return %arg0, %arg1, %c0_i32, %c0_i32_0 : i32, i32, i32, i32
  }
  func.func @transform_1(%arg0: i32, %arg1: i32) -> (i32, i32, i32) {
    %c0_i32 = arith.constant 0 : i32
    %c0_i32_0 = arith.constant 0 : i32
    %c0_i32_1 = arith.constant 0 : i32
    return %arg1, %c0_i32, %c0_i32_0 : i32, i32, i32
  }
  func.func @transform_2(%arg0: i32, %arg1: i32) -> (i32, i32, i32) {
    %c0_i32 = arith.constant 0 : i32
    %c0_i32_0 = arith.constant 0 : i32
    %c0_i32_1 = arith.constant 0 : i32
    return %arg1, %c0_i32, %c0_i32_0 : i32, i32, i32
  }
  func.func @transform_3(%arg0: i32, %arg1: i32) -> (i32, i32, i32, i32) {
    %c0_i32 = arith.constant 0 : i32
    %c0_i32_0 = arith.constant 0 : i32
    %c0_i32_1 = arith.constant 0 : i32
    return %arg0, %arg1, %c0_i32, %c0_i32_0 : i32, i32, i32, i32
  }
}

module attributes {stable_mosaic.version = 11 : i64} {
  func.func @attn_scores_kernel(%arg0: i32, %arg1: i32, %arg2: memref<1x2x8x64xf32, #tpu.memory_space<vmem>>, %arg3: memref<1x2x8x64xf32, #tpu.memory_space<vmem>>, %arg4: memref<1x2x8x8xf32, #tpu.memory_space<vmem>>, %arg5: memref<1x2x8x1xf32, #tpu.memory_space<vmem>>, %arg6: memref<1x2x8x1xf32, #tpu.memory_space<vmem>>) attributes {dimension_semantics = [#tpu.dimension_semantics<parallel>, #tpu.dimension_semantics<arbitrary>], iteration_bounds = array<i64: 2, 1>, scalar_prefetch = 0 : i64, scratch_operands = 0 : i64, tpu.core_type = #tpu.core_type<tc>, window_params = [{transform_indices = @transform_0, window_bounds = array<i64: 1, 2, 8, 64>}, {transform_indices = @transform_1, window_bounds = array<i64: 1, 2, 8, 64>}, {transform_indices = @transform_2, window_bounds = array<i64: 1, 2, 8, 8>}, {transform_indices = @transform_3, window_bounds = array<i64: 1, 2, 8, 1>}, {transform_indices = @transform_4, window_bounds = array<i64: 1, 2, 8, 1>}]} {
    %c0_i32 = arith.constant 0 : i32
    %0 = arith.cmpi eq, %arg1, %c0_i32 : i32
    %1 = arith.extui %0 : i1 to i32
    %c0_i32_0 = arith.constant 0 : i32
    %2 = arith.cmpi ne, %1, %c0_i32_0 : i32
    scf.if %2 {
      %cst_34 = arith.constant 0.000000e+00 : f32
      %32 = vector.broadcast %cst_34 : f32 to vector<2x8x8xf32>
      %c0_35 = arith.constant 0 : index
      %c0_36 = arith.constant 0 : index
      %c0_37 = arith.constant 0 : index
      %c0_38 = arith.constant 0 : index
      %33 = vector.load %arg4[%c0_35, %c0_36, %c0_37, %c0_38] : memref<1x2x8x8xf32, #tpu.memory_space<vmem>>, vector<1x2x8x8xf32>
      %34 = vector.shape_cast %33 : vector<1x2x8x8xf32> to vector<2x8x8xf32>
      %35 = vector.shape_cast %32 : vector<2x8x8xf32> to vector<1x2x8x8xf32>
      tpu.vector_store %arg4[%c0_35, %c0_36, %c0_37, %c0_38], %35 {strides = array<i32>} : memref<1x2x8x8xf32, #tpu.memory_space<vmem>>, vector<1x2x8x8xf32>,
      %cst_39 = arith.constant 0.000000e+00 : f32
      %36 = vector.broadcast %cst_39 : f32 to vector<2x8x1xf32>
      %c0_40 = arith.constant 0 : index
      %c0_41 = arith.constant 0 : index
      %c0_42 = arith.constant 0 : index
      %c0_43 = arith.constant 0 : index
      %37 = vector.load %arg5[%c0_40, %c0_41, %c0_42, %c0_43] : memref<1x2x8x1xf32, #tpu.memory_space<vmem>>, vector<1x2x8x1xf32>
      %38 = vector.shape_cast %37 : vector<1x2x8x1xf32> to vector<2x8x1xf32>
      %39 = vector.shape_cast %36 : vector<2x8x1xf32> to vector<1x2x8x1xf32>
      tpu.vector_store %arg5[%c0_40, %c0_41, %c0_42, %c0_43], %39 {strides = array<i32>} : memref<1x2x8x1xf32, #tpu.memory_space<vmem>>, vector<1x2x8x1xf32>,
      %cst_44 = arith.constant 0.000000e+00 : f32
      %40 = vector.broadcast %cst_44 : f32 to vector<2x8x1xf32>
      %c0_45 = arith.constant 0 : index
      %c0_46 = arith.constant 0 : index
      %c0_47 = arith.constant 0 : index
      %c0_48 = arith.constant 0 : index
      %41 = vector.load %arg6[%c0_45, %c0_46, %c0_47, %c0_48] : memref<1x2x8x1xf32, #tpu.memory_space<vmem>>, vector<1x2x8x1xf32>
      %42 = vector.shape_cast %41 : vector<1x2x8x1xf32> to vector<2x8x1xf32>
      %43 = vector.shape_cast %40 : vector<2x8x1xf32> to vector<1x2x8x1xf32>
      tpu.vector_store %arg6[%c0_45, %c0_46, %c0_47, %c0_48], %43 {strides = array<i32>} : memref<1x2x8x1xf32, #tpu.memory_space<vmem>>, vector<1x2x8x1xf32>,
    } else {
    }
    %c0 = arith.constant 0 : index
    %c0_1 = arith.constant 0 : index
    %c0_2 = arith.constant 0 : index
    %c0_3 = arith.constant 0 : index
    %3 = vector.load %arg2[%c0, %c0_1, %c0_2, %c0_3] : memref<1x2x8x64xf32, #tpu.memory_space<vmem>>, vector<1x2x8x64xf32>
    %4 = vector.shape_cast %3 : vector<1x2x8x64xf32> to vector<2x8x64xf32>
    %c0_4 = arith.constant 0 : index
    %c0_5 = arith.constant 0 : index
    %c0_6 = arith.constant 0 : index
    %c0_7 = arith.constant 0 : index
    %5 = vector.load %arg3[%c0_4, %c0_5, %c0_6, %c0_7] : memref<1x2x8x64xf32, #tpu.memory_space<vmem>>, vector<1x2x8x64xf32>
    %6 = vector.shape_cast %5 : vector<1x2x8x64xf32> to vector<2x8x64xf32>
    %c0_8 = arith.constant 0 : index
    %c0_9 = arith.constant 0 : index
    %c0_10 = arith.constant 0 : index
    %c0_11 = arith.constant 0 : index
    %7 = vector.load %arg4[%c0_8, %c0_9, %c0_10, %c0_11] : memref<1x2x8x8xf32, #tpu.memory_space<vmem>>, vector<1x2x8x8xf32>
    %8 = vector.shape_cast %7 : vector<1x2x8x8xf32> to vector<2x8x8xf32>
    "tpu.trace_start"() <{level = 10 : i32, message = "hcs,hds->hcd"}> : () -> ()
    %cst = arith.constant dense<0.000000e+00> : vector<2x8x8xf32>
    %9 = tpu.matmul %4, %6, %cst {dimension_numbers = #tpu.dot_dimension_numbers<[2], [2], [1], [1], [0, 0, 0, 1, 1, 1], [0], [0]>} : vector<2x8x64xf32>, vector<2x8x64xf32>, vector<2x8x8xf32> -> vector<2x8x8xf32>
    "tpu.trace_stop"() : () -> ()
    %10 = arith.addf %8, %9 : vector<2x8x8xf32>
    %c0_12 = arith.constant 0 : index
    %c0_13 = arith.constant 0 : index
    %c0_14 = arith.constant 0 : index
    %c0_15 = arith.constant 0 : index
    %11 = vector.load %arg4[%c0_12, %c0_13, %c0_14, %c0_15] : memref<1x2x8x8xf32, #tpu.memory_space<vmem>>, vector<1x2x8x8xf32>
    %12 = vector.shape_cast %11 : vector<1x2x8x8xf32> to vector<2x8x8xf32>
    %13 = vector.shape_cast %10 : vector<2x8x8xf32> to vector<1x2x8x8xf32>
    tpu.vector_store %arg4[%c0_12, %c0_13, %c0_14, %c0_15], %13 {strides = array<i32>} : memref<1x2x8x8xf32, #tpu.memory_space<vmem>>, vector<1x2x8x8xf32>,
    %c0_16 = arith.constant 0 : index
    %c0_17 = arith.constant 0 : index
    %c0_18 = arith.constant 0 : index
    %c0_19 = arith.constant 0 : index
    %14 = vector.load %arg5[%c0_16, %c0_17, %c0_18, %c0_19] : memref<1x2x8x1xf32, #tpu.memory_space<vmem>>, vector<1x2x8x1xf32>
    %15 = vector.shape_cast %14 : vector<1x2x8x1xf32> to vector<2x8x1xf32>
    %16 = arith.mulf %4, %4 : vector<2x8x64xf32>
    %cst_20 = arith.constant dense<0.000000e+00> : vector<2x8xf32>
    %17 = vector.multi_reduction <add>, %16, %cst_20 [2] : vector<2x8x64xf32> to vector<2x8xf32>
    %18 = vector.shape_cast %17 : vector<2x8xf32> to vector<2x8x1xf32>
    %19 = arith.addf %15, %18 : vector<2x8x1xf32>
    %c0_21 = arith.constant 0 : index
    %c0_22 = arith.constant 0 : index
    %c0_23 = arith.constant 0 : index
    %c0_24 = arith.constant 0 : index
    %20 = vector.load %arg5[%c0_21, %c0_22, %c0_23, %c0_24] : memref<1x2x8x1xf32, #tpu.memory_space<vmem>>, vector<1x2x8x1xf32>
    %21 = vector.shape_cast %20 : vector<1x2x8x1xf32> to vector<2x8x1xf32>
    %22 = vector.shape_cast %19 : vector<2x8x1xf32> to vector<1x2x8x1xf32>
    tpu.vector_store %arg5[%c0_21, %c0_22, %c0_23, %c0_24], %22 {strides = array<i32>} : memref<1x2x8x1xf32, #tpu.memory_space<vmem>>, vector<1x2x8x1xf32>,
    %c0_25 = arith.constant 0 : index
    %c0_26 = arith.constant 0 : index
    %c0_27 = arith.constant 0 : index
    %c0_28 = arith.constant 0 : index
    %23 = vector.load %arg6[%c0_25, %c0_26, %c0_27, %c0_28] : memref<1x2x8x1xf32, #tpu.memory_space<vmem>>, vector<1x2x8x1xf32>
    %24 = vector.shape_cast %23 : vector<1x2x8x1xf32> to vector<2x8x1xf32>
    %25 = arith.mulf %6, %6 : vector<2x8x64xf32>
    %cst_29 = arith.constant dense<0.000000e+00> : vector<2x8xf32>
    %26 = vector.multi_reduction <add>, %25, %cst_29 [2] : vector<2x8x64xf32> to vector<2x8xf32>
    %27 = vector.shape_cast %26 : vector<2x8xf32> to vector<2x8x1xf32>
    %28 = arith.addf %24, %27 : vector<2x8x1xf32>
    %c0_30 = arith.constant 0 : index
    %c0_31 = arith.constant 0 : index
    %c0_32 = arith.constant 0 : index
    %c0_33 = arith.constant 0 : index
    %29 = vector.load %arg6[%c0_30, %c0_31, %c0_32, %c0_33] : memref<1x2x8x1xf32, #tpu.memory_space<vmem>>, vector<1x2x8x1xf32>
    %30 = vector.shape_cast %29 : vector<1x2x8x1xf32> to vector<2x8x1xf32>
    %31 = vector.shape_cast %28 : vector<2x8x1xf32> to vector<1x2x8x1xf32>
    tpu.vector_store %arg6[%c0_30, %c0_31, %c0_32, %c0_33], %31 {strides = array<i32>} : memref<1x2x8x1xf32, #tpu.memory_space<vmem>>, vector<1x2x8x1xf32>,
    return
  }
  func.func @transform_0(%arg0: i32, %arg1: i32) -> (i32, i32, i32, i32) {
    %c0_i32 = arith.constant 0 : i32
    %c0_i32_0 = arith.constant 0 : i32
    %c0_i32_1 = arith.constant 0 : i32
    return %arg0, %c0_i32, %c0_i32_0, %arg1 : i32, i32, i32, i32
  }
  func.func @transform_1(%arg0: i32, %arg1: i32) -> (i32, i32, i32, i32) {
    %c1_i32 = arith.constant 1 : i32
    %c0_i32 = arith.constant 0 : i32
    %c0_i32_0 = arith.constant 0 : i32
    return %arg0, %c1_i32, %c0_i32, %arg1 : i32, i32, i32, i32
  }
  func.func @transform_2(%arg0: i32, %arg1: i32) -> (i32, i32, i32, i32) {
    %c0_i32 = arith.constant 0 : i32
    %c0_i32_0 = arith.constant 0 : i32
    %c0_i32_1 = arith.constant 0 : i32
    %c0_i32_2 = arith.constant 0 : i32
    return %arg0, %c0_i32, %c0_i32_0, %c0_i32_1 : i32, i32, i32, i32
  }
  func.func @transform_3(%arg0: i32, %arg1: i32) -> (i32, i32, i32, i32) {
    %c0_i32 = arith.constant 0 : i32
    %c0_i32_0 = arith.constant 0 : i32
    %c0_i32_1 = arith.constant 0 : i32
    %c0_i32_2 = arith.constant 0 : i32
    return %arg0, %c0_i32, %c0_i32_0, %c0_i32_1 : i32, i32, i32, i32
  }
  func.func @transform_4(%arg0: i32, %arg1: i32) -> (i32, i32, i32, i32) {
    %c0_i32 = arith.constant 0 : i32
    %c0_i32_0 = arith.constant 0 : i32
    %c0_i32_1 = arith.constant 0 : i32
    %c0_i32_2 = arith.constant 0 : i32
    return %arg0, %c0_i32, %c0_i32_0, %c0_i32_1 : i32, i32, i32, i32
  }
}

module attributes {stable_mosaic.version = 11 : i64} {
  func.func @apply_proj_kernel(%arg0: i32, %arg1: i32, %arg2: memref<1x16x16xf32, #tpu.memory_space<vmem>>, %arg3: memref<1x16x64xf32, #tpu.memory_space<vmem>>, %arg4: memref<1x16x64xf32, #tpu.memory_space<vmem>>, %arg5: memref<16x1xf32, #tpu.memory_space<vmem>>, %arg6: memref<1x16x64xf32, #tpu.memory_space<vmem>>) attributes {dimension_semantics = [#tpu.dimension_semantics<parallel>, #tpu.dimension_semantics<parallel>], iteration_bounds = array<i64: 2, 1>, scalar_prefetch = 0 : i64, scratch_operands = 0 : i64, tpu.core_type = #tpu.core_type<tc>, window_params = [{transform_indices = @transform_0, window_bounds = array<i64: 1, 16, 16>}, {transform_indices = @transform_1, window_bounds = array<i64: 1, 16, 64>}, {transform_indices = @transform_2, window_bounds = array<i64: 1, 16, 64>}, {pipeline_mode = #tpu.pipeline_mode<synchronous>, transform_indices = @transform_3, window_bounds = array<i64: 16, 1>}, {transform_indices = @transform_4, window_bounds = array<i64: 1, 16, 64>}]} {
    %c0 = arith.constant 0 : index
    %c0_0 = arith.constant 0 : index
    %c0_1 = arith.constant 0 : index
    %0 = vector.load %arg4[%c0, %c0_0, %c0_1] : memref<1x16x64xf32, #tpu.memory_space<vmem>>, vector<1x16x64xf32>
    %1 = vector.shape_cast %0 : vector<1x16x64xf32> to vector<16x64xf32>
    %c0_2 = arith.constant 0 : index
    %c0_3 = arith.constant 0 : index
    %c0_4 = arith.constant 0 : index
    %2 = vector.load %arg2[%c0_2, %c0_3, %c0_4] : memref<1x16x16xf32, #tpu.memory_space<vmem>>, vector<1x16x16xf32>
    %3 = vector.shape_cast %2 : vector<1x16x16xf32> to vector<16x16xf32>
    %c0_5 = arith.constant 0 : index
    %c0_6 = arith.constant 0 : index
    %c0_7 = arith.constant 0 : index
    %4 = vector.load %arg3[%c0_5, %c0_6, %c0_7] : memref<1x16x64xf32, #tpu.memory_space<vmem>>, vector<1x16x64xf32>
    %5 = vector.shape_cast %4 : vector<1x16x64xf32> to vector<16x64xf32>
    %cst = arith.constant dense<0.000000e+00> : vector<16x64xf32>
    %6 = tpu.matmul %3, %5, %cst {dimension_numbers = #tpu.dot_dimension_numbers<[1], [0], [0], [1], [0, 0, 1, 1], [], []>} : vector<16x16xf32>, vector<16x64xf32>, vector<16x64xf32> -> vector<16x64xf32>
    %7 = arith.addf %1, %6 : vector<16x64xf32>
    %c0_8 = arith.constant 0 : index
    %c0_9 = arith.constant 0 : index
    %8 = vector.load %arg5[%c0_8, %c0_9] : memref<16x1xf32, #tpu.memory_space<vmem>>, vector<16x1xf32>
    %9 = vector.broadcast %8 : vector<16x1xf32> to vector<16x64xf32>
    %10 = arith.addf %7, %9 : vector<16x64xf32>
    %c0_10 = arith.constant 0 : index
    %c0_11 = arith.constant 0 : index
    %c0_12 = arith.constant 0 : index
    %11 = vector.load %arg6[%c0_10, %c0_11, %c0_12] : memref<1x16x64xf32, #tpu.memory_space<vmem>>, vector<1x16x64xf32>
    %12 = vector.shape_cast %11 : vector<1x16x64xf32> to vector<16x64xf32>
    %13 = vector.shape_cast %10 : vector<16x64xf32> to vector<1x16x64xf32>
    tpu.vector_store %arg6[%c0_10, %c0_11, %c0_12], %13 {strides = array<i32>} : memref<1x16x64xf32, #tpu.memory_space<vmem>>, vector<1x16x64xf32>,
    return
  }
  func.func @transform_0(%arg0: i32, %arg1: i32) -> (i32, i32, i32) {
    %c0_i32 = arith.constant 0 : i32
    %c0_i32_0 = arith.constant 0 : i32
    %c0_i32_1 = arith.constant 0 : i32
    return %arg0, %c0_i32, %c0_i32_0 : i32, i32, i32
  }
  func.func @transform_1(%arg0: i32, %arg1: i32) -> (i32, i32, i32) {
    %c2_i32 = arith.constant 2 : i32
    %c0_i32 = arith.constant 0 : i32
    return %arg0, %c2_i32, %arg1 : i32, i32, i32
  }
  func.func @transform_2(%arg0: i32, %arg1: i32) -> (i32, i32, i32) {
    %c0_i32 = arith.constant 0 : i32
    %c0_i32_0 = arith.constant 0 : i32
    return %arg0, %c0_i32, %arg1 : i32, i32, i32
  }
  func.func @transform_3(%arg0: i32, %arg1: i32) -> (i32, i32) {
    %c0_i32 = arith.constant 0 : i32
    %c0_i32_0 = arith.constant 0 : i32
    %c0_i32_1 = arith.constant 0 : i32
    return %c0_i32, %c0_i32_0 : i32, i32
  }
  func.func @transform_4(%arg0: i32, %arg1: i32) -> (i32, i32, i32) {
    %c0_i32 = arith.constant 0 : i32
    %c0_i32_0 = arith.constant 0 : i32
    return %arg0, %c0_i32, %arg1 : i32, i32, i32
  }
}

</mosaic_0001>

<bundles_post_ra>
// kernel: transformer_block_forward.4
= control target key start
LH: loop header
LB: loop body
LE: loop exit
PB: predicated region body
PF: predicated region fallthrough
CT: control target
= control target key end

     0   :  { %s596_s12 = smov 0   ;;  %s598_s13 = smov 0   ;;  %s685_s0 = inlined_call_operand.vmem [shape: f32[2,16,64], index: 0, kind: input, shape index: {}]   ;;  %s686_s1 = inlined_call_operand.vmem [shape: f32[48,16], index: 1, kind: input, shape index: {}]   ;;  %s687_s2 = inlined_call_operand.vmem [shape: f32[48,1], index: 2, kind: input, shape index: {}]   ;;  %s688_s3 = inlined_call_operand.vmem [shape: f32[2,48,64], index: 3, kind: output, shape index: {}]  }
   0x1   :  { %s600_s14 = smov 0  }
   0x2 LB: > { %s25_s15 = sadd.s32 1, %s569_s13  ;;  %p483_p0 = scmp.ge.s32.totalorder %s573_s14, 1  ;;  %s573_s14 = sphi %s600_s14, %s13_s14   ;;  %s569_s13 = sphi %s598_s13, %s690_s13   ;;  %s565_s12 = sphi %s596_s12, %s689_s12  }
   0x3   : > { %p27_p1 = scmp.ge.s32.totalorder %s25_s15, 2  ;;  %p156_p2 = scmp.lt.s32.totalorder %s573_s14, 3 }
   0x5   : > { %s692_s15 = smov (%p27_p1, %s25_s15), 0  ;;  %p157_p3 = pnand %p483_p0, %p156_p2 }
   0x6   : > { %p186_p4 = scmp.lt.s32.totalorder (!%p157_p3), %s565_s12, 1 }
   0x7   : > { %160 = sbr.rel (%p157_p3) target bundleno = 278 (0x116), region = 32 }
   0xc   : > { %v234_v0 = vld [vmem:[%s686_s1] sm:$0xff]  ;;  %vm276_vm0 = vcmask 130048   ;;  %v236_v1 = vld [vmem:[%s686_s1 + $0x10] sm:$0xff]  ;;  %s694_s12 = smov (!%p186_p4, %s565_s12), 1  ;;  %v575_v2 = vmov 0   ;;  %vm204_vm1 = vcmask 523264  }
   0xd   : > { %508 = vmatprep.mubr.msk.f32.mxu0 %vm276_vm0, %v234_v0  ;;  %511 = vmatprep.mubr.msk.f32.mxu1 %vm276_vm0, %v236_v1  ;;  %v242_v3 = vld [vmem:[%s687_s2 + $0x10] sm:$0xff]  ;;  %v240_v4 = vld [vmem:[%s687_s2] sm:$0xff]  ;;  %s495_s24 = sshll.u32 %s694_s12, 4  ;;  %v243_v5 = vld [vmem:[%s687_s2 + $0x18] sm:$0xff]  ;;  %s521_s21 = smul.u32 48, %s694_s12 }
   0xe   : > { %548 = vset.pattern.permute.xlu1 %v575_v2  ;;  %547 = vset.pattern.permute.xlu0 %v575_v2  ;;  %v241_v6 = vld [vmem:[%s687_s2 + $0x8] sm:$0xff]  ;;  %s193_s4 = scalar_lea.vmem %s685_s0, %s495_s24  ;;  %v244_v13 = vld [vmem:[%s687_s2 + $0x20] sm:$0xff]  ;;  %v237_v40 = vld [vmem:[%s686_s1 + $0x18] sm:$0xff] }
   0xf   : > { %258 = vperm.xlu1 %548, %v242_v3   ;;  %248 = vperm.xlu0 %547, %v240_v4   ;;  %v202_v7 = vld [vmem:[%s193_s4] sm:$0xff]  ;;  %v203_v8 = vld [vmem:[%s193_s4 + $0x8] sm:$0xff]  ;;  %s201_s24 = scalar_lea.vmem %s688_s3, %s521_s21 }
  0x10   : > { %v205_v9 = vsel %vm204_vm1, %v202_v7, 0.0  ;;  %v206_v10 = vsel %vm204_vm1, %v203_v8, 0.0  ;;  %v245_v12 = vld [vmem:[%s687_s2 + $0x28] sm:$0xff]  ;;  %v238_v41 = vld [vmem:[%s686_s1 + $0x20] sm:$0xff] }
  0x11   : > { %v207_v11 = vadd.f32 %v206_v10, %v205_v9  ;;  %v235_v39 = vld [vmem:[%s686_s1 + $0x8] sm:$0xff] }
  0x12   : > { %v239_v42 = vld [vmem:[%s686_s1 + $0x28] sm:$0xff] }
  0x13   : > { %263 = vperm.xlu1 %548, %v243_v5   ;;  %253 = vperm.xlu0 %547, %v241_v6   ;;  %v208_v14 = vrot.slane %v207_v11, 4 }
  0x15   : > { %v209_v15 = vadd.f32 %v208_v14, %v207_v11 }
  0x17   : > { %273 = vperm.xlu1 %548, %v245_v12   ;;  %268 = vperm.xlu0 %547, %v244_v13   ;;  %v210_v16 = vrot.slane %v209_v15, 2 }
  0x19   : > { %v211_v17 = vadd.f32 %v210_v16, %v209_v15 }
  0x1b   : > { %v212_v18 = vrot.slane %v211_v17, 1 }
  0x1d   : > { %v213_v19 = vadd.f32 %v212_v18, %v211_v17 }
  0x1f   : > { %v215_v20 = vmul.f32 0.0625, %v213_v19 }
  0x21   : > { %v216_v21 = vsub.f32 %v202_v7, %v215_v20  ;;  %v217_v22 = vsub.f32 %v203_v8, %v215_v20 }
  0x23   : > { %v218_v23 = vmul.f32 %v216_v21, %v216_v21  ;;  %v219_v24 = vmul.f32 %v217_v22, %v217_v22 }
  0x25   : > { %v220_v25 = vsel %vm204_vm1, %v218_v23, 0.0  ;;  %v221_v26 = vsel %vm204_vm1, %v219_v24, 0.0 }
  0x26   : > { %v222_v27 = vadd.f32 %v221_v26, %v220_v25 }
  0x28   : > { %v223_v28 = vrot.slane %v222_v27, 4 }
  0x2a   : > { %v224_v29 = vadd.f32 %v223_v28, %v222_v27 }
  0x2c   : > { %v225_v30 = vrot.slane %v224_v29, 2 }
  0x2e   : > { %v226_v31 = vadd.f32 %v225_v30, %v224_v29 }
  0x30   : > { %v227_v32 = vrot.slane %v226_v31, 1 }
  0x32   : > { %v228_v33 = vadd.f32 %v227_v32, %v226_v31 }
  0x34   : > { %v229_v34 = vmul.f32 0.0625, %v228_v33 }
  0x36   : > { %v230_v35 = vadd.f32 1e-05, %v229_v34 }
  0x38   : > { %549 = vrsqrt.f32 %v230_v35 }
  0x45   : > { %v550_v36 = vpop.eup %549 }
  0x46   : > { %v233_v37 = vmul.f32 %v550_v36, %v217_v22  ;;  %v232_v38 = vmul.f32 %v550_v36, %v216_v21 }
  0x48   : > { %504 = vmatprep.subr.mxu0 %v233_v37  ;;  %517 = vmatprep.subr.mxu1 %v233_v37 }
  0x49   : > { %505 = vmatpush3.msra.mxu0 %v233_v37  ;;  %519 = vmatpush3.msra.mxu1 %v233_v37 }
  0x4a   : > { %506 = vmatprep.subr.mxu0 %v232_v38  ;;  %518 = vmatprep.subr.mxu1 %v232_v38 }
  0x4b   : > { %507 = vmatpush3.msra.mxu0 %v232_v38  ;;  %520 = vmatpush3.msra.mxu1 %v232_v38 }
  0x4c   : > { %509 = vmatmul.mubr.msk.f32.vlgmr.msra.gmra.mxu0 %vm276_vm0, %v235_v39  ;;  %512 = vmatmul.mubr.msk.f32.vlgmr.msra.gmra.mxu1 %vm276_vm0, %v237_v40 }
  0x4d   : > { %514 = vmatprep.mubr.msk.f32.mxu1 %vm276_vm0, %v238_v41 }
  0x50   : > { %515 = vmatmul.mubr.msk.f32.gmra.mxu1 %vm276_vm0, %v239_v42 }
  0x8a   : > { %v259_v43 = vpop.permute.xlu1 %258  ;;  %v249_v44 = vpop.permute.xlu0 %248 }
  0x8e   : > { %v264_v45 = vpop.permute.xlu1 %263  ;;  %v254_v46 = vpop.permute.xlu0 %253 }
  0x92   : > { %v274_v55 = vpop.permute.xlu1 %273  ;;  %v269_v58 = vpop.permute.xlu0 %268 }
 0x10c   : > { %v510_v47 = vpop.f32.mrf.mxu0  ;;  %v513_v48 = vpop.f32.mrf.mxu1 }
 0x10d   : > { %v367_v49 = vadd.f32 %v510_v47, %v254_v46  ;;  %v377_v50 = vadd.f32 %v513_v48, %v264_v45 }
 0x10e   : > { %v361_v51 = vpop.f32.mrf.mxu0  ;;  %v371_v52 = vpop.f32.mrf.mxu1 }
 0x10f   : > { %391 = vst.msk [vmem:[%s201_s24 + $0x8] sm:$0xff] %vm204_vm1, %v367_v49  ;;  %393 = vst.msk [vmem:[%s201_s24 + $0x18] sm:$0xff] %vm204_vm1, %v377_v50  ;;  %v362_v53 = vadd.f32 %v361_v51, %v249_v44  ;;  %v372_v54 = vadd.f32 %v371_v52, %v259_v43 }
 0x110   : > { %v516_v56 = vpop.f32.mrf.mxu1 }
 0x111   : > { %390 = vst.msk [vmem:[%s201_s24] sm:$0xff] %vm204_vm1, %v362_v53  ;;  %392 = vst.msk [vmem:[%s201_s24 + $0x10] sm:$0xff] %vm204_vm1, %v372_v54  ;;  %v387_v57 = vadd.f32 %v516_v56, %v274_v55 }
 0x112   : > { %v381_v59 = vpop.f32.mrf.mxu1 }
 0x113   : > { %395 = vst.msk [vmem:[%s201_s24 + $0x28] sm:$0xff] %vm204_vm1, %v387_v57  ;;  %v382_v60 = vadd.f32 %v381_v59, %v269_v58 }
 0x115   : > { %394 = vst.msk [vmem:[%s201_s24 + $0x20] sm:$0xff] %vm204_vm1, %v382_v60 }
 0x116 PF: > { %s13_s14 = sadd.s32 1, %s573_s14   ;;  %s689_s12 = smov %s569_s13 }
 0x117   : > { %p10_p5 = scmp.ge.s32.totalorder %s13_s14, 4   ;;  %s690_s13 = smov %s692_s15 }
 0x119   :  { %12 = sbr.rel (!%p10_p5) target bundleno = 2 (0x2), region = 62 }

// kernel: transformer_block_forward.6
= control target key start
LH: loop header
LB: loop body
LE: loop exit
PB: predicated region body
PF: predicated region fallthrough
CT: control target
= control target key end

     0   :  { %s757_s15 = smov 0   ;;  %s759_s16 = smov 0   ;;  %s832_s0 = inlined_call_operand.vmem [shape: f32[2,6,8,64], index: 0, kind: input, shape index: {}, may-alias: {0,1}]   ;;  %s833_s1 = inlined_call_operand.vmem [shape: f32[2,6,8,64], index: 1, kind: input, shape index: {}, may-alias: {0,1}]   ;;  %s834_s2 = inlined_call_operand.vmem [shape: f32[2,2,8,8], index: 2, kind: output, shape index: {0}]   ;;  %s835_s3 = inlined_call_operand.vmem [shape: f32[2,2,8,1], index: 3, kind: output, shape index: {1}]   ;;  %s836_s4 = inlined_call_operand.vmem [shape: f32[2,2,8,1], index: 4, kind: output, shape index: {2}]  }
   0x1   :  { %s761_s17 = smov 0  }
   0x2 LB: > { %s27_s18 = sadd.s32 1, %s724_s16  ;;  %p645_p0 = scmp.ge.s32.totalorder %s728_s17, 1  ;;  %s728_s17 = sphi %s761_s17, %s15_s17   ;;  %s724_s16 = sphi %s759_s16, %s838_s16   ;;  %s720_s15 = sphi %s757_s15, %s837_s15  }
   0x3   : > { %p29_p1 = scmp.ge.s32.totalorder %s27_s18, 2  ;;  %p200_p2 = scmp.lt.s32.totalorder %s728_s17, 3 }
   0x5   : > { %s840_s18 = smov (%p29_p1, %s27_s18), 0  ;;  %p201_p3 = pnand %p645_p0, %p200_p2 }
   0x6   : > { %p248_p4 = scmp.lt.s32.totalorder (!%p201_p3), %s720_s15, 1 }
   0x7   : > { %204 = sbr.rel (%p201_p3) target bundleno = 216 (0xd8), region = 28 }
   0xc   : > { %v730_v0 = vmov 0.0   ;;  %s842_s15 = smov (!%p248_p4, %s720_s15), 1  ;;  %vm731_vm0 = vmmov 0   ;;  %vm287_vm1 = vcmask 7168   ;;  %vm298_vm2 = vcmask 523264  }
   0xd   : > { %669 = vmatprep.subr.mxu0 %v730_v0  ;;  %674 = vmatprep.subr.mxu1 %v730_v0  ;;  %s679_s19 = smul.u32 48, %s842_s15  ;;  %s775_s20 = sshll.u32 %s842_s15, 4  ;;  %vm284_vm3 = vcmask 64512  }
   0xe   : > { %671 = vmatprep.mubr.msk.f32.mxu0 %vm731_vm0, %v730_v0  ;;  %676 = vmatprep.mubr.msk.f32.mxu1 %vm731_vm0, %v730_v0  ;;  %s781_s23 = scalar_lea.vmem %s836_s4, %s775_s20  ;;  %s274_s6 = scalar_lea.vmem %s835_s3, %s775_s20 }
   0xf   : > { %s569_s26 = scalar_lea.vmem %s833_s1, %s679_s19  ;;  %s255_s29 = scalar_lea.vmem %s832_s0, %s679_s19  ;;  %290 = vst.msk [vmem:[%s781_s23] sm:$0xff] %vm287_vm1, %v730_v0  ;;  %291 = vst.msk [vmem:[%s781_s23 + $0x8] sm:$0xff] %vm287_vm1, %v730_v0 }
  0x10   : > { %v654_v1 = vld [vmem:[%s569_s26 + $0x10] sm:$0xff]  ;;  %v655_v2 = vld [vmem:[%s569_s26 + $0x18] sm:$0xff]  ;;  %v292_v3 = vld [vmem:[%s255_s29] sm:$0xff]  ;;  %288 = vst.msk [vmem:[%s274_s6] sm:$0xff] %vm287_vm1, %v730_v0  ;;  %s269_s9 = scalar_lea.vmem %s834_s2, %s775_s20 }
  0x11   : > { %670 = vmatpush3.xpose.msk.msra.mxu0 %vm298_vm2, %v654_v1  ;;  %675 = vmatpush3.xpose.msk.msra.mxu1 %vm298_vm2, %v655_v2  ;;  %v293_v4 = vld [vmem:[%s255_s29 + $0x8] sm:$0xff]  ;;  %v473_v5 = vmul.f32 %v654_v1, %v654_v1  ;;  %v458_v6 = vmul.f32 %v292_v3, %v292_v3  ;;  %v474_v7 = vmul.f32 %v655_v2, %v655_v2 }
  0x12   : > { %v459_v8 = vmul.f32 %v293_v4, %v293_v4  ;;  %289 = vst.msk [vmem:[%s274_s6 + $0x8] sm:$0xff] %vm287_vm1, %v730_v0 }
  0x13   : > { %v475_v9 = vsel %vm298_vm2, %v473_v5, 0.0  ;;  %v460_v10 = vsel %vm298_vm2, %v458_v6, 0.0  ;;  %v478_v11 = vsel %vm298_vm2, %v474_v7, 0.0  ;;  %286 = vst.msk [vmem:[%s269_s9 + $0x8] sm:$0xff] %vm284_vm3, %v730_v0  ;;  %285 = vst.msk [vmem:[%s269_s9] sm:$0xff] %vm284_vm3, %v730_v0 }
  0x14   : > { %672 = vmatmul.mubr.msk.f32.vlgmr.msra.gmra.mxu0 %vm298_vm2, %v292_v3  ;;  %677 = vmatmul.mubr.msk.f32.vlgmr.msra.gmra.mxu1 %vm298_vm2, %v293_v4  ;;  %v463_v12 = vsel %vm298_vm2, %v459_v8, 0.0 }
  0x15   : > { %476 = vadd.xlane.f32.xlu1 %v475_v9  ;;  %461 = vadd.xlane.f32.xlu0 %v460_v10 }
  0x16   : > { %v471_v13 = vld [vmem:[%s781_s23] sm:$0xff]  ;;  %v472_v19 = vld [vmem:[%s781_s23 + $0x8] sm:$0xff] }
  0x17   : > { %v456_v14 = vld [vmem:[%s274_s6] sm:$0xff] }
  0x19   : > { %479 = vadd.xlane.f32.xlu1 %v478_v11  ;;  %464 = vadd.xlane.f32.xlu0 %v463_v12  ;;  %v457_v20 = vld [vmem:[%s274_s6 + $0x8] sm:$0xff] }
  0x1a   : > { %v297_v25 = vld [vmem:[%s269_s9 + $0x8] sm:$0xff]  ;;  %v296_v26 = vld [vmem:[%s269_s9] sm:$0xff] }
  0x9e   : > { %v477_v15 = vpop.xlane.xlu1 %476  ;;  %v462_v16 = vpop.xlane.xlu0 %461 }
  0x9f   : > { %v481_v17 = vadd.f32 %v477_v15, %v471_v13  ;;  %v466_v18 = vadd.f32 %v462_v16, %v456_v14 }
  0xa1   : > { %483 = vst.msk [vmem:[%s781_s23] sm:$0xff] %vm287_vm1, %v481_v17  ;;  %469 = vst.msk [vmem:[%s274_s6] sm:$0xff] %vm287_vm1, %v466_v18 }
  0xa2   : > { %v480_v21 = vpop.xlane.xlu1 %479  ;;  %v465_v22 = vpop.xlane.xlu0 %464 }
  0xa3   : > { %v482_v23 = vadd.f32 %v480_v21, %v472_v19  ;;  %v467_v24 = vadd.f32 %v465_v22, %v457_v20 }
  0xa5   : > { %484 = vst.msk [vmem:[%s781_s23 + $0x8] sm:$0xff] %vm287_vm1, %v482_v23  ;;  %470 = vst.msk [vmem:[%s274_s6 + $0x8] sm:$0xff] %vm287_vm1, %v467_v24 }
  0xd4   : > { %v447_v27 = vpop.f32.mrf.mxu1  ;;  %v371_v28 = vpop.f32.mrf.mxu0 }
  0xd5   : > { %v452_v29 = vadd.f32 %v447_v27, %v297_v25  ;;  %v451_v30 = vadd.f32 %v371_v28, %v296_v26 }
  0xd6   : > { %v673_v31 = vpop.f32.mrf.mxu0  ;;  %v678_v32 = vpop.f32.mrf.mxu1 }
  0xd7   : > { %455 = vst.msk [vmem:[%s269_s9 + $0x8] sm:$0xff] %vm284_vm3, %v452_v29  ;;  %454 = vst.msk [vmem:[%s269_s9] sm:$0xff] %vm284_vm3, %v451_v30 }
  0xd8 PF: > { %s15_s17 = sadd.s32 1, %s728_s17   ;;  %s837_s15 = smov %s724_s16 }
  0xd9   : > { %p12_p5 = scmp.ge.s32.totalorder %s15_s17, 4   ;;  %s838_s16 = smov %s840_s18 }
  0xdb   :  { %14 = sbr.rel (!%p12_p5) target bundleno = 2 (0x2), region = 89 }

// kernel: transformer_block_forward.7
= control target key start
LH: loop header
LB: loop body
LE: loop exit
PB: predicated region body
PF: predicated region fallthrough
CT: control target
= control target key end

     0   :  { %s614_s15 = smov 0   ;;  %s616_s16 = smov 0   ;;  %s659_s0 = inlined_call_operand.vmem [shape: f32[2,16,16], index: 0, kind: input, shape index: {}]   ;;  %s660_s1 = inlined_call_operand.vmem [shape: f32[2,48,64], index: 1, kind: input, shape index: {}]   ;;  %s661_s2 = inlined_call_operand.vmem [shape: f32[2,16,64], index: 2, kind: input, shape index: {}]   ;;  %s662_s3 = inlined_call_operand.vmem [shape: f32[16,1], index: 3, kind: input, shape index: {}]   ;;  %s663_s4 = inlined_call_operand.vmem [shape: f32[2,16,64], index: 4, kind: output, shape index: {}]  }
   0x1   :  { %s618_s17 = smov 0  }
   0x2 LB: > { %s26_s18 = sadd.s32 1, %s582_s16  ;;  %p510_p0 = scmp.ge.s32.totalorder %s586_s17, 1  ;;  %s586_s17 = sphi %s618_s17, %s14_s17   ;;  %s582_s16 = sphi %s616_s16, %s665_s16   ;;  %s578_s15 = sphi %s614_s15, %s664_s15  }
   0x3   : > { %p28_p1 = scmp.ge.s32.totalorder %s26_s18, 2  ;;  %p207_p2 = scmp.lt.s32.totalorder %s586_s17, 3 }
   0x5   : > { %s667_s18 = smov (%p28_p1, %s26_s18), 0  ;;  %p208_p3 = pnand %p510_p0, %p207_p2 }
   0x6   : > { %p253_p4 = scmp.lt.s32.totalorder (!%p208_p3), %s578_s15, 1 }
   0x7   : > { %211 = sbr.rel (%p208_p3) target bundleno = 221 (0xdd), region = 36 }
   0xc   : > { %v373_v0 = vld [vmem:[%s662_s3] sm:$0xff]  ;;  %v588_v1 = vmov 0   ;;  %s669_s15 = smov (!%p253_p4, %s578_s15), 1  ;;  %v374_v2 = vld [vmem:[%s662_s3 + $0x8] sm:$0xff]  ;;  %vm289_vm0 = vcmask 130048   ;;  %vm387_vm1 = vcmask 523264  }
   0xd   : > { %563 = vset.pattern.permute.xlu0 %v588_v1  ;;  %s513_s23 = smul.u32 48, %s669_s15  ;;  %s524_s24 = sshll.u32 %s669_s15, 4 }
   0xe   : > { %377 = vperm.xlu0 %563, %v373_v0   ;;  %s257_s27 = scalar_lea.vmem %s659_s0, %s524_s24  ;;  %s274_s7 = scalar_lea.vmem %s661_s2, %s524_s24 }
   0xf   : > { %s448_s30 = scalar_lea.vmem %s660_s1, %s513_s23  ;;  %v285_v3 = vld [vmem:[%s257_s27] sm:$0xff]  ;;  %v286_v6 = vld [vmem:[%s257_s27 + $0x8] sm:$0xff]  ;;  %s282_s10 = scalar_lea.vmem %s663_s4, %s524_s24 }
  0x10   : > { %v519_v4 = vld [vmem:[%s448_s30 + $0x28] sm:$0xff]  ;;  %v518_v5 = vld [vmem:[%s448_s30 + $0x20] sm:$0xff]  ;;  %535 = vmatprep.mubr.msk.f32.mxu0 %vm289_vm0, %v285_v3 }
  0x11   : > { %531 = vmatprep.subr.mxu0 %v519_v4  ;;  %v284_v8 = vld [vmem:[%s274_s7 + $0x8] sm:$0xff]  ;;  %v283_v10 = vld [vmem:[%s274_s7] sm:$0xff] }
  0x12   : > { %382 = vperm.xlu0 %563, %v374_v2   ;;  %532 = vmatpush3.msra.mxu0 %v519_v4 }
  0x13   : > { %533 = vmatprep.subr.mxu0 %v518_v5 }
  0x14   : > { %534 = vmatpush3.msra.mxu0 %v518_v5 }
  0x15   : > { %536 = vmatmul.mubr.msk.f32.vlgmr.msra.gmra.mxu0 %vm289_vm0, %v286_v6 }
  0x89   : > { %v378_v7 = vpop.permute.xlu0 %377 }
  0x8d   : > { %v383_v12 = vpop.permute.xlu0 %382 }
  0xd5   : > { %v537_v9 = vpop.f32.mrf.mxu0 }
  0xd6   : > { %v372_v11 = vadd.f32 %v537_v9, %v284_v8 }
  0xd7   : > { %v362_v13 = vpop.f32.mrf.mxu0 }
  0xd8   : > { %v386_v14 = vadd.f32 %v383_v12, %v372_v11  ;;  %v371_v15 = vadd.f32 %v362_v13, %v283_v10 }
  0xda   : > { %389 = vst.msk [vmem:[%s282_s10 + $0x8] sm:$0xff] %vm387_vm1, %v386_v14  ;;  %v385_v16 = vadd.f32 %v378_v7, %v371_v15 }
  0xdc   : > { %388 = vst.msk [vmem:[%s282_s10] sm:$0xff] %vm387_vm1, %v385_v16 }
  0xdd PF: > { %s14_s17 = sadd.s32 1, %s586_s17   ;;  %s664_s15 = smov %s582_s16 }
  0xde   : > { %p11_p5 = scmp.ge.s32.totalorder %s14_s17, 4   ;;  %s665_s16 = smov %s667_s18 }
  0xe0   :  { %13 = sbr.rel (!%p11_p5) target bundleno = 2 (0x2), region = 72 }

// kernel: transformer_block_forward.5
= control target key start
LH: loop header
LB: loop body
LE: loop exit
PB: predicated region body
PF: predicated region fallthrough
CT: control target
= control target key end

     0   :  { %s6380_s12 = smov 0   ;;  %s6382_s13 = smov 0   ;;  %s13573_s0 = inlined_call_operand.vmem [shape: f32[2,48,8,8], index: 0, kind: input, shape index: {}]   ;;  %s13574_s1 = inlined_call_operand.vmem [shape: f32[48,3,3], index: 1, kind: input, shape index: {}]   ;;  %s13575_s2 = inlined_call_operand.vmem [shape: f32[48,1,1], index: 2, kind: input, shape index: {}]   ;;  %s13576_s3 = inlined_call_operand.vmem [shape: f32[2,48,8,8], index: 3, kind: output, shape index: {}]  }
   0x1   :  { %14075 = sst [smem:[#allocation363_spill]] %s13573_s0  ;;  %s6384_s14 = smov 0  }
   0x2   :  { %14076 = sst [smem:[#allocation364_spill]] %s13574_s1 }
   0x3   :  { %14077 = sst [smem:[#allocation365_spill]] %s13575_s2 }
   0x4   :  { %14078 = sst [smem:[#allocation366_spill]] %s13576_s3 }
   0x5 LB: > { %14079 = sst [smem:[#allocation2_spill]] %s6349_s13  ;;  %s25_s15 = sadd.s32 1, %s6349_s13  ;;  %s6353_s14 = sphi %s6384_s14, %s13_s14   ;;  %s6349_s13 = sphi %s6382_s13, %s16213_s13   ;;  %s6345_s12 = sphi %s6380_s12, %s16212_s12  }
   0x6   : > { %14080 = sst [smem:[#allocation3_spill]] %s6353_s14  ;;  %p5189_p0 = scmp.ge.s32.totalorder %s6353_s14, 1 }
   0x7   : > { %p27_p1 = scmp.ge.s32.totalorder %s25_s15, 2  ;;  %p179_p2 = scmp.lt.s32.totalorder %s6353_s14, 3 }
   0x9   : > { %s16215_s15 = smov (%p27_p1, %s25_s15), 0  ;;  %p180_p3 = pnand %p5189_p0, %p179_p2 }
   0xa   : > { %14081 = sst [smem:[#allocation4_spill]] %s16215_s15 }
   0xb   : > { %183 = sbr.rel (%p180_p3) target bundleno = 1435 (0x59b), region = 32 }
  0x10   : > { %p221_p4 = scmp.lt.s32.totalorder %s6345_s12, 1  ;;  %s14083_s0 = sld [smem:[#allocation363_spill]]  ;;  %vm351_vm0 = vcmask 1047616   ;;  %vm5020_vm5 = vcmask 64512  }
  0x11   : > { %s6355_s20 = smov 8   ;;  %s14085_s1 = sld [smem:[#allocation364_spill]] }
  0x12   : > { %s16217_s12 = smov (!%p221_p4, %s6345_s12), 1  ;;  %s6356_s18 = smov 121  }
  0x13   : > { %14082 = sst [smem:[#allocation5_spill]] %s16217_s12  ;;  %s13655_s16 = smul.u32 384, %s16217_s12 }
  0x14   : > { %s13656_s9 = smov 127  }
  0x16   : > { %s6406_s19 = scalar_lea.vmem %s14083_s0, %s13655_s16 }
  0x17   : > { %14084 = sst [smem:[#allocation6_spill]] %s6406_s19  ;;  %v6409_v0 = vld [vmem:[%s6406_s19] sm:$0xff]  ;;  %v6412_v1 = vld [vmem:[%s6406_s19 + $0x10] sm:$0xff]  ;;  %v6419_v2 = vld [vmem:[%s6406_s19 + $0x8] sm:$0xff] }
  0x18   : > { %352 = vrot.lane.b32.xlu0 %v6409_v0, %s6355_s20  ;;  %358 = vrot.lane.b32.xlu1 %v6412_v1, %s6355_s20  ;;  %v6422_v3 = vld [vmem:[%s6406_s19 + $0x18] sm:$0xff]  ;;  %v6429_v4 = vld [vmem:[%s6406_s19 + $0x20] sm:$0xff] }
  0x19   : > { %v6432_v5 = vld [vmem:[%s6406_s19 + $0x28] sm:$0xff]  ;;  %v6439_v6 = vld [vmem:[%s6406_s19 + $0x30] sm:$0xff]  ;;  %v6442_v7 = vld [vmem:[%s6406_s19 + $0x38] sm:$0xff] }
  0x1a   : > { %v6449_v8 = vld [vmem:[%s6406_s19 + $0x40] sm:$0xff]  ;;  %v6452_v9 = vld [vmem:[%s6406_s19 + $0x48] sm:$0xff]  ;;  %v6459_v10 = vld [vmem:[%s6406_s19 + $0x50] sm:$0xff] }
  0x1b   : > { %v6462_v11 = vld [vmem:[%s6406_s19 + $0x58] sm:$0xff]  ;;  %v6469_v12 = vld [vmem:[%s6406_s19 + $0x60] sm:$0xff]  ;;  %v6472_v13 = vld [vmem:[%s6406_s19 + $0x68] sm:$0xff] }
  0x1c   : > { %355 = vrot.lane.b32.xlu0 %v6419_v2, %s6355_s20  ;;  %361 = vrot.lane.b32.xlu1 %v6422_v3, %s6355_s20  ;;  %v6479_v14 = vld [vmem:[%s6406_s19 + $0x70] sm:$0xff]  ;;  %v6482_v15 = vld [vmem:[%s6406_s19 + $0x78] sm:$0xff] }
  0x1d   : > { %v6489_v16 = vld [vmem:[%s6406_s19 + $0x80] sm:$0xff]  ;;  %v6492_v17 = vld [vmem:[%s6406_s19 + $0x88] sm:$0xff]  ;;  %v6499_v18 = vld [vmem:[%s6406_s19 + $0x90] sm:$0xff] }
  0x1e   : > { %v6502_v19 = vld [vmem:[%s6406_s19 + $0x98] sm:$0xff]  ;;  %v6509_v20 = vld [vmem:[%s6406_s19 + $0xa0] sm:$0xff]  ;;  %v6512_v21 = vld [vmem:[%s6406_s19 + $0xa8] sm:$0xff] }
  0x1f   : > { %v6519_v22 = vld [vmem:[%s6406_s19 + $0xb0] sm:$0xff]  ;;  %v6522_v23 = vld [vmem:[%s6406_s19 + $0xb8] sm:$0xff]  ;;  %v6529_v24 = vld [vmem:[%s6406_s19 + $0xc0] sm:$0xff] }
  0x20   : > { %364 = vrot.lane.b32.xlu0 %v6429_v4, %s6355_s20  ;;  %367 = vrot.lane.b32.xlu1 %v6432_v5, %s6355_s20  ;;  %v6532_v25 = vld [vmem:[%s6406_s19 + $0xc8] sm:$0xff]  ;;  %v6539_v26 = vld [vmem:[%s6406_s19 + $0xd0] sm:$0xff] }
  0x21   : > { %v6542_v27 = vld [vmem:[%s6406_s19 + $0xd8] sm:$0xff]  ;;  %v6549_v28 = vld [vmem:[%s6406_s19 + $0xe0] sm:$0xff]  ;;  %v6552_v29 = vld [vmem:[%s6406_s19 + $0xe8] sm:$0xff] }
  0x22   : > { %v6559_v30 = vld [vmem:[%s6406_s19 + $0xf0] sm:$0xff]  ;;  %v6562_v31 = vld [vmem:[%s6406_s19 + $0xf8] sm:$0xff]  ;;  %v6569_v32 = vld [vmem:[%s6406_s19 + $0x100] sm:$0xff] }
  0x23   : > { %v6572_v33 = vld [vmem:[%s6406_s19 + $0x108] sm:$0xff]  ;;  %v6579_v34 = vld [vmem:[%s6406_s19 + $0x110] sm:$0xff]  ;;  %v6582_v35 = vld [vmem:[%s6406_s19 + $0x118] sm:$0xff] }
  0x24   : > { %370 = vrot.lane.b32.xlu0 %v6439_v6, %s6355_s20  ;;  %373 = vrot.lane.b32.xlu1 %v6442_v7, %s6355_s20  ;;  %v6589_v36 = vld [vmem:[%s6406_s19 + $0x120] sm:$0xff]  ;;  %v6592_v37 = vld [vmem:[%s6406_s19 + $0x128] sm:$0xff] }
  0x25   : > { %v6599_v38 = vld [vmem:[%s6406_s19 + $0x130] sm:$0xff]  ;;  %v6602_v39 = vld [vmem:[%s6406_s19 + $0x138] sm:$0xff]  ;;  %v6609_v40 = vld [vmem:[%s6406_s19 + $0x140] sm:$0xff] }
  0x26   : > { %v6612_v41 = vld [vmem:[%s6406_s19 + $0x148] sm:$0xff]  ;;  %v6619_v42 = vld [vmem:[%s6406_s19 + $0x150] sm:$0xff]  ;;  %v6622_v43 = vld [vmem:[%s6406_s19 + $0x158] sm:$0xff] }
  0x27   : > { %v6629_v44 = vld [vmem:[%s6406_s19 + $0x160] sm:$0xff]  ;;  %v6632_v45 = vld [vmem:[%s6406_s19 + $0x168] sm:$0xff]  ;;  %v6639_v46 = vld [vmem:[%s6406_s19 + $0x170] sm:$0xff] }
  0x28   : > { %376 = vrot.lane.b32.xlu0 %v6449_v8, %s6355_s20  ;;  %379 = vrot.lane.b32.xlu1 %v6452_v9, %s6355_s20  ;;  %v6642_v47 = vld [vmem:[%s6406_s19 + $0x178] sm:$0xff] }
  0x2c   : > { %382 = vrot.lane.b32.xlu0 %v6459_v10, %s6355_s20  ;;  %385 = vrot.lane.b32.xlu1 %v6462_v11, %s6355_s20 }
  0x30   : > { %388 = vrot.lane.b32.xlu0 %v6469_v12, %s6355_s20  ;;  %391 = vrot.lane.b32.xlu1 %v6472_v13, %s6355_s20 }
  0x34   : > { %394 = vrot.lane.b32.xlu0 %v6479_v14, %s6355_s20  ;;  %397 = vrot.lane.b32.xlu1 %v6482_v15, %s6355_s20 }
  0x38   : > { %400 = vrot.lane.b32.xlu0 %v6489_v16, %s6355_s20  ;;  %403 = vrot.lane.b32.xlu1 %v6492_v17, %s6355_s20 }
  0x3c   : > { %406 = vrot.lane.b32.xlu0 %v6499_v18, %s6355_s20  ;;  %409 = vrot.lane.b32.xlu1 %v6502_v19, %s6355_s20 }
  0x40   : > { %412 = vrot.lane.b32.xlu0 %v6509_v20, %s6355_s20  ;;  %415 = vrot.lane.b32.xlu1 %v6512_v21, %s6355_s20 }
  0x44   : > { %418 = vrot.lane.b32.xlu0 %v6519_v22, %s6355_s20  ;;  %421 = vrot.lane.b32.xlu1 %v6522_v23, %s6355_s20 }
  0x48   : > { %424 = vrot.lane.b32.xlu0 %v6529_v24, %s6355_s20  ;;  %427 = vrot.lane.b32.xlu1 %v6532_v25, %s6355_s20 }
  0x4c   : > { %430 = vrot.lane.b32.xlu0 %v6539_v26, %s6355_s20  ;;  %433 = vrot.lane.b32.xlu1 %v6542_v27, %s6355_s20 }
  0x50   : > { %436 = vrot.lane.b32.xlu0 %v6549_v28, %s6355_s20  ;;  %439 = vrot.lane.b32.xlu1 %v6552_v29, %s6355_s20 }
  0x54   : > { %442 = vrot.lane.b32.xlu0 %v6559_v30, %s6355_s20  ;;  %445 = vrot.lane.b32.xlu1 %v6562_v31, %s6355_s20 }
  0x58   : > { %448 = vrot.lane.b32.xlu0 %v6569_v32, %s6355_s20  ;;  %451 = vrot.lane.b32.xlu1 %v6572_v33, %s6355_s20 }
  0x5c   : > { %454 = vrot.lane.b32.xlu0 %v6579_v34, %s6355_s20  ;;  %457 = vrot.lane.b32.xlu1 %v6582_v35, %s6355_s20 }
  0x60   : > { %460 = vrot.lane.b32.xlu0 %v6589_v36, %s6355_s20  ;;  %463 = vrot.lane.b32.xlu1 %v6592_v37, %s6355_s20 }
  0x64   : > { %466 = vrot.lane.b32.xlu0 %v6599_v38, %s6355_s20  ;;  %469 = vrot.lane.b32.xlu1 %v6602_v39, %s6355_s20 }
  0x68   : > { %472 = vrot.lane.b32.xlu0 %v6609_v40, %s6355_s20  ;;  %475 = vrot.lane.b32.xlu1 %v6612_v41, %s6355_s20 }
  0x6c   : > { %478 = vrot.lane.b32.xlu0 %v6619_v42, %s6355_s20  ;;  %481 = vrot.lane.b32.xlu1 %v6622_v43, %s6355_s20 }
  0x70   : > { %484 = vrot.lane.b32.xlu0 %v6629_v44, %s6355_s20  ;;  %487 = vrot.lane.b32.xlu1 %v6632_v45, %s6355_s20 }
  0x74   : > { %490 = vrot.lane.b32.xlu0 %v6639_v46, %s6355_s20  ;;  %493 = vrot.lane.b32.xlu1 %v6642_v47, %s6355_s20 }
  0x8a   : > { %v353_v48 = vpop.permute.xlu0 %352  ;;  %v359_v49 = vpop.permute.xlu1 %358 }
  0x8b   : > { %v354_v50 = vsel %vm351_vm0, %v353_v48, %v6409_v0  ;;  %v360_v51 = vsel %vm351_vm0, %v359_v49, %v6412_v1 }
  0x8c   : > { %496 = vrot.lane.b32.xlu0 %v354_v50, %s6355_s20 }
  0x8e   : > { %v356_v52 = vpop.permute.xlu0 %355  ;;  %v362_v53 = vpop.permute.xlu1 %361 }
  0x8f   : > { %v357_v54 = vsel %vm351_vm0, %v356_v52, %v6419_v2  ;;  %v363_v55 = vsel %vm351_vm0, %v362_v53, %v6422_v3 }
  0x90   : > { %500 = vrot.lane.b32.xlu0 %v360_v51, %s6355_s20  ;;  %498 = vrot.lane.b32.xlu1 %v357_v54, %s6355_s20 }
  0x92   : > { %v365_v56 = vpop.permute.xlu0 %364  ;;  %v368_v57 = vpop.permute.xlu1 %367 }
  0x93   : > { %v366_v58 = vsel %vm351_vm0, %v365_v56, %v6429_v4  ;;  %v369_v59 = vsel %vm351_vm0, %v368_v57, %v6432_v5 }
  0x94   : > { %502 = vrot.lane.b32.xlu1 %v363_v55, %s6355_s20  ;;  %504 = vrot.lane.b32.xlu0 %v366_v58, %s6355_s20 }
  0x96   : > { %v371_v60 = vpop.permute.xlu0 %370  ;;  %v374_v61 = vpop.permute.xlu1 %373 }
  0x97   : > { %v372_v62 = vsel %vm351_vm0, %v371_v60, %v6439_v6  ;;  %v375_v63 = vsel %vm351_vm0, %v374_v61, %v6442_v7 }
  0x98   : > { %506 = vrot.lane.b32.xlu1 %v369_v59, %s6355_s20  ;;  %508 = vrot.lane.b32.xlu0 %v372_v62, %s6355_s20 }
  0x9a   : > { %v377_v48 = vpop.permute.xlu0 %376  ;;  %v380_v49 = vpop.permute.xlu1 %379 }
  0x9b   : > { %v378_v50 = vsel %vm351_vm0, %v377_v48, %v6449_v8  ;;  %v381_v51 = vsel %vm351_vm0, %v380_v49, %v6452_v9 }
  0x9c   : > { %510 = vrot.lane.b32.xlu1 %v375_v63, %s6355_s20  ;;  %512 = vrot.lane.b32.xlu0 %v378_v50, %s6355_s20 }
  0x9e   : > { %v383_v52 = vpop.permute.xlu0 %382  ;;  %v386_v53 = vpop.permute.xlu1 %385 }
  0x9f   : > { %v384_v54 = vsel %vm351_vm0, %v383_v52, %v6459_v10  ;;  %v387_v55 = vsel %vm351_vm0, %v386_v53, %v6462_v11 }
  0xa0   : > { %514 = vrot.lane.b32.xlu1 %v381_v51, %s6355_s20  ;;  %516 = vrot.lane.b32.xlu0 %v384_v54, %s6355_s20 }
  0xa2   : > { %v389_v56 = vpop.permute.xlu0 %388  ;;  %v392_v57 = vpop.permute.xlu1 %391 }
  0xa3   : > { %v390_v58 = vsel %vm351_vm0, %v389_v56, %v6469_v12  ;;  %v393_v59 = vsel %vm351_vm0, %v392_v57, %v6472_v13 }
  0xa4   : > { %518 = vrot.lane.b32.xlu1 %v387_v55, %s6355_s20  ;;  %520 = vrot.lane.b32.xlu0 %v390_v58, %s6355_s20 }
  0xa6   : > { %v395_v60 = vpop.permute.xlu0 %394  ;;  %v398_v61 = vpop.permute.xlu1 %397 }
  0xa7   : > { %v396_v62 = vsel %vm351_vm0, %v395_v60, %v6479_v14  ;;  %v399_v63 = vsel %vm351_vm0, %v398_v61, %v6482_v15 }
  0xa8   : > { %522 = vrot.lane.b32.xlu1 %v393_v59, %s6355_s20  ;;  %524 = vrot.lane.b32.xlu0 %v396_v62, %s6355_s20 }
  0xaa   : > { %v401_v48 = vpop.permute.xlu0 %400  ;;  %v404_v49 = vpop.permute.xlu1 %403 }
  0xab   : > { %v402_v50 = vsel %vm351_vm0, %v401_v48, %v6489_v16  ;;  %v405_v51 = vsel %vm351_vm0, %v404_v49, %v6492_v17 }
  0xac   : > { %526 = vrot.lane.b32.xlu1 %v399_v63, %s6355_s20  ;;  %528 = vrot.lane.b32.xlu0 %v402_v50, %s6355_s20 }
  0xae   : > { %v407_v52 = vpop.permute.xlu0 %406  ;;  %v410_v53 = vpop.permute.xlu1 %409 }
  0xaf   : > { %v408_v54 = vsel %vm351_vm0, %v407_v52, %v6499_v18  ;;  %v411_v55 = vsel %vm351_vm0, %v410_v53, %v6502_v19 }
  0xb0   : > { %530 = vrot.lane.b32.xlu1 %v405_v51, %s6355_s20  ;;  %532 = vrot.lane.b32.xlu0 %v408_v54, %s6355_s20 }
  0xb2   : > { %v413_v56 = vpop.permute.xlu0 %412  ;;  %v416_v57 = vpop.permute.xlu1 %415 }
  0xb3   : > { %v414_v58 = vsel %vm351_vm0, %v413_v56, %v6509_v20  ;;  %v417_v59 = vsel %vm351_vm0, %v416_v57, %v6512_v21 }
  0xb4   : > { %534 = vrot.lane.b32.xlu1 %v411_v55, %s6355_s20  ;;  %536 = vrot.lane.b32.xlu0 %v414_v58, %s6355_s20  ;;  %v6734_v58 = vld [vmem:[%s14085_s1] sm:$0x7] }
  0xb5   : > { %5243 = vpush %v6734_v58 }
  0xb6   : > { %v419_v60 = vpop.permute.xlu0 %418  ;;  %v422_v61 = vpop.permute.xlu1 %421 }
  0xb7   : > { %v420_v62 = vsel %vm351_vm0, %v419_v60, %v6519_v22  ;;  %v423_v63 = vsel %vm351_vm0, %v422_v61, %v6522_v23 }
  0xb8   : > { %538 = vrot.lane.b32.xlu1 %v417_v59, %s6355_s20  ;;  %540 = vrot.lane.b32.xlu0 %v420_v62, %s6355_s20 }
  0xba   : > { %v425_v48 = vpop.permute.xlu0 %424  ;;  %v428_v49 = vpop.permute.xlu1 %427 }
  0xbb   : > { %v426_v50 = vsel %vm351_vm0, %v425_v48, %v6529_v24  ;;  %v429_v51 = vsel %vm351_vm0, %v428_v49, %v6532_v25  ;;  %v6751_v48 = vld [vmem:[%s14085_s1 + $0x8] sm:$0x7] }
  0xbc   : > { %542 = vrot.lane.b32.xlu1 %v423_v63, %s6355_s20  ;;  %544 = vrot.lane.b32.xlu0 %v426_v50, %s6355_s20  ;;  %v6746_v63 = vld [vmem:[%s14085_s1 + $0x4] sm:$0x7] }
  0xbd   : > { %5245 = vpush %v6746_v63 }
  0xbe   : > { %v431_v52 = vpop.permute.xlu0 %430  ;;  %v434_v53 = vpop.permute.xlu1 %433  ;;  %5247 = vpush %v6751_v48 }
  0xbf   : > { %v432_v54 = vsel %vm351_vm0, %v431_v52, %v6539_v26  ;;  %v435_v55 = vsel %vm351_vm0, %v434_v53, %v6542_v27  ;;  %v6764_v53 = vld [vmem:[%s14085_s1 + $0xc] sm:$0x7] }
  0xc0   : > { %546 = vrot.lane.b32.xlu1 %v429_v51, %s6355_s20  ;;  %548 = vrot.lane.b32.xlu0 %v432_v54, %s6355_s20  ;;  %5249 = vpush %v6764_v53 }
  0xc2   : > { %v437_v56 = vpop.permute.xlu0 %436  ;;  %v440_v57 = vpop.permute.xlu1 %439 }
  0xc3   : > { %v438_v59 = vsel %vm351_vm0, %v437_v56, %v6549_v28  ;;  %v441_v60 = vsel %vm351_vm0, %v440_v57, %v6552_v29 }
  0xc4   : > { %550 = vrot.lane.b32.xlu1 %v435_v55, %s6355_s20  ;;  %552 = vrot.lane.b32.xlu0 %v438_v59, %s6355_s20  ;;  %v6776_v59 = vld [vmem:[%s14085_s1 + $0x10] sm:$0x7] }
  0xc5   : > { %5251 = vpush %v6776_v59 }
  0xc6   : > { %v443_v61 = vpop.permute.xlu0 %442  ;;  %v446_v62 = vpop.permute.xlu1 %445 }
  0xc7   : > { %v444_v49 = vsel %vm351_vm0, %v443_v61, %v6559_v30  ;;  %v447_v50 = vsel %vm351_vm0, %v446_v62, %v6562_v31 }
  0xc8   : > { %554 = vrot.lane.b32.xlu1 %v441_v60, %s6355_s20  ;;  %556 = vrot.lane.b32.xlu0 %v444_v49, %s6355_s20  ;;  %v6781_v60 = vld [vmem:[%s14085_s1 + $0x14] sm:$0x7] }
  0xc9   : > { %5253 = vpush %v6781_v60 }
  0xca   : > { %v449_v51 = vpop.permute.xlu0 %448  ;;  %v452_v52 = vpop.permute.xlu1 %451 }
  0xcb   : > { %v450_v54 = vsel %vm351_vm0, %v449_v51, %v6569_v32  ;;  %v453_v55 = vsel %vm351_vm0, %v452_v52, %v6572_v33  ;;  %v6794_v51 = vld [vmem:[%s14085_s1 + $0x18] sm:$0x7]  ;;  %v6799_v52 = vld [vmem:[%s14085_s1 + $0x1c] sm:$0x7] }
  0xcc   : > { %558 = vrot.lane.b32.xlu1 %v447_v50, %s6355_s20  ;;  %560 = vrot.lane.b32.xlu0 %v450_v54, %s6355_s20  ;;  %14086 = vst [vmem:[#allocation7_spill] sm:$0xff] %v6794_v51  ;;  %14087 = vst [vmem:[#allocation8_spill] sm:$0xff] %v6799_v52 }
  0xcd   : > { %5255 = vpush %v6794_v51  ;;  %v6830_v51 = vld [vmem:[%s14085_s1 + $0x28] sm:$0x7] }
  0xce   : > { %v455_v56 = vpop.permute.xlu0 %454  ;;  %v458_v57 = vpop.permute.xlu1 %457  ;;  %5257 = vpush %v6799_v52 }
  0xcf   : > { %v456_v61 = vsel %vm351_vm0, %v455_v56, %v6579_v34  ;;  %v459_v62 = vsel %vm351_vm0, %v458_v57, %v6582_v35 }
  0xd0   : > { %562 = vrot.lane.b32.xlu1 %v453_v55, %s6355_s20  ;;  %564 = vrot.lane.b32.xlu0 %v456_v61, %s6355_s20  ;;  %v6812_v61 = vld [vmem:[%s14085_s1 + $0x20] sm:$0x7] }
  0xd1   : > { %14088 = vst [vmem:[#allocation9_spill] sm:$0xff] %v6812_v61  ;;  %5259 = vpush %v6812_v61  ;;  %v6848_v61 = vld [vmem:[%s14085_s1 + $0x30] sm:$0x7] }
  0xd2   : > { %v461_v49 = vpop.permute.xlu0 %460  ;;  %v464_v50 = vpop.permute.xlu1 %463  ;;  %14090 = vst [vmem:[#allocation11_spill] sm:$0xff] %v6848_v61 }
  0xd3   : > { %v462_v54 = vsel %vm351_vm0, %v461_v49, %v6589_v36  ;;  %v465_v55 = vsel %vm351_vm0, %v464_v50, %v6592_v37  ;;  %v6817_v49 = vld [vmem:[%s14085_s1 + $0x24] sm:$0x7] }
  0xd4   : > { %566 = vrot.lane.b32.xlu1 %v459_v62, %s6355_s20  ;;  %568 = vrot.lane.b32.xlu0 %v462_v54, %s6355_s20  ;;  %14089 = vst [vmem:[#allocation10_spill] sm:$0xff] %v6817_v49  ;;  %5261 = vpush %v6817_v49 }
  0xd5   : > { %5263 = vpush %v6830_v51 }
  0xd6   : > { %v467_v56 = vpop.permute.xlu0 %466  ;;  %v470_v57 = vpop.permute.xlu1 %469 }
  0xd7   : > { %v468_v62 = vsel %vm351_vm0, %v467_v56, %v6599_v38  ;;  %v471_v50 = vsel %vm351_vm0, %v470_v57, %v6602_v39  ;;  %v6835_v56 = vld [vmem:[%s14085_s1 + $0x2c] sm:$0x7] }
  0xd8   : > { %570 = vrot.lane.b32.xlu1 %v465_v55, %s6355_s20  ;;  %572 = vrot.lane.b32.xlu0 %v468_v62, %s6355_s20  ;;  %5265 = vpush %v6835_v56 }
  0xd9   : > { %5267 = vpush %v6848_v61 }
  0xda   : > { %v473_v54 = vpop.permute.xlu0 %472  ;;  %v476_v52 = vpop.permute.xlu1 %475 }
  0xdb   : > { %v474_v55 = vsel %vm351_vm0, %v473_v54, %v6609_v40  ;;  %v477_v57 = vsel %vm351_vm0, %v476_v52, %v6612_v41  ;;  %v6853_v54 = vld [vmem:[%s14085_s1 + $0x34] sm:$0x7]  ;;  %v6864_v52 = vld [vmem:[%s14085_s1 + $0x38] sm:$0x7] }
  0xdc   : > { %574 = vrot.lane.b32.xlu1 %v471_v50, %s6355_s20  ;;  %576 = vrot.lane.b32.xlu0 %v474_v55, %s6355_s20  ;;  %14091 = vst [vmem:[#allocation12_spill] sm:$0xff] %v6853_v54  ;;  %5269 = vpush %v6853_v54  ;;  %v6869_v55 = vld [vmem:[%s14085_s1 + $0x3c] sm:$0x7]  ;;  %v6882_v54 = vld [vmem:[%s14085_s1 + $0x40] sm:$0x7] }
  0xdd   : > { %14092 = vst [vmem:[#allocation13_spill] sm:$0xff] %v6864_v52  ;;  %14093 = vst [vmem:[#allocation14_spill] sm:$0xff] %v6869_v55 }
  0xde   : > { %v479_v62 = vpop.permute.xlu0 %478  ;;  %v482_v49 = vpop.permute.xlu1 %481  ;;  %5271 = vpush %v6864_v52  ;;  %14094 = vst [vmem:[#allocation15_spill] sm:$0xff] %v6882_v54 }
  0xdf   : > { %v480_v50 = vsel %vm351_vm0, %v479_v62, %v6619_v42  ;;  %v483_v62 = vsel %vm351_vm0, %v482_v49, %v6622_v43  ;;  %5273 = vpush %v6869_v55  ;;  %v6887_v49 = vld [vmem:[%s14085_s1 + $0x44] sm:$0x7] }
  0xe0   : > { %578 = vrot.lane.b32.xlu1 %v477_v57, %s6355_s20  ;;  %580 = vrot.lane.b32.xlu0 %v480_v50, %s6355_s20  ;;  %14095 = vst [vmem:[#allocation16_spill] sm:$0xff] %v6887_v49  ;;  %5275 = vpush %v6882_v54 }
  0xe1   : > { %5277 = vpush %v6887_v49 }
  0xe2   : > { %v485_v57 = vpop.permute.xlu0 %484  ;;  %v488_v61 = vpop.permute.xlu1 %487 }
  0xe3   : > { %v486_v50 = vsel %vm351_vm0, %v485_v57, %v6629_v44  ;;  %v489_v55 = vsel %vm351_vm0, %v488_v61, %v6632_v45  ;;  %v6905_v61 = vld [vmem:[%s14085_s1 + $0x4c] sm:$0x7] }
  0xe4   : > { %582 = vrot.lane.b32.xlu1 %v483_v62, %s6355_s20  ;;  %584 = vrot.lane.b32.xlu0 %v486_v50, %s6355_s20  ;;  %v6900_v50 = vld [vmem:[%s14085_s1 + $0x48] sm:$0x7]  ;;  %14097 = vst [vmem:[#allocation18_spill] sm:$0xff] %v6905_v61 }
  0xe5   : > { %14096 = vst [vmem:[#allocation17_spill] sm:$0xff] %v6900_v50  ;;  %5279 = vpush %v6900_v50  ;;  %v6981_v50 = vld [vmem:[%s14085_s1 + $0x78] sm:$0x7] }
  0xe6   : > { %v491_v57 = vpop.permute.xlu0 %490  ;;  %v494_v52 = vpop.permute.xlu1 %493  ;;  %5281 = vpush %v6905_v61  ;;  %14108 = vst [vmem:[#allocation29_spill] sm:$0xff] %v6981_v50  ;;  %s7798_s10 = spop %5243 }
  0xe7   : > { %v492_v62 = vsel %vm351_vm0, %v491_v57, %v6639_v46  ;;  %v495_v49 = vsel %vm351_vm0, %v494_v52, %v6642_v47  ;;  %v6920_v57 = vld [vmem:[%s14085_s1 + $0x54] sm:$0x7]  ;;  %v6927_v52 = vld [vmem:[%s14085_s1 + $0x58] sm:$0x7] }
  0xe8   : > { %586 = vrot.lane.b32.xlu1 %v489_v55, %s6355_s20  ;;  %588 = vrot.lane.b32.xlu0 %v492_v62, %s6355_s20  ;;  %v6915_v55 = vld [vmem:[%s14085_s1 + $0x50] sm:$0x7]  ;;  %14099 = vst [vmem:[#allocation20_spill] sm:$0xff] %v6920_v57  ;;  %14100 = vst [vmem:[#allocation21_spill] sm:$0xff] %v6927_v52  ;;  %v6939_v62 = vld [vmem:[%s14085_s1 + $0x60] sm:$0x7] }
  0xe9   : > { %14098 = vst [vmem:[#allocation19_spill] sm:$0xff] %v6915_v55  ;;  %5283 = vpush %v6915_v55 }
  0xea   : > { %5285 = vpush %v6920_v57  ;;  %14102 = vst [vmem:[#allocation23_spill] sm:$0xff] %v6939_v62  ;;  %v6944_v57 = vld [vmem:[%s14085_s1 + $0x64] sm:$0x7] }
  0xeb   : > { %5287 = vpush %v6927_v52  ;;  %14103 = vst [vmem:[#allocation24_spill] sm:$0xff] %v6944_v57  ;;  %v6951_v52 = vld [vmem:[%s14085_s1 + $0x68] sm:$0x7] }
  0xec   : > { %590 = vrot.lane.b32.xlu1 %v495_v49, %s6355_s20  ;;  %v6932_v49 = vld [vmem:[%s14085_s1 + $0x5c] sm:$0x7]  ;;  %14104 = vst [vmem:[#allocation25_spill] sm:$0xff] %v6951_v52 }
  0xed   : > { %14101 = vst [vmem:[#allocation22_spill] sm:$0xff] %v6932_v49  ;;  %5289 = vpush %v6932_v49  ;;  %v6956_v49 = vld [vmem:[%s14085_s1 + $0x6c] sm:$0x7] }
  0xee   : > { %5291 = vpush %v6939_v62  ;;  %14105 = vst [vmem:[#allocation26_spill] sm:$0xff] %v6956_v49  ;;  %v6963_v62 = vld [vmem:[%s14085_s1 + $0x70] sm:$0x7]  ;;  %s7800_s11 = spop %5245 }
  0xef   : > { %5293 = vpush %v6944_v57  ;;  %14106 = vst [vmem:[#allocation27_spill] sm:$0xff] %v6963_v62  ;;  %v6968_v57 = vld [vmem:[%s14085_s1 + $0x74] sm:$0x7]  ;;  %s7806_s17 = spop %5247 }
  0xf0   : > { %5295 = vpush %v6951_v52  ;;  %14107 = vst [vmem:[#allocation28_spill] sm:$0xff] %v6968_v57 }
  0xf1   : > { %5297 = vpush %v6956_v49  ;;  %s7808_s21 = spop %5249 }
  0xf2   : > { %5299 = vpush %v6963_v62 }
  0xf3   : > { %5301 = vpush %v6968_v57 }
  0xf4   : > { %5303 = vpush %v6981_v50 }
  0xf6   : > { %s7810_s22 = spop %5251 }
  0xfa   : > { %s7816_s23 = spop %5253 }
  0xfe   : > { %v497_v55 = vpop.permute.xlu0 %496  ;;  %s7818_s24 = spop %5255 }
  0xff   : > { %v6972_v61 = vsel %vm351_vm0, %v497_v55, %v6409_v0  ;;  %v6986_v0 = vld [vmem:[%s14085_s1 + $0x7c] sm:$0x7]  ;;  %s7824_s25 = spop %5257 }
 0x100   : > { %691 = vrot.lane.b32.xlu0 %v6972_v61, %s6356_s18  ;;  %14109 = vst [vmem:[#allocation30_spill] sm:$0xff] %v6986_v0  ;;  %5305 = vpush %v6986_v0 }
 0x102   : > { %v499_v49 = vpop.permute.xlu1 %498  ;;  %v501_v52 = vpop.permute.xlu0 %500  ;;  %s7826_s26 = spop %5259 }
 0x103   : > { %v6990_v55 = vsel %vm351_vm0, %v501_v52, %v6412_v1  ;;  %v6994_v62 = vsel %vm351_vm0, %v499_v49, %v6419_v2  ;;  %v7005_v1 = vld [vmem:[%s14085_s1 + $0x80] sm:$0x7]  ;;  %v7010_v2 = vld [vmem:[%s14085_s1 + $0x84] sm:$0x7] }
 0x104   : > { %693 = vrot.lane.b32.xlu1 %v6994_v62, %s6356_s18  ;;  %695 = vrot.lane.b32.xlu0 %v6990_v55, %s6356_s18  ;;  %14110 = vst [vmem:[#allocation31_spill] sm:$0xff] %v7005_v1  ;;  %14111 = vst [vmem:[#allocation32_spill] sm:$0xff] %v7010_v2 }
 0x105   : > { %5307 = vpush %v7005_v1  ;;  %s7828_s20 = spop %5261 }
 0x106   : > { %v503_v57 = vpop.permute.xlu1 %502  ;;  %v505_v54 = vpop.permute.xlu0 %504  ;;  %5309 = vpush %v7010_v2  ;;  %s7834_s27 = spop %5263 }
 0x107   : > { %v7014_v52 = vsel %vm351_vm0, %v503_v57, %v6422_v3  ;;  %v7018_v49 = vsel %vm351_vm0, %v505_v54, %v6429_v4  ;;  %v7029_v3 = vld [vmem:[%s14085_s1 + $0x88] sm:$0x7]  ;;  %v7034_v4 = vld [vmem:[%s14085_s1 + $0x8c] sm:$0x7] }
 0x108   : > { %697 = vrot.lane.b32.xlu1 %v7014_v52, %s6356_s18  ;;  %699 = vrot.lane.b32.xlu0 %v7018_v49, %s6356_s18  ;;  %14112 = vst [vmem:[#allocation33_spill] sm:$0xff] %v7029_v3  ;;  %14113 = vst [vmem:[#allocation34_spill] sm:$0xff] %v7034_v4 }
 0x109   : > { %5311 = vpush %v7029_v3  ;;  %s7836_s28 = spop %5265 }
 0x10a   : > { %v507_v0 = vpop.permute.xlu1 %506  ;;  %v509_v50 = vpop.permute.xlu0 %508  ;;  %5313 = vpush %v7034_v4  ;;  %s7838_s29 = spop %5267 }
 0x10b   : > { %v7038_v54 = vsel %vm351_vm0, %v507_v0, %v6432_v5  ;;  %v7042_v57 = vsel %vm351_vm0, %v509_v50, %v6439_v6  ;;  %v7053_v5 = vld [vmem:[%s14085_s1 + $0x90] sm:$0x7]  ;;  %v7058_v6 = vld [vmem:[%s14085_s1 + $0x94] sm:$0x7] }
 0x10c   : > { %701 = vrot.lane.b32.xlu1 %v7038_v54, %s6356_s18  ;;  %703 = vrot.lane.b32.xlu0 %v7042_v57, %s6356_s18  ;;  %14114 = vst [vmem:[#allocation35_spill] sm:$0xff] %v7053_v5  ;;  %14115 = vst [vmem:[#allocation36_spill] sm:$0xff] %v7058_v6 }
 0x10d   : > { %5315 = vpush %v7053_v5  ;;  %s7844_s30 = spop %5269 }
 0x10e   : > { %v511_v2 = vpop.permute.xlu1 %510  ;;  %v513_v1 = vpop.permute.xlu0 %512  ;;  %5317 = vpush %v7058_v6 }
 0x10f   : > { %v7062_v50 = vsel %vm351_vm0, %v511_v2, %v6442_v7  ;;  %v7066_v0 = vsel %vm351_vm0, %v513_v1, %v6449_v8  ;;  %v7077_v7 = vld [vmem:[%s14085_s1 + $0x98] sm:$0x7]  ;;  %v7082_v8 = vld [vmem:[%s14085_s1 + $0x9c] sm:$0x7]  ;;  %s7846_s4 = spop %5271 }
 0x110   : > { %705 = vrot.lane.b32.xlu1 %v7062_v50, %s6356_s18  ;;  %707 = vrot.lane.b32.xlu0 %v7066_v0, %s6356_s18  ;;  %14116 = vst [vmem:[#allocation37_spill] sm:$0xff] %v7077_v7  ;;  %14117 = vst [vmem:[#allocation38_spill] sm:$0xff] %v7082_v8  ;;  %14248 = sst [smem:[#allocation91_spill]] %s7846_s4  ;;  %s7852_s5 = spop %5273 }
 0x111   : > { %5319 = vpush %v7077_v7  ;;  %14249 = sst [smem:[#allocation92_spill]] %s7852_s5  ;;  %s7854_s6 = spop %5275 }
 0x112   : > { %v515_v4 = vpop.permute.xlu1 %514  ;;  %v517_v3 = vpop.permute.xlu0 %516  ;;  %5321 = vpush %v7082_v8  ;;  %14250 = sst [smem:[#allocation93_spill]] %s7854_s6  ;;  %s7856_s7 = spop %5277 }
 0x113   : > { %v7086_v1 = vsel %vm351_vm0, %v515_v4, %v6452_v9  ;;  %v7090_v2 = vsel %vm351_vm0, %v517_v3, %v6459_v10  ;;  %v7101_v9 = vld [vmem:[%s14085_s1 + $0xa0] sm:$0x7]  ;;  %v7106_v10 = vld [vmem:[%s14085_s1 + $0xa4] sm:$0x7]  ;;  %14251 = sst [smem:[#allocation94_spill]] %s7856_s7 }
 0x114   : > { %709 = vrot.lane.b32.xlu1 %v7086_v1, %s6356_s18  ;;  %711 = vrot.lane.b32.xlu0 %v7090_v2, %s6356_s18  ;;  %14118 = vst [vmem:[#allocation39_spill] sm:$0xff] %v7101_v9  ;;  %14119 = vst [vmem:[#allocation40_spill] sm:$0xff] %v7106_v10 }
 0x115   : > { %5323 = vpush %v7101_v9 }
 0x116   : > { %v519_v6 = vpop.permute.xlu1 %518  ;;  %v521_v5 = vpop.permute.xlu0 %520  ;;  %5325 = vpush %v7106_v10  ;;  %s7862_s8 = spop %5279 }
 0x117   : > { %v7110_v3 = vsel %vm351_vm0, %v519_v6, %v6462_v11  ;;  %v7114_v4 = vsel %vm351_vm0, %v521_v5, %v6469_v12  ;;  %v7125_v11 = vld [vmem:[%s14085_s1 + $0xa8] sm:$0x7]  ;;  %v7130_v12 = vld [vmem:[%s14085_s1 + $0xac] sm:$0x7]  ;;  %14252 = sst [smem:[#allocation95_spill]] %s7862_s8  ;;  %s7864_s16 = spop %5281 }
 0x118   : > { %713 = vrot.lane.b32.xlu1 %v7110_v3, %s6356_s18  ;;  %715 = vrot.lane.b32.xlu0 %v7114_v4, %s6356_s18  ;;  %14120 = vst [vmem:[#allocation41_spill] sm:$0xff] %v7125_v11  ;;  %14121 = vst [vmem:[#allocation42_spill] sm:$0xff] %v7130_v12  ;;  %14253 = sst [smem:[#allocation96_spill]] %s7864_s16 }
 0x119   : > { %5327 = vpush %v7125_v11 }
 0x11a   : > { %v523_v8 = vpop.permute.xlu1 %522  ;;  %v525_v7 = vpop.permute.xlu0 %524  ;;  %5329 = vpush %v7130_v12 }
 0x11b   : > { %v7134_v5 = vsel %vm351_vm0, %v523_v8, %v6472_v13  ;;  %v7138_v6 = vsel %vm351_vm0, %v525_v7, %v6479_v14  ;;  %v7149_v13 = vld [vmem:[%s14085_s1 + $0xb0] sm:$0x7]  ;;  %v7154_v14 = vld [vmem:[%s14085_s1 + $0xb4] sm:$0x7] }
 0x11c   : > { %717 = vrot.lane.b32.xlu1 %v7134_v5, %s6356_s18  ;;  %719 = vrot.lane.b32.xlu0 %v7138_v6, %s6356_s18  ;;  %14122 = vst [vmem:[#allocation43_spill] sm:$0xff] %v7149_v13  ;;  %14123 = vst [vmem:[#allocation44_spill] sm:$0xff] %v7154_v14 }
 0x11d   : > { %5331 = vpush %v7149_v13 }
 0x11e   : > { %v527_v10 = vpop.permute.xlu1 %526  ;;  %v529_v9 = vpop.permute.xlu0 %528  ;;  %5333 = vpush %v7154_v14 }
 0x11f   : > { %v7158_v7 = vsel %vm351_vm0, %v527_v10, %v6482_v15  ;;  %v7162_v8 = vsel %vm351_vm0, %v529_v9, %v6489_v16  ;;  %v7173_v15 = vld [vmem:[%s14085_s1 + $0xb8] sm:$0x7]  ;;  %v7178_v16 = vld [vmem:[%s14085_s1 + $0xbc] sm:$0x7] }
 0x120   : > { %721 = vrot.lane.b32.xlu1 %v7158_v7, %s6356_s18  ;;  %723 = vrot.lane.b32.xlu0 %v7162_v8, %s6356_s18  ;;  %14124 = vst [vmem:[#allocation45_spill] sm:$0xff] %v7178_v16  ;;  %5335 = vpush %v7173_v15 }
 0x121   : > { %5337 = vpush %v7178_v16 }
 0x122   : > { %v531_v12 = vpop.permute.xlu1 %530  ;;  %v533_v11 = vpop.permute.xlu0 %532 }
 0x123   : > { %v7182_v9 = vsel %vm351_vm0, %v531_v12, %v6492_v17  ;;  %v7186_v10 = vsel %vm351_vm0, %v533_v11, %v6499_v18 }
 0x124   : > { %725 = vrot.lane.b32.xlu1 %v7182_v9, %s6356_s18  ;;  %727 = vrot.lane.b32.xlu0 %v7186_v10, %s6356_s18 }
 0x126   : > { %v535_v14 = vpop.permute.xlu1 %534  ;;  %v537_v13 = vpop.permute.xlu0 %536 }
 0x127   : > { %v7196_v17 = vsel %vm351_vm0, %v535_v14, %v6502_v19  ;;  %v7200_v18 = vsel %vm351_vm0, %v537_v13, %v6509_v20 }
 0x128   : > { %729 = vrot.lane.b32.xlu1 %v7196_v17, %s6356_s18  ;;  %731 = vrot.lane.b32.xlu0 %v7200_v18, %s6356_s18 }
 0x12a   : > { %v539_v11 = vpop.permute.xlu1 %538  ;;  %v541_v12 = vpop.permute.xlu0 %540 }
 0x12b   : > { %v7208_v16 = vsel %vm351_vm0, %v539_v11, %v6512_v21  ;;  %v7212_v19 = vsel %vm351_vm0, %v541_v12, %v6519_v22 }
 0x12c   : > { %733 = vrot.lane.b32.xlu1 %v7208_v16, %s6356_s18  ;;  %735 = vrot.lane.b32.xlu0 %v7212_v19, %s6356_s18 }
 0x12e   : > { %v543_v20 = vpop.permute.xlu1 %542  ;;  %v545_v13 = vpop.permute.xlu0 %544 }
 0x12f   : > { %v7220_v14 = vsel %vm351_vm0, %v543_v20, %v6522_v23  ;;  %v7224_v21 = vsel %vm351_vm0, %v545_v13, %v6529_v24 }
 0x130   : > { %737 = vrot.lane.b32.xlu1 %v7220_v14, %s6356_s18  ;;  %739 = vrot.lane.b32.xlu0 %v7224_v21, %s6356_s18 }
 0x132   : > { %v547_v22 = vpop.permute.xlu1 %546  ;;  %v549_v11 = vpop.permute.xlu0 %548 }
 0x133   : > { %v7232_v12 = vsel %vm351_vm0, %v547_v22, %v6532_v25  ;;  %v7236_v23 = vsel %vm351_vm0, %v549_v11, %v6539_v26 }
 0x134   : > { %741 = vrot.lane.b32.xlu1 %v7232_v12, %s6356_s18  ;;  %743 = vrot.lane.b32.xlu0 %v7236_v23, %s6356_s18 }
 0x136   : > { %v551_v24 = vpop.permute.xlu1 %550  ;;  %v553_v20 = vpop.permute.xlu0 %552 }
 0x137   : > { %v7244_v13 = vsel %vm351_vm0, %v551_v24, %v6542_v27  ;;  %v7248_v25 = vsel %vm351_vm0, %v553_v20, %v6549_v28 }
 0x138   : > { %745 = vrot.lane.b32.xlu1 %v7244_v13, %s6356_s18  ;;  %747 = vrot.lane.b32.xlu0 %v7248_v25, %s6356_s18 }
 0x13a   : > { %v555_v26 = vpop.permute.xlu1 %554  ;;  %v557_v22 = vpop.permute.xlu0 %556 }
 0x13b   : > { %v7256_v11 = vsel %vm351_vm0, %v555_v26, %v6552_v29  ;;  %v7260_v27 = vsel %vm351_vm0, %v557_v22, %v6559_v30 }
 0x13c   : > { %749 = vrot.lane.b32.xlu1 %v7256_v11, %s6356_s18  ;;  %751 = vrot.lane.b32.xlu0 %v7260_v27, %s6356_s18 }
 0x13e   : > { %v559_v28 = vpop.permute.xlu1 %558  ;;  %v561_v24 = vpop.permute.xlu0 %560 }
 0x13f   : > { %v7268_v20 = vsel %vm351_vm0, %v559_v28, %v6562_v31  ;;  %v7272_v29 = vsel %vm351_vm0, %v561_v24, %v6569_v32 }
 0x140   : > { %753 = vrot.lane.b32.xlu1 %v7268_v20, %s6356_s18  ;;  %755 = vrot.lane.b32.xlu0 %v7272_v29, %s6356_s18 }
 0x142   : > { %v563_v30 = vpop.permute.xlu1 %562  ;;  %v565_v26 = vpop.permute.xlu0 %564 }
 0x143   : > { %v7280_v22 = vsel %vm351_vm0, %v563_v30, %v6572_v33  ;;  %v7284_v31 = vsel %vm351_vm0, %v565_v26, %v6579_v34 }
 0x144   : > { %757 = vrot.lane.b32.xlu1 %v7280_v22, %s6356_s18  ;;  %759 = vrot.lane.b32.xlu0 %v7284_v31, %s6356_s18 }
 0x146   : > { %v567_v32 = vpop.permute.xlu1 %566  ;;  %v569_v28 = vpop.permute.xlu0 %568 }
 0x147   : > { %v7292_v24 = vsel %vm351_vm0, %v567_v32, %v6582_v35  ;;  %v7296_v33 = vsel %vm351_vm0, %v569_v28, %v6589_v36 }
 0x148   : > { %761 = vrot.lane.b32.xlu1 %v7292_v24, %s6356_s18  ;;  %763 = vrot.lane.b32.xlu0 %v7296_v33, %s6356_s18 }
 0x14a   : > { %v571_v34 = vpop.permute.xlu1 %570  ;;  %v573_v30 = vpop.permute.xlu0 %572 }
 0x14b   : > { %v7304_v26 = vsel %vm351_vm0, %v571_v34, %v6592_v37  ;;  %v7308_v35 = vsel %vm351_vm0, %v573_v30, %v6599_v38 }
 0x14c   : > { %765 = vrot.lane.b32.xlu1 %v7304_v26, %s6356_s18  ;;  %767 = vrot.lane.b32.xlu0 %v7308_v35, %s6356_s18 }
 0x14e   : > { %v575_v36 = vpop.permute.xlu1 %574  ;;  %v577_v32 = vpop.permute.xlu0 %576 }
 0x14f   : > { %v7316_v28 = vsel %vm351_vm0, %v575_v36, %v6602_v39  ;;  %v7320_v37 = vsel %vm351_vm0, %v577_v32, %v6609_v40 }
 0x150   : > { %769 = vrot.lane.b32.xlu1 %v7316_v28, %s6356_s18  ;;  %771 = vrot.lane.b32.xlu0 %v7320_v37, %s6356_s18 }
 0x152   : > { %v579_v38 = vpop.permute.xlu1 %578  ;;  %v581_v34 = vpop.permute.xlu0 %580 }
 0x153   : > { %v7328_v30 = vsel %vm351_vm0, %v579_v38, %v6612_v41  ;;  %v7332_v39 = vsel %vm351_vm0, %v581_v34, %v6619_v42 }
 0x154   : > { %773 = vrot.lane.b32.xlu1 %v7328_v30, %s6356_s18  ;;  %775 = vrot.lane.b32.xlu0 %v7332_v39, %s6356_s18 }
 0x156   : > { %v583_v40 = vpop.permute.xlu1 %582  ;;  %v585_v36 = vpop.permute.xlu0 %584 }
 0x157   : > { %v7340_v32 = vsel %vm351_vm0, %v583_v40, %v6622_v43  ;;  %v7344_v41 = vsel %vm351_vm0, %v585_v36, %v6629_v44 }
 0x158   : > { %777 = vrot.lane.b32.xlu1 %v7340_v32, %s6356_s18  ;;  %779 = vrot.lane.b32.xlu0 %v7344_v41, %s6356_s18 }
 0x15a   : > { %v587_v42 = vpop.permute.xlu1 %586  ;;  %v589_v38 = vpop.permute.xlu0 %588 }
 0x15b   : > { %v7352_v34 = vsel %vm351_vm0, %v587_v42, %v6632_v45  ;;  %v7356_v43 = vsel %vm351_vm0, %v589_v38, %v6639_v46  ;;  %v14162_v42 = vld [vmem:[#allocation9_spill] sm:$0xff] }
 0x15c   : > { %781 = vrot.lane.b32.xlu1 %v7352_v34, %s6356_s18  ;;  %783 = vrot.lane.b32.xlu0 %v7356_v43, %s6356_s18 }
 0x15e   : > { %v591_v44 = vpop.permute.xlu1 %590 }
 0x15f   : > { %v7364_v40 = vsel %vm351_vm0, %v591_v44, %v6642_v47 }
 0x160   : > { %785 = vrot.lane.b32.xlu1 %v7364_v40, %s6356_s18  ;;  %886 = vrot.lane.b32.xlu0 %v6972_v61, %s13656_s9  ;;  %s13675_s18 = smov 126  }
 0x164   : > { %888 = vrot.lane.b32.xlu1 %v6994_v62, %s13656_s9  ;;  %890 = vrot.lane.b32.xlu0 %v6990_v55, %s13656_s9 }
 0x168   : > { %892 = vrot.lane.b32.xlu1 %v7014_v52, %s13656_s9  ;;  %894 = vrot.lane.b32.xlu0 %v7018_v49, %s13656_s9 }
 0x16c   : > { %896 = vrot.lane.b32.xlu1 %v7038_v54, %s13656_s9  ;;  %898 = vrot.lane.b32.xlu0 %v7042_v57, %s13656_s9 }
 0x170   : > { %900 = vrot.lane.b32.xlu1 %v7062_v50, %s13656_s9  ;;  %902 = vrot.lane.b32.xlu0 %v7066_v0, %s13656_s9 }
 0x172   : > { %v7386_v45 = vpop.permute.xlu0 %691 }
 0x174   : > { %904 = vrot.lane.b32.xlu1 %v7086_v1, %s13656_s9  ;;  %906 = vrot.lane.b32.xlu0 %v7090_v2, %s13656_s9 }
 0x176   : > { %v7392_v46 = vpop.permute.xlu1 %693  ;;  %v7394_v47 = vpop.permute.xlu0 %695 }
 0x178   : > { %908 = vrot.lane.b32.xlu1 %v7110_v3, %s13656_s9  ;;  %910 = vrot.lane.b32.xlu0 %v7114_v4, %s13656_s9 }
 0x17a   : > { %v7400_v61 = vpop.permute.xlu1 %697  ;;  %v7402_v62 = vpop.permute.xlu0 %699 }
 0x17c   : > { %912 = vrot.lane.b32.xlu1 %v7134_v5, %s13656_s9  ;;  %914 = vrot.lane.b32.xlu0 %v7138_v6, %s13656_s9 }
 0x17e   : > { %v7408_v55 = vpop.permute.xlu1 %701  ;;  %v7410_v52 = vpop.permute.xlu0 %703 }
 0x180   : > { %916 = vrot.lane.b32.xlu1 %v7158_v7, %s13656_s9  ;;  %918 = vrot.lane.b32.xlu0 %v7162_v8, %s13656_s9 }
 0x182   : > { %v7416_v49 = vpop.permute.xlu1 %705  ;;  %v7418_v54 = vpop.permute.xlu0 %707 }
 0x184   : > { %920 = vrot.lane.b32.xlu1 %v7182_v9, %s13656_s9  ;;  %922 = vrot.lane.b32.xlu0 %v7186_v10, %s13656_s9 }
 0x186   : > { %v7424_v57 = vpop.permute.xlu1 %709  ;;  %v7426_v50 = vpop.permute.xlu0 %711 }
 0x188   : > { %924 = vrot.lane.b32.xlu1 %v7196_v17, %s13656_s9  ;;  %926 = vrot.lane.b32.xlu0 %v7200_v18, %s13656_s9 }
 0x18a   : > { %v7432_v0 = vpop.permute.xlu1 %713  ;;  %v7434_v1 = vpop.permute.xlu0 %715 }
 0x18b   : > { %14125 = vst [vmem:[#allocation46_spill] sm:$0xff] %v7434_v1 }
 0x18c   : > { %928 = vrot.lane.b32.xlu1 %v7208_v16, %s13656_s9  ;;  %930 = vrot.lane.b32.xlu0 %v7212_v19, %s13656_s9 }
 0x18e   : > { %v7440_v2 = vpop.permute.xlu1 %717  ;;  %v7442_v3 = vpop.permute.xlu0 %719 }
 0x18f   : > { %14126 = vst [vmem:[#allocation47_spill] sm:$0xff] %v7440_v2  ;;  %14127 = vst [vmem:[#allocation48_spill] sm:$0xff] %v7442_v3  ;;  %v14232_v3 = vld [vmem:[#allocation43_spill] sm:$0xff] }
 0x190   : > { %932 = vrot.lane.b32.xlu1 %v7220_v14, %s13656_s9  ;;  %934 = vrot.lane.b32.xlu0 %v7224_v21, %s13656_s9 }
 0x192   : > { %v7448_v4 = vpop.permute.xlu1 %721  ;;  %v7450_v5 = vpop.permute.xlu0 %723 }
 0x193   : > { %14128 = vst [vmem:[#allocation49_spill] sm:$0xff] %v7448_v4  ;;  %14129 = vst [vmem:[#allocation50_spill] sm:$0xff] %v7450_v5  ;;  %v14228_v5 = vld [vmem:[#allocation41_spill] sm:$0xff] }
 0x194   : > { %936 = vrot.lane.b32.xlu1 %v7232_v12, %s13656_s9  ;;  %938 = vrot.lane.b32.xlu0 %v7236_v23, %s13656_s9 }
 0x196   : > { %v7456_v6 = vpop.permute.xlu1 %725  ;;  %v7458_v7 = vpop.permute.xlu0 %727 }
 0x197   : > { %14130 = vst [vmem:[#allocation51_spill] sm:$0xff] %v7456_v6  ;;  %14131 = vst [vmem:[#allocation52_spill] sm:$0xff] %v7458_v7  ;;  %v14224_v7 = vld [vmem:[#allocation39_spill] sm:$0xff] }
 0x198   : > { %940 = vrot.lane.b32.xlu1 %v7244_v13, %s13656_s9  ;;  %942 = vrot.lane.b32.xlu0 %v7248_v25, %s13656_s9 }
 0x19a   : > { %v7464_v8 = vpop.permute.xlu1 %729  ;;  %v7466_v16 = vpop.permute.xlu0 %731 }
 0x19b   : > { %14132 = vst [vmem:[#allocation53_spill] sm:$0xff] %v7464_v8  ;;  %14133 = vst [vmem:[#allocation54_spill] sm:$0xff] %v7466_v16  ;;  %v14220_v16 = vld [vmem:[#allocation37_spill] sm:$0xff] }
 0x19c   : > { %944 = vrot.lane.b32.xlu1 %v7256_v11, %s13656_s9  ;;  %946 = vrot.lane.b32.xlu0 %v7260_v27, %s13656_s9 }
 0x19e   : > { %v7472_v9 = vpop.permute.xlu1 %733  ;;  %v7474_v10 = vpop.permute.xlu0 %735 }
 0x19f   : > { %14134 = vst [vmem:[#allocation55_spill] sm:$0xff] %v7472_v9  ;;  %14135 = vst [vmem:[#allocation56_spill] sm:$0xff] %v7474_v10  ;;  %v14216_v10 = vld [vmem:[#allocation35_spill] sm:$0xff] }
 0x1a0   : > { %948 = vrot.lane.b32.xlu1 %v7268_v20, %s13656_s9  ;;  %950 = vrot.lane.b32.xlu0 %v7272_v29, %s13656_s9 }
 0x1a2   : > { %v7480_v17 = vpop.permute.xlu1 %737  ;;  %v7482_v18 = vpop.permute.xlu0 %739 }
 0x1a3   : > { %14136 = vst [vmem:[#allocation57_spill] sm:$0xff] %v7480_v17  ;;  %14137 = vst [vmem:[#allocation58_spill] sm:$0xff] %v7482_v18  ;;  %v14212_v18 = vld [vmem:[#allocation33_spill] sm:$0xff] }
 0x1a4   : > { %952 = vrot.lane.b32.xlu1 %v7280_v22, %s13656_s9  ;;  %954 = vrot.lane.b32.xlu0 %v7284_v31, %s13656_s9 }
 0x1a6   : > { %v7488_v19 = vpop.permute.xlu1 %741  ;;  %v7490_v14 = vpop.permute.xlu0 %743 }
 0x1a7   : > { %14138 = vst [vmem:[#allocation59_spill] sm:$0xff] %v7488_v19  ;;  %14139 = vst [vmem:[#allocation60_spill] sm:$0xff] %v7490_v14  ;;  %v14208_v14 = vld [vmem:[#allocation31_spill] sm:$0xff] }
 0x1a8   : > { %956 = vrot.lane.b32.xlu1 %v7292_v24, %s13656_s9  ;;  %958 = vrot.lane.b32.xlu0 %v7296_v33, %s13656_s9 }
 0x1aa   : > { %v7496_v21 = vpop.permute.xlu1 %745  ;;  %v7498_v12 = vpop.permute.xlu0 %747 }
 0x1ab   : > { %14140 = vst [vmem:[#allocation61_spill] sm:$0xff] %v7496_v21  ;;  %14141 = vst [vmem:[#allocation62_spill] sm:$0xff] %v7498_v12  ;;  %v14204_v12 = vld [vmem:[#allocation29_spill] sm:$0xff] }
 0x1ac   : > { %960 = vrot.lane.b32.xlu1 %v7304_v26, %s13656_s9  ;;  %962 = vrot.lane.b32.xlu0 %v7308_v35, %s13656_s9 }
 0x1ae   : > { %v7504_v23 = vpop.permute.xlu1 %749  ;;  %v7506_v13 = vpop.permute.xlu0 %751 }
 0x1af   : > { %14142 = vst [vmem:[#allocation63_spill] sm:$0xff] %v7504_v23  ;;  %14143 = vst [vmem:[#allocation64_spill] sm:$0xff] %v7506_v13  ;;  %v14200_v13 = vld [vmem:[#allocation27_spill] sm:$0xff] }
 0x1b0   : > { %964 = vrot.lane.b32.xlu1 %v7316_v28, %s13656_s9  ;;  %966 = vrot.lane.b32.xlu0 %v7320_v37, %s13656_s9 }
 0x1b2   : > { %v7512_v25 = vpop.permute.xlu1 %753  ;;  %v7514_v11 = vpop.permute.xlu0 %755 }
 0x1b3   : > { %14144 = vst [vmem:[#allocation65_spill] sm:$0xff] %v7512_v25  ;;  %14145 = vst [vmem:[#allocation66_spill] sm:$0xff] %v7514_v11  ;;  %v14196_v11 = vld [vmem:[#allocation25_spill] sm:$0xff] }
 0x1b4   : > { %968 = vrot.lane.b32.xlu1 %v7328_v30, %s13656_s9  ;;  %970 = vrot.lane.b32.xlu0 %v7332_v39, %s13656_s9  ;;  %v14158_v39 = vld [vmem:[#allocation7_spill] sm:$0xff] }
 0x1b6   : > { %v7520_v27 = vpop.permute.xlu1 %757  ;;  %v7522_v20 = vpop.permute.xlu0 %759 }
 0x1b7   : > { %14146 = vst [vmem:[#allocation67_spill] sm:$0xff] %v7520_v27  ;;  %14147 = vst [vmem:[#allocation68_spill] sm:$0xff] %v7522_v20  ;;  %v14192_v20 = vld [vmem:[#allocation23_spill] sm:$0xff] }
 0x1b8   : > { %972 = vrot.lane.b32.xlu1 %v7340_v32, %s13656_s9  ;;  %974 = vrot.lane.b32.xlu0 %v7344_v41, %s13656_s9  ;;  %v14161_v41 = vld [vmem:[#allocation8_spill] sm:$0xff] }
 0x1ba   : > { %v7528_v29 = vpop.permute.xlu1 %761  ;;  %v7530_v22 = vpop.permute.xlu0 %763 }
 0x1bb   : > { %14148 = vst [vmem:[#allocation69_spill] sm:$0xff] %v7528_v29  ;;  %14149 = vst [vmem:[#allocation70_spill] sm:$0xff] %v7530_v22  ;;  %v14188_v22 = vld [vmem:[#allocation21_spill] sm:$0xff] }
 0x1bc   : > { %976 = vrot.lane.b32.xlu1 %v7352_v34, %s13656_s9  ;;  %978 = vrot.lane.b32.xlu0 %v7356_v43, %s13656_s9  ;;  %v14165_v43 = vld [vmem:[#allocation10_spill] sm:$0xff] }
 0x1be   : > { %v7536_v31 = vpop.permute.xlu1 %765  ;;  %v7538_v24 = vpop.permute.xlu0 %767 }
 0x1bf   : > { %14150 = vst [vmem:[#allocation71_spill] sm:$0xff] %v7536_v31  ;;  %14151 = vst [vmem:[#allocation72_spill] sm:$0xff] %v7538_v24  ;;  %v14184_v24 = vld [vmem:[#allocation19_spill] sm:$0xff] }
 0x1c0   : > { %980 = vrot.lane.b32.xlu1 %v7364_v40, %s13656_s9  ;;  %1462 = vrot.lane.b32.xlu0 %v6734_v58, %s13656_s9 }
 0x1c2   : > { %v7544_v33 = vpop.permute.xlu1 %769  ;;  %v7546_v26 = vpop.permute.xlu0 %771 }
 0x1c3   : > { %14152 = vst [vmem:[#allocation73_spill] sm:$0xff] %v7544_v33  ;;  %14153 = vst [vmem:[#allocation74_spill] sm:$0xff] %v7546_v26  ;;  %v14180_v26 = vld [vmem:[#allocation17_spill] sm:$0xff] }
 0x1c4   : > { %1464 = vrot.lane.b32.xlu1 %v6746_v63, %s13656_s9  ;;  %1466 = vrot.lane.b32.xlu0 %v6751_v48, %s13656_s9 }
 0x1c6   : > { %v7552_v35 = vpop.permute.xlu1 %773  ;;  %v7554_v28 = vpop.permute.xlu0 %775 }
 0x1c7   : > { %14154 = vst [vmem:[#allocation75_spill] sm:$0xff] %v7552_v35  ;;  %14155 = vst [vmem:[#allocation76_spill] sm:$0xff] %v7554_v28  ;;  %v14176_v28 = vld [vmem:[#allocation15_spill] sm:$0xff] }
 0x1c8   : > { %1468 = vrot.lane.b32.xlu1 %v6764_v53, %s13656_s9  ;;  %1470 = vrot.lane.b32.xlu0 %v6776_v59, %s13656_s9 }
 0x1ca   : > { %v7560_v37 = vpop.permute.xlu1 %777  ;;  %v7562_v30 = vpop.permute.xlu0 %779 }
 0x1cb   : > { %14156 = vst [vmem:[#allocation77_spill] sm:$0xff] %v7560_v37  ;;  %14157 = vst [vmem:[#allocation78_spill] sm:$0xff] %v7562_v30  ;;  %v14172_v30 = vld [vmem:[#allocation13_spill] sm:$0xff] }
 0x1cc   : > { %1472 = vrot.lane.b32.xlu1 %v6781_v60, %s13656_s9  ;;  %1474 = vrot.lane.b32.xlu0 %v14158_v39, %s13656_s9 }
 0x1ce   : > { %v7568_v36 = vpop.permute.xlu1 %781  ;;  %v7570_v32 = vpop.permute.xlu0 %783 }
 0x1cf   : > { %14159 = vst [vmem:[#allocation7_spill] sm:$0xff] %v7568_v36  ;;  %14160 = vst [vmem:[#allocation79_spill] sm:$0xff] %v7570_v32  ;;  %v14168_v32 = vld [vmem:[#allocation11_spill] sm:$0xff] }
 0x1d0   : > { %1476 = vrot.lane.b32.xlu1 %v14161_v41, %s13656_s9  ;;  %1478 = vrot.lane.b32.xlu0 %v14162_v42, %s13656_s9 }
 0x1d2   : > { %v7576_v38 = vpop.permute.xlu1 %785  ;;  %v7578_v34 = vpop.permute.xlu0 %886 }
 0x1d3   : > { %14163 = vst [vmem:[#allocation8_spill] sm:$0xff] %v7576_v38  ;;  %14164 = vst [vmem:[#allocation9_spill] sm:$0xff] %v7578_v34  ;;  %v14171_v34 = vld [vmem:[#allocation12_spill] sm:$0xff] }
 0x1d4   : > { %1480 = vrot.lane.b32.xlu1 %v14165_v43, %s13656_s9  ;;  %1482 = vrot.lane.b32.xlu0 %v6830_v51, %s13656_s9 }
 0x1d6   : > { %v7584_v44 = vpop.permute.xlu1 %888  ;;  %v7586_v40 = vpop.permute.xlu0 %890 }
 0x1d7   : > { %14166 = vst [vmem:[#allocation10_spill] sm:$0xff] %v7584_v44  ;;  %14167 = vst [vmem:[#allocation80_spill] sm:$0xff] %v7586_v40  ;;  %v14175_v40 = vld [vmem:[#allocation14_spill] sm:$0xff] }
 0x1d8   : > { %1484 = vrot.lane.b32.xlu1 %v6835_v56, %s13656_s9  ;;  %1486 = vrot.lane.b32.xlu0 %v14168_v32, %s13656_s9 }
 0x1da   : > { %v7592_v36 = vpop.permute.xlu1 %892  ;;  %v7594_v38 = vpop.permute.xlu0 %894 }
 0x1db   : > { %14169 = vst [vmem:[#allocation11_spill] sm:$0xff] %v7592_v36  ;;  %14170 = vst [vmem:[#allocation81_spill] sm:$0xff] %v7594_v38  ;;  %v14179_v38 = vld [vmem:[#allocation16_spill] sm:$0xff] }
 0x1dc   : > { %1488 = vrot.lane.b32.xlu1 %v14171_v34, %s13656_s9  ;;  %1490 = vrot.lane.b32.xlu0 %v14172_v30, %s13656_s9 }
 0x1de   : > { %v7600_v37 = vpop.permute.xlu1 %896  ;;  %v7602_v44 = vpop.permute.xlu0 %898 }
 0x1df   : > { %14173 = vst [vmem:[#allocation12_spill] sm:$0xff] %v7600_v37  ;;  %14174 = vst [vmem:[#allocation13_spill] sm:$0xff] %v7602_v44  ;;  %v14183_v44 = vld [vmem:[#allocation18_spill] sm:$0xff] }
 0x1e0   : > { %1492 = vrot.lane.b32.xlu1 %v14175_v40, %s13656_s9  ;;  %1494 = vrot.lane.b32.xlu0 %v14176_v28, %s13656_s9 }
 0x1e2   : > { %v7608_v35 = vpop.permute.xlu1 %900  ;;  %v7610_v36 = vpop.permute.xlu0 %902 }
 0x1e3   : > { %14177 = vst [vmem:[#allocation14_spill] sm:$0xff] %v7608_v35  ;;  %14178 = vst [vmem:[#allocation15_spill] sm:$0xff] %v7610_v36  ;;  %v14187_v36 = vld [vmem:[#allocation20_spill] sm:$0xff] }
 0x1e4   : > { %1496 = vrot.lane.b32.xlu1 %v14179_v38, %s13656_s9  ;;  %1498 = vrot.lane.b32.xlu0 %v14180_v26, %s13656_s9 }
 0x1e6   : > { %v7616_v33 = vpop.permute.xlu1 %904  ;;  %v7618_v37 = vpop.permute.xlu0 %906 }
 0x1e7   : > { %14181 = vst [vmem:[#allocation16_spill] sm:$0xff] %v7616_v33  ;;  %14182 = vst [vmem:[#allocation17_spill] sm:$0xff] %v7618_v37  ;;  %v14191_v37 = vld [vmem:[#allocation22_spill] sm:$0xff] }
 0x1e8   : > { %1500 = vrot.lane.b32.xlu1 %v14183_v44, %s13656_s9  ;;  %1502 = vrot.lane.b32.xlu0 %v14184_v24, %s13656_s9 }
 0x1ea   : > { %v7624_v31 = vpop.permute.xlu1 %908  ;;  %v7626_v35 = vpop.permute.xlu0 %910 }
 0x1eb   : > { %14185 = vst [vmem:[#allocation18_spill] sm:$0xff] %v7624_v31  ;;  %14186 = vst [vmem:[#allocation19_spill] sm:$0xff] %v7626_v35  ;;  %v14195_v35 = vld [vmem:[#allocation24_spill] sm:$0xff] }
 0x1ec   : > { %1504 = vrot.lane.b32.xlu1 %v14187_v36, %s13656_s9  ;;  %1506 = vrot.lane.b32.xlu0 %v14188_v22, %s13656_s9 }
 0x1ee   : > { %v7632_v29 = vpop.permute.xlu1 %912  ;;  %v7634_v33 = vpop.permute.xlu0 %914 }
 0x1ef   : > { %14189 = vst [vmem:[#allocation20_spill] sm:$0xff] %v7632_v29  ;;  %14190 = vst [vmem:[#allocation21_spill] sm:$0xff] %v7634_v33  ;;  %v14199_v33 = vld [vmem:[#allocation26_spill] sm:$0xff] }
 0x1f0   : > { %1508 = vrot.lane.b32.xlu1 %v14191_v37, %s13656_s9  ;;  %1510 = vrot.lane.b32.xlu0 %v14192_v20, %s13656_s9 }
 0x1f2   : > { %v7640_v27 = vpop.permute.xlu1 %916  ;;  %v7642_v31 = vpop.permute.xlu0 %918 }
 0x1f3   : > { %14193 = vst [vmem:[#allocation22_spill] sm:$0xff] %v7640_v27  ;;  %14194 = vst [vmem:[#allocation23_spill] sm:$0xff] %v7642_v31  ;;  %v14203_v31 = vld [vmem:[#allocation28_spill] sm:$0xff] }
 0x1f4   : > { %1512 = vrot.lane.b32.xlu1 %v14195_v35, %s13656_s9  ;;  %1514 = vrot.lane.b32.xlu0 %v14196_v11, %s13656_s9 }
 0x1f6   : > { %v7648_v25 = vpop.permute.xlu1 %920  ;;  %v7650_v29 = vpop.permute.xlu0 %922 }
 0x1f7   : > { %14197 = vst [vmem:[#allocation24_spill] sm:$0xff] %v7648_v25  ;;  %14198 = vst [vmem:[#allocation25_spill] sm:$0xff] %v7650_v29  ;;  %v14207_v29 = vld [vmem:[#allocation30_spill] sm:$0xff] }
 0x1f8   : > { %1516 = vrot.lane.b32.xlu1 %v14199_v33, %s13656_s9  ;;  %1518 = vrot.lane.b32.xlu0 %v14200_v13, %s13656_s9 }
 0x1fa   : > { %v7656_v23 = vpop.permute.xlu1 %924  ;;  %v7658_v27 = vpop.permute.xlu0 %926 }
 0x1fb   : > { %14201 = vst [vmem:[#allocation26_spill] sm:$0xff] %v7656_v23  ;;  %14202 = vst [vmem:[#allocation27_spill] sm:$0xff] %v7658_v27  ;;  %v14211_v27 = vld [vmem:[#allocation32_spill] sm:$0xff] }
 0x1fc   : > { %1520 = vrot.lane.b32.xlu1 %v14203_v31, %s13656_s9  ;;  %1522 = vrot.lane.b32.xlu0 %v14204_v12, %s13656_s9 }
 0x1fe   : > { %v7664_v21 = vpop.permute.xlu1 %928  ;;  %v7666_v25 = vpop.permute.xlu0 %930 }
 0x1ff   : > { %14205 = vst [vmem:[#allocation28_spill] sm:$0xff] %v7664_v21  ;;  %14206 = vst [vmem:[#allocation29_spill] sm:$0xff] %v7666_v25  ;;  %v14215_v25 = vld [vmem:[#allocation34_spill] sm:$0xff] }
 0x200   : > { %1524 = vrot.lane.b32.xlu1 %v14207_v29, %s13656_s9  ;;  %1526 = vrot.lane.b32.xlu0 %v14208_v14, %s13656_s9 }
 0x202   : > { %v7672_v19 = vpop.permute.xlu1 %932  ;;  %v7674_v23 = vpop.permute.xlu0 %934 }
 0x203   : > { %14209 = vst [vmem:[#allocation30_spill] sm:$0xff] %v7672_v19  ;;  %14210 = vst [vmem:[#allocation31_spill] sm:$0xff] %v7674_v23  ;;  %v14219_v23 = vld [vmem:[#allocation36_spill] sm:$0xff] }
 0x204   : > { %1528 = vrot.lane.b32.xlu1 %v14211_v27, %s13656_s9  ;;  %1530 = vrot.lane.b32.xlu0 %v14212_v18, %s13656_s9 }
 0x206   : > { %v7680_v17 = vpop.permute.xlu1 %936  ;;  %v7682_v21 = vpop.permute.xlu0 %938 }
 0x207   : > { %14213 = vst [vmem:[#allocation32_spill] sm:$0xff] %v7680_v17  ;;  %14214 = vst [vmem:[#allocation33_spill] sm:$0xff] %v7682_v21  ;;  %v14223_v21 = vld [vmem:[#allocation38_spill] sm:$0xff] }
 0x208   : > { %1532 = vrot.lane.b32.xlu1 %v14215_v25, %s13656_s9  ;;  %1534 = vrot.lane.b32.xlu0 %v14216_v10, %s13656_s9 }
 0x20a   : > { %v7688_v9 = vpop.permute.xlu1 %940  ;;  %v7690_v19 = vpop.permute.xlu0 %942 }
 0x20b   : > { %14217 = vst [vmem:[#allocation34_spill] sm:$0xff] %v7688_v9  ;;  %14218 = vst [vmem:[#allocation35_spill] sm:$0xff] %v7690_v19  ;;  %v14227_v19 = vld [vmem:[#allocation40_spill] sm:$0xff] }
 0x20c   : > { %1536 = vrot.lane.b32.xlu1 %v14219_v23, %s13656_s9  ;;  %1538 = vrot.lane.b32.xlu0 %v14220_v16, %s13656_s9 }
 0x20e   : > { %v7696_v8 = vpop.permute.xlu1 %944  ;;  %v7698_v17 = vpop.permute.xlu0 %946 }
 0x20f   : > { %14221 = vst [vmem:[#allocation36_spill] sm:$0xff] %v7696_v8  ;;  %14222 = vst [vmem:[#allocation37_spill] sm:$0xff] %v7698_v17  ;;  %v14231_v17 = vld [vmem:[#allocation42_spill] sm:$0xff] }
 0x210   : > { %1540 = vrot.lane.b32.xlu1 %v14223_v21, %s13656_s9  ;;  %1542 = vrot.lane.b32.xlu0 %v14224_v7, %s13656_s9 }
 0x212   : > { %v7704_v6 = vpop.permute.xlu1 %948  ;;  %v7706_v9 = vpop.permute.xlu0 %950 }
 0x213   : > { %14225 = vst [vmem:[#allocation38_spill] sm:$0xff] %v7704_v6  ;;  %14226 = vst [vmem:[#allocation39_spill] sm:$0xff] %v7706_v9  ;;  %v14235_v9 = vld [vmem:[#allocation44_spill] sm:$0xff] }
 0x214   : > { %1544 = vrot.lane.b32.xlu1 %v14227_v19, %s13656_s9  ;;  %1546 = vrot.lane.b32.xlu0 %v14228_v5, %s13656_s9 }
 0x216   : > { %v7712_v4 = vpop.permute.xlu1 %952  ;;  %v7714_v8 = vpop.permute.xlu0 %954 }
 0x217   : > { %14229 = vst [vmem:[#allocation40_spill] sm:$0xff] %v7712_v4  ;;  %14230 = vst [vmem:[#allocation41_spill] sm:$0xff] %v7714_v8  ;;  %v14238_v8 = vld [vmem:[#allocation45_spill] sm:$0xff] }
 0x218   : > { %1548 = vrot.lane.b32.xlu1 %v14231_v17, %s13656_s9  ;;  %1550 = vrot.lane.b32.xlu0 %v14232_v3, %s13656_s9 }
 0x21a   : > { %v7720_v2 = vpop.permute.xlu1 %956  ;;  %v7722_v6 = vpop.permute.xlu0 %958 }
 0x21b   : > { %14233 = vst [vmem:[#allocation42_spill] sm:$0xff] %v7720_v2  ;;  %14234 = vst [vmem:[#allocation43_spill] sm:$0xff] %v7722_v6 }
 0x21c   : > { %1552 = vrot.lane.b32.xlu1 %v14235_v9, %s13656_s9  ;;  %1554 = vrot.lane.b32.xlu0 %v7173_v15, %s13656_s9 }
 0x21e   : > { %v7728_v1 = vpop.permute.xlu1 %960  ;;  %v7730_v4 = vpop.permute.xlu0 %962 }
 0x21f   : > { %14236 = vst [vmem:[#allocation44_spill] sm:$0xff] %v7728_v1  ;;  %14237 = vst [vmem:[#allocation82_spill] sm:$0xff] %v7730_v4 }
 0x220   : > { %1556 = vrot.lane.b32.xlu1 %v14238_v8, %s13656_s9  ;;  %1846 = vrot.lane.b32.xlu0 %v6734_v58, %s13675_s18  ;;  %s7866_s9 = spop %5283 }
 0x221   : > { %14254 = sst [smem:[#allocation97_spill]] %s7866_s9  ;;  %s7872_s0 = spop %5285 }
 0x222   : > { %v7736_v2 = vpop.permute.xlu1 %964  ;;  %v7738_v6 = vpop.permute.xlu0 %966  ;;  %14255 = sst [smem:[#allocation98_spill]] %s7872_s0  ;;  %s7874_s15 = spop %5287 }
 0x223   : > { %14239 = vst [vmem:[#allocation45_spill] sm:$0xff] %v7736_v2  ;;  %14240 = vst [vmem:[#allocation83_spill] sm:$0xff] %v7738_v6  ;;  %14256 = sst [smem:[#allocation99_spill]] %s7874_s15  ;;  %s7880_s13 = spop %5289 }
 0x224   : > { %1848 = vrot.lane.b32.xlu1 %v6746_v63, %s13675_s18  ;;  %1850 = vrot.lane.b32.xlu0 %v6751_v48, %s13675_s18  ;;  %14257 = sst [smem:[#allocation100_spill]] %s7880_s13  ;;  %s7882_s14 = spop %5291 }
 0x225   : > { %14258 = sst [smem:[#allocation101_spill]] %s7882_s14  ;;  %s7884_s3 = spop %5293 }
 0x226   : > { %v7744_v1 = vpop.permute.xlu1 %968  ;;  %v7746_v4 = vpop.permute.xlu0 %970  ;;  %14259 = sst [smem:[#allocation102_spill]] %s7884_s3  ;;  %s7890_s12 = spop %5295 }
 0x227   : > { %14241 = vst [vmem:[#allocation84_spill] sm:$0xff] %v7744_v1  ;;  %14242 = vst [vmem:[#allocation85_spill] sm:$0xff] %v7746_v4  ;;  %14260 = sst [smem:[#allocation103_spill]] %s7890_s12  ;;  %s7892_s2 = spop %5297  ;;  %v6184_v4 = vld [vmem:[%s14085_s1 + $0xb8] sm:$0x7] }
 0x228   : > { %1852 = vrot.lane.b32.xlu1 %v6764_v53, %s13675_s18  ;;  %1854 = vrot.lane.b32.xlu0 %v6776_v59, %s13675_s18  ;;  %14261 = sst [smem:[#allocation104_spill]] %s7892_s2  ;;  %s7894_s19 = spop %5299 }
 0x229   : > { %14262 = sst [smem:[#allocation105_spill]] %s7894_s19  ;;  %s7900_s3 = spop %5301 }
 0x22a   : > { %v7752_v58 = vpop.permute.xlu1 %972  ;;  %v7754_v2 = vpop.permute.xlu0 %974  ;;  %14263 = sst [smem:[#allocation106_spill]] %s7900_s3  ;;  %s7902_s14 = spop %5303 }
 0x22b   : > { %14243 = vst [vmem:[#allocation86_spill] sm:$0xff] %v7752_v58  ;;  %14244 = vst [vmem:[#allocation87_spill] sm:$0xff] %v7754_v2  ;;  %14264 = sst [smem:[#allocation107_spill]] %s7902_s14  ;;  %s7913_s12 = spop %5305  ;;  %v6182_v2 = vld [vmem:[%s14085_s1 + $0xb0] sm:$0x7] }
 0x22c   : > { %1856 = vrot.lane.b32.xlu1 %v6781_v60, %s13675_s18  ;;  %1858 = vrot.lane.b32.xlu0 %v14158_v39, %s13675_s18  ;;  %14265 = sst [smem:[#allocation108_spill]] %s7913_s12  ;;  %s7915_s3 = spop %5307  ;;  %v8337_v58 = vrot.slane %v6182_v2, 1  ;;  %v6183_v2 = vld [vmem:[%s14085_s1 + $0xb4] sm:$0x7] }
 0x22d   : > { %14266 = sst [smem:[#allocation109_spill]] %s7915_s3  ;;  %s7917_s14 = spop %5309 }
 0x22e   : > { %v7760_v63 = vpop.permute.xlu1 %976  ;;  %v7762_v48 = vpop.permute.xlu0 %978  ;;  %14267 = sst [smem:[#allocation110_spill]] %s7917_s14  ;;  %s14268_s13 = smov 127   ;;  %14325 = vst [vmem:[#allocation167_spill] sm:$0xff] %v8337_v58 }
 0x22f   : > { %14245 = vst [vmem:[#allocation88_spill] sm:$0xff] %v7760_v63  ;;  %14246 = vst [vmem:[#allocation89_spill] sm:$0xff] %v7762_v48  ;;  %s7933_s14 = spop %5311  ;;  %v6180_v48 = vld [vmem:[%s14085_s1 + $0xa8] sm:$0x7]  ;;  %s14373_s6 = sld [smem:[#allocation106_spill]] }
 0x230   : > { %1860 = vrot.lane.b32.xlu1 %v14161_v41, %s13675_s18  ;;  %1862 = vrot.lane.b32.xlu0 %v14162_v42, %s13675_s18  ;;  %14269 = sst [smem:[#allocation111_spill]] %s7933_s14 }
 0x231   : > { %s14376_s16 = sld [smem:[#allocation108_spill]] }
 0x232   : > { %v7768_v53 = vpop.permute.xlu1 %980  ;;  %v1463_v59 = vpop.permute.xlu0 %1462  ;;  %s14377_s9 = sld [smem:[#allocation109_spill]] }
 0x233   : > { %14247 = vst [vmem:[#allocation90_spill] sm:$0xff] %v7768_v53  ;;  %5339 = vpush %v1463_v59  ;;  %v6140_v59 = vld [vmem:[%s14085_s1 + $0x8] sm:$0x7] }
 0x234   : > { %1864 = vrot.lane.b32.xlu1 %v14165_v43, %s13675_s18  ;;  %1866 = vrot.lane.b32.xlu0 %v6830_v51, %s13675_s18 }
 0x236   : > { %v1465_v60 = vpop.permute.xlu1 %1464  ;;  %v1467_v39 = vpop.permute.xlu0 %1466 }
 0x237   : > { %5341 = vpush %v1465_v60  ;;  %v7931_v60 = vrot.slane %v6140_v59, 1  ;;  %v6154_v59 = vld [vmem:[%s14085_s1 + $0x40] sm:$0x7] }
 0x238   : > { %5343 = vpush %v1467_v39  ;;  %1868 = vrot.lane.b32.xlu1 %v6835_v56, %s13675_s18  ;;  %1870 = vrot.lane.b32.xlu0 %v14168_v32, %s13675_s18 }
 0x23a   : > { %v1469_v41 = vpop.permute.xlu1 %1468  ;;  %v1471_v42 = vpop.permute.xlu0 %1470 }
 0x23b   : > { %5345 = vpush %v1469_v41 }
 0x23c   : > { %5347 = vpush %v1471_v42  ;;  %1872 = vrot.lane.b32.xlu1 %v14171_v34, %s13675_s18  ;;  %1874 = vrot.lane.b32.xlu0 %v14172_v30, %s13675_s18 }
 0x23e   : > { %v1473_v51 = vpop.permute.xlu1 %1472  ;;  %v1475_v43 = vpop.permute.xlu0 %1474 }
 0x23f   : > { %5349 = vpush %v1473_v51  ;;  %v6142_v51 = vld [vmem:[%s14085_s1 + $0x10] sm:$0x7] }
 0x240   : > { %5351 = vpush %v1475_v43  ;;  %1876 = vrot.lane.b32.xlu1 %v14175_v40, %s13675_s18  ;;  %1878 = vrot.lane.b32.xlu0 %v14176_v28, %s13675_s18  ;;  %v7951_v43 = vrot.slane %v6142_v51, 1  ;;  %v6155_v51 = vld [vmem:[%s14085_s1 + $0x44] sm:$0x7] }
 0x242   : > { %v1477_v56 = vpop.permute.xlu1 %1476  ;;  %v1479_v32 = vpop.permute.xlu0 %1478 }
 0x243   : > { %5353 = vpush %v1477_v56 }
 0x244   : > { %5355 = vpush %v1479_v32  ;;  %1880 = vrot.lane.b32.xlu1 %v14179_v38, %s13675_s18  ;;  %1882 = vrot.lane.b32.xlu0 %v14180_v26, %s13675_s18 }
 0x246   : > { %v1481_v30 = vpop.permute.xlu1 %1480  ;;  %v1483_v34 = vpop.permute.xlu0 %1482 }
 0x247   : > { %5357 = vpush %v1481_v30  ;;  %v6143_v30 = vld [vmem:[%s14085_s1 + $0x14] sm:$0x7] }
 0x248   : > { %5359 = vpush %v1483_v34  ;;  %1884 = vrot.lane.b32.xlu1 %v14183_v44, %s13675_s18  ;;  %1886 = vrot.lane.b32.xlu0 %v14184_v24, %s13675_s18  ;;  %v7964_v34 = vrot.slane %v6143_v30, 1 }
 0x24a   : > { %v1485_v28 = vpop.permute.xlu1 %1484  ;;  %v1487_v40 = vpop.permute.xlu0 %1486 }
 0x24b   : > { %5361 = vpush %v1485_v28  ;;  %v6144_v28 = vld [vmem:[%s14085_s1 + $0x18] sm:$0x7] }
 0x24c   : > { %5363 = vpush %v1487_v40  ;;  %1888 = vrot.lane.b32.xlu1 %v14187_v36, %s13675_s18  ;;  %1890 = vrot.lane.b32.xlu0 %v14188_v22, %s13675_s18  ;;  %v7969_v40 = vrot.slane %v6144_v28, 1 }
 0x24e   : > { %v1489_v26 = vpop.permute.xlu1 %1488  ;;  %v1491_v38 = vpop.permute.xlu0 %1490 }
 0x24f   : > { %5365 = vpush %v1489_v26 }
 0x250   : > { %5367 = vpush %v1491_v38  ;;  %1892 = vrot.lane.b32.xlu1 %v14191_v37, %s13675_s18  ;;  %1894 = vrot.lane.b32.xlu0 %v14192_v20, %s13675_s18 }
 0x252   : > { %v1493_v24 = vpop.permute.xlu1 %1492  ;;  %v1495_v36 = vpop.permute.xlu0 %1494 }
 0x253   : > { %5369 = vpush %v1493_v24  ;;  %v6145_v24 = vld [vmem:[%s14085_s1 + $0x1c] sm:$0x7] }
 0x254   : > { %5371 = vpush %v1495_v36  ;;  %1896 = vrot.lane.b32.xlu1 %v14195_v35, %s13675_s18  ;;  %1898 = vrot.lane.b32.xlu0 %v14196_v11, %s13675_s18  ;;  %v7984_v36 = vrot.slane %v6145_v24, 1 }
 0x256   : > { %v1497_v22 = vpop.permute.xlu1 %1496  ;;  %v1499_v20 = vpop.permute.xlu0 %1498 }
 0x257   : > { %5373 = vpush %v1497_v22  ;;  %v6146_v22 = vld [vmem:[%s14085_s1 + $0x20] sm:$0x7] }
 0x258   : > { %5375 = vpush %v1499_v20  ;;  %1900 = vrot.lane.b32.xlu1 %v14199_v33, %s13675_s18  ;;  %1902 = vrot.lane.b32.xlu0 %v14200_v13, %s13675_s18  ;;  %v7989_v20 = vrot.slane %v6146_v22, 1  ;;  %v6158_v22 = vld [vmem:[%s14085_s1 + $0x50] sm:$0x7] }
 0x25a   : > { %v1501_v35 = vpop.permute.xlu1 %1500  ;;  %v1503_v11 = vpop.permute.xlu0 %1502 }
 0x25b   : > { %5377 = vpush %v1501_v35 }
 0x25c   : > { %5379 = vpush %v1503_v11  ;;  %1904 = vrot.lane.b32.xlu1 %v14203_v31, %s13675_s18  ;;  %1906 = vrot.lane.b32.xlu0 %v14204_v12, %s13675_s18 }
 0x25e   : > { %v1505_v33 = vpop.permute.xlu1 %1504  ;;  %v1507_v13 = vpop.permute.xlu0 %1506 }
 0x25f   : > { %5381 = vpush %v1505_v33  ;;  %v6147_v33 = vld [vmem:[%s14085_s1 + $0x24] sm:$0x7] }
 0x260   : > { %5383 = vpush %v1507_v13  ;;  %1908 = vrot.lane.b32.xlu1 %v14207_v29, %s13675_s18  ;;  %1910 = vrot.lane.b32.xlu0 %v14208_v14, %s13675_s18  ;;  %v8004_v13 = vrot.slane %v6147_v33, 1 }
 0x262   : > { %v1509_v31 = vpop.permute.xlu1 %1508  ;;  %v1511_v12 = vpop.permute.xlu0 %1510 }
 0x263   : > { %5385 = vpush %v1509_v31  ;;  %v6148_v31 = vld [vmem:[%s14085_s1 + $0x28] sm:$0x7] }
 0x264   : > { %5387 = vpush %v1511_v12  ;;  %1912 = vrot.lane.b32.xlu1 %v14211_v27, %s13675_s18  ;;  %1914 = vrot.lane.b32.xlu0 %v14212_v18, %s13675_s18  ;;  %v8009_v12 = vrot.slane %v6148_v31, 1  ;;  %v6159_v31 = vld [vmem:[%s14085_s1 + $0x54] sm:$0x7] }
 0x266   : > { %v1513_v29 = vpop.permute.xlu1 %1512  ;;  %v1515_v14 = vpop.permute.xlu0 %1514 }
 0x267   : > { %5389 = vpush %v1513_v29 }
 0x268   : > { %5391 = vpush %v1515_v14  ;;  %1916 = vrot.lane.b32.xlu1 %v14215_v25, %s13675_s18  ;;  %1918 = vrot.lane.b32.xlu0 %v14216_v10, %s13675_s18 }
 0x26a   : > { %v1517_v27 = vpop.permute.xlu1 %1516  ;;  %v1519_v18 = vpop.permute.xlu0 %1518 }
 0x26b   : > { %5393 = vpush %v1517_v27  ;;  %v6149_v27 = vld [vmem:[%s14085_s1 + $0x2c] sm:$0x7] }
 0x26c   : > { %5395 = vpush %v1519_v18  ;;  %1920 = vrot.lane.b32.xlu1 %v14219_v23, %s13675_s18  ;;  %1922 = vrot.lane.b32.xlu0 %v14220_v16, %s13675_s18  ;;  %v8022_v18 = vrot.slane %v6149_v27, 1 }
 0x26e   : > { %v1521_v25 = vpop.permute.xlu1 %1520  ;;  %v1523_v10 = vpop.permute.xlu0 %1522 }
 0x26f   : > { %5397 = vpush %v1521_v25  ;;  %v6150_v25 = vld [vmem:[%s14085_s1 + $0x30] sm:$0x7] }
 0x270   : > { %5399 = vpush %v1523_v10  ;;  %1924 = vrot.lane.b32.xlu1 %v14223_v21, %s13675_s18  ;;  %1926 = vrot.lane.b32.xlu0 %v14224_v7, %s13675_s18  ;;  %v8027_v10 = vrot.slane %v6150_v25, 1 }
 0x272   : > { %v1525_v23 = vpop.permute.xlu1 %1524  ;;  %v1527_v16 = vpop.permute.xlu0 %1526 }
 0x273   : > { %5401 = vpush %v1525_v23 }
 0x274   : > { %5403 = vpush %v1527_v16  ;;  %1928 = vrot.lane.b32.xlu1 %v14227_v19, %s13675_s18  ;;  %1930 = vrot.lane.b32.xlu0 %v14228_v5, %s13675_s18 }
 0x276   : > { %v1529_v21 = vpop.permute.xlu1 %1528  ;;  %v1531_v7 = vpop.permute.xlu0 %1530 }
 0x277   : > { %5405 = vpush %v1529_v21  ;;  %v6151_v21 = vld [vmem:[%s14085_s1 + $0x34] sm:$0x7] }
 0x278   : > { %5407 = vpush %v1531_v7  ;;  %1932 = vrot.lane.b32.xlu1 %v14231_v17, %s13675_s18  ;;  %1934 = vrot.lane.b32.xlu0 %v14232_v3, %s13675_s18  ;;  %v6138_v17 = vld [vmem:[%s14085_s1] sm:$0x7]  ;;  %v8042_v7 = vrot.slane %v6151_v21, 1 }
 0x279   : > { %v7911_v37 = vrot.slane %v6138_v17, 1 }
 0x27a   : > { %v1533_v19 = vpop.permute.xlu1 %1532  ;;  %v1535_v5 = vpop.permute.xlu0 %1534 }
 0x27b   : > { %5409 = vpush %v1533_v19  ;;  %v6152_v19 = vld [vmem:[%s14085_s1 + $0x38] sm:$0x7] }
 0x27c   : > { %5411 = vpush %v1535_v5  ;;  %1936 = vrot.lane.b32.xlu1 %v14235_v9, %s13675_s18  ;;  %1938 = vrot.lane.b32.xlu0 %v7173_v15, %s13675_s18  ;;  %v6139_v15 = vld [vmem:[%s14085_s1 + $0x4] sm:$0x7]  ;;  %v8047_v5 = vrot.slane %v6152_v19, 1  ;;  %v6162_v19 = vld [vmem:[%s14085_s1 + $0x60] sm:$0x7] }
 0x27d   : > { %v7926_v9 = vrot.slane %v6139_v15, 1 }
 0x27e   : > { %v1537_v3 = vpop.permute.xlu1 %1536  ;;  %v1539_v44 = vpop.permute.xlu0 %1538 }
 0x27f   : > { %5413 = vpush %v1537_v3 }
 0x280   : > { %5415 = vpush %v1539_v44  ;;  %1940 = vrot.lane.b32.xlu1 %v14238_v8, %s13675_s18  ;;  %2569 = vrot.lane.b32.xlu0 %v7911_v37, %s14268_s13  ;;  %s7935_s18 = spop %5313  ;;  %v6141_v8 = vld [vmem:[%s14085_s1 + $0xc] sm:$0x7]  ;;  %v6153_v44 = vld [vmem:[%s14085_s1 + $0x3c] sm:$0x7] }
 0x281   : > { %14270 = sst [smem:[#allocation112_spill]] %s7935_s18  ;;  %s7937_s15 = spop %5315  ;;  %v7946_v42 = vrot.slane %v6141_v8, 1  ;;  %v8062_v15 = vrot.slane %v6153_v44, 1 }
 0x282   : > { %v1541_v39 = vpop.permute.xlu1 %1540  ;;  %v1543_v41 = vpop.permute.xlu0 %1542  ;;  %14271 = sst [smem:[#allocation113_spill]] %s7937_s15  ;;  %s7953_s15 = spop %5317 }
 0x283   : > { %5417 = vpush %v1541_v39  ;;  %14272 = sst [smem:[#allocation114_spill]] %s7953_s15  ;;  %s7955_s18 = spop %5319  ;;  %v8067_v39 = vrot.slane %v6154_v59, 1  ;;  %v6163_v59 = vld [vmem:[%s14085_s1 + $0x64] sm:$0x7] }
 0x284   : > { %5419 = vpush %v1543_v41  ;;  %2571 = vrot.lane.b32.xlu1 %v7926_v9, %s14268_s13  ;;  %2573 = vrot.lane.b32.xlu0 %v7931_v60, %s14268_s13  ;;  %14273 = sst [smem:[#allocation115_spill]] %s7955_s18  ;;  %s7971_s18 = spop %5321 }
 0x285   : > { %14274 = sst [smem:[#allocation116_spill]] %s7971_s18  ;;  %s7973_s15 = spop %5323 }
 0x286   : > { %v1545_v56 = vpop.permute.xlu1 %1544  ;;  %v1547_v32 = vpop.permute.xlu0 %1546  ;;  %14275 = sst [smem:[#allocation117_spill]] %s7973_s15  ;;  %s7975_s14 = spop %5325 }
 0x287   : > { %5421 = vpush %v1545_v56  ;;  %14276 = sst [smem:[#allocation118_spill]] %s7975_s14  ;;  %s7991_s14 = spop %5327  ;;  %v8082_v56 = vrot.slane %v6155_v51, 1 }
 0x288   : > { %5423 = vpush %v1547_v32  ;;  %2575 = vrot.lane.b32.xlu1 %v7946_v42, %s14268_s13  ;;  %2577 = vrot.lane.b32.xlu0 %v7951_v43, %s14268_s13  ;;  %14277 = sst [smem:[#allocation119_spill]] %s7991_s14  ;;  %s7993_s15 = spop %5329  ;;  %v6156_v32 = vld [vmem:[%s14085_s1 + $0x48] sm:$0x7] }
 0x289   : > { %14278 = sst [smem:[#allocation120_spill]] %s7993_s15  ;;  %s7995_s18 = spop %5331  ;;  %v8087_v30 = vrot.slane %v6156_v32, 1 }
 0x28a   : > { %v1549_v26 = vpop.permute.xlu1 %1548  ;;  %v1551_v38 = vpop.permute.xlu0 %1550  ;;  %14279 = sst [smem:[#allocation121_spill]] %s7995_s18  ;;  %s8011_s18 = spop %5333 }
 0x28b   : > { %5425 = vpush %v1549_v26  ;;  %14280 = sst [smem:[#allocation122_spill]] %s8011_s18  ;;  %s8013_s15 = spop %5335 }
 0x28c   : > { %5427 = vpush %v1551_v38  ;;  %2579 = vrot.lane.b32.xlu1 %v7964_v34, %s14268_s13  ;;  %2581 = vrot.lane.b32.xlu0 %v7969_v40, %s14268_s13  ;;  %14281 = sst [smem:[#allocation123_spill]] %s8013_s15  ;;  %s8029_s15 = spop %5337  ;;  %v6157_v38 = vld [vmem:[%s14085_s1 + $0x4c] sm:$0x7] }
 0x28d   : > { %14282 = sst [smem:[#allocation124_spill]] %s8029_s15  ;;  %s8031_s18 = spop %5339  ;;  %v8100_v24 = vrot.slane %v6157_v38, 1 }
 0x28e   : > { %v1553_v35 = vpop.permute.xlu1 %1552  ;;  %v1555_v11 = vpop.permute.xlu0 %1554  ;;  %14283 = sst [smem:[#allocation125_spill]] %s8031_s18  ;;  %s8033_s14 = spop %5341 }
 0x28f   : > { %5429 = vpush %v1553_v35  ;;  %14284 = sst [smem:[#allocation126_spill]] %s8033_s14  ;;  %s8049_s14 = spop %5343  ;;  %v8105_v35 = vrot.slane %v6158_v22, 1  ;;  %v6166_v22 = vld [vmem:[%s14085_s1 + $0x70] sm:$0x7] }
 0x290   : > { %5431 = vpush %v1555_v11  ;;  %2583 = vrot.lane.b32.xlu1 %v7984_v36, %s14268_s13  ;;  %2585 = vrot.lane.b32.xlu0 %v7989_v20, %s14268_s13  ;;  %14285 = sst [smem:[#allocation127_spill]] %s8049_s14  ;;  %s8051_s18 = spop %5345 }
 0x291   : > { %14286 = sst [smem:[#allocation128_spill]] %s8051_s18  ;;  %s8053_s15 = spop %5347 }
 0x292   : > { %v1557_v29 = vpop.permute.xlu1 %1556  ;;  %v1847_v14 = vpop.permute.xlu0 %1846  ;;  %14287 = sst [smem:[#allocation129_spill]] %s8053_s15  ;;  %s8069_s15 = spop %5349 }
 0x293   : > { %5433 = vpush %v1557_v29  ;;  %14288 = sst [smem:[#allocation130_spill]] %s8069_s15  ;;  %s8071_s18 = spop %5351  ;;  %v8120_v29 = vrot.slane %v6159_v31, 1 }
 0x294   : > { %5435 = vpush %v1847_v14  ;;  %2587 = vrot.lane.b32.xlu1 %v8004_v13, %s14268_s13  ;;  %2589 = vrot.lane.b32.xlu0 %v8009_v12, %s14268_s13  ;;  %14289 = sst [smem:[#allocation131_spill]] %s8071_s18  ;;  %s8073_s14 = spop %5353  ;;  %v6160_v14 = vld [vmem:[%s14085_s1 + $0x58] sm:$0x7] }
 0x295   : > { %14290 = sst [smem:[#allocation132_spill]] %s8073_s14  ;;  %s8089_s14 = spop %5355  ;;  %v8125_v27 = vrot.slane %v6160_v14, 1  ;;  %v6167_v14 = vld [vmem:[%s14085_s1 + $0x74] sm:$0x7] }
 0x296   : > { %v1849_v23 = vpop.permute.xlu1 %1848  ;;  %v1851_v16 = vpop.permute.xlu0 %1850  ;;  %14291 = sst [smem:[#allocation133_spill]] %s8089_s14  ;;  %s8091_s18 = spop %5357 }
 0x297   : > { %5437 = vpush %v1849_v23  ;;  %14292 = sst [smem:[#allocation134_spill]] %s8091_s18  ;;  %s8107_s18 = spop %5359 }
 0x298   : > { %5439 = vpush %v1851_v16  ;;  %2591 = vrot.lane.b32.xlu1 %v8022_v18, %s14268_s13  ;;  %2593 = vrot.lane.b32.xlu0 %v8027_v10, %s14268_s13  ;;  %14293 = sst [smem:[#allocation135_spill]] %s8107_s18  ;;  %s8109_s14 = spop %5361  ;;  %v6161_v16 = vld [vmem:[%s14085_s1 + $0x5c] sm:$0x7] }
 0x299   : > { %14294 = sst [smem:[#allocation136_spill]] %s8109_s14  ;;  %s8111_s15 = spop %5363  ;;  %v8140_v21 = vrot.slane %v6161_v16, 1 }
 0x29a   : > { %v1853_v17 = vpop.permute.xlu1 %1852  ;;  %v1855_v3 = vpop.permute.xlu0 %1854  ;;  %14295 = sst [smem:[#allocation137_spill]] %s8111_s15  ;;  %s8127_s15 = spop %5365 }
 0x29b   : > { %5441 = vpush %v1853_v17  ;;  %14296 = sst [smem:[#allocation138_spill]] %s8127_s15  ;;  %s8129_s14 = spop %5367  ;;  %v8145_v17 = vrot.slane %v6162_v19, 1 }
 0x29c   : > { %5443 = vpush %v1855_v3  ;;  %2595 = vrot.lane.b32.xlu1 %v8042_v7, %s14268_s13  ;;  %2597 = vrot.lane.b32.xlu0 %v8047_v5, %s14268_s13  ;;  %14297 = sst [smem:[#allocation139_spill]] %s8129_s14  ;;  %s8131_s18 = spop %5369 }
 0x29d   : > { %14298 = sst [smem:[#allocation140_spill]] %s8131_s18  ;;  %s8147_s18 = spop %5371 }
 0x29e   : > { %v1857_v41 = vpop.permute.xlu1 %1856  ;;  %v1859_v8 = vpop.permute.xlu0 %1858  ;;  %14299 = sst [smem:[#allocation141_spill]] %s8147_s18  ;;  %s8149_s14 = spop %5373 }
 0x29f   : > { %5445 = vpush %v1857_v41  ;;  %14300 = sst [smem:[#allocation142_spill]] %s8149_s14  ;;  %v8158_v41 = vrot.slane %v6163_v59, 1  ;;  %s8165_s14 = spop %5375 }
 0x2a0   : > { %5447 = vpush %v1859_v8  ;;  %2599 = vrot.lane.b32.xlu1 %v8062_v15, %s14268_s13  ;;  %2601 = vrot.lane.b32.xlu0 %v8067_v39, %s14268_s13  ;;  %v6164_v8 = vld [vmem:[%s14085_s1 + $0x68] sm:$0x7]  ;;  %14301 = sst [smem:[#allocation143_spill]] %s8165_s14  ;;  %s8167_s18 = spop %5377 }
 0x2a1   : > { %v8163_v51 = vrot.slane %v6164_v8, 1  ;;  %14302 = sst [smem:[#allocation144_spill]] %s8167_s18  ;;  %s8169_s15 = spop %5379  ;;  %v6170_v8 = vld [vmem:[%s14085_s1 + $0x80] sm:$0x7] }
 0x2a2   : > { %v1861_v28 = vpop.permute.xlu1 %1860  ;;  %v1863_v26 = vpop.permute.xlu0 %1862  ;;  %14303 = sst [smem:[#allocation145_spill]] %s8169_s15  ;;  %s8185_s15 = spop %5381 }
 0x2a3   : > { %5449 = vpush %v1861_v28  ;;  %14304 = sst [smem:[#allocation146_spill]] %s8185_s15  ;;  %s8187_s18 = spop %5383 }
 0x2a4   : > { %5451 = vpush %v1863_v26  ;;  %2603 = vrot.lane.b32.xlu1 %v8082_v56, %s14268_s13  ;;  %2605 = vrot.lane.b32.xlu0 %v8087_v30, %s14268_s13  ;;  %v6165_v26 = vld [vmem:[%s14085_s1 + $0x6c] sm:$0x7]  ;;  %14305 = sst [smem:[#allocation147_spill]] %s8187_s18  ;;  %s8189_s14 = spop %5385 }
 0x2a5   : > { %v8178_v38 = vrot.slane %v6165_v26, 1  ;;  %14306 = sst [smem:[#allocation148_spill]] %s8189_s14  ;;  %s8205_s14 = spop %5387 }
 0x2a6   : > { %v1865_v11 = vpop.permute.xlu1 %1864  ;;  %v1867_v33 = vpop.permute.xlu0 %1866  ;;  %14307 = sst [smem:[#allocation149_spill]] %s8205_s14  ;;  %s8207_s18 = spop %5389 }
 0x2a7   : > { %5453 = vpush %v1865_v11  ;;  %v8183_v11 = vrot.slane %v6166_v22, 1  ;;  %14308 = sst [smem:[#allocation150_spill]] %s8207_s18  ;;  %s8223_s18 = spop %5391  ;;  %v6171_v22 = vld [vmem:[%s14085_s1 + $0x84] sm:$0x7] }
 0x2a8   : > { %5455 = vpush %v1867_v33  ;;  %2607 = vrot.lane.b32.xlu1 %v8100_v24, %s14268_s13  ;;  %2609 = vrot.lane.b32.xlu0 %v8105_v35, %s14268_s13  ;;  %14309 = sst [smem:[#allocation151_spill]] %s8223_s18  ;;  %s8225_s14 = spop %5393 }
 0x2a9   : > { %14310 = sst [smem:[#allocation152_spill]] %s8225_s14  ;;  %s8227_s15 = spop %5395 }
 0x2aa   : > { %v1869_v25 = vpop.permute.xlu1 %1868  ;;  %v1871_v23 = vpop.permute.xlu0 %1870  ;;  %14311 = sst [smem:[#allocation153_spill]] %s8227_s15  ;;  %s8243_s15 = spop %5397 }
 0x2ab   : > { %5457 = vpush %v1869_v25  ;;  %v8198_v25 = vrot.slane %v6167_v14, 1  ;;  %14312 = sst [smem:[#allocation154_spill]] %s8243_s15  ;;  %s8245_s14 = spop %5399 }
 0x2ac   : > { %5459 = vpush %v1871_v23  ;;  %2611 = vrot.lane.b32.xlu1 %v8120_v29, %s14268_s13  ;;  %2613 = vrot.lane.b32.xlu0 %v8125_v27, %s14268_s13  ;;  %v6168_v23 = vld [vmem:[%s14085_s1 + $0x78] sm:$0x7]  ;;  %14313 = sst [smem:[#allocation155_spill]] %s8245_s14  ;;  %s8247_s18 = spop %5401 }
 0x2ad   : > { %v8203_v16 = vrot.slane %v6168_v23, 1  ;;  %14314 = sst [smem:[#allocation156_spill]] %s8247_s18  ;;  %s8263_s18 = spop %5403 }
 0x2ae   : > { %v1873_v3 = vpop.permute.xlu1 %1872  ;;  %v1875_v44 = vpop.permute.xlu0 %1874  ;;  %14315 = sst [smem:[#allocation157_spill]] %s8263_s18  ;;  %s8265_s14 = spop %5405 }
 0x2af   : > { %5461 = vpush %v1873_v3  ;;  %14316 = sst [smem:[#allocation158_spill]] %s8265_s14  ;;  %s8281_s14 = spop %5407 }
 0x2b0   : > { %5463 = vpush %v1875_v44  ;;  %2615 = vrot.lane.b32.xlu1 %v8140_v21, %s14268_s13  ;;  %2617 = vrot.lane.b32.xlu0 %v8145_v17, %s14268_s13  ;;  %v6169_v44 = vld [vmem:[%s14085_s1 + $0x7c] sm:$0x7]  ;;  %14317 = sst [smem:[#allocation159_spill]] %s8281_s14  ;;  %s8283_s18 = spop %5409 }
 0x2b1   : > { %v8216_v59 = vrot.slane %v6169_v44, 1  ;;  %14318 = sst [smem:[#allocation160_spill]] %s8283_s18  ;;  %s8285_s15 = spop %5411 }
 0x2b2   : > { %v1877_v32 = vpop.permute.xlu1 %1876  ;;  %v1879_v28 = vpop.permute.xlu0 %1878  ;;  %14319 = sst [smem:[#allocation161_spill]] %s8285_s15  ;;  %s8301_s15 = spop %5413 }
 0x2b3   : > { %5465 = vpush %v1877_v32  ;;  %v8221_v32 = vrot.slane %v6170_v8, 1  ;;  %v6174_v8 = vld [vmem:[%s14085_s1 + $0x90] sm:$0x7]  ;;  %14320 = sst [smem:[#allocation162_spill]] %s8301_s15  ;;  %s8303_s18 = spop %5415 }
 0x2b4   : > { %5467 = vpush %v1879_v28  ;;  %2619 = vrot.lane.b32.xlu1 %v8158_v41, %s14268_s13  ;;  %2621 = vrot.lane.b32.xlu0 %v8163_v51, %s14268_s13  ;;  %14321 = sst [smem:[#allocation163_spill]] %s8303_s18  ;;  %s8305_s14 = spop %5417 }
 0x2b5   : > { %14322 = sst [smem:[#allocation164_spill]] %s8305_s14  ;;  %s8321_s14 = spop %5419 }
 0x2b6   : > { %v1881_v33 = vpop.permute.xlu1 %1880  ;;  %v1883_v31 = vpop.permute.xlu0 %1882  ;;  %14323 = sst [smem:[#allocation165_spill]] %s8321_s14 }
 0x2b7   : > { %5469 = vpush %v1881_v33  ;;  %v8236_v33 = vrot.slane %v6171_v22, 1  ;;  %s14391_s7 = sld [smem:[#allocation119_spill]] }
 0x2b8   : > { %5471 = vpush %v1883_v31  ;;  %2623 = vrot.lane.b32.xlu1 %v8178_v38, %s14268_s13  ;;  %2625 = vrot.lane.b32.xlu0 %v8183_v11, %s14268_s13  ;;  %v6172_v31 = vld [vmem:[%s14085_s1 + $0x88] sm:$0x7]  ;;  %s8323_s18 = spop %5421  ;;  %s14393_s8 = sld [smem:[#allocation120_spill]] }
 0x2b9   : > { %v8241_v14 = vrot.slane %v6172_v31, 1  ;;  %v6175_v31 = vld [vmem:[%s14085_s1 + $0x94] sm:$0x7]  ;;  %14324 = sst [smem:[#allocation166_spill]] %s8323_s18  ;;  %s8339_s18 = spop %5423 }
 0x2ba   : > { %v1885_v19 = vpop.permute.xlu1 %1884  ;;  %v1887_v3 = vpop.permute.xlu0 %1886  ;;  %14326 = sst [smem:[#allocation168_spill]] %s8339_s18 }
 0x2bb   : > { %5473 = vpush %v1885_v19  ;;  %s14394_s0 = sld [smem:[#allocation121_spill]] }
 0x2bc   : > { %5475 = vpush %v1887_v3  ;;  %2627 = vrot.lane.b32.xlu1 %v8198_v25, %s14268_s13  ;;  %2629 = vrot.lane.b32.xlu0 %v8203_v16, %s14268_s13  ;;  %v6173_v3 = vld [vmem:[%s14085_s1 + $0x8c] sm:$0x7]  ;;  %s8341_s14 = spop %5425 }
 0x2bd   : > { %v8256_v44 = vrot.slane %v6173_v3, 1  ;;  %14327 = sst [smem:[#allocation169_spill]] %s8341_s14  ;;  %s8343_s15 = spop %5427 }
 0x2be   : > { %v1889_v28 = vpop.permute.xlu1 %1888  ;;  %v1891_v26 = vpop.permute.xlu0 %1890  ;;  %14328 = sst [smem:[#allocation170_spill]] %s8343_s15 }
 0x2bf   : > { %5477 = vpush %v1889_v28  ;;  %v8261_v28 = vrot.slane %v6174_v8, 1 }
 0x2c0   : > { %5479 = vpush %v1891_v26  ;;  %2631 = vrot.lane.b32.xlu1 %v8216_v59, %s14268_s13  ;;  %2633 = vrot.lane.b32.xlu0 %v8221_v32, %s14268_s13  ;;  %s8359_s15 = spop %5429 }
 0x2c1   : > { %14329 = sst [smem:[#allocation171_spill]] %s8359_s15  ;;  %s8361_s14 = spop %5431 }
 0x2c2   : > { %v1893_v23 = vpop.permute.xlu1 %1892  ;;  %v1895_v19 = vpop.permute.xlu0 %1894  ;;  %14330 = sst [smem:[#allocation172_spill]] %s8361_s14 }
 0x2c3   : > { %5481 = vpush %v1893_v23  ;;  %v8274_v23 = vrot.slane %v6175_v31, 1 }
 0x2c4   : > { %5483 = vpush %v1895_v19  ;;  %2635 = vrot.lane.b32.xlu1 %v8236_v33, %s14268_s13  ;;  %2637 = vrot.lane.b32.xlu0 %v8241_v14, %s14268_s13  ;;  %v6176_v19 = vld [vmem:[%s14085_s1 + $0x98] sm:$0x7]  ;;  %s8363_s18 = spop %5433 }
 0x2c5   : > { %v8279_v3 = vrot.slane %v6176_v19, 1  ;;  %v6178_v19 = vld [vmem:[%s14085_s1 + $0xa0] sm:$0x7]  ;;  %14331 = sst [smem:[#allocation173_spill]] %s8363_s18  ;;  %s8374_s2 = spop %5435 }
 0x2c6   : > { %v1897_v26 = vpop.permute.xlu1 %1896  ;;  %v1899_v22 = vpop.permute.xlu0 %1898  ;;  %14332 = sst [smem:[#allocation174_spill]] %s8374_s2  ;;  %s14334_s18 = smov 126  }
 0x2c7   : > { %5485 = vpush %v1897_v26 }
 0x2c8   : > { %5487 = vpush %v1899_v22  ;;  %2639 = vrot.lane.b32.xlu1 %v8256_v44, %s14268_s13  ;;  %2641 = vrot.lane.b32.xlu0 %v8261_v28, %s14268_s13  ;;  %v6177_v22 = vld [vmem:[%s14085_s1 + $0x9c] sm:$0x7]  ;;  %s8376_s19 = spop %5437 }
 0x2c9   : > { %v8294_v31 = vrot.slane %v6177_v22, 1  ;;  %v6179_v22 = vld [vmem:[%s14085_s1 + $0xa4] sm:$0x7]  ;;  %14333 = sst [smem:[#allocation175_spill]] %s8376_s19  ;;  %s8382_s14 = spop %5439 }
 0x2ca   : > { %v1901_v8 = vpop.permute.xlu1 %1900  ;;  %v1903_v26 = vpop.permute.xlu0 %1902  ;;  %14335 = sst [smem:[#allocation176_spill]] %s8382_s14 }
 0x2cb   : > { %5489 = vpush %v1901_v8  ;;  %v8299_v8 = vrot.slane %v6178_v19, 1  ;;  %v8314_v19 = vrot.slane %v6179_v22, 1  ;;  %v6181_v22 = vld [vmem:[%s14085_s1 + $0xac] sm:$0x7] }
 0x2cc   : > { %5491 = vpush %v1903_v26  ;;  %2643 = vrot.lane.b32.xlu1 %v8274_v23, %s14268_s13  ;;  %2645 = vrot.lane.b32.xlu0 %v8279_v3, %s14268_s13  ;;  %s8384_s3 = spop %5441 }
 0x2cd   : > { %14336 = sst [smem:[#allocation177_spill]] %s8384_s3  ;;  %s8386_s12 = spop %5443 }
 0x2ce   : > { %v1905_v26 = vpop.permute.xlu1 %1904  ;;  %v1907_v53 = vpop.permute.xlu0 %1906  ;;  %14337 = sst [smem:[#allocation178_spill]] %s8386_s12 }
 0x2cf   : > { %5493 = vpush %v1905_v26  ;;  %v8319_v26 = vrot.slane %v6180_v48, 1  ;;  %v8332_v48 = vrot.slane %v6181_v22, 1  ;;  %v8352_v22 = vrot.slane %v6183_v2, 1 }
 0x2d0   : > { %5495 = vpush %v1907_v53  ;;  %2647 = vrot.lane.b32.xlu1 %v8294_v31, %s14268_s13  ;;  %2649 = vrot.lane.b32.xlu0 %v8299_v8, %s14268_s13  ;;  %s8392_s19 = spop %5445 }
 0x2d1   : > { %14338 = sst [smem:[#allocation179_spill]] %s8392_s19  ;;  %s8394_s2 = spop %5447 }
 0x2d2   : > { %v1909_v53 = vpop.permute.xlu1 %1908  ;;  %v1911_v63 = vpop.permute.xlu0 %1910  ;;  %14339 = sst [smem:[#allocation180_spill]] %s8394_s2 }
 0x2d3   : > { %5497 = vpush %v1909_v53  ;;  %s14369_s19 = sld [smem:[#allocation102_spill]] }
 0x2d4   : > { %5499 = vpush %v1911_v63  ;;  %2651 = vrot.lane.b32.xlu1 %v8314_v19, %s14268_s13  ;;  %2653 = vrot.lane.b32.xlu0 %v8319_v26, %s14268_s13  ;;  %s8396_s3 = spop %5449 }
 0x2d5   : > { %14340 = sst [smem:[#allocation181_spill]] %s8396_s3  ;;  %s8402_s12 = spop %5451 }
 0x2d6   : > { %v1913_v63 = vpop.permute.xlu1 %1912  ;;  %v1915_v53 = vpop.permute.xlu0 %1914  ;;  %14341 = sst [smem:[#allocation182_spill]] %s8402_s12 }
 0x2d7   : > { %5501 = vpush %v1913_v63  ;;  %v8357_v63 = vrot.slane %v6184_v4, 1  ;;  %v6185_v4 = vld [vmem:[%s14085_s1 + $0xbc] sm:$0x7]  ;;  %s14372_s1 = sld [smem:[#allocation105_spill]] }
 0x2d8   : > { %5503 = vpush %v1915_v53  ;;  %2655 = vrot.lane.b32.xlu1 %v8332_v48, %s14268_s13  ;;  %2657 = vrot.lane.b32.xlu0 %v8337_v58, %s14268_s13  ;;  %v8372_v2 = vrot.slane %v6185_v4, 1  ;;  %s8404_s14 = spop %5453 }
 0x2d9   : > { %14342 = sst [smem:[#allocation183_spill]] %s8404_s14  ;;  %s8410_s3 = spop %5455 }
 0x2da   : > { %v1917_v53 = vpop.permute.xlu1 %1916  ;;  %v1919_v1 = vpop.permute.xlu0 %1918  ;;  %14343 = sst [smem:[#allocation184_spill]] %s8410_s3 }
 0x2db   : > { %5505 = vpush %v1917_v53 }
 0x2dc   : > { %5507 = vpush %v1919_v1  ;;  %2659 = vrot.lane.b32.xlu1 %v8352_v22, %s14268_s13  ;;  %2661 = vrot.lane.b32.xlu0 %v8357_v63, %s14268_s13  ;;  %s8412_s2 = spop %5457 }
 0x2dd   : > { %14344 = sst [smem:[#allocation185_spill]] %s8412_s2  ;;  %s8414_s12 = spop %5459 }
 0x2de   : > { %v1921_v6 = vpop.permute.xlu1 %1920  ;;  %v1923_v58 = vpop.permute.xlu0 %1922  ;;  %14345 = sst [smem:[#allocation186_spill]] %s8414_s12 }
 0x2df   : > { %5509 = vpush %v1921_v6 }
 0x2e0   : > { %5511 = vpush %v1923_v58  ;;  %2663 = vrot.lane.b32.xlu1 %v8372_v2, %s14268_s13  ;;  %2905 = vrot.lane.b32.xlu0 %v7911_v37, %s14334_s18  ;;  %s8420_s14 = spop %5461  ;;  %s14371_s13 = sld [smem:[#allocation104_spill]] }
 0x2e1   : > { %14346 = sst [smem:[#allocation187_spill]] %s8420_s14  ;;  %s8424_s3 = spop %5463 }
 0x2e2   : > { %v1925_v1 = vpop.permute.xlu1 %1924  ;;  %v1927_v53 = vpop.permute.xlu0 %1926  ;;  %14347 = sst [smem:[#allocation188_spill]] %s8424_s3 }
 0x2e3   : > { %5513 = vpush %v1925_v1  ;;  %s14385_s14 = sld [smem:[#allocation115_spill]] }
 0x2e4   : > { %5515 = vpush %v1927_v53  ;;  %2907 = vrot.lane.b32.xlu1 %v7926_v9, %s14334_s18  ;;  %2909 = vrot.lane.b32.xlu0 %v7931_v60, %s14334_s18  ;;  %s8426_s2 = spop %5465 }
 0x2e5   : > { %14348 = sst [smem:[#allocation189_spill]] %s8426_s2  ;;  %s8434_s12 = spop %5467 }
 0x2e6   : > { %v1929_v6 = vpop.permute.xlu1 %1928  ;;  %v1931_v58 = vpop.permute.xlu0 %1930  ;;  %14349 = sst [smem:[#allocation190_spill]] %s8434_s12 }
 0x2e7   : > { %5517 = vpush %v1929_v6 }
 0x2e8   : > { %5519 = vpush %v1931_v58  ;;  %2911 = vrot.lane.b32.xlu1 %v7946_v42, %s14334_s18  ;;  %2913 = vrot.lane.b32.xlu0 %v7951_v43, %s14334_s18  ;;  %s8441_s3 = spop %5469 }
 0x2e9   : > { %14350 = sst [smem:[#allocation191_spill]] %s8441_s3  ;;  %s8449_s2 = spop %5471 }
 0x2ea   : > { %v1933_v4 = vpop.permute.xlu1 %1932  ;;  %v1935_v1 = vpop.permute.xlu0 %1934  ;;  %14351 = sst [smem:[#allocation192_spill]] %s8449_s2 }
 0x2eb   : > { %5521 = vpush %v1933_v4 }
 0x2ec   : > { %5523 = vpush %v1935_v1  ;;  %2915 = vrot.lane.b32.xlu1 %v7964_v34, %s14334_s18  ;;  %2917 = vrot.lane.b32.xlu0 %v7969_v40, %s14334_s18  ;;  %s8452_s12 = spop %5473 }
 0x2ed   : > { %14352 = sst [smem:[#allocation193_spill]] %s8452_s12  ;;  %s8460_s3 = spop %5475 }
 0x2ee   : > { %v1937_v53 = vpop.permute.xlu1 %1936  ;;  %v1939_v6 = vpop.permute.xlu0 %1938  ;;  %14353 = sst [smem:[#allocation194_spill]] %s8460_s3 }
 0x2ef   : > { %5525 = vpush %v1937_v53 }
 0x2f0   : > { %5527 = vpush %v1939_v6  ;;  %2919 = vrot.lane.b32.xlu1 %v7984_v36, %s14334_s18  ;;  %2921 = vrot.lane.b32.xlu0 %v7989_v20, %s14334_s18  ;;  %s8467_s2 = spop %5477 }
 0x2f1   : > { %14354 = sst [smem:[#allocation195_spill]] %s8467_s2  ;;  %s8475_s12 = spop %5479 }
 0x2f2   : > { %v1941_v58 = vpop.permute.xlu1 %1940  ;;  %v8422_v4 = vpop.permute.xlu0 %2569  ;;  %14355 = sst [smem:[#allocation196_spill]] %s8475_s12 }
 0x2f3   : > { %5529 = vpush %v1941_v58 }
 0x2f4   : > { %5531 = vpush %v7911_v37  ;;  %2923 = vrot.lane.b32.xlu1 %v8004_v13, %s14334_s18  ;;  %2925 = vrot.lane.b32.xlu0 %v8009_v12, %s14334_s18  ;;  %s8479_s3 = spop %5481 }
 0x2f5   : > { %5533 = vpush %v7926_v9  ;;  %14356 = sst [smem:[#allocation197_spill]] %s8479_s3  ;;  %s8487_s2 = spop %5483 }
 0x2f6   : > { %5535 = vpush %v7931_v60  ;;  %v8437_v1 = vpop.permute.xlu1 %2571  ;;  %v8439_v53 = vpop.permute.xlu0 %2573  ;;  %14357 = sst [smem:[#allocation198_spill]] %s8487_s2 }
 0x2f7   : > { %5537 = vpush %v7946_v42 }
 0x2f8   : > { %5539 = vpush %v7951_v43  ;;  %2927 = vrot.lane.b32.xlu1 %v8022_v18, %s14334_s18  ;;  %2929 = vrot.lane.b32.xlu0 %v8027_v10, %s14334_s18  ;;  %s8494_s12 = spop %5485 }
 0x2f9   : > { %5541 = vpush %v7964_v34  ;;  %14358 = sst [smem:[#allocation199_spill]] %s8494_s12  ;;  %s8502_s2 = spop %5487 }
 0x2fa   : > { %5543 = vpush %v7969_v40  ;;  %v8455_v37 = vpop.permute.xlu1 %2575  ;;  %v8457_v9 = vpop.permute.xlu0 %2577  ;;  %14359 = sst [smem:[#allocation200_spill]] %s8502_s2 }
 0x2fb   : > { %5545 = vpush %v7984_v36 }
 0x2fc   : > { %5547 = vpush %v7989_v20  ;;  %2931 = vrot.lane.b32.xlu1 %v8042_v7, %s14334_s18  ;;  %2933 = vrot.lane.b32.xlu0 %v8047_v5, %s14334_s18  ;;  %s8505_s3 = spop %5489  ;;  %v13694_v20 = vlaneseq }
 0x2fd   : > { %5549 = vpush %v8004_v13  ;;  %14360 = sst [smem:[#allocation201_spill]] %s8505_s3  ;;  %s8513_s12 = spop %5491  ;;  %v1128_v13 = vstv %s7798_s10 }
 0x2fe   : > { %5551 = vpush %v8009_v12  ;;  %v8471_v60 = vpop.permute.xlu1 %2579  ;;  %v8473_v42 = vpop.permute.xlu0 %2581  ;;  %14361 = sst [smem:[#allocation202_spill]] %s8513_s12  ;;  %v1132_v12 = vstv %s7800_s11 }
 0x2ff   : > { %5553 = vpush %v8022_v18  ;;  %v14416_v18 = vld [vmem:[#allocation46_spill] sm:$0xff] }
 0x300   : > { %5555 = vpush %v8027_v10  ;;  %2935 = vrot.lane.b32.xlu1 %v8062_v15, %s14334_s18  ;;  %2937 = vrot.lane.b32.xlu0 %v8067_v39, %s14334_s18  ;;  %s8520_s3 = spop %5493 }
 0x301   : > { %5557 = vpush %v8042_v7  ;;  %14362 = sst [smem:[#allocation203_spill]] %s8520_s3  ;;  %s8535_s3 = spop %5495 }
 0x302   : > { %5559 = vpush %v8047_v5  ;;  %v8489_v43 = vpop.permute.xlu1 %2583  ;;  %v8491_v34 = vpop.permute.xlu0 %2585  ;;  %14363 = sst [smem:[#allocation204_spill]] %s8535_s3 }
 0x303   : > { %5561 = vpush %v8062_v15 }
 0x304   : > { %5563 = vpush %v8067_v39  ;;  %2939 = vrot.lane.b32.xlu1 %v8082_v56, %s14334_s18  ;;  %2941 = vrot.lane.b32.xlu0 %v8087_v30, %s14334_s18  ;;  %s8543_s12 = spop %5497 }
 0x305   : > { %5565 = vpush %v8082_v56  ;;  %14364 = sst [smem:[#allocation205_spill]] %s8543_s12  ;;  %s8559_s2 = spop %5499 }
 0x306   : > { %5567 = vpush %v8087_v30  ;;  %v8507_v40 = vpop.permute.xlu1 %2587  ;;  %v8509_v36 = vpop.permute.xlu0 %2589  ;;  %v8538_v30 = vand.u32 127, %v13694_v20  ;;  %14367 = sst [smem:[#allocation206_spill]] %s8559_s2 }
 0x307   : > { %5569 = vpush %v8100_v24  ;;  %s14384_s12 = sld [smem:[#allocation114_spill]] }
 0x308   : > { %5571 = vpush %v8105_v35  ;;  %2943 = vrot.lane.b32.xlu1 %v8100_v24, %s14334_s18  ;;  %2945 = vrot.lane.b32.xlu0 %v8105_v35, %s14334_s18  ;;  %s8570_s5 = spop %5501  ;;  %vm640_vm1 = vcmp.ge.s32.totalorder %v8538_v30, 1  ;;  %vm883_vm2 = vcmp.le.s32.totalorder %v8538_v30, 6 }
 0x309   : > { %5573 = vpush %v8120_v29  ;;  %14374 = sst [smem:[#allocation102_spill]] %s8570_s5  ;;  %s8585_s3 = spop %5503  ;;  %v8606_v24 = vsel %vm640_vm1, %v7386_v45, 0.0  ;;  %v8620_v6 = vsel %vm640_vm1, %v7392_v46, 0.0  ;;  %v8636_v46 = vsel %vm640_vm1, %v7400_v61, 0.0  ;;  %v8671_v45 = vsel %vm640_vm1, %v7408_v55, 0.0 }
 0x30a   : > { %5575 = vpush %v8125_v27  ;;  %v8526_v10 = vpop.permute.xlu1 %2591  ;;  %v8528_v7 = vpop.permute.xlu0 %2593  ;;  %14381 = sst [smem:[#allocation104_spill]] %s8585_s3  ;;  %14388 = vst [vmem:[#allocation207_spill] sm:$0xff] %v8606_v24  ;;  %v1078_v35 = vrot.slane %v8606_v24, 7  ;;  %v1079_v61 = vrot.slane %v8620_v6, 7  ;;  %v1081_v56 = vrot.slane %v8636_v46, 7  ;;  %v8699_v39 = vsel %vm640_vm1, %v7416_v49, 0.0 }
 0x30b   : > { %5577 = vpush %v8140_v21  ;;  %14392 = vst [vmem:[#allocation208_spill] sm:$0xff] %v8620_v6  ;;  %s14396_s5 = sld [smem:[#allocation122_spill]]  ;;  %v14408_v49 = vstv %s7806_s17 }
 0x30c   : > { %5579 = vpush %v8145_v17  ;;  %2947 = vrot.lane.b32.xlu1 %v8120_v29, %s14334_s18  ;;  %2949 = vrot.lane.b32.xlu0 %v8125_v27, %s14334_s18  ;;  %s8592_s4 = spop %5505  ;;  %14398 = vst [vmem:[#allocation210_spill] sm:$0xff] %v8636_v46  ;;  %v8706_v58 = vmul.f32 %v1132_v12, %v1079_v61 }
 0x30d   : > { %5581 = vpush %v8158_v41  ;;  %14383 = sst [smem:[#allocation105_spill]] %s8592_s4  ;;  %s8611_s2 = spop %5507  ;;  %14403 = vst [vmem:[#allocation212_spill] sm:$0xff] %v8671_v45 }
 0x30e   : > { %5583 = vpush %v8163_v51  ;;  %v8561_v29 = vpop.permute.xlu1 %2595  ;;  %v8563_v27 = vpop.permute.xlu0 %2597  ;;  %14390 = sst [smem:[#allocation106_spill]] %s8611_s2  ;;  %14406 = vst [vmem:[#allocation214_spill] sm:$0xff] %v8699_v39 }
 0x30f   : > { %5585 = vpush %v8178_v38  ;;  %s14401_s4 = sld [smem:[#allocation124_spill]] }
 0x310   : > { %5587 = vpush %v8183_v11  ;;  %2951 = vrot.lane.b32.xlu1 %v8140_v21, %s14334_s18  ;;  %2953 = vrot.lane.b32.xlu0 %v8145_v17, %s14334_s18  ;;  %s8626_s2 = spop %5509 }
 0x311   : > { %5589 = vpush %v8198_v25  ;;  %14395 = sst [smem:[#allocation108_spill]] %s8626_s2  ;;  %s8654_s3 = spop %5511 }
 0x312   : > { %5591 = vpush %v8203_v16  ;;  %v8594_v17 = vpop.permute.xlu1 %2599  ;;  %v8596_v20 = vpop.permute.xlu0 %2601  ;;  %s14400_s2 = sld [smem:[#allocation123_spill]] }
 0x313   : > { %5593 = vpush %v8216_v59 }
 0x314   : > { %5595 = vpush %v8221_v32  ;;  %2955 = vrot.lane.b32.xlu1 %v8158_v41, %s14334_s18  ;;  %2957 = vrot.lane.b32.xlu0 %v8163_v51, %s14334_s18  ;;  %v8631_v41 = vsel %vm640_vm1, %v7394_v47, 0.0  ;;  %v8649_v47 = vsel %vm640_vm1, %v7402_v62, 0.0  ;;  %s8660_s15 = spop %5513  ;;  %v8676_v51 = vsel %vm640_vm1, %v7410_v52, 0.0  ;;  %v8692_v52 = vmul.f32 %v1128_v13, %v1078_v35 }
 0x315   : > { %5597 = vpush %v8236_v33  ;;  %14397 = vst [vmem:[#allocation209_spill] sm:$0xff] %v8631_v41  ;;  %14402 = sst [smem:[#allocation109_spill]] %s8660_s15  ;;  %v1080_v62 = vrot.slane %v8631_v41, 7  ;;  %s8684_s15 = spop %5515  ;;  %v1083_v13 = vrot.slane %v8671_v45, 7  ;;  %v1084_v35 = vrot.slane %v8676_v51, 7  ;;  %v14409_v41 = vstv %s7808_s21 }
 0x316   : > { %5599 = vpush %v8241_v14  ;;  %v8641_v15 = vpop.permute.xlu1 %2603  ;;  %v8643_v21 = vpop.permute.xlu0 %2605  ;;  %14399 = vst [vmem:[#allocation211_spill] sm:$0xff] %v8649_v47  ;;  %14405 = sst [smem:[#allocation114_spill]] %s8684_s15  ;;  %v8728_v6 = vmul.f32 %v14409_v41, %v1081_v56  ;;  %v8746_v56 = vsel %vm640_vm1, %v7426_v50, 0.0  ;;  %v8765_v50 = vsel %vm640_vm1, %v14416_v18, 0.0  ;;  %v14420_v45 = vstv %s7818_s24 }
 0x317   : > { %5601 = vpush %v8256_v44  ;;  %14404 = vst [vmem:[#allocation213_spill] sm:$0xff] %v8676_v51  ;;  %v8722_v12 = vmul.f32 %v14408_v49, %v1080_v62  ;;  %v8741_v62 = vsel %vm640_vm1, %v7424_v57, 0.0  ;;  %v8760_v57 = vsel %vm640_vm1, %v7432_v0, 0.0  ;;  %v8776_v24 = vmul.f32 %v14420_v45, %v1084_v35  ;;  %v14422_v0 = vld [vmem:[#allocation167_spill] sm:$0xff]  ;;  %v14425_v35 = vld [vmem:[#allocation48_spill] sm:$0xff] }
 0x318   : > { %5603 = vpush %v8261_v28  ;;  %2959 = vrot.lane.b32.xlu1 %v8178_v38, %s14334_s18  ;;  %2961 = vrot.lane.b32.xlu0 %v8183_v11, %s14334_s18  ;;  %v1082_v11 = vrot.slane %v8649_v47, 7  ;;  %s8702_s15 = spop %5517  ;;  %v8713_v38 = vsel %vm640_vm1, %v7418_v54, 0.0  ;;  %14410 = vst [vmem:[#allocation216_spill] sm:$0xff] %v8728_v6  ;;  %v14411_v54 = vstv %s7810_s22  ;;  %v14418_v47 = vstv %s7816_s23 }
 0x319   : > { %5605 = vpush %v8274_v23  ;;  %14407 = vst [vmem:[#allocation215_spill] sm:$0xff] %v8713_v38  ;;  %s8731_s10 = spop %5519  ;;  %v8771_v46 = vmul.f32 %v14418_v47, %v1083_v13  ;;  %v1087_v18 = vrot.slane %v8741_v62, 7  ;;  %v1088_v47 = vrot.slane %v8746_v56, 7  ;;  %v14423_v13 = vld [vmem:[#allocation47_spill] sm:$0xff]  ;;  %v8795_v49 = vsel %vm640_vm1, %v14425_v35, 0.0 }
 0x31a   : > { %5607 = vpush %v8279_v3  ;;  %v8686_v55 = vpop.permute.xlu1 %2607  ;;  %v8688_v5 = vpop.permute.xlu0 %2609  ;;  %14413 = vst [vmem:[#allocation218_spill] sm:$0xff] %v8741_v62  ;;  %v8790_v45 = vsel %vm640_vm1, %v14423_v13, 0.0  ;;  %v1090_v51 = vrot.slane %v8765_v50, 7 }
 0x31b   : > { %5609 = vpush %v8294_v31  ;;  %14414 = vst [vmem:[#allocation219_spill] sm:$0xff] %v8746_v56  ;;  %v14437_v56 = vstv %s7828_s20  ;;  %s14449_s20 = sld [smem:[#allocation92_spill]] }
 0x31c   : > { %5611 = vpush %v8299_v8  ;;  %2963 = vrot.lane.b32.xlu1 %v8198_v25, %s14334_s18  ;;  %2965 = vrot.lane.b32.xlu0 %v8203_v16, %s14334_s18  ;;  %v8735_v25 = vmul.f32 %v14411_v54, %v1082_v11  ;;  %v1085_v16 = vrot.slane %v8699_v39, 7  ;;  %s8749_s11 = spop %5521  ;;  %v1086_v54 = vrot.slane %v8713_v38, 7  ;;  %14415 = vst [vmem:[#allocation220_spill] sm:$0xff] %v8760_v57  ;;  %v1089_v39 = vrot.slane %v8760_v57, 7 }
 0x31d   : > { %5613 = vpush %v8314_v19  ;;  %14417 = vst [vmem:[#allocation46_spill] sm:$0xff] %v8765_v50  ;;  %s8779_s17 = spop %5523  ;;  %v1091_v38 = vrot.slane %v8790_v45, 7  ;;  %v8847_v62 = vmul.f32 %v14437_v56, %v1087_v18  ;;  %v14443_v18 = vld [vmem:[#allocation52_spill] sm:$0xff]  ;;  %v14451_v50 = vstv %s7844_s30 }
 0x31e   : > { %14412 = vst [vmem:[#allocation217_spill] sm:$0xff] %v8735_v25  ;;  %5615 = vpush %v8319_v26  ;;  %v8751_v41 = vpop.permute.xlu1 %2611  ;;  %v8753_v11 = vpop.permute.xlu0 %2613  ;;  %v14429_v25 = vstv %s7826_s26 }
 0x31f   : > { %5617 = vpush %v8332_v48  ;;  %14419 = vst [vmem:[#allocation221_spill] sm:$0xff] %v8771_v46  ;;  %v14433_v46 = vld [vmem:[#allocation50_spill] sm:$0xff]  ;;  %v8898_v57 = vmul.f32 %v14451_v50, %v1091_v38  ;;  %v14456_v50 = vld [vmem:[#allocation55_spill] sm:$0xff] }
 0x320   : > { %14421 = vst [vmem:[#allocation222_spill] sm:$0xff] %v8776_v24  ;;  %5619 = vpush %v14422_v0  ;;  %2967 = vrot.lane.b32.xlu1 %v8216_v59, %s14334_s18  ;;  %2969 = vrot.lane.b32.xlu0 %v8221_v32, %s14334_s18  ;;  %s8798_s21 = spop %5525  ;;  %v14427_v32 = vstv %s7824_s25  ;;  %v8816_v59 = vmul.f32 %v14429_v25, %v1086_v54  ;;  %v1092_v24 = vrot.slane %v8795_v49, 7  ;;  %v8831_v25 = vsel %vm640_vm1, %v14433_v46, 0.0  ;;  %v14435_v54 = vld [vmem:[#allocation51_spill] sm:$0xff]  ;;  %s14442_s25 = sld [smem:[#allocation91_spill]] }
 0x321   : > { %14424 = vst [vmem:[#allocation167_spill] sm:$0xff] %v8790_v45  ;;  %14426 = vst [vmem:[#allocation47_spill] sm:$0xff] %v8795_v49  ;;  %v8803_v61 = vmul.f32 %v14427_v32, %v1085_v16  ;;  %v14431_v16 = vld [vmem:[#allocation49_spill] sm:$0xff]  ;;  %s8824_s22 = spop %5527 }
 0x322   : > { %5621 = vpush %v8352_v22  ;;  %v8808_v13 = vpop.permute.xlu1 %2615  ;;  %v8810_v35 = vpop.permute.xlu0 %2617  ;;  %14430 = vst [vmem:[#allocation223_spill] sm:$0xff] %v8816_v59  ;;  %v8821_v32 = vsel %vm640_vm1, %v14431_v16, 0.0  ;;  %v8836_v16 = vsel %vm640_vm1, %v14435_v54, 0.0  ;;  %v8870_v59 = vsel %vm640_vm1, %v14443_v18, 0.0 }
 0x323   : > { %14428 = vst [vmem:[#allocation48_spill] sm:$0xff] %v8803_v61  ;;  %5623 = vpush %v8357_v63  ;;  %v14438_v61 = vstv %s7834_s27  ;;  %v1093_v56 = vrot.slane %v8821_v32, 7  ;;  %v1096_v38 = vrot.slane %v8870_v59, 7 }
 0x324   : > { %14432 = vst [vmem:[#allocation49_spill] sm:$0xff] %v8821_v32  ;;  %5625 = vpush %v8372_v2  ;;  %2971 = vrot.lane.b32.xlu1 %v8236_v33, %s14334_s18  ;;  %2973 = vrot.lane.b32.xlu0 %v8241_v14, %s14334_s18  ;;  %s8843_s23 = spop %5529  ;;  %v8853_v54 = vmul.f32 %v14438_v61, %v1088_v47  ;;  %v14439_v33 = vstv %s7836_s28  ;;  %v14440_v14 = vstv %s7838_s29  ;;  %v1094_v61 = vrot.slane %v8831_v25, 7  ;;  %v14445_v47 = vld [vmem:[#allocation53_spill] sm:$0xff]  ;;  %s14454_s29 = sld [smem:[#allocation93_spill]] }
 0x325   : > { %14434 = vst [vmem:[#allocation50_spill] sm:$0xff] %v8831_v25  ;;  %14436 = vst [vmem:[#allocation51_spill] sm:$0xff] %v8836_v16  ;;  %s8856_s24 = spop %5531  ;;  %v8864_v6 = vmul.f32 %v14440_v14, %v1090_v51  ;;  %v1095_v51 = vrot.slane %v8836_v16, 7  ;;  %v14447_v14 = vld [vmem:[#allocation54_spill] sm:$0xff]  ;;  %v14469_v25 = vld [vmem:[#allocation57_spill] sm:$0xff] }
 0x326   : > { %5627 = vpush %v8422_v4  ;;  %v8860_v4 = vmul.f32 %v14439_v33, %v1089_v39  ;;  %14444 = vst [vmem:[#allocation52_spill] sm:$0xff] %v8870_v59  ;;  %s8873_s26 = spop %5533  ;;  %v8877_v39 = vpop.permute.xlu0 %2621  ;;  %v8884_v33 = vsel %vm640_vm1, %v14445_v47, 0.0  ;;  %v8889_v18 = vsel %vm640_vm1, %v14447_v14, 0.0 }
 0x327   : > { %5629 = vpush %v8437_v1  ;;  %14441 = vst [vmem:[#allocation224_spill] sm:$0xff] %v8864_v6  ;;  %v8875_v1 = vpop.permute.xlu1 %2619  ;;  %s8892_s27 = spop %5535  ;;  %v14452_v6 = vstv %s14442_s25  ;;  %v1097_v14 = vrot.slane %v8884_v33, 7 }
 0x328   : > { %5631 = vpush %v8439_v53  ;;  %14446 = vst [vmem:[#allocation53_spill] sm:$0xff] %v8884_v33  ;;  %14450 = sst [smem:[#allocation115_spill]] %s8892_s27  ;;  %v8902_v47 = vmul.f32 %v14452_v6, %v1092_v24  ;;  %s8905_s28 = spop %5537  ;;  %2975 = vrot.lane.b32.xlu1 %v8256_v44, %s14334_s18  ;;  %2977 = vrot.lane.b32.xlu0 %v8261_v28, %s14334_s18  ;;  %v8916_v24 = vsel %vm640_vm1, %v14456_v50, 0.0  ;;  %v14461_v44 = vstv %s14449_s20 }
 0x329   : > { %14448 = vst [vmem:[#allocation54_spill] sm:$0xff] %v8889_v18  ;;  %5633 = vpush %v8455_v37  ;;  %14453 = sst [smem:[#allocation119_spill]] %s8905_s28  ;;  %s8924_s30 = spop %5539  ;;  %v8928_v28 = vmul.f32 %v14461_v44, %v1093_v56  ;;  %v1098_v37 = vrot.slane %v8889_v18, 7  ;;  %v1099_v49 = vrot.slane %v8916_v24, 7 }
 0x32a   : > { %5635 = vpush %v8457_v9  ;;  %s14455_s27 = sld [smem:[#allocation94_spill]]  ;;  %14457 = vst [vmem:[#allocation55_spill] sm:$0xff] %v8916_v24  ;;  %v14458_v9 = vld [vmem:[#allocation56_spill] sm:$0xff]  ;;  %s8933_s25 = spop %5541  ;;  %v8937_v46 = vpop.permute.xlu0 %2625 }
 0x32b   : > { %v8921_v6 = vsel %vm640_vm1, %v14458_v9, 0.0  ;;  %5637 = vpush %v8471_v60  ;;  %14460 = sst [smem:[#allocation120_spill]] %s8924_s30  ;;  %v8935_v50 = vpop.permute.xlu1 %2623  ;;  %v14464_v9 = vstv %s14454_s29  ;;  %s8949_s20 = spop %5543 }
 0x32c   : > { %14459 = vst [vmem:[#allocation56_spill] sm:$0xff] %v8921_v6  ;;  %5639 = vpush %v8473_v42  ;;  %14462 = sst [smem:[#allocation121_spill]] %s8933_s25  ;;  %v8942_v53 = vmul.f32 %v14464_v9, %v1094_v61  ;;  %v1100_v60 = vrot.slane %v8921_v6, 7  ;;  %v8958_v61 = vsel %vm640_vm1, %v14469_v25, 0.0  ;;  %2979 = vrot.lane.b32.xlu1 %v8274_v23, %s14334_s18  ;;  %2981 = vrot.lane.b32.xlu0 %v8279_v3, %s14334_s18  ;;  %v14475_v25 = vld [vmem:[#allocation59_spill] sm:$0xff]  ;;  %v14481_v42 = vld [vmem:[#allocation60_spill] sm:$0xff]  ;;  %v14504_v6 = vstv %s14369_s19 }
 0x32d   : > { %s14463_s28 = sld [smem:[#allocation95_spill]]  ;;  %5641 = vpush %v8489_v43  ;;  %14470 = vst [vmem:[#allocation57_spill] sm:$0xff] %v8958_v61  ;;  %v8979_v32 = vsel %vm640_vm1, %v14475_v25, 0.0  ;;  %v8997_v25 = vsel %vm640_vm1, %v14481_v42, 0.0  ;;  %v14486_v42 = vld [vmem:[#allocation62_spill] sm:$0xff] }
 0x32e   : > { %14466 = sst [smem:[#allocation122_spill]] %s8949_s20  ;;  %5643 = vpush %v8491_v34  ;;  %14476 = vst [vmem:[#allocation59_spill] sm:$0xff] %v8979_v32  ;;  %v9004_v34 = vpop.permute.xlu0 %2629  ;;  %v1103_v59 = vrot.slane %v8979_v32, 7 }
 0x32f   : > { %s14467_s25 = sld [smem:[#allocation96_spill]]  ;;  %5645 = vpush %v8507_v40  ;;  %14482 = vst [vmem:[#allocation60_spill] sm:$0xff] %v8997_v25  ;;  %v9002_v40 = vpop.permute.xlu1 %2627 }
 0x330   : > { %v14465_v56 = vstv %s14455_s27  ;;  %s14468_s30 = sld [smem:[#allocation97_spill]]  ;;  %s8966_s27 = spop %5545  ;;  %5647 = vpush %v8509_v36  ;;  %v9017_v36 = vsel %vm640_vm1, %v14486_v42, 0.0  ;;  %2983 = vrot.lane.b32.xlu1 %v8294_v31, %s14334_s18  ;;  %2985 = vrot.lane.b32.xlu0 %v8299_v8, %s14334_s18  ;;  %v9084_v16 = vmul.f32 %v14504_v6, %v1103_v59 }
 0x331   : > { %v8946_v44 = vmul.f32 %v14465_v56, %v1095_v51  ;;  %v14471_v51 = vld [vmem:[#allocation58_spill] sm:$0xff]  ;;  %14473 = sst [smem:[#allocation123_spill]] %s8966_s27  ;;  %s8982_s29 = spop %5547  ;;  %14487 = vst [vmem:[#allocation62_spill] sm:$0xff] %v9017_v36  ;;  %5649 = vpush %v8526_v10 }
 0x332   : > { %v8963_v43 = vsel %vm640_vm1, %v14471_v51, 0.0  ;;  %s14477_s27 = sld [smem:[#allocation98_spill]]  ;;  %5651 = vpush %v8528_v7  ;;  %v9067_v8 = vpop.permute.xlu0 %2633  ;;  %14505 = vst [vmem:[#allocation225_spill] sm:$0xff] %v9084_v16  ;;  %v14754_v16 = vld [vmem:[#allocation84_spill] sm:$0xff] }
 0x333   : > { %14472 = vst [vmem:[#allocation58_spill] sm:$0xff] %v8963_v43  ;;  %v14474_v9 = vstv %s14463_s28  ;;  %s14479_s20 = sld [smem:[#allocation99_spill]]  ;;  %s9000_s28 = spop %5549  ;;  %5653 = vpush %v8561_v29  ;;  %v9065_v31 = vpop.permute.xlu1 %2631 }
 0x334   : > { %v8974_v56 = vmul.f32 %v14474_v9, %v1096_v38  ;;  %14483 = sst [smem:[#allocation124_spill]] %s9000_s28  ;;  %5655 = vpush %v8563_v27  ;;  %2987 = vrot.lane.b32.xlu1 %v8314_v19, %s14334_s18  ;;  %2989 = vrot.lane.b32.xlu0 %v8319_v26, %s14334_s18  ;;  %v14512_v27 = vld [vmem:[#allocation68_spill] sm:$0xff]  ;;  %v14515_v19 = vstv %s14371_s13  ;;  %v14517_v26 = vstv %s14372_s1 }
 0x335   : > { %v14478_v51 = vstv %s14467_s25  ;;  %5657 = vpush %v8594_v17 }
 0x336   : > { %v8988_v3 = vmul.f32 %v14478_v51, %v1097_v14  ;;  %v14480_v38 = vstv %s14468_s30  ;;  %v1101_v14 = vrot.slane %v8958_v61, 7  ;;  %v14484_v51 = vld [vmem:[#allocation61_spill] sm:$0xff]  ;;  %s9020_s30 = spop %5551  ;;  %5659 = vpush %v8596_v20 }
 0x337   : > { %v8992_v9 = vmul.f32 %v14480_v38, %v1098_v37  ;;  %v1102_v37 = vrot.slane %v8963_v43, 7  ;;  %v9012_v38 = vsel %vm640_vm1, %v14484_v51, 0.0  ;;  %14488 = sst [smem:[#allocation91_spill]] %s9020_s30  ;;  %s9032_s25 = spop %5553  ;;  %v14497_v51 = vld [vmem:[#allocation64_spill] sm:$0xff]  ;;  %5661 = vpush %v8641_v15  ;;  %v14526_v15 = vstv %s14373_s6 }
 0x338   : > { %14485 = vst [vmem:[#allocation61_spill] sm:$0xff] %v9012_v38  ;;  %v14489_v18 = vstv %s14477_s27  ;;  %14491 = sst [smem:[#allocation92_spill]] %s9032_s25  ;;  %v1105_v7 = vrot.slane %v9012_v38, 7  ;;  %v9055_v42 = vsel %vm640_vm1, %v14497_v51, 0.0  ;;  %5663 = vpush %v8643_v21  ;;  %2991 = vrot.lane.b32.xlu1 %v8332_v48, %s14334_s18  ;;  %2993 = vrot.lane.b32.xlu0 %v14422_v0, %s14334_s18  ;;  %v14541_v48 = vstv %s14377_s9 }
 0x339   : > { %v9024_v23 = vmul.f32 %v14489_v18, %v1099_v49  ;;  %v14490_v24 = vstv %s14479_s20  ;;  %s14492_s30 = sld [smem:[#allocation100_spill]]  ;;  %v1104_v49 = vrot.slane %v8997_v25, 7  ;;  %v14494_v18 = vld [vmem:[#allocation63_spill] sm:$0xff]  ;;  %s9046_s20 = spop %5555  ;;  %14498 = vst [vmem:[#allocation64_spill] sm:$0xff] %v9055_v42  ;;  %5665 = vpush %v8686_v55 }
 0x33a   : > { %v9028_v33 = vmul.f32 %v14490_v24, %v1100_v60  ;;  %s14493_s27 = sld [smem:[#allocation101_spill]]  ;;  %v9043_v24 = vsel %vm640_vm1, %v14494_v18, 0.0  ;;  %v1106_v60 = vrot.slane %v9017_v36, 7  ;;  %v14499_v18 = vld [vmem:[#allocation65_spill] sm:$0xff]  ;;  %v9120_v20 = vmul.f32 %v14515_v19, %v1105_v7  ;;  %5667 = vpush %v8688_v5 }
 0x33b   : > { %14495 = vst [vmem:[#allocation63_spill] sm:$0xff] %v9043_v24  ;;  %14496 = sst [smem:[#allocation93_spill]] %s9046_s20  ;;  %v9060_v29 = vsel %vm640_vm1, %v14499_v18, 0.0  ;;  %s9063_s20 = spop %5557  ;;  %v1107_v45 = vrot.slane %v9043_v24, 7  ;;  %v9131_v18 = vpop.permute.xlu0 %2637  ;;  %5669 = vpush %v8751_v41  ;;  %v14549_v24 = vld [vmem:[#allocation73_spill] sm:$0xff] }
 0x33c   : > { %14500 = vst [vmem:[#allocation65_spill] sm:$0xff] %v9060_v29  ;;  %s14501_s25 = sld [smem:[#allocation103_spill]]  ;;  %s9078_s28 = spop %5559  ;;  %14516 = vst [vmem:[#allocation227_spill] sm:$0xff] %v9120_v20  ;;  %2995 = vrot.lane.b32.xlu1 %v8352_v22, %s14334_s18  ;;  %2997 = vrot.lane.b32.xlu0 %v8357_v63, %s14334_s18 }
 0x33d   : > { %s14530_s6 = sld [smem:[#allocation110_spill]]  ;;  %5671 = vpush %v8753_v11 }
 0x33e   : > { %5673 = vpush %v8808_v13  ;;  %s14550_s9 = sld [smem:[#allocation113_spill]] }
 0x33f   : > { %v14502_v10 = vstv %s14492_s30  ;;  %s9098_s30 = spop %5561  ;;  %5675 = vpush %v8810_v35 }
 0x340   : > { %v9071_v43 = vmul.f32 %v14502_v10, %v1101_v14  ;;  %v14503_v61 = vstv %s14493_s27  ;;  %v14506_v14 = vld [vmem:[#allocation66_spill] sm:$0xff]  ;;  %v1108_v10 = vrot.slane %v9055_v42, 7  ;;  %s9116_s19 = spop %5563  ;;  %s14520_s27 = sld [smem:[#allocation107_spill]]  ;;  %5677 = vpush %v8875_v1  ;;  %2999 = vrot.lane.b32.xlu1 %v8372_v2, %s14334_s18  ;;  %v14580_v2 = vstv %s14385_s14 }
 0x341   : > { %v9075_v51 = vmul.f32 %v14503_v61, %v1102_v37  ;;  %v9090_v61 = vsel %vm640_vm1, %v14506_v14, 0.0  ;;  %v14508_v37 = vld [vmem:[#allocation67_spill] sm:$0xff]  ;;  %v1109_v14 = vrot.slane %v9060_v29, 7  ;;  %14514 = sst [smem:[#allocation94_spill]] %s9116_s19  ;;  %5679 = vpush %v8877_v39 }
 0x342   : > { %14507 = vst [vmem:[#allocation66_spill] sm:$0xff] %v9090_v61  ;;  %v9095_v17 = vsel %vm640_vm1, %v14508_v37, 0.0  ;;  %v14510_v59 = vstv %s14501_s25  ;;  %v9113_v37 = vsel %vm640_vm1, %v14512_v27, 0.0  ;;  %s9127_s25 = spop %5565  ;;  %v1110_v7 = vrot.slane %v9090_v61, 7  ;;  %5681 = vpush %v8935_v50  ;;  %s14575_s19 = sld [smem:[#allocation116_spill]] }
 0x343   : > { %14509 = vst [vmem:[#allocation67_spill] sm:$0xff] %v9095_v17  ;;  %v9106_v6 = vmul.f32 %v14510_v59, %v1104_v49  ;;  %14513 = vst [vmem:[#allocation68_spill] sm:$0xff] %v9113_v37  ;;  %v9124_v49 = vmul.f32 %v14517_v26, %v1106_v60  ;;  %14519 = sst [smem:[#allocation95_spill]] %s9127_s25  ;;  %v9129_v59 = vpop.permute.xlu1 %2635  ;;  %v1111_v19 = vrot.slane %v9095_v17, 7  ;;  %v14521_v60 = vld [vmem:[#allocation69_spill] sm:$0xff]  ;;  %v14523_v26 = vld [vmem:[#allocation70_spill] sm:$0xff]  ;;  %s9148_s1 = spop %5567  ;;  %v9152_v27 = vmul.f32 %v14526_v15, %v1107_v45 }
 0x344   : > { %v9140_v21 = vsel %vm640_vm1, %v14521_v60, 0.0  ;;  %v9145_v25 = vsel %vm640_vm1, %v14523_v26, 0.0  ;;  %14525 = sst [smem:[#allocation96_spill]] %s9148_s1  ;;  %v1112_v36 = vrot.slane %v9113_v37, 7  ;;  %s9156_s13 = spop %5569  ;;  %v14532_v15 = vstv %s14376_s16  ;;  %v14536_v60 = vld [vmem:[#allocation71_spill] sm:$0xff]  ;;  %5683 = vpush %v8937_v46 }
 0x345   : > { %14511 = vst [vmem:[#allocation226_spill] sm:$0xff] %v9106_v6  ;;  %14518 = vst [vmem:[#allocation228_spill] sm:$0xff] %v9124_v49  ;;  %14528 = sst [smem:[#allocation97_spill]] %s9156_s13  ;;  %v9170_v38 = vmul.f32 %v14532_v15, %v1109_v14  ;;  %s9173_s13 = spop %5571  ;;  %v1113_v0 = vrot.slane %v9140_v21, 7  ;;  %v1114_v55 = vrot.slane %v9145_v25, 7  ;;  %v14538_v14 = vld [vmem:[#allocation72_spill] sm:$0xff]  ;;  %v9194_v15 = vpop.permute.xlu0 %2641  ;;  %v9198_v5 = vmul.f32 %v14541_v48, %v1110_v7 }
 0x346   : > { %14522 = vst [vmem:[#allocation69_spill] sm:$0xff] %v9140_v21  ;;  %14524 = vst [vmem:[#allocation70_spill] sm:$0xff] %v9145_v25  ;;  %v14529_v26 = vstv %s14520_s27  ;;  %14534 = sst [smem:[#allocation98_spill]] %s9173_s13  ;;  %v9187_v41 = vsel %vm640_vm1, %v14538_v14, 0.0  ;;  %s9190_s16 = spop %5573  ;;  %v14543_v61 = vstv %s14530_s6  ;;  %v14552_v7 = vld [vmem:[#allocation74_spill] sm:$0xff]  ;;  %v14577_v46 = vstv %s14384_s12  ;;  %v14582_v17 = vld [vmem:[#allocation7_spill] sm:$0xff] }
 0x347   : > { %14527 = vst [vmem:[#allocation229_spill] sm:$0xff] %v9152_v27  ;;  %v9166_v45 = vmul.f32 %v14529_v26, %v1108_v10  ;;  %14533 = vst [vmem:[#allocation231_spill] sm:$0xff] %v9170_v38  ;;  %s14535_s1 = sld [smem:[#allocation111_spill]]  ;;  %v9182_v10 = vsel %vm640_vm1, %v14536_v60, 0.0  ;;  %v9192_v26 = vpop.permute.xlu1 %2639  ;;  %v9202_v29 = vmul.f32 %v14543_v61, %v1111_v19  ;;  %s9206_s27 = spop %5575  ;;  %v9217_v61 = vsel %vm640_vm1, %v14549_v24, 0.0  ;;  %v14739_v27 = vld [vmem:[#allocation82_spill] sm:$0xff] }
 0x348   : > { %14537 = vst [vmem:[#allocation71_spill] sm:$0xff] %v9182_v10  ;;  %14539 = vst [vmem:[#allocation72_spill] sm:$0xff] %v9187_v41  ;;  %14540 = sst [smem:[#allocation99_spill]] %s9190_s16  ;;  %v9222_v13 = vsel %vm640_vm1, %v14552_v7, 0.0  ;;  %s9225_s6 = spop %5577  ;;  %v1115_v19 = vrot.slane %v9182_v10, 7  ;;  %v1116_v48 = vrot.slane %v9187_v41, 7  ;;  %v14560_v7 = vstv %s14550_s9 }
 0x349   : > { %14531 = vst [vmem:[#allocation230_spill] sm:$0xff] %v9166_v45  ;;  %14542 = vst [vmem:[#allocation232_spill] sm:$0xff] %v9198_v5  ;;  %14545 = sst [smem:[#allocation100_spill]] %s9206_s27  ;;  %s9238_s25 = spop %5579  ;;  %v9249_v11 = vmul.f32 %v14560_v7, %v1114_v55  ;;  %v9261_v35 = vpop.permute.xlu0 %2645  ;;  %v1118_v55 = vrot.slane %v9222_v13, 7  ;;  %v14570_v10 = vld [vmem:[#allocation78_spill] sm:$0xff]  ;;  %v14724_v5 = vld [vmem:[#allocation40_spill] sm:$0xff] }
 0x34a   : > { %14544 = vst [vmem:[#allocation233_spill] sm:$0xff] %v9202_v29  ;;  %s14547_s16 = sld [smem:[#allocation112_spill]]  ;;  %14551 = vst [vmem:[#allocation73_spill] sm:$0xff] %v9217_v61  ;;  %s9256_s27 = spop %5581  ;;  %v9283_v25 = vsel %vm640_vm1, %v14570_v10, 0.0  ;;  %v9304_v39 = vmul.f32 %v14577_v46, %v1115_v19  ;;  %v9308_v41 = vmul.f32 %v14580_v2, %v1116_v48  ;;  %v14584_v19 = vld [vmem:[#allocation79_spill] sm:$0xff]  ;;  %v9925_v38 = vsel %vm883_vm2, %v14724_v5, 0.0 }
 0x34b   : > { %14553 = vst [vmem:[#allocation74_spill] sm:$0xff] %v9222_v13  ;;  %14554 = sst [smem:[#allocation101_spill]] %s9225_s6  ;;  %14561 = vst [vmem:[#allocation237_spill] sm:$0xff] %v9249_v11  ;;  %v9259_v1 = vpop.permute.xlu1 %2643  ;;  %v9324_v48 = vsel %vm640_vm1, %v14584_v19, 0.0  ;;  %v14737_v45 = vld [vmem:[#allocation44_spill] sm:$0xff] }
 0x34c   : > { %s14555_s13 = sld [smem:[#allocation364_spill]]  ;;  %14571 = vst [vmem:[#allocation78_spill] sm:$0xff] %v9283_v25  ;;  %14579 = vst [vmem:[#allocation240_spill] sm:$0xff] %v9304_v39  ;;  %v1124_v13 = vrot.slane %v9324_v48, 7 }
 0x34d   : > { %v14546_v14 = vstv %s14535_s1  ;;  %14557 = sst [smem:[#allocation103_spill]] %s9238_s25  ;;  %s14573_s1 = smov 127   ;;  %14581 = vst [vmem:[#allocation241_spill] sm:$0xff] %v9308_v41  ;;  %5685 = vpush %v9002_v40  ;;  %v9331_v40 = vpop.permute.xlu0 %2649  ;;  %v1122_v41 = vrot.slane %v9283_v25, 7  ;;  %v14620_v25 = vld [vmem:[#allocation11_spill] sm:$0xff] }
 0x34e   : > { %v9212_v42 = vmul.f32 %v14546_v14, %v1112_v36  ;;  %14564 = sst [smem:[#allocation107_spill]] %s9256_s27  ;;  %14585 = vst [vmem:[#allocation79_spill] sm:$0xff] %v9324_v48  ;;  %5687 = vpush %v9004_v34  ;;  %v14592_v34 = vld [vmem:[#allocation8_spill] sm:$0xff]  ;;  %v14635_v48 = vld [vmem:[#allocation14_spill] sm:$0xff] }
 0x34f   : > { %v9329_v46 = vpop.permute.xlu1 %2647  ;;  %s14589_s12 = sld [smem:[#allocation118_spill]]  ;;  %5689 = vpush %v9065_v31  ;;  %v9350_v39 = vsel %vm640_vm1, %v14592_v34, 0.0  ;;  %14725 = vst [vmem:[#allocation40_spill] sm:$0xff] %v9925_v38  ;;  %v14747_v38 = vld [vmem:[#allocation45_spill] sm:$0xff] }
 0x350   : > { %14548 = vst [vmem:[#allocation234_spill] sm:$0xff] %v9212_v42  ;;  %v14558_v14 = vstv %s14547_s16  ;;  %s9271_s16 = spop %5583  ;;  %14593 = vst [vmem:[#allocation8_spill] sm:$0xff] %v9350_v39  ;;  %v9984_v42 = vsel %vm883_vm2, %v14739_v27, 0.0  ;;  %v10029_v20 = vsel %vm883_vm2, %v14747_v38, 0.0  ;;  %v14769_v38 = vld [vmem:[#allocation88_spill] sm:$0xff] }
 0x351   : > { %v9245_v63 = vmul.f32 %v14558_v14, %v1113_v0  ;;  %v1117_v0 = vrot.slane %v9217_v61, 7  ;;  %v14565_v14 = vld [vmem:[#allocation76_spill] sm:$0xff]  ;;  %14567 = sst [smem:[#allocation110_spill]] %s9271_s16  ;;  %s9285_s9 = spop %5585  ;;  %5691 = vpush %v9067_v8  ;;  %14740 = vst [vmem:[#allocation82_spill] sm:$0xff] %v9984_v42 }
 0x352   : > { %v6186_v36 = vld [vmem:[%s14555_s13] sm:$0x7]  ;;  %v9269_v7 = vsel %vm640_vm1, %v14565_v14, 0.0  ;;  %14572 = sst [smem:[#allocation111_spill]] %s9285_s9  ;;  %v6187_v50 = vld [vmem:[%s14555_s13 + $0x4] sm:$0x7]  ;;  %s9311_s27 = spop %5587  ;;  %5693 = vpush %v9129_v59 }
 0x353   : > { %v9234_v24 = vrot.slane %v6186_v36, 2  ;;  %14559 = vst [vmem:[#allocation236_spill] sm:$0xff] %v9245_v63  ;;  %v14562_v36 = vld [vmem:[#allocation75_spill] sm:$0xff]  ;;  %14566 = vst [vmem:[#allocation76_spill] sm:$0xff] %v9269_v7  ;;  %v9295_v14 = vrot.slane %v6187_v50, 2  ;;  %s14578_s9 = sld [smem:[#allocation117_spill]]  ;;  %s9326_s14 = spop %5589  ;;  %v14586_v50 = vstv %s14575_s19 }
 0x354   : > { %v9254_v60 = vsel %vm640_vm1, %v14562_v36, 0.0  ;;  %v14568_v36 = vld [vmem:[#allocation77_spill] sm:$0xff]  ;;  %v6188_v10 = vld [vmem:[%s14555_s13 + $0x8] sm:$0x7]  ;;  %v1120_v37 = vrot.slane %v9269_v7, 7  ;;  %v9336_v61 = vmul.f32 %v14586_v50, %v1117_v0  ;;  %s9344_s25 = spop %5591  ;;  %5695 = vpush %v9131_v18  ;;  %v14608_v7 = vld [vmem:[#allocation10_spill] sm:$0xff] }
 0x355   : > { %14556 = vst [vmem:[#allocation235_spill] sm:$0xff] %v9234_v24  ;;  %14563 = vst [vmem:[#allocation75_spill] sm:$0xff] %v9254_v60  ;;  %v9278_v22 = vsel %vm640_vm1, %v14568_v36, 0.0  ;;  %3673 = vrot.lane.b32.xlu0 %v9234_v24, %s14573_s1  ;;  %v9300_v36 = vrot.slane %v6188_v10, 2  ;;  %v1119_v21 = vrot.slane %v9254_v60, 7  ;;  %v9319_v10 = vsel %vm640_vm1, %v14582_v17, 0.0  ;;  %s9352_s19 = spop %5593  ;;  %3675 = vrot.lane.b32.xlu1 %v9295_v14, %s14573_s1 }
 0x356   : > { %14569 = vst [vmem:[#allocation77_spill] sm:$0xff] %v9278_v22  ;;  %14574 = vst [vmem:[#allocation238_spill] sm:$0xff] %v9295_v14  ;;  %v1121_v19 = vrot.slane %v9278_v22, 7  ;;  %14591 = sst [smem:[#allocation112_spill]] %s9344_s25  ;;  %v6189_v31 = vld [vmem:[%s14555_s13 + $0xc] sm:$0x7]  ;;  %s9376_s6 = spop %5595  ;;  %v14617_v60 = vstv %s14400_s2 }
 0x357   : > { %14576 = vst [vmem:[#allocation239_spill] sm:$0xff] %v9300_v36  ;;  %14583 = vst [vmem:[#allocation7_spill] sm:$0xff] %v9319_v10  ;;  %v9362_v0 = vrot.slane %v6189_v31, 2  ;;  %v1123_v2 = vrot.slane %v9319_v10, 7  ;;  %v9410_v59 = vsel %vm883_vm2, %v14608_v7, 0.0  ;;  %v9441_v10 = vmul.f32 %v14617_v60, %v1124_v13  ;;  %s14644_s16 = sld [smem:[#allocation6_spill]] }
 0x358   : > { %14587 = vst [vmem:[#allocation242_spill] sm:$0xff] %v9336_v61  ;;  %v14600_v61 = vld [vmem:[#allocation9_spill] sm:$0xff]  ;;  %5697 = vpush %v9192_v26  ;;  %v6192_v7 = vld [vmem:[%s14555_s13 + $0x18] sm:$0x7]  ;;  %v9450_v22 = vsel %vm883_vm2, %v14620_v25, 0.0  ;;  %v9504_v25 = vsel %vm883_vm2, %v14635_v48, 0.0 }
 0x359   : > { %v14588_v17 = vstv %s14578_s9  ;;  %3677 = vrot.lane.b32.xlu0 %v9300_v36, %s14573_s1  ;;  %14594 = vst [vmem:[#allocation244_spill] sm:$0xff] %v9362_v0  ;;  %v9387_v8 = vsel %vm883_vm2, %v14600_v61, 0.0  ;;  %v1125_v61 = vrot.slane %v9350_v39, 7  ;;  %14609 = vst [vmem:[#allocation10_spill] sm:$0xff] %v9410_v59  ;;  %3679 = vrot.lane.b32.xlu1 %v9362_v0, %s14573_s1  ;;  %v14643_v39 = vld [vmem:[#allocation17_spill] sm:$0xff]  ;;  %v14678_v0 = vld [vmem:[#allocation26_spill] sm:$0xff] }
 0x35a   : > { %v9340_v32 = vmul.f32 %v14588_v17, %v1118_v55  ;;  %v6190_v55 = vld [vmem:[%s14555_s13 + $0x10] sm:$0x7]  ;;  %v14596_v17 = vstv %s14589_s12  ;;  %14601 = vst [vmem:[#allocation9_spill] sm:$0xff] %v9387_v8  ;;  %s9389_s12 = spop %5597  ;;  %5699 = vpush %v9194_v15  ;;  %v14615_v15 = vstv %s14396_s5  ;;  %v14706_v14 = vld [vmem:[#allocation35_spill] sm:$0xff] }
 0x35b   : > { %v9367_v50 = vrot.slane %v6190_v55, 2  ;;  %v9372_v34 = vmul.f32 %v14596_v17, %v1119_v21  ;;  %14602 = sst [smem:[#allocation113_spill]] %s9389_s12  ;;  %v2652_v21 = vpop.permute.xlu1 %2651  ;;  %v2654_v17 = vpop.permute.xlu0 %2653  ;;  %14618 = vst [vmem:[#allocation253_spill] sm:$0xff] %v9441_v10  ;;  %5701 = vpush %v9259_v1  ;;  %v14627_v10 = vld [vmem:[#allocation12_spill] sm:$0xff]  ;;  %v14700_v8 = vld [vmem:[#allocation33_spill] sm:$0xff] }
 0x35c   : > { %14590 = vst [vmem:[#allocation243_spill] sm:$0xff] %v9340_v32  ;;  %v14598_v32 = vstv %s14391_s7  ;;  %s9403_s7 = spop %5599  ;;  %14621 = vst [vmem:[#allocation11_spill] sm:$0xff] %v9450_v22  ;;  %v6232_v5 = vld [vmem:[%s14555_s13 + $0x5c] sm:$0x7]  ;;  %v6238_v27 = vld [vmem:[%s14555_s13 + $0x64] sm:$0x7] }
 0x35d   : > { %14595 = vst [vmem:[#allocation245_spill] sm:$0xff] %v9367_v50  ;;  %14597 = vst [vmem:[#allocation246_spill] sm:$0xff] %v9372_v34  ;;  %v9382_v55 = vmul.f32 %v14598_v32, %v1120_v37  ;;  %v14603_v34 = vstv %s14393_s8  ;;  %v14605_v32 = vstv %s14394_s0  ;;  %14607 = sst [smem:[#allocation116_spill]] %s9403_s7  ;;  %s9417_s0 = spop %5601  ;;  %3681 = vrot.lane.b32.xlu0 %v9367_v50, %s14573_s1  ;;  %v14685_v50 = vld [vmem:[#allocation28_spill] sm:$0xff]  ;;  %v9755_v59 = vld [vmem:[%s14644_s16 + $0x58] sm:$0xff] }
 0x35e   : > { %v9396_v31 = vmul.f32 %v14603_v34, %v1121_v19  ;;  %v9400_v37 = vmul.f32 %v14605_v32, %v1122_v41  ;;  %v14610_v19 = vld [vmem:[#allocation80_spill] sm:$0xff]  ;;  %14612 = sst [smem:[#allocation117_spill]] %s9417_s0  ;;  %v6191_v41 = vld [vmem:[%s14555_s13 + $0x14] sm:$0x7]  ;;  %v9432_v32 = vrot.slane %v6192_v7, 2  ;;  %s9443_s0 = spop %5603  ;;  %5703 = vpush %v9261_v35  ;;  %14636 = vst [vmem:[#allocation14_spill] sm:$0xff] %v9504_v25 }
 0x35f   : > { %14599 = vst [vmem:[#allocation247_spill] sm:$0xff] %v9382_v55  ;;  %v9415_v34 = vsel %vm883_vm2, %v14610_v19, 0.0  ;;  %v9427_v26 = vrot.slane %v6191_v41, 2  ;;  %v9436_v19 = vmul.f32 %v14615_v15, %v1123_v2  ;;  %14619 = sst [smem:[#allocation118_spill]] %s9443_s0  ;;  %v14622_v7 = vld [vmem:[#allocation81_spill] sm:$0xff]  ;;  %s9457_s5 = spop %5605  ;;  %v2656_v60 = vpop.permute.xlu1 %2655  ;;  %v2658_v13 = vpop.permute.xlu0 %2657  ;;  %v14625_v41 = vstv %s14401_s4  ;;  %5705 = vpush %v9329_v46  ;;  %v14657_v25 = vld [vmem:[#allocation20_spill] sm:$0xff] }
 0x360   : > { %14604 = vst [vmem:[#allocation248_spill] sm:$0xff] %v9396_v31  ;;  %14606 = vst [vmem:[#allocation249_spill] sm:$0xff] %v9400_v37  ;;  %v9455_v2 = vsel %vm883_vm2, %v14622_v7, 0.0  ;;  %14624 = sst [smem:[#allocation254_spill]] %s9457_s5  ;;  %v9464_v18 = vmul.f32 %v14625_v41, %v1125_v61  ;;  %v9471_v7 = vsel %vm883_vm2, %v14627_v10, 0.0  ;;  %s9473_s2 = spop %5607  ;;  %v14630_v35 = vld [vmem:[#allocation13_spill] sm:$0xff] }
 0x361   : > { %14611 = vst [vmem:[#allocation80_spill] sm:$0xff] %v9415_v34  ;;  %14613 = vst [vmem:[#allocation250_spill] sm:$0xff] %v9427_v26  ;;  %14629 = sst [smem:[#allocation256_spill]] %s9473_s2  ;;  %v9479_v15 = vsel %vm883_vm2, %v14630_v35, 0.0  ;;  %s9481_s4 = spop %5609  ;;  %3683 = vrot.lane.b32.xlu1 %v9427_v26, %s14573_s1  ;;  %3685 = vrot.lane.b32.xlu0 %v9432_v32, %s14573_s1  ;;  %v6193_v10 = vld [vmem:[%s14555_s13 + $0x1c] sm:$0x7] }
 0x362   : > { %14614 = vst [vmem:[#allocation251_spill] sm:$0xff] %v9432_v32  ;;  %14616 = vst [vmem:[#allocation252_spill] sm:$0xff] %v9436_v19  ;;  %14632 = sst [smem:[#allocation257_spill]] %s9481_s4  ;;  %v9491_v46 = vrot.slane %v6193_v10, 2  ;;  %v6194_v61 = vld [vmem:[%s14555_s13 + $0x20] sm:$0x7]  ;;  %s9506_s8 = spop %5611 }
 0x363   : > { %14623 = vst [vmem:[#allocation81_spill] sm:$0xff] %v9455_v2  ;;  %14626 = vst [vmem:[#allocation255_spill] sm:$0xff] %v9464_v18  ;;  %v9496_v41 = vrot.slane %v6194_v61, 2  ;;  %14637 = sst [smem:[#allocation260_spill]] %s9506_s8  ;;  %v14638_v61 = vld [vmem:[#allocation15_spill] sm:$0xff]  ;;  %s9515_s25 = spop %5613  ;;  %v2660_v1 = vpop.permute.xlu1 %2659  ;;  %v2662_v35 = vpop.permute.xlu0 %2661  ;;  %v14641_v32 = vld [vmem:[#allocation16_spill] sm:$0xff] }
 0x364   : > { %14628 = vst [vmem:[#allocation12_spill] sm:$0xff] %v9471_v7  ;;  %14631 = vst [vmem:[#allocation13_spill] sm:$0xff] %v9479_v15  ;;  %14640 = sst [smem:[#allocation261_spill]] %s9515_s25  ;;  %v9523_v10 = vsel %vm883_vm2, %v14641_v32, 0.0  ;;  %s9530_s9 = spop %5615  ;;  %v9553_v18 = vld [vmem:[%s14644_s16] sm:$0xff]  ;;  %v14659_v7 = vld [vmem:[#allocation21_spill] sm:$0xff] }
 0x365   : > { %5707 = vpush %v9331_v40  ;;  %14633 = vst [vmem:[#allocation258_spill] sm:$0xff] %v9491_v46  ;;  %v9513_v40 = vsel %vm883_vm2, %v14638_v61, 0.0  ;;  %v9528_v61 = vsel %vm883_vm2, %v14643_v39, 0.0  ;;  %14646 = sst [smem:[#allocation262_spill]] %s9530_s9  ;;  %s9534_s25 = spop %5617  ;;  %3687 = vrot.lane.b32.xlu1 %v9491_v46, %s14573_s1  ;;  %3689 = vrot.lane.b32.xlu0 %v9496_v41, %s14573_s1  ;;  %v6195_v39 = vld [vmem:[%s14555_s13 + $0x24] sm:$0x7] }
 0x366   : > { %14634 = vst [vmem:[#allocation259_spill] sm:$0xff] %v9496_v41  ;;  %5709 = vpush %v2652_v21  ;;  %14647 = sst [smem:[#allocation263_spill]] %s9534_s25  ;;  %v9543_v32 = vrot.slane %v6195_v39, 2  ;;  %s9556_s4 = spop %5619  ;;  %v14653_v15 = vld [vmem:[#allocation19_spill] sm:$0xff]  ;;  %v9575_v41 = vld [vmem:[%s14644_s16 + $0x8] sm:$0xff] }
 0x367   : > { %14639 = vst [vmem:[#allocation15_spill] sm:$0xff] %v9513_v40  ;;  %5711 = vpush %v2654_v17  ;;  %14650 = sst [smem:[#allocation266_spill]] %s9556_s4  ;;  %v9570_v21 = vsel %vm883_vm2, %v14653_v15, 0.0  ;;  %s9572_s2 = spop %5621  ;;  %v2906_v39 = vpop.permute.xlu0 %2905  ;;  %v9579_v46 = vld [vmem:[%s14644_s16 + $0x10] sm:$0xff]  ;;  %v9631_v2 = vld [vmem:[%s14644_s16 + $0x20] sm:$0xff] }
 0x368   : > { %14642 = vst [vmem:[#allocation16_spill] sm:$0xff] %v9523_v10  ;;  %14645 = vst [vmem:[#allocation17_spill] sm:$0xff] %v9528_v61  ;;  %14655 = sst [smem:[#allocation267_spill]] %s9572_s2  ;;  %s9582_s8 = spop %5623  ;;  %v14672_v26 = vld [vmem:[#allocation25_spill] sm:$0xff]  ;;  %v14680_v34 = vld [vmem:[#allocation27_spill] sm:$0xff] }
 0x369   : > { %5713 = vpush %v2656_v60  ;;  %14648 = vst [vmem:[#allocation264_spill] sm:$0xff] %v9543_v32  ;;  %v6196_v60 = vld [vmem:[%s14555_s13 + $0x28] sm:$0x7]  ;;  %14656 = sst [smem:[#allocation268_spill]] %s9582_s8  ;;  %s9596_s9 = spop %5625  ;;  %3691 = vrot.lane.b32.xlu1 %v9543_v32, %s14573_s1  ;;  %v14664_v32 = vld [vmem:[#allocation22_spill] sm:$0xff] }
 0x36a   : > { %5715 = vpush %v2658_v13  ;;  %v9548_v17 = vrot.slane %v6196_v60, 2  ;;  %v14651_v13 = vld [vmem:[#allocation18_spill] sm:$0xff]  ;;  %14654 = vst [vmem:[#allocation19_spill] sm:$0xff] %v9570_v21  ;;  %v9594_v60 = vsel %vm883_vm2, %v14659_v7, 0.0  ;;  %14661 = sst [smem:[#allocation269_spill]] %s9596_s9  ;;  %v9619_v61 = vsel %vm883_vm2, %v14664_v32, 0.0  ;;  %s9634_s25 = spop %5627 }
 0x36b   : > { %5717 = vpush %v2660_v1  ;;  %v9565_v48 = vsel %vm883_vm2, %v14651_v13, 0.0  ;;  %v2664_v1 = vpop.permute.xlu1 %2663  ;;  %14660 = vst [vmem:[#allocation21_spill] sm:$0xff] %v9594_v60  ;;  %v6201_v7 = vld [vmem:[%s14555_s13 + $0x30] sm:$0x7]  ;;  %14668 = sst [smem:[#allocation272_spill]] %s9634_s25  ;;  %v2910_v13 = vpop.permute.xlu0 %2909  ;;  %s9638_s4 = spop %5629  ;;  %v9650_v32 = vsel %vm883_vm2, %v14672_v26, 0.0 }
 0x36c   : > { %14649 = vst [vmem:[#allocation265_spill] sm:$0xff] %v9548_v17  ;;  %14652 = vst [vmem:[#allocation18_spill] sm:$0xff] %v9565_v48  ;;  %3693 = vrot.lane.b32.xlu0 %v9548_v17, %s14573_s1  ;;  %v9610_v15 = vrot.slane %v6201_v7, 2  ;;  %v9627_v7 = vld [vmem:[%s14644_s16 + $0x18] sm:$0xff]  ;;  %14669 = sst [smem:[#allocation273_spill]] %s9638_s4  ;;  %v14670_v48 = vld [vmem:[#allocation24_spill] sm:$0xff]  ;;  %s9676_s2 = spop %5631 }
 0x36d   : > { %5719 = vpush %v2662_v35  ;;  %v9589_v35 = vsel %vm883_vm2, %v14657_v25, 0.0  ;;  %v6200_v25 = vld [vmem:[%s14555_s13 + $0x2c] sm:$0x7]  ;;  %14665 = vst [vmem:[#allocation22_spill] sm:$0xff] %v9619_v61  ;;  %v9645_v40 = vsel %vm883_vm2, %v14670_v48, 0.0  ;;  %14676 = sst [smem:[#allocation276_spill]] %s9676_s2  ;;  %s9686_s9 = spop %5633 }
 0x36e   : > { %5721 = vpush %v2664_v1  ;;  %14658 = vst [vmem:[#allocation20_spill] sm:$0xff] %v9589_v35  ;;  %v9605_v1 = vrot.slane %v6200_v25, 2  ;;  %v14666_v25 = vld [vmem:[#allocation23_spill] sm:$0xff]  ;;  %v9669_v21 = vld [vmem:[%s14644_s16 + $0x28] sm:$0xff]  ;;  %14677 = sst [smem:[#allocation277_spill]] %s9686_s9  ;;  %v9695_v35 = vsel %vm883_vm2, %v14678_v0, 0.0  ;;  %s9702_s4 = spop %5635 }
 0x36f   : > { %5723 = vpush %v2906_v39  ;;  %14663 = vst [vmem:[#allocation271_spill] sm:$0xff] %v9610_v15  ;;  %v9624_v10 = vsel %vm883_vm2, %v14666_v25, 0.0  ;;  %v2908_v17 = vpop.permute.xlu1 %2907  ;;  %v6205_v39 = vld [vmem:[%s14555_s13 + $0x38] sm:$0x7]  ;;  %v2914_v22 = vpop.permute.xlu0 %2913  ;;  %14682 = sst [smem:[#allocation278_spill]] %s9702_s4  ;;  %v9723_v60 = vsel %vm883_vm2, %v14685_v50, 0.0  ;;  %s9738_s25 = spop %5637 }
 0x370   : > { %14662 = vst [vmem:[#allocation270_spill] sm:$0xff] %v9605_v1  ;;  %14667 = vst [vmem:[#allocation23_spill] sm:$0xff] %v9624_v10  ;;  %3695 = vrot.lane.b32.xlu1 %v9605_v1, %s14573_s1  ;;  %3697 = vrot.lane.b32.xlu0 %v9610_v15, %s14573_s1  ;;  %v9664_v26 = vrot.slane %v6205_v39, 2  ;;  %v9673_v1 = vld [vmem:[%s14644_s16 + $0x30] sm:$0xff]  ;;  %v9683_v39 = vld [vmem:[%s14644_s16 + $0x40] sm:$0xff]  ;;  %14689 = sst [smem:[#allocation281_spill]] %s9738_s25  ;;  %s9762_s2 = spop %5639 }
 0x371   : > { %5725 = vpush %v2908_v17  ;;  %14671 = vst [vmem:[#allocation24_spill] sm:$0xff] %v9645_v40  ;;  %v6204_v17 = vld [vmem:[%s14555_s13 + $0x34] sm:$0x7]  ;;  %v6210_v0 = vld [vmem:[%s14555_s13 + $0x3c] sm:$0x7]  ;;  %14694 = sst [smem:[#allocation282_spill]] %s9762_s2  ;;  %s9766_s9 = spop %5641 }
 0x372   : > { %14673 = vst [vmem:[#allocation25_spill] sm:$0xff] %v9650_v32  ;;  %5727 = vpush %v2910_v13  ;;  %v9659_v48 = vrot.slane %v6204_v17, 2  ;;  %v9679_v17 = vld [vmem:[%s14644_s16 + $0x38] sm:$0xff]  ;;  %v9700_v13 = vsel %vm883_vm2, %v14680_v34, 0.0  ;;  %v9711_v19 = vrot.slane %v6210_v0, 2  ;;  %v9735_v10 = vld [vmem:[%s14644_s16 + $0x50] sm:$0xff]  ;;  %s9804_s4 = spop %5643 }
 0x373   : > { %14675 = vst [vmem:[#allocation275_spill] sm:$0xff] %v9664_v26  ;;  %v2912_v25 = vpop.permute.xlu1 %2911  ;;  %14679 = vst [vmem:[#allocation26_spill] sm:$0xff] %v9695_v35  ;;  %v6211_v34 = vld [vmem:[%s14555_s13 + $0x40] sm:$0x7]  ;;  %v2918_v40 = vpop.permute.xlu0 %2917  ;;  %v14690_v37 = vld [vmem:[#allocation30_spill] sm:$0xff]  ;;  %14695 = sst [smem:[#allocation283_spill]] %s9766_s9  ;;  %s9814_s25 = spop %5645 }
 0x374   : > { %14674 = vst [vmem:[#allocation274_spill] sm:$0xff] %v9659_v48  ;;  %14681 = vst [vmem:[#allocation27_spill] sm:$0xff] %v9700_v13  ;;  %3699 = vrot.lane.b32.xlu1 %v9659_v48, %s14573_s1  ;;  %3701 = vrot.lane.b32.xlu0 %v9664_v26, %s14573_s1  ;;  %v14687_v26 = vld [vmem:[#allocation29_spill] sm:$0xff]  ;;  %v9731_v48 = vld [vmem:[%s14644_s16 + $0x48] sm:$0xff]  ;;  %14702 = sst [smem:[#allocation286_spill]] %s9804_s4  ;;  %s9844_s9 = spop %5647 }
 0x375   : > { %5729 = vpush %v2912_v25  ;;  %14683 = vst [vmem:[#allocation279_spill] sm:$0xff] %v9711_v19  ;;  %v9716_v25 = vrot.slane %v6211_v34, 2  ;;  %v9728_v0 = vsel %vm883_vm2, %v14687_v26, 0.0  ;;  %v9747_v34 = vsel %vm883_vm2, %v14690_v37, 0.0  ;;  %v14692_v31 = vld [vmem:[#allocation31_spill] sm:$0xff]  ;;  %v9787_v50 = vld [vmem:[%s14644_s16 + $0x70] sm:$0xff]  ;;  %s9866_s4 = spop %5649 }
 0x376   : > { %5731 = vpush %v2914_v22  ;;  %14686 = vst [vmem:[#allocation28_spill] sm:$0xff] %v9723_v60  ;;  %v9752_v15 = vsel %vm883_vm2, %v14692_v31, 0.0  ;;  %v9759_v22 = vld [vmem:[%s14644_s16 + $0x60] sm:$0xff]  ;;  %v14698_v55 = vld [vmem:[#allocation32_spill] sm:$0xff]  ;;  %v9802_v37 = vsel %vm883_vm2, %v14700_v8, 0.0  ;;  %14703 = sst [smem:[#allocation287_spill]] %s9814_s25  ;;  %s9882_s25 = spop %5651 }
 0x377   : > { %14684 = vst [vmem:[#allocation280_spill] sm:$0xff] %v9716_v25  ;;  %14688 = vst [vmem:[#allocation29_spill] sm:$0xff] %v9728_v0  ;;  %v2916_v32 = vpop.permute.xlu1 %2915  ;;  %v6216_v31 = vld [vmem:[%s14555_s13 + $0x44] sm:$0x7]  ;;  %v9807_v60 = vld [vmem:[%s14644_s16 + $0x78] sm:$0xff]  ;;  %14710 = sst [smem:[#allocation290_spill]] %s9844_s9  ;;  %s9908_s2 = spop %5653 }
 0x378   : > { %14691 = vst [vmem:[#allocation30_spill] sm:$0xff] %v9747_v34  ;;  %14693 = vst [vmem:[#allocation31_spill] sm:$0xff] %v9752_v15  ;;  %3703 = vrot.lane.b32.xlu1 %v9711_v19, %s14573_s1  ;;  %3705 = vrot.lane.b32.xlu0 %v9716_v25, %s14573_s1  ;;  %v9775_v61 = vrot.slane %v6216_v31, 2  ;;  %v2922_v19 = vpop.permute.xlu0 %2921  ;;  %v9811_v13 = vld [vmem:[%s14644_s16 + $0x80] sm:$0xff]  ;;  %v14704_v0 = vld [vmem:[#allocation34_spill] sm:$0xff]  ;;  %v9826_v31 = vsel %vm883_vm2, %v14706_v14, 0.0  ;;  %s9932_s9 = spop %5655 }
 0x379   : > { %5733 = vpush %v2916_v32  ;;  %v6217_v32 = vld [vmem:[%s14555_s13 + $0x48] sm:$0x7]  ;;  %14701 = vst [vmem:[#allocation33_spill] sm:$0xff] %v9802_v37  ;;  %v9821_v36 = vsel %vm883_vm2, %v14704_v0, 0.0  ;;  %v6223_v8 = vld [vmem:[%s14555_s13 + $0x50] sm:$0x7] }
 0x37a   : > { %5735 = vpush %v2918_v40  ;;  %14696 = vst [vmem:[#allocation284_spill] sm:$0xff] %v9775_v61  ;;  %v9780_v26 = vrot.slane %v6217_v32, 2  ;;  %v9783_v40 = vld [vmem:[%s14644_s16 + $0x68] sm:$0xff]  ;;  %v9797_v32 = vsel %vm883_vm2, %v14698_v55, 0.0  ;;  %v9840_v14 = vrot.slane %v6223_v8, 2  ;;  %v14713_v15 = vld [vmem:[#allocation37_spill] sm:$0xff] }
 0x37b   : > { %14699 = vst [vmem:[#allocation32_spill] sm:$0xff] %v9797_v32  ;;  %v2920_v25 = vpop.permute.xlu1 %2919  ;;  %14705 = vst [vmem:[#allocation34_spill] sm:$0xff] %v9821_v36  ;;  %v9856_v8 = vsel %vm883_vm2, %v14713_v15, 0.0  ;;  %v9859_v34 = vld [vmem:[%s14644_s16 + $0x88] sm:$0xff]  ;;  %14715 = sst [smem:[#allocation291_spill]] %s9866_s4  ;;  %v14716_v55 = vld [vmem:[#allocation38_spill] sm:$0xff]  ;;  %s9934_s4 = spop %5657 }
 0x37c   : > { %14697 = vst [vmem:[#allocation285_spill] sm:$0xff] %v9780_v26  ;;  %5737 = vpush %v2920_v25  ;;  %3707 = vrot.lane.b32.xlu1 %v9775_v61, %s14573_s1  ;;  %3709 = vrot.lane.b32.xlu0 %v9780_v26, %s14573_s1  ;;  %v6222_v25 = vld [vmem:[%s14555_s13 + $0x4c] sm:$0x7]  ;;  %v2926_v37 = vpop.permute.xlu0 %2925  ;;  %v9875_v63 = vsel %vm883_vm2, %v14716_v55, 0.0  ;;  %v14718_v35 = vld [vmem:[#allocation39_spill] sm:$0xff]  ;;  %14720 = sst [smem:[#allocation292_spill]] %s9882_s25  ;;  %s9972_s5 = spop %5659 }
 0x37d   : > { %14707 = vst [vmem:[#allocation35_spill] sm:$0xff] %v9826_v31  ;;  %5739 = vpush %v2922_v19  ;;  %v9835_v0 = vrot.slane %v6222_v25, 2  ;;  %v14711_v61 = vld [vmem:[#allocation36_spill] sm:$0xff]  ;;  %v9863_v19 = vld [vmem:[%s14644_s16 + $0x90] sm:$0xff]  ;;  %v9880_v24 = vsel %vm883_vm2, %v14718_v35, 0.0  ;;  %14723 = sst [smem:[#allocation295_spill]] %s9908_s2  ;;  %s9994_s25 = spop %5661 }
 0x37e   : > { %14709 = vst [vmem:[#allocation289_spill] sm:$0xff] %v9840_v14  ;;  %v9851_v25 = vsel %vm883_vm2, %v14711_v61, 0.0  ;;  %14714 = vst [vmem:[#allocation37_spill] sm:$0xff] %v9856_v8  ;;  %v6227_v35 = vld [vmem:[%s14555_s13 + $0x58] sm:$0x7]  ;;  %v14726_v31 = vld [vmem:[#allocation41_spill] sm:$0xff]  ;;  %s10020_s2 = spop %5663 }
 0x37f   : > { %14708 = vst [vmem:[#allocation288_spill] sm:$0xff] %v9835_v0  ;;  %14712 = vst [vmem:[#allocation36_spill] sm:$0xff] %v9851_v25  ;;  %v2924_v26 = vpop.permute.xlu1 %2923  ;;  %v9896_v11 = vrot.slane %v6227_v35, 2  ;;  %v9901_v32 = vld [vmem:[%s14644_s16 + $0x98] sm:$0xff]  ;;  %v9915_v35 = vld [vmem:[%s14644_s16 + $0xb0] sm:$0xff]  ;;  %14728 = sst [smem:[#allocation296_spill]] %s9932_s9 }
 0x380   : > { %5741 = vpush %v2924_v26  ;;  %14717 = vst [vmem:[#allocation38_spill] sm:$0xff] %v9875_v63  ;;  %3711 = vrot.lane.b32.xlu1 %v9835_v0, %s14573_s1  ;;  %3713 = vrot.lane.b32.xlu0 %v9840_v14, %s14573_s1  ;;  %v6226_v26 = vld [vmem:[%s14555_s13 + $0x54] sm:$0x7]  ;;  %v9905_v14 = vld [vmem:[%s14644_s16 + $0xa0] sm:$0xff]  ;;  %v2930_v15 = vpop.permute.xlu0 %2929  ;;  %14729 = sst [smem:[#allocation297_spill]] %s9934_s4  ;;  %v9943_v61 = vrot.slane %v6232_v5, 2 }
 0x381   : > { %14719 = vst [vmem:[#allocation39_spill] sm:$0xff] %v9880_v24  ;;  %5743 = vpush %v2926_v37  ;;  %v9891_v55 = vrot.slane %v6226_v26, 2  ;;  %v9911_v26 = vld [vmem:[%s14644_s16 + $0xa8] sm:$0xff]  ;;  %v9930_v37 = vsel %vm883_vm2, %v14726_v31, 0.0  ;;  %v6233_v31 = vld [vmem:[%s14555_s13 + $0x60] sm:$0x7] }
 0x382   : > { %14722 = vst [vmem:[#allocation294_spill] sm:$0xff] %v9896_v11  ;;  %14727 = vst [vmem:[#allocation41_spill] sm:$0xff] %v9930_v37  ;;  %v14732_v0 = vld [vmem:[#allocation42_spill] sm:$0xff]  ;;  %v9967_v8 = vld [vmem:[%s14644_s16 + $0xc0] sm:$0xff]  ;;  %14736 = sst [smem:[#allocation300_spill]] %s9972_s5  ;;  %s10036_s5 = spop %5665 }
 0x383   : > { %14721 = vst [vmem:[#allocation293_spill] sm:$0xff] %v9891_v55  ;;  %v2928_v36 = vpop.permute.xlu1 %2927  ;;  %14730 = vst [vmem:[#allocation298_spill] sm:$0xff] %v9943_v61  ;;  %v9955_v29 = vsel %vm883_vm2, %v14732_v0, 0.0  ;;  %v9987_v24 = vld [vmem:[%s14644_s16 + $0xc8] sm:$0xff]  ;;  %v9991_v49 = vld [vmem:[%s14644_s16 + $0xd0] sm:$0xff]  ;;  %14741 = sst [smem:[#allocation301_spill]] %s9994_s25  ;;  %s10058_s25 = spop %5667 }
 0x384   : > { %5745 = vpush %v2928_v36  ;;  %3715 = vrot.lane.b32.xlu1 %v9891_v55, %s14573_s1  ;;  %3717 = vrot.lane.b32.xlu0 %v9896_v11, %s14573_s1  ;;  %v9948_v36 = vrot.slane %v6233_v31, 2  ;;  %14733 = vst [vmem:[#allocation42_spill] sm:$0xff] %v9955_v29  ;;  %v14734_v11 = vld [vmem:[#allocation43_spill] sm:$0xff]  ;;  %v9963_v55 = vld [vmem:[%s14644_s16 + $0xb8] sm:$0xff]  ;;  %v2934_v63 = vpop.permute.xlu0 %2933  ;;  %v9979_v31 = vsel %vm883_vm2, %v14737_v45, 0.0  ;;  %14746 = sst [smem:[#allocation306_spill]] %s10020_s2 }
 0x385   : > { %5747 = vpush %v2930_v15  ;;  %v9960_v5 = vsel %vm883_vm2, %v14734_v11, 0.0  ;;  %14738 = vst [vmem:[#allocation44_spill] sm:$0xff] %v9979_v31  ;;  %v10005_v15 = vrot.slane %v6238_v27, 2  ;;  %v10017_v25 = vld [vmem:[%s14644_s16 + $0xe0] sm:$0xff]  ;;  %14751 = sst [smem:[#allocation307_spill]] %s10036_s5  ;;  %v10039_v29 = vld [vmem:[%s14644_s16 + $0xe8] sm:$0xff] }
 0x386   : > { %14731 = vst [vmem:[#allocation299_spill] sm:$0xff] %v9948_v36  ;;  %14735 = vst [vmem:[#allocation43_spill] sm:$0xff] %v9960_v5  ;;  %v14749_v11 = vld [vmem:[#allocation83_spill] sm:$0xff]  ;;  %v10043_v37 = vld [vmem:[%s14644_s16 + $0xf0] sm:$0xff]  ;;  %14758 = sst [smem:[#allocation310_spill]] %s10058_s25  ;;  %s10076_s25 = spop %5669 }
 0x387   : > { %v2932_v0 = vpop.permute.xlu1 %2931  ;;  %14742 = vst [vmem:[#allocation302_spill] sm:$0xff] %v10005_v15  ;;  %14745 = vst [vmem:[#allocation305_spill] sm:$0xff] %v10017_v25  ;;  %v10034_v6 = vsel %vm883_vm2, %v14749_v11, 0.0  ;;  %v10051_v11 = vsel %vm883_vm2, %v14754_v16, 0.0  ;;  %v14756_v25 = vld [vmem:[#allocation85_spill] sm:$0xff]  ;;  %14761 = sst [smem:[#allocation313_spill]] %s10076_s25  ;;  %s10100_s4 = spop %5671 }
 0x388   : > { %5749 = vpush %v2932_v0  ;;  %3719 = vrot.lane.b32.xlu1 %v9943_v61, %s14573_s1  ;;  %3721 = vrot.lane.b32.xlu0 %v9948_v36, %s14573_s1  ;;  %v6239_v0 = vld [vmem:[%s14555_s13 + $0x68] sm:$0x7]  ;;  %14748 = vst [vmem:[#allocation45_spill] sm:$0xff] %v10029_v20  ;;  %v2938_v27 = vpop.permute.xlu0 %2937  ;;  %v6244_v16 = vld [vmem:[%s14555_s13 + $0x6c] sm:$0x7]  ;;  %14768 = sst [smem:[#allocation316_spill]] %s10100_s4  ;;  %s10114_s2 = spop %5673 }
 0x389   : > { %5751 = vpush %v2934_v63  ;;  %v10010_v45 = vrot.slane %v6239_v0, 2  ;;  %v10013_v63 = vld [vmem:[%s14644_s16 + $0xd8] sm:$0xff]  ;;  %14750 = vst [vmem:[#allocation83_spill] sm:$0xff] %v10034_v6  ;;  %v14771_v0 = vld [vmem:[#allocation89_spill] sm:$0xff]  ;;  %14773 = sst [smem:[#allocation317_spill]] %s10114_s2  ;;  %s10149_s25 = spop %5675 }
 0x38a   : > { %14744 = vst [vmem:[#allocation304_spill] sm:$0xff] %v10013_v63  ;;  %14752 = vst [vmem:[#allocation308_spill] sm:$0xff] %v10039_v29  ;;  %v10056_v63 = vsel %vm883_vm2, %v14756_v25, 0.0  ;;  %v6245_v25 = vld [vmem:[%s14555_s13 + $0x70] sm:$0x7]  ;;  %v10091_v42 = vld [vmem:[%s14644_s16 + $0xf8] sm:$0xff]  ;;  %s10159_s4 = spop %5677 }
 0x38b   : > { %14743 = vst [vmem:[#allocation303_spill] sm:$0xff] %v10010_v45  ;;  %v2936_v36 = vpop.permute.xlu1 %2935  ;;  %14753 = vst [vmem:[#allocation309_spill] sm:$0xff] %v10043_v37  ;;  %v10072_v5 = vrot.slane %v6245_v25, 2  ;;  %v10112_v6 = vsel %vm883_vm2, %v14771_v0, 0.0  ;;  %v6249_v0 = vld [vmem:[%s14555_s13 + $0x78] sm:$0x7]  ;;  %s10190_s7 = spop %5679 }
 0x38c   : > { %5753 = vpush %v2936_v36  ;;  %14755 = vst [vmem:[#allocation84_spill] sm:$0xff] %v10051_v11  ;;  %3723 = vrot.lane.b32.xlu1 %v10005_v15, %s14573_s1  ;;  %3725 = vrot.lane.b32.xlu0 %v10010_v45, %s14573_s1  ;;  %v10067_v36 = vrot.slane %v6244_v16, 2  ;;  %v14762_v45 = vld [vmem:[#allocation86_spill] sm:$0xff]  ;;  %v14764_v15 = vld [vmem:[#allocation87_spill] sm:$0xff]  ;;  %v2942_v61 = vpop.permute.xlu0 %2941  ;;  %v10128_v31 = vrot.slane %v6249_v0, 2  ;;  %14781 = sst [smem:[#allocation323_spill]] %s10149_s25  ;;  %s10197_s2 = spop %5681 }
 0x38d   : > { %14757 = vst [vmem:[#allocation85_spill] sm:$0xff] %v10056_v63  ;;  %5755 = vpush %v2938_v27  ;;  %v10083_v16 = vsel %vm883_vm2, %v14762_v45, 0.0  ;;  %v10088_v25 = vsel %vm883_vm2, %v14764_v15, 0.0  ;;  %v10095_v27 = vld [vmem:[%s14644_s16 + $0x100] sm:$0xff]  ;;  %v10133_v45 = vld [vmem:[%s14644_s16 + $0x108] sm:$0xff]  ;;  %14783 = sst [smem:[#allocation325_spill]] %s10159_s4 }
 0x38e   : > { %14759 = vst [vmem:[#allocation311_spill] sm:$0xff] %v10067_v36  ;;  %14760 = vst [vmem:[#allocation312_spill] sm:$0xff] %v10072_v5  ;;  %v14778_v63 = vld [vmem:[#allocation90_spill] sm:$0xff]  ;;  %v10156_v30 = vld [vmem:[%s14644_s16 + $0x120] sm:$0xff]  ;;  %s14785_s5 = sld [smem:[#allocation125_spill]] }
 0x38f   : > { %14763 = vst [vmem:[#allocation86_spill] sm:$0xff] %v10083_v16  ;;  %14765 = vst [vmem:[#allocation87_spill] sm:$0xff] %v10088_v25  ;;  %v2940_v20 = vpop.permute.xlu1 %2939  ;;  %v10143_v11 = vsel %vm883_vm2, %v14778_v63, 0.0  ;;  %v10146_v0 = vld [vmem:[%s14644_s16 + $0x118] sm:$0xff]  ;;  %s14786_s8 = sld [smem:[#allocation126_spill]]  ;;  %v10217_v37 = vld [vmem:[%s14644_s16 + $0x160] sm:$0xff] }
 0x390   : > { %14766 = vst [vmem:[#allocation314_spill] sm:$0xff] %v10091_v42  ;;  %14767 = vst [vmem:[#allocation315_spill] sm:$0xff] %v10095_v27  ;;  %v10107_v42 = vsel %vm883_vm2, %v14769_v38, 0.0  ;;  %3727 = vrot.lane.b32.xlu1 %v10067_v36, %s14573_s1  ;;  %3729 = vrot.lane.b32.xlu0 %v10072_v5, %s14573_s1  ;;  %v10137_v36 = vld [vmem:[%s14644_s16 + $0x110] sm:$0xff]  ;;  %v2946_v27 = vpop.permute.xlu0 %2945  ;;  %s14787_s25 = sld [smem:[#allocation127_spill]] }
 0x391   : > { %5757 = vpush %v2940_v20  ;;  %14770 = vst [vmem:[#allocation88_spill] sm:$0xff] %v10107_v42  ;;  %v6248_v20 = vld [vmem:[%s14555_s13 + $0x74] sm:$0x7]  ;;  %s14788_s9 = sld [smem:[#allocation128_spill]]  ;;  %v10187_v42 = vld [vmem:[%s14644_s16 + $0x138] sm:$0xff] }
 0x392   : > { %14772 = vst [vmem:[#allocation89_spill] sm:$0xff] %v10112_v6  ;;  %5759 = vpush %v2942_v61  ;;  %v10123_v38 = vrot.slane %v6248_v20, 2  ;;  %v6256_v61 = vld [vmem:[%s14555_s13 + $0x80] sm:$0x7]  ;;  %v10183_v5 = vld [vmem:[%s14644_s16 + $0x130] sm:$0xff]  ;;  %14793 = sst [smem:[#allocation125_spill]] %s10190_s7 }
 0x393   : > { %14775 = vst [vmem:[#allocation319_spill] sm:$0xff] %v10128_v31  ;;  %14776 = vst [vmem:[#allocation320_spill] sm:$0xff] %v10133_v45  ;;  %v2944_v15 = vpop.permute.xlu1 %2943  ;;  %s14794_s0 = sld [smem:[#allocation129_spill]]  ;;  %v6265_v16 = vld [vmem:[%s14555_s13 + $0x88] sm:$0x7] }
 0x394   : > { %14774 = vst [vmem:[#allocation318_spill] sm:$0xff] %v10123_v38  ;;  %14777 = vst [vmem:[#allocation321_spill] sm:$0xff] %v10137_v36  ;;  %3731 = vrot.lane.b32.xlu1 %v10123_v38, %s14573_s1  ;;  %3733 = vrot.lane.b32.xlu0 %v10128_v31, %s14573_s1  ;;  %v1559_v31 = vstv %s14785_s5  ;;  %14795 = sst [smem:[#allocation126_spill]] %s10197_s2  ;;  %v2950_v63 = vpop.permute.xlu0 %2949  ;;  %v10200_v38 = vld [vmem:[%s14644_s16 + $0x140] sm:$0xff]  ;;  %s10220_s5 = spop %5683 }
 0x395   : > { %14779 = vst [vmem:[#allocation90_spill] sm:$0xff] %v10143_v11  ;;  %14780 = vst [vmem:[#allocation322_spill] sm:$0xff] %v10146_v0  ;;  %v10163_v0 = vld [vmem:[%s14644_s16 + $0x128] sm:$0xff]  ;;  %v1562_v36 = vstv %s14786_s8  ;;  %v10212_v11 = vld [vmem:[%s14644_s16 + $0x158] sm:$0xff]  ;;  %s14803_s4 = sld [smem:[#allocation132_spill]]  ;;  %s10244_s7 = spop %5685 }
 0x396   : > { %14782 = vst [vmem:[#allocation324_spill] sm:$0xff] %v10156_v30  ;;  %5761 = vpush %v2944_v15  ;;  %v6255_v15 = vld [vmem:[%s14555_s13 + $0x7c] sm:$0x7]  ;;  %v1565_v20 = vstv %s14787_s25  ;;  %s14802_s25 = sld [smem:[#allocation131_spill]] }
 0x397   : > { %14784 = vst [vmem:[#allocation326_spill] sm:$0xff] %v10163_v0  ;;  %5763 = vpush %v2946_v27  ;;  %v10173_v45 = vrot.slane %v6255_v15, 2  ;;  %v10178_v27 = vrot.slane %v6256_v61, 2  ;;  %v1568_v6 = vstv %s14788_s9  ;;  %v2948_v25 = vpop.permute.xlu1 %2947  ;;  %v10204_v15 = vld [vmem:[%s14644_s16 + $0x148] sm:$0xff]  ;;  %s14800_s9 = sld [smem:[#allocation130_spill]]  ;;  %v10234_v61 = vrot.slane %v6265_v16, 2 }
 0x398   : > { %14791 = vst [vmem:[#allocation329_spill] sm:$0xff] %v10183_v5  ;;  %14792 = vst [vmem:[#allocation330_spill] sm:$0xff] %v10187_v42  ;;  %v10208_v5 = vld [vmem:[%s14644_s16 + $0x150] sm:$0xff]  ;;  %14804 = sst [smem:[#allocation127_spill]] %s10220_s5 }
 0x399   : > { %14789 = vst [vmem:[#allocation327_spill] sm:$0xff] %v10173_v45  ;;  %14790 = vst [vmem:[#allocation328_spill] sm:$0xff] %v10178_v27  ;;  %v1571_v30 = vstv %s14794_s0  ;;  %s14805_s8 = sld [smem:[#allocation133_spill]]  ;;  %3735 = vrot.lane.b32.xlu1 %v10173_v45, %s14573_s1  ;;  %3737 = vrot.lane.b32.xlu0 %v10178_v27, %s14573_s1  ;;  %v14809_v45 = vrot.slane %v9575_v41, 7  ;;  %v14815_v41 = vrot.slane %v9631_v2, 7 }
 0x39a   : > { %14796 = vst [vmem:[#allocation331_spill] sm:$0xff] %v10200_v38  ;;  %14797 = vst [vmem:[#allocation332_spill] sm:$0xff] %v10204_v15  ;;  %14812 = sst [smem:[#allocation128_spill]] %s10244_s7  ;;  %v6269_v2 = vld [vmem:[%s14555_s13 + $0x8c] sm:$0x7] }
 0x39b   : > { %14798 = vst [vmem:[#allocation333_spill] sm:$0xff] %v10208_v5  ;;  %14799 = vst [vmem:[#allocation334_spill] sm:$0xff] %v10212_v11  ;;  %v1703_v27 = vmul.f32 %v1562_v36, %v14809_v45  ;;  %s14813_s12 = sld [smem:[#allocation134_spill]]  ;;  %v1580_v38 = vstv %s14803_s4  ;;  %v10253_v36 = vld [vmem:[%s14644_s16 + $0x168] sm:$0xff] }
 0x39c   : > { %5765 = vpush %v2948_v25  ;;  %14801 = vst [vmem:[#allocation335_spill] sm:$0xff] %v10217_v37  ;;  %v6264_v25 = vld [vmem:[%s14555_s13 + $0x84] sm:$0x7]  ;;  %v14810_v37 = vrot.slane %v9579_v46, 7  ;;  %s14814_s2 = sld [smem:[#allocation135_spill]]  ;;  %v1577_v16 = vstv %s14802_s25 }
 0x39d   : > { %5767 = vpush %v2950_v63  ;;  %v10229_v0 = vrot.slane %v6264_v25, 2  ;;  %14807 = vst [vmem:[#allocation337_spill] sm:$0xff] %v10234_v61  ;;  %v14808_v63 = vrot.slane %v9553_v18, 7  ;;  %v14811_v25 = vrot.slane %v9627_v7, 7  ;;  %v1574_v15 = vstv %s14800_s9  ;;  %v2952_v18 = vpop.permute.xlu1 %2951  ;;  %v10261_v7 = vld [vmem:[%s14644_s16 + $0x178] sm:$0xff]  ;;  %s10264_s9 = spop %5687  ;;  %3741 = vrot.lane.b32.xlu0 %v10234_v61, %s14573_s1  ;;  %s14828_s4 = sld [smem:[#allocation138_spill]] }
 0x39e   : > { %v1704_v11 = vmul.f32 %v1565_v20, %v14810_v37  ;;  %v10257_v37 = vld [vmem:[%s14644_s16 + $0x170] sm:$0xff]  ;;  %14817 = vst [vmem:[#allocation339_spill] sm:$0xff] %v10261_v7  ;;  %14818 = sst [smem:[#allocation129_spill]] %s10264_s9  ;;  %5769 = vpush %v2952_v18  ;;  %s10268_s25 = spop %5689  ;;  %v14825_v61 = vrot.slane %v9679_v17, 7 }
 0x39f   : > { %14806 = vst [vmem:[#allocation336_spill] sm:$0xff] %v10229_v0  ;;  %v1702_v42 = vmul.f32 %v1559_v31, %v14808_v63  ;;  %v1705_v5 = vmul.f32 %v1568_v6, %v14811_v25  ;;  %v1583_v29 = vstv %s14805_s8  ;;  %v2954_v31 = vpop.permute.xlu0 %2953  ;;  %v1706_v63 = vmul.f32 %v1571_v30, %v14815_v41  ;;  %14816 = vst [vmem:[#allocation338_spill] sm:$0xff] %v10257_v37  ;;  %14819 = sst [smem:[#allocation130_spill]] %s10268_s25  ;;  %v6270_v18 = vld [vmem:[%s14555_s13 + $0x90] sm:$0x7]  ;;  %s10304_s9 = spop %5691 }
 0x3a0   : > { %5771 = vpush %v2954_v31  ;;  %3739 = vrot.lane.b32.xlu1 %v10229_v0, %s14573_s1  ;;  %v10277_v30 = vrot.slane %v6269_v2, 2  ;;  %v10282_v41 = vrot.slane %v6270_v18, 2  ;;  %v14823_v31 = vrot.slane %v9669_v21, 7  ;;  %v14824_v6 = vrot.slane %v9673_v1, 7  ;;  %14830 = sst [smem:[#allocation131_spill]] %s10304_s9  ;;  %s10314_s8 = spop %5693 }
 0x3a1   : > { %v1586_v20 = vstv %s14813_s12  ;;  %s14821_s12 = sld [smem:[#allocation136_spill]]  ;;  %v1709_v0 = vmul.f32 %v1580_v38, %v14825_v61  ;;  %v14827_v2 = vrot.slane %v9683_v39, 7  ;;  %v10293_v37 = vadd.f32 %v1702_v42, %v8692_v52  ;;  %v2956_v17 = vpop.permute.xlu1 %2955  ;;  %v14831_v61 = vld [vmem:[#allocation217_spill] sm:$0xff]  ;;  %s10344_s5 = spop %5695 }
 0x3a2   : > { %v1589_v25 = vstv %s14814_s2  ;;  %14820 = vst [vmem:[#allocation340_spill] sm:$0xff] %v10277_v30  ;;  %14822 = vst [vmem:[#allocation341_spill] sm:$0xff] %v10282_v41  ;;  %v1707_v45 = vmul.f32 %v1574_v15, %v14823_v31  ;;  %v1708_v46 = vmul.f32 %v1577_v16, %v14824_v6  ;;  %s14826_s2 = sld [smem:[#allocation137_spill]]  ;;  %v10296_v18 = vadd.f32 %v1703_v27, %v8706_v58  ;;  %v14829_v15 = vld [vmem:[#allocation216_spill] sm:$0xff]  ;;  %v14843_v31 = vld [vmem:[#allocation48_spill] sm:$0xff] }
 0x3a3   : > { %v1710_v7 = vmul.f32 %v1583_v29, %v14827_v2  ;;  %v10299_v21 = vadd.f32 %v1704_v11, %v8722_v12  ;;  %v10302_v1 = vadd.f32 %v1705_v5, %v14829_v15  ;;  %v2958_v38 = vpop.permute.xlu0 %2957  ;;  %v10307_v39 = vadd.f32 %v1706_v63, %v14831_v61  ;;  %14834 = sst [smem:[#allocation132_spill]] %s10314_s8  ;;  %5773 = vpush %v2956_v17  ;;  %v6272_v11 = vld [vmem:[%s14555_s13 + $0x98] sm:$0x7]  ;;  %v14844_v15 = vld [vmem:[#allocation223_spill] sm:$0xff] }
 0x3a4   : > { %v14832_v29 = vrot.slane %v9731_v48, 7  ;;  %v14833_v42 = vrot.slane %v9735_v10, 7  ;;  %s14835_s0 = sld [smem:[#allocation139_spill]]  ;;  %v1598_v5 = vstv %s14828_s4  ;;  %5775 = vpush %v2958_v38  ;;  %3743 = vrot.lane.b32.xlu1 %v10277_v30, %s14573_s1  ;;  %3745 = vrot.lane.b32.xlu0 %v10282_v41, %s14573_s1  ;;  %v6271_v10 = vld [vmem:[%s14555_s13 + $0x94] sm:$0x7]  ;;  %v10330_v16 = vrot.slane %v6272_v11, 2 }
 0x3a5   : > { %s14836_s25 = sld [smem:[#allocation140_spill]]  ;;  %v10325_v48 = vrot.slane %v6271_v10, 2  ;;  %v14841_v63 = vld [vmem:[#allocation221_spill] sm:$0xff]  ;;  %v10339_v2 = vadd.f32 %v1709_v0, %v14843_v31  ;;  %v10342_v17 = vadd.f32 %v1710_v7, %v14844_v15  ;;  %v14848_v0 = vrot.slane %v9755_v59, 7 }
 0x3a6   : > { %v1711_v52 = vmul.f32 %v1586_v20, %v14832_v29  ;;  %v1712_v58 = vmul.f32 %v1589_v25, %v14833_v42  ;;  %s14837_s7 = sld [smem:[#allocation141_spill]]  ;;  %14840 = vst [vmem:[#allocation217_spill] sm:$0xff] %v10330_v16  ;;  %v10333_v6 = vadd.f32 %v1707_v45, %v14841_v63  ;;  %v14842_v20 = vld [vmem:[#allocation222_spill] sm:$0xff]  ;;  %v2960_v45 = vpop.permute.xlu1 %2959  ;;  %v14849_v63 = vrot.slane %v9759_v22, 7 }
 0x3a7   : > { %v1592_v27 = vstv %s14821_s12  ;;  %s14838_s9 = sld [smem:[#allocation142_spill]]  ;;  %14839 = vst [vmem:[#allocation216_spill] sm:$0xff] %v10325_v48  ;;  %v10336_v25 = vadd.f32 %v1708_v46, %v14842_v20  ;;  %v2962_v10 = vpop.permute.xlu0 %2961  ;;  %v14850_v20 = vrot.slane %v9783_v40, 7  ;;  %5777 = vpush %v2960_v45  ;;  %v14858_v40 = vrot.slane %v9787_v50, 7 }
 0x3a8   : > { %v1595_v12 = vstv %s14826_s2  ;;  %s14845_s16 = sld [smem:[#allocation143_spill]]  ;;  %s10350_s2 = spop %5697  ;;  %v10353_v46 = vadd.f32 %v1711_v52, %v8847_v62  ;;  %v1713_v11 = vmul.f32 %v1592_v27, %v14848_v0  ;;  %v10362_v15 = vadd.f32 %v1712_v58, %v8853_v54  ;;  %5779 = vpush %v2962_v10  ;;  %3747 = vrot.lane.b32.xlu1 %v10325_v48, %s14573_s1  ;;  %v6273_v62 = vld [vmem:[%s14555_s13 + $0x9c] sm:$0x7]  ;;  %v6274_v54 = vld [vmem:[%s14555_s13 + $0xa0] sm:$0x7] }
 0x3a9   : > { %14846 = sst [smem:[#allocation133_spill]] %s10344_s5  ;;  %v1714_v7 = vmul.f32 %v1595_v12, %v14849_v63  ;;  %v1715_v31 = vmul.f32 %v1598_v5, %v14850_v20  ;;  %3749 = vrot.lane.b32.xlu0 %v10330_v16, %s14573_s1  ;;  %v10374_v59 = vrot.slane %v6273_v62, 2  ;;  %v10379_v22 = vrot.slane %v6274_v54, 2  ;;  %v14975_v16 = vld [vmem:[#allocation332_spill] sm:$0xff] }
 0x3aa   : > { %v1601_v38 = vstv %s14835_s0  ;;  %14847 = sst [smem:[#allocation134_spill]] %s10350_s2  ;;  %v14859_v58 = vrot.slane %v9807_v60, 7  ;;  %v14860_v12 = vrot.slane %v9811_v13, 7  ;;  %v14862_v45 = vrot.slane %v9859_v34, 7  ;;  %v2964_v54 = vpop.permute.xlu1 %2963  ;;  %v14865_v60 = vld [vmem:[#allocation224_spill] sm:$0xff] }
 0x3ab   : > { %v1604_v61 = vstv %s14836_s25  ;;  %s14852_s25 = sld [smem:[#allocation145_spill]]  ;;  %14856 = vst [vmem:[#allocation221_spill] sm:$0xff] %v10374_v59  ;;  %14857 = vst [vmem:[#allocation222_spill] sm:$0xff] %v10379_v22  ;;  %v1716_v52 = vmul.f32 %v1601_v38, %v14858_v40  ;;  %v2966_v50 = vpop.permute.xlu0 %2965  ;;  %v10396_v38 = vadd.f32 %v1713_v11, %v8860_v4  ;;  %v10402_v13 = vadd.f32 %v1715_v31, %v8898_v57  ;;  %v6275_v57 = vld [vmem:[%s14555_s13 + $0xa4] sm:$0x7] }
 0x3ac   : > { %v1607_v29 = vstv %s14837_s7  ;;  %s14851_s7 = sld [smem:[#allocation144_spill]]  ;;  %v1717_v27 = vmul.f32 %v1604_v61, %v14859_v58  ;;  %v10399_v61 = vadd.f32 %v1714_v7, %v14865_v60  ;;  %v14866_v34 = vrot.slane %v9863_v19, 7  ;;  %5781 = vpush %v2964_v54  ;;  %3751 = vrot.lane.b32.xlu1 %v10374_v59, %s14573_s1  ;;  %v6276_v19 = vld [vmem:[%s14555_s13 + $0xa8] sm:$0x7] }
 0x3ad   : > { %v1610_v42 = vstv %s14838_s9  ;;  %s14853_s4 = sld [smem:[#allocation146_spill]]  ;;  %s10365_s9 = spop %5699  ;;  %v1718_v5 = vmul.f32 %v1607_v29, %v14860_v12  ;;  %5783 = vpush %v2966_v50  ;;  %3753 = vrot.lane.b32.xlu0 %v10379_v22, %s14573_s1  ;;  %v10419_v4 = vrot.slane %v6275_v57, 2  ;;  %v14873_v11 = vrot.slane %v9901_v32, 7 }
 0x3ae   : > { %v1613_v41 = vstv %s14845_s16  ;;  %14854 = sst [smem:[#allocation135_spill]] %s10365_s9  ;;  %v1719_v10 = vmul.f32 %v1610_v42, %v14862_v45  ;;  %s10389_s12 = spop %5701  ;;  %v14874_v31 = vrot.slane %v9905_v14, 7  ;;  %v14875_v12 = vrot.slane %v9911_v26, 7  ;;  %v2968_v14 = vpop.permute.xlu1 %2967 }
 0x3af   : > { %s14855_s8 = sld [smem:[#allocation147_spill]]  ;;  %v1720_v29 = vmul.f32 %v1613_v41, %v14866_v34  ;;  %s10406_s5 = spop %5703  ;;  %14869 = vst [vmem:[#allocation48_spill] sm:$0xff] %v10419_v4  ;;  %v10424_v41 = vrot.slane %v6276_v19, 2  ;;  %v14876_v54 = vrot.slane %v9915_v35, 7  ;;  %v10435_v60 = vadd.f32 %v1716_v52, %v8902_v47  ;;  %v2970_v26 = vpop.permute.xlu0 %2969  ;;  %5785 = vpush %v2968_v14  ;;  %v14903_v14 = vld [vmem:[#allocation305_spill] sm:$0xff] }
 0x3b0   : > { %s14861_s16 = sld [smem:[#allocation148_spill]]  ;;  %s10410_s2 = spop %5705  ;;  %v10438_v34 = vadd.f32 %v1717_v27, %v8928_v28  ;;  %v10441_v57 = vadd.f32 %v1718_v5, %v8942_v53  ;;  %v10444_v32 = vadd.f32 %v1719_v10, %v8946_v44  ;;  %v14879_v35 = vrot.slane %v9963_v55, 7  ;;  %5787 = vpush %v2970_v26  ;;  %3755 = vrot.lane.b32.xlu1 %v10419_v4, %s14573_s1  ;;  %v6277_v44 = vld [vmem:[%s14555_s13 + $0xac] sm:$0x7] }
 0x3b1   : > { %s14863_s0 = sld [smem:[#allocation149_spill]]  ;;  %v1619_v63 = vstv %s14852_s25  ;;  %14872 = vst [vmem:[#allocation223_spill] sm:$0xff] %v10424_v41  ;;  %s10446_s25 = spop %5707  ;;  %v10457_v53 = vadd.f32 %v1720_v29, %v8974_v56  ;;  %3757 = vrot.lane.b32.xlu0 %v10424_v41, %s14573_s1  ;;  %v6278_v56 = vld [vmem:[%s14555_s13 + $0xb0] sm:$0x7]  ;;  %v14890_v29 = vrot.slane %v9987_v24, 7  ;;  %v14904_v26 = vrot.slane %v14903_v14, 7 }
 0x3b2   : > { %14864 = sst [smem:[#allocation136_spill]] %s10389_s12  ;;  %v1616_v0 = vstv %s14851_s7  ;;  %v1722_v58 = vmul.f32 %v1619_v63, %v14874_v31  ;;  %v14880_v63 = vrot.slane %v9967_v8, 7  ;;  %v10467_v8 = vrot.slane %v6277_v44, 2  ;;  %v14893_v31 = vld [vmem:[#allocation304_spill] sm:$0xff]  ;;  %v14969_v41 = vld [vmem:[#allocation330_spill] sm:$0xff] }
 0x3b3   : > { %v1622_v20 = vstv %s14853_s4  ;;  %14867 = sst [smem:[#allocation137_spill]] %s10406_s5  ;;  %v1721_v7 = vmul.f32 %v1616_v0, %v14873_v11  ;;  %s10454_s4 = spop %5709  ;;  %v10472_v55 = vrot.slane %v6278_v56, 2  ;;  %v14909_v56 = vld [vmem:[#allocation226_spill] sm:$0xff]  ;;  %v14970_v4 = vrot.slane %v14969_v41, 7 }
 0x3b4   : > { %14868 = sst [smem:[#allocation138_spill]] %s10410_s2  ;;  %v1723_v45 = vmul.f32 %v1622_v20, %v14875_v12  ;;  %14884 = vst [vmem:[#allocation224_spill] sm:$0xff] %v10467_v8  ;;  %v10478_v5 = vadd.f32 %v1722_v58, %v8992_v9  ;;  %v2972_v9 = vpop.permute.xlu1 %2971  ;;  %v14894_v58 = vrot.slane %v14893_v31, 7  ;;  %3759 = vrot.lane.b32.xlu1 %v10467_v8, %s14573_s1  ;;  %v14976_v48 = vrot.slane %v14975_v16, 7  ;;  %v14986_v16 = vld [vmem:[#allocation238_spill] sm:$0xff] }
 0x3b5   : > { %v1625_v62 = vstv %s14855_s8  ;;  %s14877_s7 = sld [smem:[#allocation152_spill]]  ;;  %14885 = vst [vmem:[#allocation342_spill] sm:$0xff] %v10472_v55  ;;  %v10475_v27 = vadd.f32 %v1721_v7, %v8988_v3  ;;  %v2974_v7 = vpop.permute.xlu0 %2973  ;;  %5789 = vpush %v2972_v9  ;;  %3761 = vrot.lane.b32.xlu0 %v10472_v55, %s14573_s1 }
 0x3b6   : > { %v1628_v42 = vstv %s14861_s16  ;;  %s14870_s16 = sld [smem:[#allocation150_spill]]  ;;  %v1724_v50 = vmul.f32 %v1625_v62, %v14876_v54  ;;  %v10481_v10 = vadd.f32 %v1723_v45, %v9024_v23  ;;  %5791 = vpush %v2974_v7  ;;  %v6280_v54 = vld [vmem:[%s14555_s13 + $0xb8] sm:$0x7] }
 0x3b7   : > { %v1631_v40 = vstv %s14863_s0  ;;  %s14871_s0 = sld [smem:[#allocation151_spill]]  ;;  %v1725_v0 = vmul.f32 %v1628_v42, %v14879_v35 }
 0x3b8   : > { %14878 = sst [smem:[#allocation139_spill]] %s10446_s25  ;;  %v1726_v47 = vmul.f32 %v1631_v40, %v14880_v63  ;;  %v10484_v62 = vadd.f32 %v1724_v50, %v9028_v33  ;;  %s10486_s25 = spop %5711  ;;  %v14891_v40 = vrot.slane %v9991_v49, 7  ;;  %v10521_v50 = vrot.slane %v6280_v54, 2 }
 0x3b9   : > { %14881 = sst [smem:[#allocation140_spill]] %s10454_s4  ;;  %v10497_v23 = vadd.f32 %v1725_v0, %v9071_v43  ;;  %v6279_v43 = vld [vmem:[%s14555_s13 + $0xb4] sm:$0x7]  ;;  %v14905_v0 = vld [vmem:[#allocation308_spill] sm:$0xff] }
 0x3ba   : > { %s14882_s8 = sld [smem:[#allocation153_spill]]  ;;  %v10500_v33 = vadd.f32 %v1726_v47, %v9075_v51  ;;  %v10516_v51 = vrot.slane %v6279_v43, 2  ;;  %14902 = vst [vmem:[#allocation343_spill] sm:$0xff] %v10521_v50  ;;  %v14906_v63 = vrot.slane %v14905_v0, 7  ;;  %v2978_v43 = vpop.permute.xlu0 %2977  ;;  %3765 = vrot.lane.b32.xlu0 %v10521_v50, %s14573_s1 }
 0x3bb   : > { %v1640_v28 = vstv %s14877_s7  ;;  %s14883_s2 = sld [smem:[#allocation154_spill]] }
 0x3bc   : > { %v1634_v52 = vstv %s14870_s16  ;;  %s14886_s7 = sld [smem:[#allocation155_spill]]  ;;  %s10494_s16 = spop %5713  ;;  %v1729_v24 = vmul.f32 %v1640_v28, %v14894_v58  ;;  %14899 = vst [vmem:[#allocation304_spill] sm:$0xff] %v10516_v51  ;;  %v14908_v28 = vld [vmem:[#allocation225_spill] sm:$0xff]  ;;  %v2976_v58 = vpop.permute.xlu1 %2975  ;;  %3763 = vrot.lane.b32.xlu1 %v10516_v51, %s14573_s1 }
 0x3bd   : > { %v1637_v20 = vstv %s14871_s0  ;;  %s14887_s4 = sld [smem:[#allocation156_spill]]  ;;  %v1727_v42 = vmul.f32 %v1634_v52, %v14890_v29  ;;  %5793 = vpush %v2976_v58  ;;  %v14942_v51 = vld [vmem:[#allocation326_spill] sm:$0xff] }
 0x3be   : > { %s14888_s5 = sld [smem:[#allocation157_spill]]  ;;  %v1728_v3 = vmul.f32 %v1637_v20, %v14891_v40  ;;  %v14910_v40 = vld [vmem:[#allocation309_spill] sm:$0xff]  ;;  %5795 = vpush %v2978_v43  ;;  %v14930_v43 = vld [vmem:[#allocation228_spill] sm:$0xff] }
 0x3bf   : > { %14889 = sst [smem:[#allocation141_spill]] %s10486_s25  ;;  %v10532_v44 = vadd.f32 %v1727_v42, %v14908_v28  ;;  %v14911_v9 = vrot.slane %v14910_v40, 7  ;;  %v14917_v42 = vld [vmem:[#allocation320_spill] sm:$0xff] }
 0x3c0   : > { %v1643_v19 = vstv %s14882_s8  ;;  %14892 = sst [smem:[#allocation142_spill]] %s10494_s16  ;;  %v10535_v29 = vadd.f32 %v1728_v3, %v14909_v56  ;;  %v14918_v3 = vrot.slane %v14917_v42, 7  ;;  %v14919_v56 = vld [vmem:[#allocation321_spill] sm:$0xff] }
 0x3c1   : > { %v1646_v11 = vstv %s14883_s2  ;;  %s14895_s0 = sld [smem:[#allocation158_spill]]  ;;  %s10507_s2 = spop %5715  ;;  %v1730_v35 = vmul.f32 %v1643_v19, %v14904_v26  ;;  %v14912_v19 = vld [vmem:[#allocation314_spill] sm:$0xff]  ;;  %v14920_v40 = vrot.slane %v14919_v56, 7  ;;  %v14936_v56 = vld [vmem:[#allocation230_spill] sm:$0xff] }
 0x3c2   : > { %s14896_s25 = sld [smem:[#allocation159_spill]]  ;;  %v1649_v12 = vstv %s14886_s7  ;;  %v1731_v47 = vmul.f32 %v1646_v11, %v14906_v63  ;;  %s10529_s12 = spop %5717  ;;  %v14913_v54 = vrot.slane %v14912_v19, 7  ;;  %v14914_v11 = vld [vmem:[#allocation315_spill] sm:$0xff] }
 0x3c3   : > { %v1652_v49 = vstv %s14887_s4  ;;  %14897 = sst [smem:[#allocation143_spill]] %s10507_s2  ;;  %v1732_v7 = vmul.f32 %v1649_v12, %v14911_v9  ;;  %v14915_v26 = vrot.slane %v14914_v11, 7  ;;  %s10546_s9 = spop %5719  ;;  %v10570_v19 = vadd.f32 %v1730_v35, %v14930_v43  ;;  %v2980_v35 = vpop.permute.xlu1 %2979  ;;  %v14945_v43 = vld [vmem:[#allocation231_spill] sm:$0xff] }
 0x3c4   : > { %v1655_v45 = vstv %s14888_s5  ;;  %s14898_s8 = sld [smem:[#allocation160_spill]]  ;;  %v1733_v14 = vmul.f32 %v1652_v49, %v14913_v54  ;;  %s10552_s16 = spop %5721  ;;  %v6281_v49 = vld [vmem:[%s14555_s13 + $0xbc] sm:$0x7]  ;;  %5797 = vpush %v2980_v35  ;;  %v14961_v35 = vld [vmem:[#allocation329_spill] sm:$0xff] }
 0x3c5   : > { %s14900_s4 = sld [smem:[#allocation161_spill]]  ;;  %v1734_v0 = vmul.f32 %v1655_v45, %v14915_v26  ;;  %v10561_v45 = vrot.slane %v6281_v49, 2  ;;  %14931 = vst [vmem:[#allocation226_spill] sm:$0xff] %v10570_v19  ;;  %v14932_v54 = vld [vmem:[#allocation229_spill] sm:$0xff]  ;;  %v14934_v26 = vld [vmem:[#allocation322_spill] sm:$0xff]  ;;  %v14939_v49 = vld [vmem:[#allocation324_spill] sm:$0xff] }
 0x3c6   : > { %s14901_s5 = sld [smem:[#allocation162_spill]]  ;;  %v10573_v11 = vadd.f32 %v1731_v47, %v14932_v54  ;;  %v14935_v42 = vrot.slane %v14934_v26, 7  ;;  %v14940_v50 = vrot.slane %v14939_v49, 7  ;;  %v2982_v47 = vpop.permute.xlu0 %2981  ;;  %v10588_v54 = vadd.f32 %v1733_v14, %v14945_v43  ;;  %v14957_v14 = vld [vmem:[#allocation235_spill] sm:$0xff] }
 0x3c7   : > { %v1658_v52 = vstv %s14895_s0  ;;  %14907 = sst [smem:[#allocation144_spill]] %s10529_s12  ;;  %14924 = vst [vmem:[#allocation305_spill] sm:$0xff] %v10561_v45  ;;  %s10585_s0 = spop %5723  ;;  %5799 = vpush %v2982_v47  ;;  %3767 = vrot.lane.b32.xlu1 %v10561_v45, %s14573_s1  ;;  %4057 = vrot.lane.b32.xlu0 %v14957_v14, %s14334_s18  ;;  %v14962_v43 = vrot.slane %v14961_v35, 7 }
 0x3c8   : > { %v1661_v20 = vstv %s14896_s25  ;;  %14916 = sst [smem:[#allocation145_spill]] %s10546_s9  ;;  %v1735_v28 = vmul.f32 %v1658_v52, %v14918_v3  ;;  %v14925_v52 = vlaneseq  ;;  %14933 = vst [vmem:[#allocation309_spill] sm:$0xff] %v10573_v11  ;;  %14947 = vst [vmem:[#allocation315_spill] sm:$0xff] %v10588_v54 }
 0x3c9   : > { %s14921_s25 = sld [smem:[#allocation163_spill]]  ;;  %v1736_v12 = vmul.f32 %v1661_v20, %v14920_v40  ;;  %v14928_v20 = vld [vmem:[#allocation227_spill] sm:$0xff]  ;;  %v10578_v40 = vadd.f32 %v1732_v7, %v14936_v56 }
 0x3ca   : > { %v1664_v31 = vstv %s14898_s8  ;;  %14922 = sst [smem:[#allocation146_spill]] %s10552_s16  ;;  %v10564_v9 = vshrl.u32 %v14925_v52, 7  ;;  %v10567_v58 = vadd.f32 %v1729_v24, %v14928_v20  ;;  %v14943_v24 = vrot.slane %v14942_v51, 7  ;;  %s10595_s16 = spop %5725  ;;  %v14952_v51 = vld [vmem:[#allocation233_spill] sm:$0xff] }
 0x3cb   : > { %v1667_v63 = vstv %s14900_s4  ;;  %s14923_s7 = sld [smem:[#allocation164_spill]]  ;;  %v1737_v3 = vmul.f32 %v1664_v31, %v14935_v42  ;;  %14938 = vst [vmem:[#allocation314_spill] sm:$0xff] %v10578_v40  ;;  %v14948_v31 = vld [vmem:[#allocation232_spill] sm:$0xff]  ;;  %4059 = vrot.lane.b32.xlu1 %v14986_v16, %s14334_s18  ;;  %v15044_v40 = vld [vmem:[#allocation14_spill] sm:$0xff] }
 0x3cc   : > { %v1670_v55 = vstv %s14901_s5  ;;  %s14926_s4 = sld [smem:[#allocation165_spill]]  ;;  %14927 = vst [vmem:[#allocation308_spill] sm:$0xff] %v10564_v9  ;;  %14929 = vst [vmem:[#allocation225_spill] sm:$0xff] %v10567_v58  ;;  %v1738_v52 = vmul.f32 %v1667_v63, %v14940_v50  ;;  %v10591_v7 = vadd.f32 %v1734_v0, %v14948_v31  ;;  %v14955_v50 = vld [vmem:[#allocation234_spill] sm:$0xff]  ;;  %v14958_v0 = vld [vmem:[#allocation236_spill] sm:$0xff]  ;;  %vm2182_vm3 = vcmp.ge.s32.totalorder %v10564_v9, 1 }
 0x3cd   : > { %s14937_s13 = sld [smem:[#allocation166_spill]]  ;;  %v1739_v20 = vmul.f32 %v1670_v55, %v14943_v24  ;;  %v10598_v55 = vadd.f32 %v1735_v28, %v14952_v51  ;;  %v10601_v63 = vadd.f32 %v1736_v12, %v14955_v50  ;;  %v10610_v24 = vadd.f32 %v1737_v3, %v14958_v0  ;;  %v14965_v12 = vld [vmem:[#allocation237_spill] sm:$0xff]  ;;  %v14967_v50 = vld [vmem:[#allocation240_spill] sm:$0xff]  ;;  %v2984_v3 = vpop.permute.xlu1 %2983  ;;  %v2986_v0 = vpop.permute.xlu0 %2985 }
 0x3ce   : > { %s14941_s5 = sld [smem:[#allocation168_spill]]  ;;  %14950 = vst [vmem:[#allocation320_spill] sm:$0xff] %v10591_v7  ;;  %v10619_v47 = vadd.f32 %v1738_v52, %v14965_v12  ;;  %v14977_v52 = vld [vmem:[#allocation333_spill] sm:$0xff]  ;;  %5801 = vpush %v2984_v3  ;;  %v15045_v11 = vrot.slane %v15044_v40, 7 }
 0x3cf   : > { %v1673_v8 = vstv %s14921_s25  ;;  %14944 = sst [smem:[#allocation147_spill]] %s10585_s0  ;;  %14954 = vst [vmem:[#allocation321_spill] sm:$0xff] %v10598_v55  ;;  %14956 = vst [vmem:[#allocation227_spill] sm:$0xff] %v10601_v63  ;;  %v10622_v45 = vadd.f32 %v1739_v20, %v14967_v50  ;;  %v14978_v12 = vrot.slane %v14977_v52, 7  ;;  %v14983_v50 = vld [vmem:[#allocation335_spill] sm:$0xff]  ;;  %v15038_v7 = vld [vmem:[#allocation13_spill] sm:$0xff] }
 0x3d0   : > { %s14946_s8 = sld [smem:[#allocation169_spill]]  ;;  %14960 = vst [vmem:[#allocation228_spill] sm:$0xff] %v10610_v24  ;;  %v1740_v28 = vmul.f32 %v1673_v8, %v14962_v43  ;;  %14966 = vst [vmem:[#allocation229_spill] sm:$0xff] %v10619_v47  ;;  %v14972_v8 = vld [vmem:[#allocation331_spill] sm:$0xff] }
 0x3d1   : > { %s14949_s9 = sld [smem:[#allocation170_spill]]  ;;  %v1676_v26 = vstv %s14923_s7  ;;  %14968 = vst [vmem:[#allocation322_spill] sm:$0xff] %v10622_v45  ;;  %v14973_v35 = vrot.slane %v14972_v8, 7  ;;  %v14984_v45 = vrot.slane %v14983_v50, 7  ;;  %5803 = vpush %v2986_v0  ;;  %v6359_v50 = vmov 0  }
 0x3d2   : > { %v1679_v42 = vstv %s14926_s4  ;;  %14951 = sst [smem:[#allocation148_spill]] %s10595_s16  ;;  %s10616_s4 = spop %5727  ;;  %v1741_v22 = vmul.f32 %v1676_v26, %v14970_v4  ;;  %v14981_v4 = vld [vmem:[#allocation334_spill] sm:$0xff]  ;;  %6136 = vset.pattern.permute.xlu0 %v6359_v50  ;;  %6137 = vset.pattern.permute.xlu1 %v6359_v50 }
 0x3d3   : > { %s14953_s12 = sld [smem:[#allocation171_spill]]  ;;  %v1682_v56 = vstv %s14937_s13  ;;  %s10627_s1 = spop %5729  ;;  %v1742_v43 = vmul.f32 %v1679_v42, %v14973_v35  ;;  %v14982_v41 = vrot.slane %v14981_v4, 7  ;;  %v14988_v42 = vld [vmem:[#allocation241_spill] sm:$0xff]  ;;  %v14994_v35 = vld [vmem:[#allocation9_spill] sm:$0xff]  ;;  %v2988_v4 = vpop.permute.xlu1 %2987 }
 0x3d4   : > { %v1685_v49 = vstv %s14941_s5  ;;  %s14959_s25 = sld [smem:[#allocation174_spill]]  ;;  %v1743_v30 = vmul.f32 %v1682_v56, %v14976_v48  ;;  %v14987_v48 = vld [vmem:[#allocation239_spill] sm:$0xff]  ;;  %v10649_v56 = vadd.f32 %v1740_v28, %v14988_v42  ;;  %v14995_v52 = vrot.slane %v14994_v35, 7  ;;  %5805 = vpush %v2988_v4 }
 0x3d5   : > { %s14963_s7 = sld [smem:[#allocation175_spill]]  ;;  %v1744_v47 = vmul.f32 %v1685_v49, %v14978_v12  ;;  %4061 = vrot.lane.b32.xlu0 %v14987_v48, %s14334_s18  ;;  %v14990_v49 = vrot.slane %v10253_v36, 7  ;;  %v14996_v28 = vld [vmem:[#allocation243_spill] sm:$0xff]  ;;  %v14998_v36 = vld [vmem:[#allocation246_spill] sm:$0xff] }
 0x3d6   : > { %v1688_v31 = vstv %s14946_s8  ;;  %14964 = sst [smem:[#allocation149_spill]] %s10616_s4  ;;  %14989 = vst [vmem:[#allocation230_spill] sm:$0xff] %v10649_v56  ;;  %v10664_v42 = vadd.f32 %v1742_v43, %v14996_v28  ;;  %v15011_v43 = vld [vmem:[#allocation249_spill] sm:$0xff]  ;;  %v15036_v56 = vld [vmem:[#allocation12_spill] sm:$0xff] }
 0x3d7   : > { %v1691_v51 = vstv %s14949_s9  ;;  %14971 = sst [smem:[#allocation150_spill]] %s10627_s1  ;;  %v1745_v26 = vmul.f32 %v1688_v31, %v14982_v41  ;;  %v2990_v41 = vpop.permute.xlu0 %2989  ;;  %v15037_v55 = vrot.slane %v15036_v56, 7  ;;  %v15051_v56 = vld [vmem:[#allocation17_spill] sm:$0xff] }
 0x3d8   : > { %s14974_s9 = sld [smem:[#allocation176_spill]]  ;;  %v1746_v24 = vmul.f32 %v1691_v51, %v14984_v45  ;;  %v14992_v45 = vld [vmem:[#allocation242_spill] sm:$0xff]  ;;  %14997 = vst [vmem:[#allocation326_spill] sm:$0xff] %v10664_v42  ;;  %5807 = vpush %v2990_v41  ;;  %v15052_v58 = vrot.slane %v15051_v56, 7  ;;  %v15310_v56 = vld [vmem:[#allocation220_spill] sm:$0xff] }
 0x3d9   : > { %v1694_v59 = vstv %s14953_s12  ;;  %s14979_s13 = sld [smem:[#allocation172_spill]]  ;;  %s10641_s12 = spop %5731  ;;  %v10657_v51 = vadd.f32 %v1741_v22, %v14992_v45  ;;  %v15003_v45 = vld [vmem:[#allocation10_spill] sm:$0xff] }
 0x3da   : > { %v1943_v20 = vstv %s14959_s25  ;;  %s14980_s5 = sld [smem:[#allocation173_spill]]  ;;  %v1747_v31 = vmul.f32 %v1694_v59, %v14990_v49  ;;  %s10654_s8 = spop %5733  ;;  %v10667_v59 = vadd.f32 %v1743_v30, %v14998_v36  ;;  %v15001_v49 = vld [vmem:[#allocation247_spill] sm:$0xff]  ;;  %v10680_v50 = vadd.f32 %v1746_v24, %v15011_v43  ;;  %v15023_v24 = vld [vmem:[#allocation338_spill] sm:$0xff] }
 0x3db   : > { %v1946_v63 = vstv %s14963_s7  ;;  %14985 = sst [smem:[#allocation151_spill]] %s10641_s12  ;;  %14993 = vst [vmem:[#allocation324_spill] sm:$0xff] %v10657_v51  ;;  %v2086_v12 = vmul.f32 %v1943_v20, %v14995_v52  ;;  %v10670_v22 = vadd.f32 %v1744_v47, %v15001_v49  ;;  %v15004_v51 = vrot.slane %v15003_v45, 7  ;;  %v15009_v20 = vld [vmem:[#allocation248_spill] sm:$0xff]  ;;  %v15013_v30 = vld [vmem:[#allocation80_spill] sm:$0xff]  ;;  %v15019_v47 = vld [vmem:[#allocation245_spill] sm:$0xff] }
 0x3dc   : > { %14991 = sst [smem:[#allocation152_spill]] %s10654_s8  ;;  %15000 = vst [vmem:[#allocation231_spill] sm:$0xff] %v10667_v59  ;;  %v10677_v52 = vadd.f32 %v1745_v26, %v15009_v20  ;;  %15012 = vst [vmem:[#allocation234_spill] sm:$0xff] %v10680_v50  ;;  %v15014_v28 = vrot.slane %v15013_v30, 7  ;;  %4065 = vrot.lane.b32.xlu0 %v15019_v47, %s14334_s18  ;;  %v15021_v26 = vld [vmem:[#allocation252_spill] sm:$0xff]  ;;  %v15024_v4 = vrot.slane %v15023_v24, 7 }
 0x3dd   : > { %s14999_s25 = sld [smem:[#allocation177_spill]]  ;;  %15002 = vst [vmem:[#allocation232_spill] sm:$0xff] %v10670_v22  ;;  %v2087_v35 = vmul.f32 %v1946_v63, %v15004_v51  ;;  %v15017_v63 = vld [vmem:[#allocation244_spill] sm:$0xff]  ;;  %v10691_v51 = vadd.f32 %v1747_v31, %v15021_v26  ;;  %v15025_v20 = vld [vmem:[#allocation339_spill] sm:$0xff]  ;;  %v2134_v41 = vadd.f32 %v2086_v12, %v10293_v37  ;;  %v2994_v22 = vpop.permute.xlu0 %2993 }
 0x3de   : > { %v1949_v3 = vstv %s14974_s9  ;;  %s15005_s7 = sld [smem:[#allocation178_spill]]  ;;  %15010 = vst [vmem:[#allocation233_spill] sm:$0xff] %v10677_v52  ;;  %4063 = vrot.lane.b32.xlu1 %v15017_v63, %s14334_s18  ;;  %v2992_v52 = vpop.permute.xlu1 %2991  ;;  %v15030_v37 = vld [vmem:[#allocation11_spill] sm:$0xff] }
 0x3df   : > { %v1697_v0 = vstv %s14979_s13  ;;  %s15006_s9 = sld [smem:[#allocation179_spill]]  ;;  %s10674_s13 = spop %5735  ;;  %v2088_v36 = vmul.f32 %v1949_v3, %v15014_v28  ;;  %15022 = vst [vmem:[#allocation235_spill] sm:$0xff] %v10691_v51  ;;  %v15026_v3 = vrot.slane %v15025_v20, 7  ;;  %v2135_v31 = vadd.f32 %v2087_v35, %v10296_v18  ;;  %5809 = vpush %v2992_v52  ;;  %v15032_v51 = vld [vmem:[#allocation250_spill] sm:$0xff]  ;;  %v15033_v18 = vld [vmem:[#allocation251_spill] sm:$0xff] }
 0x3e0   : > { %v1700_v8 = vstv %s14980_s5  ;;  %15007 = sst [smem:[#allocation153_spill]] %s10674_s13  ;;  %s10684_s8 = spop %5737  ;;  %v1748_v49 = vmul.f32 %v1697_v0, %v15024_v4  ;;  %v15031_v12 = vrot.slane %v15030_v37, 7  ;;  %5811 = vpush %v2994_v22  ;;  %4069 = vrot.lane.b32.xlu0 %v15033_v18, %s14334_s18  ;;  %v15034_v35 = vld [vmem:[#allocation81_spill] sm:$0xff] }
 0x3e1   : > { %s15008_s5 = sld [smem:[#allocation180_spill]]  ;;  %v1749_v43 = vmul.f32 %v1700_v8, %v15026_v3  ;;  %s10702_s4 = spop %5739  ;;  %v2136_v8 = vadd.f32 %v2088_v36, %v10299_v21  ;;  %v15035_v59 = vrot.slane %v15034_v35, 7  ;;  %v15039_v21 = vrot.slane %v15038_v7, 7  ;;  %v15046_v35 = vld [vmem:[#allocation15_spill] sm:$0xff] }
 0x3e2   : > { %15015 = sst [smem:[#allocation154_spill]] %s10684_s8  ;;  %s10708_s0 = spop %5741  ;;  %4067 = vrot.lane.b32.xlu1 %v15032_v51, %s14334_s18 }
 0x3e3   : > { %s15016_s12 = sld [smem:[#allocation181_spill]]  ;;  %v1952_v28 = vstv %s14999_s25 }
 0x3e4   : > { %s15018_s1 = sld [smem:[#allocation182_spill]]  ;;  %v1955_v30 = vstv %s15005_s7  ;;  %v2089_v4 = vmul.f32 %v1952_v28, %v15031_v12  ;;  %v15041_v28 = vld [vmem:[#allocation253_spill] sm:$0xff]  ;;  %v15043_v12 = vld [vmem:[#allocation255_spill] sm:$0xff] }
 0x3e5   : > { %s15020_s13 = sld [smem:[#allocation183_spill]]  ;;  %v1958_v45 = vstv %s15006_s9  ;;  %v2090_v42 = vmul.f32 %v1955_v30, %v15035_v59  ;;  %v10729_v22 = vadd.f32 %v1748_v49, %v15041_v28  ;;  %v10732_v54 = vadd.f32 %v1749_v43, %v15043_v12  ;;  %v15054_v28 = vld [vmem:[#allocation18_spill] sm:$0xff] }
 0x3e6   : > { %s15027_s8 = sld [smem:[#allocation184_spill]]  ;;  %v2091_v52 = vmul.f32 %v1958_v45, %v15037_v55  ;;  %v15047_v59 = vrot.slane %v15046_v35, 7  ;;  %v2996_v55 = vpop.permute.xlu1 %2995  ;;  %v2998_v45 = vpop.permute.xlu0 %2997  ;;  %v15055_v43 = vrot.slane %v15054_v28, 7  ;;  %v15297_v28 = vld [vmem:[#allocation214_spill] sm:$0xff] }
 0x3e7   : > { %s15028_s2 = sld [smem:[#allocation185_spill]]  ;;  %v1961_v50 = vstv %s15008_s5  ;;  %15042 = vst [vmem:[#allocation236_spill] sm:$0xff] %v10729_v22  ;;  %5813 = vpush %v2996_v55  ;;  %v15322_v35 = vld [vmem:[#allocation47_spill] sm:$0xff] }
 0x3e8   : > { %s15029_s16 = sld [smem:[#allocation186_spill]]  ;;  %v2092_v36 = vmul.f32 %v1961_v50, %v15039_v21  ;;  %v15049_v50 = vld [vmem:[#allocation16_spill] sm:$0xff]  ;;  %5815 = vpush %v2998_v45 }
 0x3e9   : > { %v1964_v26 = vstv %s15016_s12  ;;  %v15050_v21 = vrot.slane %v15049_v50, 7  ;;  %s15057_s12 = sld [smem:[#allocation188_spill]]  ;;  %v15318_v50 = vld [vmem:[#allocation167_spill] sm:$0xff] }
 0x3ea   : > { %v1967_v0 = vstv %s15018_s1  ;;  %s10726_s1 = spop %5743  ;;  %v2093_v19 = vmul.f32 %v1964_v26, %v15045_v11  ;;  %v10748_v11 = vsel %vm2182_vm3, %v2134_v41, 0.0  ;;  %v2137_v26 = vadd.f32 %v2089_v4, %v10302_v1  ;;  %s15065_s7 = sld [smem:[#allocation190_spill]] }
 0x3eb   : > { %v1970_v24 = vstv %s15020_s13  ;;  %15040 = sst [smem:[#allocation155_spill]] %s10726_s1  ;;  %v2094_v30 = vmul.f32 %v1967_v0, %v15047_v59  ;;  %15056 = vst [vmem:[#allocation329_spill] sm:$0xff] %v10748_v11  ;;  %v15058_v0 = vld [vmem:[#allocation19_spill] sm:$0xff]  ;;  %v10761_v41 = vsel %vm2182_vm3, %v2135_v31, 0.0  ;;  %v10765_v1 = vsel %vm2182_vm3, %v2136_v8, 0.0 }
 0x3ec   : > { %v1973_v20 = vstv %s15027_s8  ;;  %v2095_v7 = vmul.f32 %v1970_v24, %v15050_v21  ;;  %v15059_v59 = vrot.slane %v15058_v0, 7  ;;  %s15060_s8 = sld [smem:[#allocation189_spill]]  ;;  %v15063_v24 = vld [vmem:[#allocation259_spill] sm:$0xff]  ;;  %15064 = vst [vmem:[#allocation237_spill] sm:$0xff] %v10761_v41  ;;  %15066 = vst [vmem:[#allocation240_spill] sm:$0xff] %v10765_v1  ;;  %v2139_v4 = vadd.f32 %v2091_v52, %v10333_v6  ;;  %v15312_v1 = vld [vmem:[#allocation223_spill] sm:$0xff] }
 0x3ed   : > { %v1976_v3 = vstv %s15028_s2  ;;  %s10738_s2 = spop %5745  ;;  %v2096_v49 = vmul.f32 %v1973_v20, %v15052_v58  ;;  %v15062_v58 = vld [vmem:[#allocation258_spill] sm:$0xff]  ;;  %4073 = vrot.lane.b32.xlu0 %v15063_v24, %s14334_s18  ;;  %v2140_v20 = vadd.f32 %v2092_v36, %v10336_v25  ;;  %s15067_s9 = sld [smem:[#allocation191_spill]]  ;;  %v2141_v55 = vadd.f32 %v2093_v19, %v10339_v2  ;;  %v15315_v41 = vld [vmem:[#allocation46_spill] sm:$0xff] }
 0x3ee   : > { %v1979_v37 = vstv %s15029_s16  ;;  %15048 = sst [smem:[#allocation156_spill]] %s10738_s2  ;;  %v2097_v12 = vmul.f32 %v1976_v3, %v15055_v43  ;;  %s10753_s25 = spop %5747  ;;  %4071 = vrot.lane.b32.xlu1 %v15062_v58, %s14334_s18  ;;  %v2142_v31 = vadd.f32 %v2094_v30, %v10342_v17  ;;  %v3000_v43 = vpop.permute.xlu1 %2999  ;;  %v2143_v8 = vadd.f32 %v2095_v7, %v10353_v46  ;;  %v15070_v2 = vld [vmem:[#allocation20_spill] sm:$0xff]  ;;  %v15073_v46 = vld [vmem:[#allocation264_spill] sm:$0xff] }
 0x3ef   : > { %s15053_s16 = sld [smem:[#allocation187_spill]]  ;;  %v2098_v22 = vmul.f32 %v1979_v37, %v15059_v59  ;;  %v2138_v37 = vadd.f32 %v2090_v42, %v10307_v39  ;;  %s10771_s13 = spop %5749  ;;  %v1985_v45 = vstv %s15057_s12  ;;  %v10777_v59 = vpop.permute.xlu0 %3673  ;;  %v2144_v39 = vadd.f32 %v2096_v49, %v10362_v15  ;;  %5817 = vpush %v3000_v43  ;;  %v15074_v15 = vld [vmem:[#allocation265_spill] sm:$0xff] }
 0x3f0   : > { %15061 = sst [smem:[#allocation157_spill]] %s10753_s25  ;;  %v2145_v6 = vadd.f32 %v2097_v12, %v10396_v38  ;;  %v1991_v25 = vstv %s15065_s7  ;;  %s10783_s5 = spop %5751  ;;  %v15071_v19 = vrot.slane %v15070_v2, 7  ;;  %5819 = vpush %v14957_v14  ;;  %v10798_v38 = vsel %vm2182_vm3, %v2137_v26, 0.0  ;;  %v15293_v2 = vld [vmem:[#allocation221_spill] sm:$0xff] }
 0x3f1   : > { %15068 = sst [smem:[#allocation158_spill]] %s10771_s13  ;;  %v2146_v42 = vadd.f32 %v2098_v22, %v10399_v61  ;;  %4077 = vrot.lane.b32.xlu0 %v15074_v15, %s14334_s18  ;;  %15076 = vst [vmem:[#allocation330_spill] sm:$0xff] %v10798_v38  ;;  %v15077_v61 = vld [vmem:[#allocation21_spill] sm:$0xff]  ;;  %v15079_v22 = vld [vmem:[#allocation22_spill] sm:$0xff]  ;;  %5821 = vpush %v14986_v16  ;;  %v10807_v14 = vsel %vm2182_vm3, %v2139_v4, 0.0  ;;  %v10811_v12 = vsel %vm2182_vm3, %v2138_v37, 0.0 }
 0x3f2   : > { %v1988_v21 = vstv %s15060_s8  ;;  %15069 = sst [smem:[#allocation159_spill]] %s10783_s5  ;;  %4075 = vrot.lane.b32.xlu1 %v15073_v46, %s14334_s18  ;;  %v15078_v7 = vrot.slane %v15077_v61, 7  ;;  %v15080_v30 = vrot.slane %v15079_v22, 7  ;;  %15081 = vst [vmem:[#allocation331_spill] sm:$0xff] %v10807_v14  ;;  %15082 = vst [vmem:[#allocation332_spill] sm:$0xff] %v10811_v12  ;;  %v10824_v16 = vsel %vm2182_vm3, %v2141_v55, 0.0 }
 0x3f3   : > { %v1994_v52 = vstv %s15067_s9  ;;  %s15075_s12 = sld [smem:[#allocation192_spill]]  ;;  %5823 = vpush %v14987_v48  ;;  %15087 = vst [vmem:[#allocation333_spill] sm:$0xff] %v10824_v16  ;;  %v10828_v37 = vsel %vm2182_vm3, %v2140_v20, 0.0  ;;  %v10832_v4 = vsel %vm2182_vm3, %v2142_v31, 0.0  ;;  %v10842_v55 = vsel %vm2182_vm3, %v2143_v8, 0.0  ;;  %v15295_v16 = vld [vmem:[#allocation213_spill] sm:$0xff] }
 0x3f4   : > { %v2100_v36 = vmul.f32 %v1985_v45, %v15078_v7  ;;  %v2101_v49 = vmul.f32 %v1988_v21, %v15080_v30  ;;  %s15085_s8 = sld [smem:[#allocation193_spill]]  ;;  %v10818_v45 = vpop.permute.xlu1 %3675  ;;  %v10820_v21 = vpop.permute.xlu0 %3677  ;;  %15088 = vst [vmem:[#allocation334_spill] sm:$0xff] %v10828_v37  ;;  %15089 = vst [vmem:[#allocation335_spill] sm:$0xff] %v10832_v4  ;;  %v10846_v20 = vsel %vm2182_vm3, %v2144_v39, 0.0  ;;  %v10857_v8 = vsel %vm2182_vm3, %v2145_v6, 0.0  ;;  %v15299_v14 = vld [vmem:[#allocation222_spill] sm:$0xff] }
 0x3f5   : > { %v1982_v3 = vstv %s15053_s16  ;;  %s10789_s16 = spop %5753  ;;  %s15092_s9 = sld [smem:[#allocation194_spill]]  ;;  %5825 = vpush %v15017_v63  ;;  %15095 = vst [vmem:[#allocation238_spill] sm:$0xff] %v10842_v55  ;;  %v15100_v63 = vld [vmem:[#allocation271_spill] sm:$0xff]  ;;  %v10861_v39 = vsel %vm2182_vm3, %v2146_v42, 0.0  ;;  %v15301_v12 = vld [vmem:[#allocation218_spill] sm:$0xff] }
 0x3f6   : > { %v2099_v17 = vmul.f32 %v1982_v3, %v15071_v19  ;;  %15072 = sst [smem:[#allocation160_spill]] %s10789_s16  ;;  %v15083_v3 = vld [vmem:[#allocation23_spill] sm:$0xff]  ;;  %s10815_s7 = spop %5755  ;;  %15096 = vst [vmem:[#allocation239_spill] sm:$0xff] %v10846_v20  ;;  %5827 = vpush %v15019_v47  ;;  %4081 = vrot.lane.b32.xlu0 %v15100_v63, %s14334_s18  ;;  %v15113_v20 = vld [vmem:[#allocation28_spill] sm:$0xff] }
 0x3f7   : > { %v15084_v43 = vrot.slane %v15083_v3, 7  ;;  %15086 = sst [smem:[#allocation161_spill]] %s10815_s7  ;;  %s10837_s16 = spop %5757  ;;  %15101 = vst [vmem:[#allocation241_spill] sm:$0xff] %v10857_v8  ;;  %15102 = vst [vmem:[#allocation242_spill] sm:$0xff] %v10861_v39  ;;  %v15114_v22 = vrot.slane %v15113_v20, 7  ;;  %v15307_v38 = vld [vmem:[#allocation219_spill] sm:$0xff] }
 0x3f8   : > { %s15093_s7 = sld [smem:[#allocation195_spill]]  ;;  %v2147_v31 = vadd.f32 %v2099_v17, %v10402_v13  ;;  %v2148_v13 = vadd.f32 %v2100_v36, %v10435_v60  ;;  %v2149_v17 = vadd.f32 %v2101_v49, %v10438_v34  ;;  %5829 = vpush %v15032_v51  ;;  %v10878_v60 = vpop.permute.xlu1 %3679  ;;  %v10880_v34 = vpop.permute.xlu0 %3681  ;;  %v15109_v51 = vld [vmem:[#allocation26_spill] sm:$0xff] }
 0x3f9   : > { %v2102_v26 = vmul.f32 %v1991_v25, %v15084_v43  ;;  %v15090_v25 = vld [vmem:[#allocation24_spill] sm:$0xff]  ;;  %v1997_v7 = vstv %s15075_s12  ;;  %15094 = sst [smem:[#allocation162_spill]] %s10837_s16  ;;  %s10867_s16 = spop %5759  ;;  %5831 = vpush %v15033_v18  ;;  %v15110_v49 = vrot.slane %v15109_v51, 7  ;;  %v15202_v51 = vld [vmem:[#allocation299_spill] sm:$0xff] }
 0x3fa   : > { %v15091_v19 = vrot.slane %v15090_v25, 7  ;;  %s15097_s5 = sld [smem:[#allocation196_spill]]  ;;  %v2000_v30 = vstv %s15085_s8  ;;  %s10875_s1 = spop %5761  ;;  %5833 = vpush %v15062_v58 }
 0x3fb   : > { %s15098_s13 = sld [smem:[#allocation197_spill]]  ;;  %v2003_v47 = vstv %s15092_s9  ;;  %v2150_v6 = vadd.f32 %v2102_v26, %v10441_v57  ;;  %v2105_v3 = vmul.f32 %v2000_v30, %v15110_v49  ;;  %5835 = vpush %v15063_v24  ;;  %v15117_v30 = vld [vmem:[#allocation29_spill] sm:$0xff]  ;;  %v10914_v24 = vsel %vm2182_vm3, %v2148_v13, 0.0 }
 0x3fc   : > { %v2103_v48 = vmul.f32 %v1994_v52, %v15091_v19  ;;  %v15099_v52 = vld [vmem:[#allocation270_spill] sm:$0xff]  ;;  %s15103_s12 = sld [smem:[#allocation198_spill]]  ;;  %v15106_v19 = vld [vmem:[#allocation25_spill] sm:$0xff]  ;;  %v15118_v58 = vrot.slane %v15117_v30, 7  ;;  %5837 = vpush %v15073_v46  ;;  %15122 = vst [vmem:[#allocation246_spill] sm:$0xff] %v10914_v24  ;;  %v10922_v46 = vpop.permute.xlu1 %3683  ;;  %v10924_v20 = vpop.permute.xlu0 %3685 }
 0x3fd   : > { %4079 = vrot.lane.b32.xlu1 %v15099_v52, %s14334_s18  ;;  %s15104_s8 = sld [smem:[#allocation199_spill]]  ;;  %v15107_v8 = vrot.slane %v15106_v19, 7  ;;  %v15124_v30 = vld [vmem:[#allocation31_spill] sm:$0xff]  ;;  %5839 = vpush %v15074_v15  ;;  %v2153_v13 = vadd.f32 %v2105_v3, %v10475_v27  ;;  %v15129_v24 = vld [vmem:[#allocation33_spill] sm:$0xff]  ;;  %v10940_v15 = vsel %vm2182_vm3, %v2150_v6, 0.0 }
 0x3fe   : > { %v2006_v43 = vstv %s15093_s7  ;;  %s15105_s25 = sld [smem:[#allocation200_spill]]  ;;  %v2151_v36 = vadd.f32 %v2103_v48, %v10444_v32  ;;  %v15115_v32 = vld [vmem:[#allocation274_spill] sm:$0xff]  ;;  %v15116_v48 = vld [vmem:[#allocation275_spill] sm:$0xff]  ;;  %5841 = vpush %v15099_v52  ;;  %15136 = vst [vmem:[#allocation248_spill] sm:$0xff] %v10940_v15 }
 0x3ff   : > { %s15108_s2 = sld [smem:[#allocation201_spill]]  ;;  %v2104_v42 = vmul.f32 %v1997_v7, %v15107_v8  ;;  %v15111_v7 = vld [vmem:[#allocation27_spill] sm:$0xff]  ;;  %v2107_v55 = vmul.f32 %v2006_v43, %v15114_v22  ;;  %4085 = vrot.lane.b32.xlu0 %v15116_v48, %s14334_s18  ;;  %v10910_v22 = vsel %vm2182_vm3, %v2147_v31, 0.0  ;;  %v10928_v31 = vsel %vm2182_vm3, %v2149_v17, 0.0  ;;  %5843 = vpush %v15100_v63 }
 0x400   : > { %v2009_v39 = vstv %s15097_s5  ;;  %v15112_v8 = vrot.slane %v15111_v7, 7  ;;  %v15119_v7 = vld [vmem:[#allocation30_spill] sm:$0xff]  ;;  %15121 = vst [vmem:[#allocation243_spill] sm:$0xff] %v10910_v22  ;;  %15128 = vst [vmem:[#allocation247_spill] sm:$0xff] %v10928_v31  ;;  %s15134_s7 = sld [smem:[#allocation204_spill]]  ;;  %v10954_v52 = vsel %vm2182_vm3, %v2151_v36, 0.0  ;;  %v10967_v36 = vpop.permute.xlu1 %3687  ;;  %v2072_v31 = vstv %s8749_s11 }
 0x401   : > { %v2012_v25 = vstv %s15098_s13  ;;  %s10894_s13 = spop %5763  ;;  %4083 = vrot.lane.b32.xlu1 %v15115_v32, %s14334_s18  ;;  %v2108_v49 = vmul.f32 %v2009_v39, %v15118_v58  ;;  %v2152_v43 = vadd.f32 %v2104_v42, %v10457_v53  ;;  %v15125_v39 = vrot.slane %v15124_v30, 7  ;;  %15141 = vst [vmem:[#allocation249_spill] sm:$0xff] %v10954_v52  ;;  %5845 = vpush %v15115_v32  ;;  %v15145_v32 = vld [vmem:[#allocation225_spill] sm:$0xff]  ;;  %v15215_v22 = vld [vmem:[#allocation85_spill] sm:$0xff] }
 0x402   : > { %v2015_v57 = vstv %s15103_s12  ;;  %v2106_v19 = vmul.f32 %v2003_v47, %v15112_v8  ;;  %v15120_v47 = vrot.slane %v15119_v7, 7  ;;  %s10905_s5 = spop %5765  ;;  %v15126_v7 = vld [vmem:[#allocation32_spill] sm:$0xff]  ;;  %v15130_v53 = vrot.slane %v15129_v24, 7  ;;  %s15137_s12 = sld [smem:[#allocation205_spill]]  ;;  %5847 = vpush %v15116_v48 }
 0x403   : > { %v2018_v26 = vstv %s15104_s8  ;;  %v2110_v58 = vmul.f32 %v2015_v57, %v15125_v39  ;;  %v15132_v57 = vld [vmem:[#allocation34_spill] sm:$0xff]  ;;  %s10935_s9 = spop %5767  ;;  %v2155_v27 = vadd.f32 %v2107_v55, %v10481_v10  ;;  %v2156_v6 = vadd.f32 %v2108_v49, %v10484_v62  ;;  %v15150_v48 = vld [vmem:[#allocation36_spill] sm:$0xff] }
 0x404   : > { %v2021_v18 = vstv %s15105_s25  ;;  %v2109_v8 = vmul.f32 %v2012_v25, %v15120_v47  ;;  %v15127_v25 = vrot.slane %v15126_v7, 7  ;;  %s15131_s25 = sld [smem:[#allocation203_spill]]  ;;  %v15133_v39 = vrot.slane %v15132_v57, 7  ;;  %s10946_s8 = spop %5769  ;;  %v15152_v57 = vld [vmem:[#allocation37_spill] sm:$0xff] }
 0x405   : > { %v2024_v61 = vstv %s15108_s2  ;;  %s15123_s2 = sld [smem:[#allocation202_spill]]  ;;  %v2112_v42 = vmul.f32 %v2021_v18, %v15130_v53  ;;  %v2154_v17 = vadd.f32 %v2106_v19, %v10478_v5  ;;  %v15140_v18 = vld [vmem:[#allocation280_spill] sm:$0xff]  ;;  %v2158_v63 = vadd.f32 %v2110_v58, %v10500_v33  ;;  %v10969_v53 = vpop.permute.xlu0 %3689  ;;  %v15146_v33 = vld [vmem:[#allocation35_spill] sm:$0xff] }
 0x406   : > { %v2111_v47 = vmul.f32 %v2018_v26, %v15127_v25  ;;  %v2113_v26 = vmul.f32 %v2024_v61, %v15133_v39  ;;  %15135 = sst [smem:[#allocation163_spill]] %s10935_s9  ;;  %v15139_v61 = vld [vmem:[#allocation279_spill] sm:$0xff]  ;;  %4089 = vrot.lane.b32.xlu0 %v15140_v18, %s14334_s18  ;;  %v2157_v5 = vadd.f32 %v2109_v8, %v10497_v23  ;;  %v2033_v55 = vstv %s15134_s7 }
 0x407   : > { %15138 = sst [smem:[#allocation164_spill]] %s10946_s8  ;;  %4087 = vrot.lane.b32.xlu1 %v15139_v61, %s14334_s18  ;;  %v10973_v62 = vsel %vm2182_vm3, %v2152_v43, 0.0  ;;  %v2160_v23 = vadd.f32 %v2112_v42, %v10535_v29  ;;  %v15147_v8 = vrot.slane %v15146_v33, 7  ;;  %5849 = vpush %v15139_v61  ;;  %v15153_v24 = vrot.slane %v15152_v57, 7  ;;  %v15154_v29 = vld [vmem:[#allocation284_spill] sm:$0xff]  ;;  %v15155_v42 = vld [vmem:[#allocation285_spill] sm:$0xff] }
 0x408   : > { %s15142_s9 = sld [smem:[#allocation206_spill]]  ;;  %v2159_v19 = vadd.f32 %v2111_v47, %v10532_v44  ;;  %v2036_v25 = vstv %s15137_s12  ;;  %15144 = vst [vmem:[#allocation244_spill] sm:$0xff] %v10973_v62  ;;  %v2161_v49 = vadd.f32 %v2113_v26, %v15145_v32  ;;  %v15151_v47 = vrot.slane %v15150_v48, 7  ;;  %5851 = vpush %v15140_v18  ;;  %v15158_v61 = vld [vmem:[#allocation38_spill] sm:$0xff] }
 0x409   : > { %v2116_v43 = vmul.f32 %v2033_v55, %v15153_v24  ;;  %v10994_v26 = vsel %vm2182_vm3, %v2153_v13, 0.0  ;;  %5853 = vpush %v15154_v29  ;;  %v11007_v18 = vsel %vm2182_vm3, %v2155_v27, 0.0  ;;  %v11011_v13 = vsel %vm2182_vm3, %v2157_v5, 0.0  ;;  %v15165_v55 = vld [vmem:[#allocation39_spill] sm:$0xff]  ;;  %v11023_v27 = vpop.permute.xlu1 %3691  ;;  %s15173_s8 = sld [smem:[#allocation108_spill]] }
 0x40a   : > { %v2030_v10 = vstv %s15131_s25  ;;  %s15148_s25 = sld [smem:[#allocation102_spill]]  ;;  %4093 = vrot.lane.b32.xlu0 %v15155_v42, %s14334_s18  ;;  %15156 = vst [vmem:[#allocation245_spill] sm:$0xff] %v10994_v26  ;;  %15162 = vst [vmem:[#allocation338_spill] sm:$0xff] %v11007_v18  ;;  %v15166_v32 = vrot.slane %v15165_v55, 7  ;;  %v11029_v5 = vsel %vm2182_vm3, %v2159_v19, 0.0  ;;  %v15177_v19 = vld [vmem:[#allocation309_spill] sm:$0xff]  ;;  %v2066_v26 = vstv %s8702_s15 }
 0x40b   : > { %v2027_v3 = vstv %s15123_s2  ;;  %s10965_s2 = spop %5771  ;;  %v2115_v39 = vmul.f32 %v2030_v10, %v15151_v47  ;;  %4091 = vrot.lane.b32.xlu1 %v15154_v29, %s14334_s18  ;;  %v15159_v10 = vrot.slane %v15158_v61, 7  ;;  %15163 = vst [vmem:[#allocation339_spill] sm:$0xff] %v11011_v13  ;;  %5855 = vpush %v15155_v42  ;;  %v11025_v47 = vpop.permute.xlu0 %3693  ;;  %v15172_v29 = vld [vmem:[#allocation226_spill] sm:$0xff]  ;;  %v15174_v42 = vld [vmem:[#allocation288_spill] sm:$0xff]  ;;  %v11044_v13 = vsel %vm2182_vm3, %v2160_v23, 0.0 }
 0x40c   : > { %15143 = sst [smem:[#allocation165_spill]] %s10965_s2  ;;  %v2114_v44 = vmul.f32 %v2027_v3, %v15147_v8  ;;  %s10981_s7 = spop %5773  ;;  %v10998_v3 = vsel %vm2182_vm3, %v2154_v17, 0.0  ;;  %v11015_v17 = vsel %vm2182_vm3, %v2156_v6, 0.0  ;;  %15170 = vst [vmem:[#allocation251_spill] sm:$0xff] %v11029_v5  ;;  %v11033_v6 = vsel %vm2182_vm3, %v2158_v63, 0.0  ;;  %5857 = vpush %v15174_v42  ;;  %v15178_v55 = vld [vmem:[#allocation314_spill] sm:$0xff] }
 0x40d   : > { %15149 = sst [smem:[#allocation166_spill]] %s10981_s7  ;;  %15157 = vst [vmem:[#allocation252_spill] sm:$0xff] %v10998_v3  ;;  %v2117_v24 = vmul.f32 %v2036_v25, %v15159_v10  ;;  %s11003_s12 = spop %5775  ;;  %15164 = vst [vmem:[#allocation250_spill] sm:$0xff] %v11015_v17  ;;  %v2163_v5 = vadd.f32 %v2115_v39, %v15177_v19  ;;  %v2164_v63 = vadd.f32 %v2116_v43, %v15178_v55  ;;  %v15183_v23 = vld [vmem:[#allocation315_spill] sm:$0xff]  ;;  %v15184_v39 = vld [vmem:[#allocation40_spill] sm:$0xff]  ;;  %v2069_v62 = vstv %s8731_s10 }
 0x40e   : > { %v2039_v58 = vstv %s15142_s9  ;;  %s15160_s9 = sld [smem:[#allocation104_spill]]  ;;  %15171 = vst [vmem:[#allocation253_spill] sm:$0xff] %v11033_v6  ;;  %15176 = vst [vmem:[#allocation258_spill] sm:$0xff] %v11044_v13  ;;  %v15185_v19 = vrot.slane %v15184_v39, 7  ;;  %v15186_v13 = vld [vmem:[#allocation293_spill] sm:$0xff]  ;;  %v15191_v17 = vld [vmem:[#allocation294_spill] sm:$0xff] }
 0x40f   : > { %15161 = sst [smem:[#allocation168_spill]] %s11003_s12  ;;  %v2118_v25 = vmul.f32 %v2039_v58, %v15166_v32  ;;  %s11021_s12 = spop %5777  ;;  %v2162_v58 = vadd.f32 %v2114_v44, %v15172_v29  ;;  %v11040_v32 = vsel %vm2182_vm3, %v2161_v49, 0.0  ;;  %v15181_v29 = vld [vmem:[#allocation289_spill] sm:$0xff]  ;;  %4095 = vrot.lane.b32.xlu1 %v15174_v42, %s14334_s18  ;;  %v2165_v49 = vadd.f32 %v2117_v24, %v15183_v23  ;;  %v15188_v61 = vld [vmem:[#allocation320_spill] sm:$0xff]  ;;  %v11071_v24 = vpop.permute.xlu1 %3695  ;;  %v11073_v23 = vpop.permute.xlu0 %3697  ;;  %v15194_v18 = vld [vmem:[#allocation43_spill] sm:$0xff] }
 0x410   : > { %s15167_s7 = sld [smem:[#allocation105_spill]]  ;;  %v2042_v8 = vstv %s15148_s25  ;;  %15175 = vst [vmem:[#allocation255_spill] sm:$0xff] %v11040_v32  ;;  %5859 = vpush %v15181_v29  ;;  %4097 = vrot.lane.b32.xlu0 %v15181_v29, %s14334_s18  ;;  %v2054_v55 = vstv %s15173_s8  ;;  %v2057_v32 = vstv %s8654_s3  ;;  %v15189_v42 = vld [vmem:[#allocation41_spill] sm:$0xff]  ;;  %v15195_v30 = vrot.slane %v15194_v18, 7 }
 0x411   : > { %s15168_s2 = sld [smem:[#allocation106_spill]]  ;;  %v2119_v43 = vmul.f32 %v2042_v8, %v15185_v19  ;;  %5861 = vpush %v15186_v13  ;;  %v2166_v57 = vadd.f32 %v2118_v25, %v15188_v61  ;;  %v15190_v48 = vrot.slane %v15189_v42, 7  ;;  %v15192_v8 = vld [vmem:[#allocation42_spill] sm:$0xff]  ;;  %v15196_v61 = vld [vmem:[#allocation298_spill] sm:$0xff] }
 0x412   : > { %15169 = sst [smem:[#allocation169_spill]] %s11021_s12  ;;  %5863 = vpush %v15191_v17  ;;  %v15193_v19 = vrot.slane %v15192_v8, 7  ;;  %v15200_v42 = vld [vmem:[#allocation82_spill] sm:$0xff]  ;;  %v15213_v8 = vld [vmem:[#allocation84_spill] sm:$0xff] }
 0x413   : > { %s15179_s25 = sld [smem:[#allocation109_spill]]  ;;  %5865 = vpush %v15196_v61  ;;  %v15201_v15 = vrot.slane %v15200_v42, 7  ;;  %4099 = vrot.lane.b32.xlu1 %v15186_v13, %s14334_s18  ;;  %v11108_v13 = vsel %vm2182_vm3, %v2163_v5, 0.0  ;;  %v11124_v5 = vsel %vm2182_vm3, %v2164_v63, 0.0  ;;  %v15228_v63 = vld [vmem:[#allocation312_spill] sm:$0xff] }
 0x414   : > { %v2045_v10 = vstv %s15160_s9  ;;  %s15180_s12 = sld [smem:[#allocation114_spill]]  ;;  %s11051_s9 = spop %5779  ;;  %5867 = vpush %v15202_v51  ;;  %4101 = vrot.lane.b32.xlu0 %v15191_v17, %s14334_s18  ;;  %15211 = vst [vmem:[#allocation264_spill] sm:$0xff] %v11108_v13  ;;  %v15212_v17 = vld [vmem:[#allocation227_spill] sm:$0xff]  ;;  %v15227_v13 = vld [vmem:[#allocation230_spill] sm:$0xff] }
 0x415   : > { %15182 = sst [smem:[#allocation170_spill]] %s11051_s9  ;;  %v2120_v33 = vmul.f32 %v2045_v10, %v15190_v48  ;;  %v15198_v48 = vld [vmem:[#allocation44_spill] sm:$0xff]  ;;  %v2124_v52 = vmul.f32 %v2057_v32, %v15201_v15  ;;  %v15208_v32 = vld [vmem:[#allocation83_spill] sm:$0xff]  ;;  %15219 = vst [vmem:[#allocation265_spill] sm:$0xff] %v11124_v5 }
 0x416   : > { %v2048_v6 = vstv %s15167_s7  ;;  %v15199_v25 = vrot.slane %v15198_v48, 7  ;;  %v15210_v48 = vld [vmem:[#allocation302_spill] sm:$0xff] }
 0x417   : > { %v2051_v44 = vstv %s15168_s2  ;;  %s11063_s2 = spop %5781  ;;  %v2121_v39 = vmul.f32 %v2048_v6, %v15193_v19  ;;  %v15205_v6 = vld [vmem:[#allocation321_spill] sm:$0xff]  ;;  %5869 = vpush %v15210_v48  ;;  %v2168_v18 = vadd.f32 %v2120_v33, %v15212_v17  ;;  %v15222_v17 = vld [vmem:[#allocation86_spill] sm:$0xff]  ;;  %v2172_v4 = vadd.f32 %v2124_v52, %v15227_v13  ;;  %4103 = vrot.lane.b32.xlu1 %v15196_v61, %s14334_s18 }
 0x418   : > { %15187 = sst [smem:[#allocation171_spill]] %s11063_s2  ;;  %v2122_v3 = vmul.f32 %v2051_v44, %v15195_v30  ;;  %s11082_s3 = spop %5783  ;;  %v2123_v10 = vmul.f32 %v2054_v55, %v15199_v25  ;;  %v11098_v30 = vsel %vm2182_vm3, %v2162_v58, 0.0  ;;  %v2167_v44 = vadd.f32 %v2119_v43, %v15205_v6  ;;  %v15206_v55 = vld [vmem:[#allocation45_spill] sm:$0xff]  ;;  %4105 = vrot.lane.b32.xlu0 %v15202_v51, %s14334_s18 }
 0x419   : > { %v2060_v29 = vstv %s15179_s25  ;;  %15197 = sst [smem:[#allocation174_spill]] %s11082_s3  ;;  %s11090_s8 = spop %5785  ;;  %15204 = vst [vmem:[#allocation259_spill] sm:$0xff] %v11098_v30  ;;  %v15207_v19 = vrot.slane %v15206_v55, 7  ;;  %v15209_v25 = vrot.slane %v15208_v32, 7  ;;  %v15214_v58 = vrot.slane %v15213_v8, 7  ;;  %v15217_v55 = vld [vmem:[#allocation303_spill] sm:$0xff] }
 0x41a   : > { %v2063_v7 = vstv %s15180_s12  ;;  %15203 = sst [smem:[#allocation175_spill]] %s11090_s8  ;;  %v15216_v43 = vrot.slane %v15215_v22, 7  ;;  %5871 = vpush %v15217_v55  ;;  %s11116_s15 = spop %5787  ;;  %v15224_v22 = vld [vmem:[#allocation311_spill] sm:$0xff]  ;;  %v2078_v13 = vstv %s8798_s21  ;;  %v11157_v51 = vsel %vm2182_vm3, %v2167_v44, 0.0 }
 0x41b   : > { %v2125_v15 = vmul.f32 %v2060_v29, %v15207_v19  ;;  %v2126_v42 = vmul.f32 %v2063_v7, %v15209_v25  ;;  %v2127_v30 = vmul.f32 %v2066_v26, %v15214_v58  ;;  %15218 = sst [smem:[#allocation176_spill]] %s11116_s15  ;;  %v11118_v29 = vpop.permute.xlu1 %3699  ;;  %v11120_v7 = vpop.permute.xlu0 %3701  ;;  %v15220_v19 = vld [vmem:[#allocation228_spill] sm:$0xff]  ;;  %v15221_v25 = vld [vmem:[#allocation229_spill] sm:$0xff]  ;;  %v15223_v58 = vrot.slane %v15222_v17, 7  ;;  %5873 = vpush %v15224_v22  ;;  %s11132_s10 = spop %5789  ;;  %v15226_v8 = vld [vmem:[#allocation322_spill] sm:$0xff]  ;;  %4107 = vrot.lane.b32.xlu1 %v15210_v48, %s14334_s18 }
 0x41c   : > { %v2128_v6 = vmul.f32 %v2069_v62, %v15216_v43  ;;  %v2169_v33 = vadd.f32 %v2121_v39, %v15220_v19  ;;  %v2170_v26 = vadd.f32 %v2122_v3, %v15221_v25  ;;  %v2075_v43 = vstv %s8779_s17  ;;  %15225 = sst [smem:[#allocation172_spill]] %s11132_s10  ;;  %5875 = vpush %v15228_v63  ;;  %v15231_v39 = vld [vmem:[#allocation324_spill] sm:$0xff]  ;;  %v15233_v19 = vld [vmem:[#allocation318_spill] sm:$0xff]  ;;  %s11153_s11 = spop %5791  ;;  %15235 = vst [vmem:[#allocation274_spill] sm:$0xff] %v11157_v51 }
 0x41d   : > { %v2129_v62 = vmul.f32 %v2072_v31, %v15223_v58  ;;  %v2171_v32 = vadd.f32 %v2123_v10, %v15226_v8  ;;  %v11143_v31 = vsel %vm2182_vm3, %v2165_v49, 0.0  ;;  %v11147_v3 = vsel %vm2182_vm3, %v2166_v57, 0.0  ;;  %v15232_v10 = vld [vmem:[#allocation326_spill] sm:$0xff]  ;;  %5877 = vpush %v15233_v19  ;;  %15234 = sst [smem:[#allocation173_spill]] %s11153_s11  ;;  %v15236_v49 = vld [vmem:[#allocation231_spill] sm:$0xff]  ;;  %v15237_v25 = vld [vmem:[#allocation232_spill] sm:$0xff]  ;;  %s11165_s17 = spop %5793  ;;  %4109 = vrot.lane.b32.xlu0 %v15217_v55, %s14334_s18 }
 0x41e   : > { %15229 = vst [vmem:[#allocation270_spill] sm:$0xff] %v11143_v31  ;;  %15230 = vst [vmem:[#allocation271_spill] sm:$0xff] %v11147_v3  ;;  %v2173_v8 = vadd.f32 %v2125_v15, %v15231_v39  ;;  %v2174_v52 = vadd.f32 %v2126_v42, %v15232_v10  ;;  %v2175_v61 = vadd.f32 %v2127_v30, %v15236_v49  ;;  %v15238_v57 = vld [vmem:[#allocation87_spill] sm:$0xff]  ;;  %v2084_v15 = vstv %s8843_s23  ;;  %v15240_v39 = vld [vmem:[#allocation319_spill] sm:$0xff]  ;;  %15241 = sst [smem:[#allocation177_spill]] %s11165_s17  ;;  %s11189_s21 = spop %5795 }
 0x41f   : > { %v2176_v58 = vadd.f32 %v2128_v6, %v15237_v25  ;;  %v15239_v17 = vrot.slane %v15238_v57, 7  ;;  %5879 = vpush %v15240_v39  ;;  %v11167_v42 = vpop.permute.xlu1 %3703  ;;  %v11169_v10 = vpop.permute.xlu0 %3705  ;;  %v15242_v31 = vld [vmem:[#allocation233_spill] sm:$0xff]  ;;  %v15243_v51 = vld [vmem:[#allocation327_spill] sm:$0xff]  ;;  %v11175_v30 = vsel %vm2182_vm3, %v2169_v33, 0.0  ;;  %v11179_v6 = vsel %vm2182_vm3, %v2168_v18, 0.0  ;;  %15250 = sst [smem:[#allocation178_spill]] %s11189_s21  ;;  %s11207_s7 = spop %5797  ;;  %4111 = vrot.lane.b32.xlu1 %v15224_v22, %s14334_s18 }
 0x420   : > { %v2177_v44 = vadd.f32 %v2129_v62, %v15242_v31  ;;  %5881 = vpush %v15243_v51  ;;  %15244 = vst [vmem:[#allocation275_spill] sm:$0xff] %v11175_v30  ;;  %v2081_v57 = vstv %s8824_s22  ;;  %v15249_v62 = vld [vmem:[#allocation328_spill] sm:$0xff]  ;;  %v11197_v18 = vsel %vm2182_vm3, %v2171_v32, 0.0  ;;  %s15252_s23 = sld [smem:[#allocation115_spill]]  ;;  %v11201_v33 = vsel %vm2182_vm3, %v2172_v4, 0.0  ;;  %v15261_v32 = vld [vmem:[#allocation234_spill] sm:$0xff] }
 0x421   : > { %v2130_v3 = vmul.f32 %v2075_v43, %v15239_v17  ;;  %15245 = vst [vmem:[#allocation279_spill] sm:$0xff] %v11179_v6  ;;  %v11183_v17 = vsel %vm2182_vm3, %v2170_v26, 0.0  ;;  %v15247_v43 = vld [vmem:[#allocation88_spill] sm:$0xff]  ;;  %5883 = vpush %v15249_v62  ;;  %v15254_v26 = vld [vmem:[#allocation90_spill] sm:$0xff]  ;;  %s15256_s22 = sld [smem:[#allocation119_spill]]  ;;  %v11211_v48 = vsel %vm2182_vm3, %v2173_v8, 0.0  ;;  %4113 = vrot.lane.b32.xlu0 %v15228_v63, %s14334_s18  ;;  %v2354_v63 = vstv %s8982_s29 }
 0x422   : > { %15246 = vst [vmem:[#allocation280_spill] sm:$0xff] %v11183_v17  ;;  %v15248_v49 = vrot.slane %v15247_v43, 7  ;;  %15251 = vst [vmem:[#allocation225_spill] sm:$0xff] %v11197_v18  ;;  %v15255_v31 = vrot.slane %v15254_v26, 7  ;;  %v15257_v43 = vld [vmem:[#allocation336_spill] sm:$0xff]  ;;  %15258 = sst [smem:[#allocation179_spill]] %s11207_s7  ;;  %v2333_v26 = vstv %s8873_s26  ;;  %s11241_s7 = spop %5799 }
 0x423   : > { %15253 = vst [vmem:[#allocation284_spill] sm:$0xff] %v11201_v33  ;;  %5885 = vpush %v15257_v43  ;;  %v11215_v55 = vsel %vm2182_vm3, %v2174_v52, 0.0  ;;  %s15262_s12 = sld [smem:[#allocation120_spill]]  ;;  %v11218_v4 = vadd.f32 %v2130_v3, %v15261_v32  ;;  %v11224_v33 = vpop.permute.xlu0 %3709  ;;  %v11228_v8 = vsel %vm2182_vm3, %v2175_v61, 0.0  ;;  %v11232_v52 = vsel %vm2182_vm3, %v2176_v58, 0.0  ;;  %v15273_v18 = vld [vmem:[#allocation340_spill] sm:$0xff]  ;;  %4115 = vrot.lane.b32.xlu1 %v15233_v19, %s14334_s18 }
 0x424   : > { %v2131_v25 = vmul.f32 %v2078_v13, %v15248_v49  ;;  %v2133_v13 = vmul.f32 %v2084_v15, %v15255_v31  ;;  %v2330_v49 = vstv %s8856_s24  ;;  %15259 = vst [vmem:[#allocation285_spill] sm:$0xff] %v11211_v48  ;;  %15260 = vst [vmem:[#allocation226_spill] sm:$0xff] %v11215_v55  ;;  %s15264_s25 = sld [smem:[#allocation121_spill]]  ;;  %v15265_v15 = vld [vmem:[#allocation337_spill] sm:$0xff]  ;;  %v11222_v31 = vpop.permute.xlu1 %3707  ;;  %v11245_v61 = vsel %vm2182_vm3, %v2177_v44, 0.0  ;;  %v15286_v17 = vld [vmem:[#allocation209_spill] sm:$0xff] }
 0x425   : > { %15263 = vst [vmem:[#allocation288_spill] sm:$0xff] %v11218_v4  ;;  %5887 = vpush %v15265_v15  ;;  %v15268_v55 = vld [vmem:[#allocation89_spill] sm:$0xff]  ;;  %s15271_s24 = sld [smem:[#allocation122_spill]]  ;;  %v15287_v30 = vld [vmem:[#allocation210_spill] sm:$0xff]  ;;  %4117 = vrot.lane.b32.xlu0 %v15240_v39, %s14334_s18 }
 0x426   : > { %15266 = vst [vmem:[#allocation309_spill] sm:$0xff] %v11228_v8  ;;  %15267 = vst [vmem:[#allocation314_spill] sm:$0xff] %v11232_v52  ;;  %v15269_v48 = vrot.slane %v15268_v55, 7  ;;  %v2336_v32 = vstv %s15252_s23  ;;  %s15272_s26 = sld [smem:[#allocation123_spill]]  ;;  %v15276_v8 = vld [vmem:[#allocation235_spill] sm:$0xff]  ;;  %s11254_s23 = spop %5801  ;;  %v11261_v44 = vadd.f32 %v2133_v13, %v10732_v54  ;;  %v15289_v54 = vld [vmem:[#allocation217_spill] sm:$0xff] }
 0x427   : > { %v2339_v4 = vstv %s15256_s22  ;;  %5889 = vpush %v15273_v18  ;;  %15274 = sst [smem:[#allocation180_spill]] %s11241_s7  ;;  %15275 = vst [vmem:[#allocation315_spill] sm:$0xff] %v11245_v61  ;;  %v2179_v58 = vadd.f32 %v2131_v25, %v15276_v8  ;;  %v15277_v52 = vld [vmem:[#allocation207_spill] sm:$0xff]  ;;  %v15283_v25 = vld [vmem:[#allocation208_spill] sm:$0xff]  ;;  %v11270_v6 = vmul.f32 %v2336_v32, %v15286_v17  ;;  %v11282_v13 = vpop.permute.xlu0 %3713  ;;  %4119 = vrot.lane.b32.xlu1 %v15243_v51, %s14334_s18 }
 0x428   : > { %v11236_v3 = vmul.f32 %v2081_v57, %v15269_v48  ;;  %s15278_s21 = sld [smem:[#allocation124_spill]]  ;;  %v11249_v55 = vmul.f32 %v2330_v49, %v15277_v52  ;;  %15282 = vst [vmem:[#allocation293_spill] sm:$0xff] %v11261_v44  ;;  %v11264_v49 = vmul.f32 %v2333_v26, %v15283_v25  ;;  %v15285_v52 = vld [vmem:[#allocation216_spill] sm:$0xff]  ;;  %v11273_v22 = vmul.f32 %v2339_v4, %v15287_v30  ;;  %v11280_v26 = vpop.permute.xlu1 %3711  ;;  %v15291_v44 = vld [vmem:[#allocation211_spill] sm:$0xff] }
 0x429   : > { %v2342_v57 = vstv %s15262_s12  ;;  %15280 = sst [smem:[#allocation181_spill]] %s11254_s23  ;;  %v15292_v32 = vld [vmem:[#allocation212_spill] sm:$0xff]  ;;  %4121 = vrot.lane.b32.xlu0 %v15249_v62, %s14334_s18  ;;  %v15340_v51 = vld [vmem:[#allocation52_spill] sm:$0xff] }
 0x42a   : > { %15270 = vst [vmem:[#allocation289_spill] sm:$0xff] %v11236_v3  ;;  %v2345_v48 = vstv %s15264_s25  ;;  %v15279_v3 = vld [vmem:[#allocation341_spill] sm:$0xff]  ;;  %s15281_s22 = sld [smem:[#allocation91_spill]]  ;;  %s11278_s25 = spop %5803  ;;  %v11285_v25 = vmul.f32 %v2342_v57, %v15291_v44  ;;  %v2369_v44 = vstv %s9063_s20 }
 0x42b   : > { %5891 = vpush %v15279_v3  ;;  %s15284_s7 = sld [smem:[#allocation92_spill]]  ;;  %v2348_v8 = vstv %s15271_s24  ;;  %v11288_v17 = vmul.f32 %v2345_v48, %v15292_v32  ;;  %s11293_s29 = spop %5805  ;;  %v15300_v48 = vld [vmem:[#allocation215_spill] sm:$0xff]  ;;  %4123 = vrot.lane.b32.xlu1 %v15257_v43, %s14334_s18 }
 0x42c   : > { %v2351_v61 = vstv %s15272_s26  ;;  %5893 = vpush %v15285_v52  ;;  %s15288_s12 = sld [smem:[#allocation93_spill]]  ;;  %v11296_v0 = vmul.f32 %v2348_v8, %v15295_v16  ;;  %v11309_v32 = vmul.f32 %v2354_v63, %v15300_v48  ;;  %v15305_v16 = vld [vmem:[#allocation48_spill] sm:$0xff]  ;;  %s11317_s20 = spop %5807 }
 0x42d   : > { %5895 = vpush %v15289_v54  ;;  %15290 = sst [smem:[#allocation182_spill]] %s11278_s25  ;;  %v11299_v37 = vmul.f32 %v2351_v61, %v15297_v28  ;;  %v2372_v61 = vstv %s9078_s28  ;;  %v2375_v28 = vstv %s9098_s30  ;;  %4125 = vrot.lane.b32.xlu0 %v15265_v15, %s14334_s18  ;;  %v15360_v15 = vld [vmem:[#allocation60_spill] sm:$0xff] }
 0x42e   : > { %v2357_v5 = vstv %s15278_s21  ;;  %5897 = vpush %v15293_v2  ;;  %15294 = sst [smem:[#allocation183_spill]] %s11293_s29  ;;  %v11344_v40 = vmul.f32 %v2372_v61, %v15322_v35  ;;  %v15335_v61 = vld [vmem:[#allocation51_spill] sm:$0xff] }
 0x42f   : > { %s15296_s21 = sld [smem:[#allocation94_spill]]  ;;  %5899 = vpush %v15299_v14  ;;  %v11312_v8 = vmul.f32 %v2357_v5, %v15301_v12  ;;  %v11330_v5 = vpop.permute.xlu1 %3715  ;;  %v11332_v12 = vpop.permute.xlu0 %3717  ;;  %4127 = vrot.lane.b32.xlu1 %v15273_v18, %s14334_s18 }
 0x430   : > { %v2360_v4 = vstv %s15281_s22  ;;  %s15298_s24 = sld [smem:[#allocation95_spill]]  ;;  %5901 = vpush %v15305_v16  ;;  %15314 = vst [vmem:[#allocation299_spill] sm:$0xff] %v11332_v12  ;;  %v15328_v12 = vld [vmem:[#allocation342_spill] sm:$0xff] }
 0x431   : > { %v2363_v30 = vstv %s15284_s7  ;;  %s15302_s7 = sld [smem:[#allocation96_spill]]  ;;  %15303 = vst [vmem:[#allocation320_spill] sm:$0xff] %v11312_v8  ;;  %v11320_v19 = vmul.f32 %v2360_v4, %v15307_v38  ;;  %5903 = vpush %v15312_v1  ;;  %v11338_v4 = vmul.f32 %v2369_v44, %v15318_v50  ;;  %v15321_v38 = vld [vmem:[#allocation224_spill] sm:$0xff]  ;;  %v11359_v44 = vsel %vm2182_vm3, %v2179_v58, 0.0  ;;  %4129 = vrot.lane.b32.xlu0 %v15279_v3, %s14334_s18 }
 0x432   : > { %v2366_v57 = vstv %s15288_s12  ;;  %s15304_s26 = sld [smem:[#allocation97_spill]]  ;;  %v11323_v39 = vmul.f32 %v2363_v30, %v15310_v56  ;;  %s11328_s12 = spop %5809  ;;  %5905 = vpush %v15321_v38  ;;  %15323 = vst [vmem:[#allocation227_spill] sm:$0xff] %v11344_v40  ;;  %v15342_v58 = vld [vmem:[#allocation53_spill] sm:$0xff] }
 0x433   : > { %15306 = sst [smem:[#allocation184_spill]] %s11317_s20  ;;  %15309 = vst [vmem:[#allocation294_spill] sm:$0xff] %v11320_v19  ;;  %v11335_v11 = vmul.f32 %v2366_v57, %v15315_v41  ;;  %15320 = vst [vmem:[#allocation302_spill] sm:$0xff] %v11338_v4  ;;  %v15332_v57 = vld [vmem:[#allocation50_spill] sm:$0xff]  ;;  %v15338_v41 = vld [vmem:[#allocation304_spill] sm:$0xff]  ;;  %v2414_v4 = vstv %s9311_s27  ;;  %4131 = vrot.lane.b32.xlu1 %v15285_v52, %s14334_s18 }
 0x434   : > { %s15308_s22 = sld [smem:[#allocation98_spill]]  ;;  %15311 = vst [vmem:[#allocation298_spill] sm:$0xff] %v11323_v39  ;;  %v15324_v39 = vld [vmem:[#allocation49_spill] sm:$0xff]  ;;  %5907 = vpush %v15328_v12  ;;  %v15411_v52 = vld [vmem:[#allocation76_spill] sm:$0xff] }
 0x435   : > { %v2378_v63 = vstv %s15296_s21  ;;  %15313 = sst [smem:[#allocation185_spill]] %s11328_s12  ;;  %15317 = vst [vmem:[#allocation321_spill] sm:$0xff] %v11335_v11  ;;  %v11347_v19 = vmul.f32 %v2375_v28, %v15324_v39  ;;  %s11351_s12 = spop %5811  ;;  %15331 = vst [vmem:[#allocation228_spill] sm:$0xff] %v11359_v44  ;;  %v2417_v11 = vstv %s9326_s14  ;;  %4133 = vrot.lane.b32.xlu0 %v15289_v54, %s14334_s18  ;;  %v15414_v54 = vld [vmem:[#allocation77_spill] sm:$0xff] }
 0x436   : > { %v2381_v48 = vstv %s15298_s24  ;;  %s15316_s28 = sld [smem:[#allocation99_spill]]  ;;  %v11362_v28 = vmul.f32 %v2378_v63, %v15332_v57  ;;  %5909 = vpush %v15338_v41  ;;  %v15344_v57 = vld [vmem:[#allocation343_spill] sm:$0xff] }
 0x437   : > { %s15319_s30 = sld [smem:[#allocation100_spill]]  ;;  %v2384_v30 = vstv %s15302_s7  ;;  %15326 = vst [vmem:[#allocation303_spill] sm:$0xff] %v11347_v19  ;;  %v11365_v39 = vmul.f32 %v2381_v48, %v15335_v61  ;;  %5911 = vpush %v15344_v57  ;;  %v11381_v48 = vpop.permute.xlu1 %3719  ;;  %v11383_v61 = vpop.permute.xlu0 %3721  ;;  %4135 = vrot.lane.b32.xlu1 %v15293_v2, %s14334_s18  ;;  %v15431_v2 = vld [vmem:[#allocation7_spill] sm:$0xff] }
 0x438   : > { %v2387_v56 = vstv %s15304_s26  ;;  %s15325_s21 = sld [smem:[#allocation101_spill]]  ;;  %15334 = vst [vmem:[#allocation229_spill] sm:$0xff] %v11362_v28  ;;  %v11373_v62 = vmul.f32 %v2384_v30, %v15340_v51 }
 0x439   : > { %s15327_s24 = sld [smem:[#allocation103_spill]]  ;;  %15337 = vst [vmem:[#allocation311_spill] sm:$0xff] %v11365_v39  ;;  %v11376_v44 = vmul.f32 %v2387_v56, %v15342_v58  ;;  %v15345_v39 = vld [vmem:[#allocation54_spill] sm:$0xff]  ;;  %v15349_v56 = vld [vmem:[#allocation55_spill] sm:$0xff]  ;;  %4137 = vrot.lane.b32.xlu0 %v15299_v14, %s14334_s18 }
 0x43a   : > { %v2390_v8 = vstv %s15308_s22  ;;  %15329 = sst [smem:[#allocation186_spill]] %s11351_s12  ;;  %s11370_s12 = spop %5813  ;;  %15341 = vst [vmem:[#allocation322_spill] sm:$0xff] %v11373_v62  ;;  %v15347_v62 = vld [vmem:[#allocation305_spill] sm:$0xff] }
 0x43b   : > { %s15330_s7 = sld [smem:[#allocation107_spill]]  ;;  %15343 = vst [vmem:[#allocation230_spill] sm:$0xff] %v11376_v44  ;;  %v11386_v28 = vmul.f32 %v2390_v8, %v15345_v39  ;;  %5913 = vpush %v15347_v62  ;;  %v15350_v44 = vld [vmem:[#allocation56_spill] sm:$0xff]  ;;  %v15353_v8 = vld [vmem:[#allocation57_spill] sm:$0xff]  ;;  %4139 = vrot.lane.b32.xlu1 %v15305_v16, %s14334_s18 }
 0x43c   : > { %s15333_s26 = sld [smem:[#allocation110_spill]]  ;;  %v2393_v35 = vstv %s15316_s28  ;;  %5915 = vpush %v10777_v59  ;;  %v15359_v59 = vld [vmem:[#allocation59_spill] sm:$0xff] }
 0x43d   : > { %s15336_s22 = sld [smem:[#allocation111_spill]]  ;;  %v2396_v50 = vstv %s15319_s30  ;;  %s11392_s30 = spop %5815  ;;  %v11395_v58 = vmul.f32 %v2393_v35, %v15349_v56  ;;  %v15354_v35 = vld [vmem:[#allocation58_spill] sm:$0xff]  ;;  %v2423_v56 = vstv %s9352_s19  ;;  %5917 = vpush %v10818_v45  ;;  %v11435_v45 = vpop.permute.xlu0 %3725  ;;  %4141 = vrot.lane.b32.xlu0 %v15312_v1, %s14334_s18 }
 0x43e   : > { %15339 = sst [smem:[#allocation187_spill]] %s11370_s12  ;;  %v2399_v63 = vstv %s15325_s21  ;;  %v11398_v40 = vmul.f32 %v2396_v50, %v15350_v44  ;;  %s11407_s21 = spop %5817  ;;  %5919 = vpush %v10820_v21  ;;  %v15373_v21 = vld [vmem:[#allocation64_spill] sm:$0xff] }
 0x43f   : > { %v2402_v9 = vstv %s15327_s24  ;;  %s15346_s28 = sld [smem:[#allocation112_spill]]  ;;  %v11410_v39 = vmul.f32 %v2399_v63, %v15353_v8  ;;  %s11418_s27 = spop %5819  ;;  %v15363_v63 = vld [vmem:[#allocation61_spill] sm:$0xff]  ;;  %5921 = vpush %v10878_v60  ;;  %4143 = vrot.lane.b32.xlu1 %v15321_v38, %s14334_s18 }
 0x440   : > { %15348 = sst [smem:[#allocation188_spill]] %s11392_s30  ;;  %15351 = vst [vmem:[#allocation312_spill] sm:$0xff] %v11398_v40  ;;  %v11413_v50 = vmul.f32 %v2402_v9, %v15354_v35  ;;  %v2426_v9 = vstv %s9376_s6  ;;  %v11433_v35 = vpop.permute.xlu1 %3723  ;;  %5923 = vpush %v10880_v34  ;;  %v15385_v34 = vld [vmem:[#allocation67_spill] sm:$0xff] }
 0x441   : > { %v2405_v19 = vstv %s15330_s7  ;;  %15352 = sst [smem:[#allocation189_spill]] %s11407_s21  ;;  %5925 = vpush %v10922_v46  ;;  %4145 = vrot.lane.b32.xlu0 %v15328_v12, %s14334_s18 }
 0x442   : > { %v2408_v30 = vstv %s15333_s26  ;;  %s15355_s24 = sld [smem:[#allocation113_spill]]  ;;  %15356 = vst [vmem:[#allocation324_spill] sm:$0xff] %v11413_v50  ;;  %v11421_v43 = vmul.f32 %v2405_v19, %v15359_v59  ;;  %v15367_v50 = vld [vmem:[#allocation62_spill] sm:$0xff]  ;;  %v15369_v59 = vld [vmem:[#allocation63_spill] sm:$0xff]  ;;  %5927 = vpush %v10924_v20 }
 0x443   : > { %v2411_v51 = vstv %s15336_s22  ;;  %s15357_s7 = sld [smem:[#allocation116_spill]]  ;;  %v11424_v40 = vmul.f32 %v2408_v30, %v15360_v15  ;;  %s11431_s22 = spop %5821  ;;  %v11438_v19 = vmul.f32 %v2414_v4, %v15367_v50  ;;  %v11441_v30 = vmul.f32 %v2417_v11, %v15369_v59  ;;  %v15380_v11 = vld [vmem:[#allocation66_spill] sm:$0xff]  ;;  %v15387_v59 = vld [vmem:[#allocation68_spill] sm:$0xff]  ;;  %5929 = vpush %v10967_v36  ;;  %v15395_v20 = vld [vmem:[#allocation71_spill] sm:$0xff]  ;;  %4147 = vrot.lane.b32.xlu1 %v15338_v41, %s14334_s18 }
 0x444   : > { %15358 = sst [smem:[#allocation190_spill]] %s11418_s27  ;;  %v11427_v8 = vmul.f32 %v2411_v51, %v15363_v63  ;;  %s11446_s6 = spop %5823  ;;  %v11464_v60 = vmul.f32 %v2426_v9, %v15380_v11  ;;  %v11483_v9 = vpop.permute.xlu1 %3727  ;;  %v11485_v11 = vpop.permute.xlu0 %3729  ;;  %5931 = vpush %v10969_v53  ;;  %v15403_v36 = vld [vmem:[#allocation74_spill] sm:$0xff] }
 0x445   : > { %v2420_v44 = vstv %s15346_s28  ;;  %s15361_s14 = sld [smem:[#allocation117_spill]]  ;;  %15362 = vst [vmem:[#allocation326_spill] sm:$0xff] %v11424_v40  ;;  %s11457_s20 = spop %5825  ;;  %5933 = vpush %v11023_v27  ;;  %4149 = vrot.lane.b32.xlu0 %v15344_v57, %s14334_s18  ;;  %v15481_v57 = vld [vmem:[#allocation321_spill] sm:$0xff] }
 0x446   : > { %s15364_s26 = sld [smem:[#allocation118_spill]]  ;;  %15365 = vst [vmem:[#allocation318_spill] sm:$0xff] %v11427_v8  ;;  %v11449_v15 = vmul.f32 %v2420_v44, %v15373_v21  ;;  %v15375_v8 = vld [vmem:[#allocation65_spill] sm:$0xff]  ;;  %15381 = vst [vmem:[#allocation319_spill] sm:$0xff] %v11464_v60 }
 0x447   : > { %15366 = sst [smem:[#allocation191_spill]] %s11431_s22  ;;  %v11452_v40 = vmul.f32 %v2423_v56, %v15375_v8  ;;  %v15390_v60 = vld [vmem:[#allocation69_spill] sm:$0xff]  ;;  %5935 = vpush %v11025_v47  ;;  %4151 = vrot.lane.b32.xlu1 %v15347_v62, %s14334_s18 }
 0x448   : > { %s15368_s19 = sld [smem:[#allocation254_spill]]  ;;  %v2429_v51 = vstv %s15355_s24  ;;  %15374 = vst [vmem:[#allocation231_spill] sm:$0xff] %v11449_v15  ;;  %v15392_v15 = vld [vmem:[#allocation70_spill] sm:$0xff]  ;;  %v11538_v27 = vpop.permute.xlu0 %3733  ;;  %5937 = vpush %v11071_v24 }
 0x449   : > { %s15370_s28 = sld [smem:[#allocation256_spill]]  ;;  %v2432_v63 = vstv %s15357_s7  ;;  %15377 = vst [vmem:[#allocation232_spill] sm:$0xff] %v11452_v40  ;;  %v11473_v21 = vmul.f32 %v2429_v51, %v15385_v34  ;;  %5939 = vpush %v11073_v23 }
 0x44a   : > { %s15371_s21 = sld [smem:[#allocation257_spill]]  ;;  %v11476_v18 = vmul.f32 %v2432_v63, %v15387_v59  ;;  %5941 = vpush %v11118_v29 }
 0x44b   : > { %15372 = sst [smem:[#allocation192_spill]] %s11446_s6  ;;  %v2435_v4 = vstv %s15361_s14  ;;  %s11470_s14 = spop %5827  ;;  %15386 = vst [vmem:[#allocation233_spill] sm:$0xff] %v11473_v21  ;;  %5943 = vpush %v11120_v7 }
 0x44c   : > { %s15376_s30 = sld [smem:[#allocation260_spill]]  ;;  %v2438_v50 = vstv %s15364_s26  ;;  %15388 = vst [vmem:[#allocation327_spill] sm:$0xff] %v11476_v18  ;;  %s11481_s26 = spop %5829  ;;  %v11488_v46 = vmul.f32 %v2435_v4, %v15390_v60  ;;  %v15397_v18 = vld [vmem:[#allocation72_spill] sm:$0xff]  ;;  %v15399_v4 = vld [vmem:[#allocation73_spill] sm:$0xff]  ;;  %5945 = vpush %v11167_v42 }
 0x44d   : > { %s15378_s12 = sld [smem:[#allocation261_spill]]  ;;  %v11491_v51 = vmul.f32 %v2438_v50, %v15392_v15  ;;  %5947 = vpush %v11169_v10 }
 0x44e   : > { %15379 = sst [smem:[#allocation193_spill]] %s11457_s20  ;;  %v2441_v44 = vstv %s15368_s19  ;;  %5949 = vpush %v11222_v31 }
 0x44f   : > { %s15382_s24 = sld [smem:[#allocation262_spill]]  ;;  %v2444_v56 = vstv %s15370_s28  ;;  %v11499_v59 = vmul.f32 %v2441_v44, %v15395_v20  ;;  %v15406_v44 = vld [vmem:[#allocation75_spill] sm:$0xff]  ;;  %5951 = vpush %v11224_v33 }
 0x450   : > { %s15383_s7 = sld [smem:[#allocation263_spill]]  ;;  %v2447_v8 = vstv %s15371_s21  ;;  %v11502_v21 = vmul.f32 %v2444_v56, %v15397_v18  ;;  %5953 = vpush %v11280_v26 }
 0x451   : > { %15384 = sst [smem:[#allocation194_spill]] %s11470_s14  ;;  %v11505_v60 = vmul.f32 %v2447_v8, %v15399_v4  ;;  %5955 = vpush %v11282_v13 }
 0x452   : > { %v2450_v40 = vstv %s15376_s30  ;;  %15389 = sst [smem:[#allocation195_spill]] %s11481_s26  ;;  %5957 = vpush %v11330_v5 }
 0x453   : > { %v2453_v3 = vstv %s15378_s12  ;;  %s15391_s21 = sld [smem:[#allocation266_spill]]  ;;  %s11496_s12 = spop %5831  ;;  %15400 = vst [vmem:[#allocation328_spill] sm:$0xff] %v11505_v60  ;;  %v11515_v50 = vmul.f32 %v2450_v40, %v15403_v36 }
 0x454   : > { %s15393_s19 = sld [smem:[#allocation272_spill]]  ;;  %s11508_s29 = spop %5833  ;;  %v11518_v56 = vmul.f32 %v2453_v3, %v15406_v44  ;;  %v11536_v3 = vpop.permute.xlu1 %3731 }
 0x455   : > { %v2456_v63 = vstv %s15382_s24  ;;  %15394 = sst [smem:[#allocation196_spill]] %s11496_s12  ;;  %15405 = vst [vmem:[#allocation336_spill] sm:$0xff] %v11515_v50 }
 0x456   : > { %v2459_v34 = vstv %s15383_s7  ;;  %s15396_s30 = sld [smem:[#allocation273_spill]]  ;;  %15408 = vst [vmem:[#allocation234_spill] sm:$0xff] %v11518_v56  ;;  %v11526_v4 = vmul.f32 %v2456_v63, %v15411_v52 }
 0x457   : > { %s15398_s28 = sld [smem:[#allocation276_spill]]  ;;  %v11529_v18 = vmul.f32 %v2459_v34, %v15414_v54  ;;  %v15422_v34 = vld [vmem:[#allocation78_spill] sm:$0xff] }
 0x458   : > { %15401 = sst [smem:[#allocation197_spill]] %s11508_s29  ;;  %s11523_s29 = spop %5835  ;;  %15413 = vst [vmem:[#allocation337_spill] sm:$0xff] %v11526_v4  ;;  %v11591_v29 = vpop.permute.xlu1 %3735 }
 0x459   : > { %s15402_s24 = sld [smem:[#allocation267_spill]]  ;;  %v2462_v8 = vstv %s15391_s21  ;;  %15416 = vst [vmem:[#allocation340_spill] sm:$0xff] %v11529_v18  ;;  %s11534_s23 = spop %5837 }
 0x45a   : > { %s15404_s7 = sld [smem:[#allocation268_spill]]  ;;  %v2666_v53 = vstv %s15393_s19  ;;  %v11548_v47 = vmul.f32 %v2462_v8, %v15422_v34 }
 0x45b   : > { %s15407_s25 = sld [smem:[#allocation277_spill]] }
 0x45c   : > { %s15409_s12 = sld [smem:[#allocation278_spill]]  ;;  %v2669_v40 = vstv %s15396_s30  ;;  %s11545_s30 = spop %5839  ;;  %15423 = vst [vmem:[#allocation235_spill] sm:$0xff] %v11548_v47 }
 0x45d   : > { %15410 = sst [smem:[#allocation198_spill]] %s11523_s29  ;;  %v2672_v36 = vstv %s15398_s28 }
 0x45e   : > { %s15412_s26 = sld [smem:[#allocation269_spill]] }
 0x45f   : > { %s15415_s14 = sld [smem:[#allocation6_spill]]  ;;  %v2465_v44 = vstv %s15402_s24 }
 0x460   : > { %s15417_s20 = sld [smem:[#allocation281_spill]]  ;;  %v2468_v20 = vstv %s15404_s7  ;;  %v11577_v47 = vmul.f32 %v2465_v44, %v15431_v2  ;;  %v11593_v44 = vpop.permute.xlu0 %3737  ;;  %v15438_v2 = vld [vmem:[#allocation79_spill] sm:$0xff] }
 0x461   : > { %15418 = sst [smem:[#allocation199_spill]] %s11534_s23  ;;  %v2675_v63 = vstv %s15407_s25  ;;  %s11557_s25 = spop %5841 }
 0x462   : > { %v2678_v52 = vstv %s15409_s12  ;;  %s15419_s21 = sld [smem:[#allocation282_spill]]  ;;  %15432 = vst [vmem:[#allocation221_spill] sm:$0xff] %v11577_v47  ;;  %v11596_v47 = vmul.f32 %v2468_v20, %v15438_v2 }
 0x463   : > { %s15420_s19 = sld [smem:[#allocation283_spill]] }
 0x464   : > { %15421 = sst [smem:[#allocation200_spill]] %s11545_s30  ;;  %v2471_v54 = vstv %s15412_s26  ;;  %s11574_s26 = spop %5843  ;;  %15439 = vst [vmem:[#allocation223_spill] sm:$0xff] %v11596_v47  ;;  %v11658_v31 = vpop.permute.xlu0 %3741 }
 0x465   : > { %v11552_v15 = vld [vmem:[%s15415_s14] sm:$0xff]  ;;  %15425 = sst [smem:[#allocation201_spill]] %s11557_s25  ;;  %v11564_v24 = vld [vmem:[%s15415_s14 + $0x8] sm:$0xff]  ;;  %v11568_v34 = vld [vmem:[%s15415_s14 + $0x10] sm:$0xff]  ;;  %s11589_s7 = spop %5845 }
 0x466   : > { %15424 = vst [vmem:[#allocation341_spill] sm:$0xff] %v11552_v15  ;;  %v2809_v18 = vmul.f32 %v11552_v15, %v2666_v53  ;;  %v2681_v4 = vstv %s15417_s20  ;;  %s15426_s12 = sld [smem:[#allocation286_spill]]  ;;  %15427 = vst [vmem:[#allocation216_spill] sm:$0xff] %v11564_v24  ;;  %v2810_v8 = vmul.f32 %v11564_v24, %v2669_v40  ;;  %v2811_v53 = vmul.f32 %v11568_v34, %v2672_v36  ;;  %v11580_v14 = vld [vmem:[%s15415_s14 + $0x18] sm:$0xff]  ;;  %v11584_v24 = vld [vmem:[%s15415_s14 + $0x20] sm:$0xff] }
 0x467   : > { %15428 = vst [vmem:[#allocation217_spill] sm:$0xff] %v11568_v34  ;;  %s15429_s20 = sld [smem:[#allocation287_spill]]  ;;  %15433 = vst [vmem:[#allocation222_spill] sm:$0xff] %v11580_v14  ;;  %v2812_v40 = vmul.f32 %v11580_v14, %v2675_v63  ;;  %v2813_v36 = vmul.f32 %v11584_v24, %v2678_v52  ;;  %v15440_v63 = vld [vmem:[#allocation8_spill] sm:$0xff]  ;;  %v11610_v7 = vld [vmem:[%s15415_s14 + $0x30] sm:$0xff] }
 0x468   : > { %v2684_v15 = vstv %s15419_s21  ;;  %15430 = sst [smem:[#allocation202_spill]] %s11574_s26  ;;  %15434 = vst [vmem:[#allocation48_spill] sm:$0xff] %v11584_v24  ;;  %v11599_v14 = vmul.f32 %v2471_v54, %v15440_v63  ;;  %v11602_v56 = vld [vmem:[%s15415_s14 + $0x28] sm:$0xff]  ;;  %s11607_s21 = spop %5847  ;;  %v11614_v60 = vld [vmem:[%s15415_s14 + $0x38] sm:$0xff]  ;;  %v11627_v42 = vadd.f32 %v2809_v18, %v11249_v55  ;;  %v11636_v10 = vld [vmem:[%s15415_s14 + $0x40] sm:$0xff]  ;;  %v11656_v18 = vpop.permute.xlu1 %3739 }
 0x469   : > { %v2687_v23 = vstv %s15420_s19  ;;  %s15435_s28 = sld [smem:[#allocation290_spill]]  ;;  %v2814_v52 = vmul.f32 %v11602_v56, %v2681_v4  ;;  %v2815_v50 = vmul.f32 %v11610_v7, %v2684_v15  ;;  %v11630_v15 = vadd.f32 %v2810_v8, %v11264_v49  ;;  %v11649_v55 = vld [vmem:[%s15415_s14 + $0x48] sm:$0xff]  ;;  %v11706_v12 = vld [vmem:[%s15415_s14 + $0x70] sm:$0xff] }
 0x46a   : > { %s15436_s24 = sld [smem:[#allocation291_spill]]  ;;  %15441 = vst [vmem:[#allocation224_spill] sm:$0xff] %v11599_v14  ;;  %v2816_v20 = vmul.f32 %v11614_v60, %v2687_v23  ;;  %v11633_v4 = vadd.f32 %v2811_v53, %v11270_v6  ;;  %v11643_v1 = vadd.f32 %v2812_v40, %v11273_v22  ;;  %v11646_v16 = vadd.f32 %v2813_v36, %v11285_v25  ;;  %v11665_v25 = vld [vmem:[%s15415_s14 + $0x58] sm:$0xff]  ;;  %v11702_v13 = vld [vmem:[%s15415_s14 + $0x68] sm:$0xff] }
 0x46b   : > { %15437 = sst [smem:[#allocation203_spill]] %s11589_s7  ;;  %15450 = vst [vmem:[#allocation304_spill] sm:$0xff] %v11665_v25  ;;  %v11674_v33 = vadd.f32 %v2814_v52, %v11288_v17  ;;  %v11677_v40 = vadd.f32 %v2815_v50, %v11296_v0  ;;  %v11693_v0 = vld [vmem:[%s15415_s14 + $0x60] sm:$0xff]  ;;  %15460 = vst [vmem:[#allocation305_spill] sm:$0xff] %v11702_v13 }
 0x46c   : > { %v2690_v34 = vstv %s15426_s12  ;;  %15442 = sst [smem:[#allocation204_spill]] %s11607_s21  ;;  %s11620_s12 = spop %5849  ;;  %v11680_v36 = vadd.f32 %v2816_v20, %v11299_v37  ;;  %15457 = vst [vmem:[#allocation343_spill] sm:$0xff] %v11693_v0  ;;  %15461 = vst [vmem:[#allocation344_spill] sm:$0xff] %v11706_v12  ;;  %v15463_v20 = vld [vmem:[#allocation299_spill] sm:$0xff]  ;;  %v11714_v5 = vpop.permute.xlu1 %3743 }
 0x46d   : > { %v2693_v24 = vstv %s15429_s20  ;;  %s15443_s19 = sld [smem:[#allocation292_spill]]  ;;  %v2817_v23 = vmul.f32 %v11636_v10, %v2690_v34  ;;  %v11661_v34 = vld [vmem:[%s15415_s14 + $0x50] sm:$0xff]  ;;  %5959 = vpush %v15463_v20  ;;  %v11732_v20 = vld [vmem:[%s15415_s14 + $0x78] sm:$0xff] }
 0x46e   : > { %15444 = sst [smem:[#allocation205_spill]] %s11620_s12  ;;  %v2818_v6 = vmul.f32 %v11649_v55, %v2693_v24  ;;  %15449 = vst [vmem:[#allocation342_spill] sm:$0xff] %v11661_v34  ;;  %5961 = vpush %v11381_v48  ;;  %v11749_v48 = vld [vmem:[%s15415_s14 + $0x88] sm:$0xff] }
 0x46f   : > { %v2696_v54 = vstv %s15435_s28  ;;  %s15445_s20 = sld [smem:[#allocation295_spill]]  ;;  %v11690_v17 = vadd.f32 %v2817_v23, %v11309_v32  ;;  %v15466_v23 = vld [vmem:[#allocation320_spill] sm:$0xff]  ;;  %15472 = vst [vmem:[#allocation299_spill] sm:$0xff] %v11732_v20  ;;  %5963 = vpush %v11383_v61 }
 0x470   : > { %v2699_v47 = vstv %s15436_s24  ;;  %s15446_s28 = sld [smem:[#allocation296_spill]]  ;;  %s11640_s24 = spop %5851  ;;  %v2819_v22 = vmul.f32 %v11661_v34, %v2696_v54  ;;  %v11716_v54 = vpop.permute.xlu0 %3745  ;;  %5965 = vpush %v11433_v35  ;;  %v11777_v35 = vpop.permute.xlu1 %3747  ;;  %v11801_v34 = vld [vmem:[%s15415_s14 + $0xb0] sm:$0xff] }
 0x471   : > { %15447 = sst [smem:[#allocation206_spill]] %s11640_s24  ;;  %s11654_s12 = spop %5853  ;;  %v2820_v8 = vmul.f32 %v11665_v25, %v2699_v47  ;;  %5967 = vpush %v11435_v45  ;;  %v15489_v45 = vld [vmem:[#allocation303_spill] sm:$0xff] }
 0x472   : > { %15448 = sst [smem:[#allocation102_spill]] %s11654_s12  ;;  %5969 = vpush %v11483_v9  ;;  %15490 = vst [vmem:[#allocation303_spill] sm:$0xff] %v11801_v34  ;;  %v15496_v9 = vld [vmem:[#allocation229_spill] sm:$0xff] }
 0x473   : > { %v2702_v49 = vstv %s15443_s19  ;;  %s15451_s24 = sld [smem:[#allocation297_spill]]  ;;  %s11671_s19 = spop %5855  ;;  %5971 = vpush %v11485_v11 }
 0x474   : > { %s15452_s21 = sld [smem:[#allocation300_spill]]  ;;  %v2821_v37 = vmul.f32 %v11693_v0, %v2702_v49  ;;  %v11719_v49 = vadd.f32 %v2818_v6, %v15466_v23  ;;  %v11736_v23 = vld [vmem:[%s15415_s14 + $0x80] sm:$0xff]  ;;  %v11782_v0 = vld [vmem:[%s15415_s14 + $0x98] sm:$0xff]  ;;  %5973 = vpush %v11536_v3  ;;  %v11845_v3 = vpop.permute.xlu1 %3751 }
 0x475   : > { %v2705_v24 = vstv %s15445_s20  ;;  %15453 = sst [smem:[#allocation104_spill]] %s11671_s19  ;;  %15473 = vst [vmem:[#allocation320_spill] sm:$0xff] %v11736_v23  ;;  %15485 = vst [vmem:[#allocation321_spill] sm:$0xff] %v11782_v0 }
 0x476   : > { %v2708_v53 = vstv %s15446_s28  ;;  %s15454_s12 = sld [smem:[#allocation301_spill]]  ;;  %s11683_s28 = spop %5857  ;;  %v2822_v38 = vmul.f32 %v11702_v13, %v2705_v24  ;;  %v15467_v24 = vld [vmem:[#allocation294_spill] sm:$0xff]  ;;  %v11779_v13 = vpop.permute.xlu0 %3749  ;;  %5975 = vpush %v11538_v27  ;;  %v15511_v27 = vld [vmem:[#allocation312_spill] sm:$0xff] }
 0x477   : > { %s15455_s20 = sld [smem:[#allocation306_spill]]  ;;  %s11699_s7 = spop %5859  ;;  %v2823_v32 = vmul.f32 %v11706_v12, %v2708_v53  ;;  %v11722_v14 = vadd.f32 %v2819_v22, %v15467_v24  ;;  %v15468_v53 = vld [vmem:[#allocation298_spill] sm:$0xff]  ;;  %15476 = vst [vmem:[#allocation294_spill] sm:$0xff] %v11749_v48  ;;  %5977 = vpush %v11591_v29  ;;  %v11878_v29 = vld [vmem:[%s15415_s14 + $0xd8] sm:$0xff] }
 0x478   : > { %15456 = sst [smem:[#allocation105_spill]] %s11683_s28  ;;  %v11725_v63 = vadd.f32 %v2820_v8, %v15468_v53  ;;  %5979 = vpush %v11593_v44  ;;  %15517 = vst [vmem:[#allocation348_spill] sm:$0xff] %v11878_v29 }
 0x479   : > { %v2711_v26 = vstv %s15451_s24  ;;  %s15458_s19 = sld [smem:[#allocation307_spill]]  ;;  %s11712_s24 = spop %5861  ;;  %5981 = vpush %v11656_v18 }
 0x47a   : > { %v2714_v50 = vstv %s15452_s21  ;;  %15459 = sst [smem:[#allocation106_spill]] %s11699_s7  ;;  %v2824_v6 = vmul.f32 %v11732_v20, %v2711_v26  ;;  %v11753_v26 = vld [vmem:[%s15415_s14 + $0x90] sm:$0xff]  ;;  %5983 = vpush %v11658_v31 }
 0x47b   : > { %s15462_s28 = sld [smem:[#allocation310_spill]]  ;;  %v2825_v22 = vmul.f32 %v11736_v23, %v2714_v50  ;;  %15477 = vst [vmem:[#allocation298_spill] sm:$0xff] %v11753_v26  ;;  %5985 = vpush %v11714_v5  ;;  %v15535_v5 = vld [vmem:[#allocation318_spill] sm:$0xff] }
 0x47c   : > { %v2717_v47 = vstv %s15454_s12  ;;  %s15464_s21 = sld [smem:[#allocation313_spill]]  ;;  %v11798_v25 = vadd.f32 %v2824_v6, %v15489_v45  ;;  %v15497_v6 = vld [vmem:[#allocation311_spill] sm:$0xff]  ;;  %5987 = vpush %v11716_v54 }
 0x47d   : > { %v2720_v52 = vstv %s15455_s20  ;;  %15465 = sst [smem:[#allocation108_spill]] %s11712_s24  ;;  %s11729_s20 = spop %5863  ;;  %v2826_v8 = vmul.f32 %v11749_v48, %v2717_v47  ;;  %v11765_v47 = vadd.f32 %v2821_v37, %v15481_v57  ;;  %v15482_v48 = vld [vmem:[#allocation302_spill] sm:$0xff]  ;;  %v15498_v45 = vld [vmem:[#allocation322_spill] sm:$0xff]  ;;  %5989 = vpush %v11777_v35 }
 0x47e   : > { %s15469_s12 = sld [smem:[#allocation316_spill]]  ;;  %v2827_v50 = vmul.f32 %v11753_v26, %v2720_v52  ;;  %v11768_v23 = vadd.f32 %v2822_v38, %v15482_v48  ;;  %v15483_v52 = vld [vmem:[#allocation227_spill] sm:$0xff]  ;;  %v11786_v38 = vld [vmem:[%s15415_s14 + $0xa0] sm:$0xff]  ;;  %5991 = vpush %v11779_v13 }
 0x47f   : > { %v2723_v2 = vstv %s15458_s19  ;;  %15470 = sst [smem:[#allocation109_spill]] %s11729_s20  ;;  %s11742_s19 = spop %5865  ;;  %v11771_v26 = vadd.f32 %v2823_v32, %v15483_v52  ;;  %15486 = vst [vmem:[#allocation302_spill] sm:$0xff] %v11786_v38  ;;  %v11790_v48 = vld [vmem:[%s15415_s14 + $0xa8] sm:$0xff]  ;;  %5993 = vpush %v11845_v3 }
 0x480   : > { %s15471_s24 = sld [smem:[#allocation317_spill]]  ;;  %v2828_v37 = vmul.f32 %v11782_v0, %v2723_v2  ;;  %15487 = vst [vmem:[#allocation227_spill] sm:$0xff] %v11790_v48  ;;  %v11805_v0 = vld [vmem:[%s15415_s14 + $0xb8] sm:$0xff] }
 0x481   : > { %v2726_v24 = vstv %s15462_s28  ;;  %s15474_s7 = sld [smem:[#allocation323_spill]]  ;;  %s11758_s28 = spop %5867  ;;  %15491 = vst [vmem:[#allocation345_spill] sm:$0xff] %v11805_v0 }
 0x482   : > { %v2729_v12 = vstv %s15464_s21  ;;  %15475 = sst [smem:[#allocation114_spill]] %s11742_s19  ;;  %v2829_v32 = vmul.f32 %v11786_v38, %v2726_v24 }
 0x483   : > { %15478 = sst [smem:[#allocation115_spill]] %s11758_s28  ;;  %v2830_v57 = vmul.f32 %v11790_v48, %v2729_v12  ;;  %v11814_v12 = vadd.f32 %v2825_v22, %v15496_v9  ;;  %v11836_v22 = vld [vmem:[%s15415_s14 + $0xc8] sm:$0xff]  ;;  %v11847_v9 = vpop.permute.xlu0 %3753 }
 0x484   : > { %v2732_v61 = vstv %s15469_s12  ;;  %s15479_s20 = sld [smem:[#allocation365_spill]]  ;;  %15502 = vst [vmem:[#allocation311_spill] sm:$0xff] %v11836_v22  ;;  %5995 = vpush %v11847_v9 }
 0x485   : > { %s15480_s26 = sld [smem:[#allocation325_spill]]  ;;  %v2831_v2 = vmul.f32 %v11801_v34, %v2732_v61  ;;  %v11817_v61 = vadd.f32 %v2826_v8, %v15497_v6  ;;  %v11820_v34 = vadd.f32 %v2827_v50, %v15498_v45  ;;  %v15506_v6 = vld [vmem:[#allocation230_spill] sm:$0xff] }
 0x486   : > { %v2735_v53 = vstv %s15471_s24  ;;  %s11774_s24 = spop %5869  ;;  %s15492_s12 = sld [smem:[#allocation125_spill]]  ;;  %v11850_v45 = vadd.f32 %v2828_v37, %v15506_v6 }
 0x487   : > { %v2738_v20 = vstv %s15474_s7  ;;  %15484 = sst [smem:[#allocation119_spill]] %s11774_s24  ;;  %s11794_s7 = spop %5871  ;;  %v2832_v24 = vmul.f32 %v11805_v0, %v2735_v53  ;;  %v11823_v53 = vld [vmem:[%s15415_s14 + $0xc0] sm:$0xff]  ;;  %v11863_v48 = vadd.f32 %v2831_v2, %v15511_v27  ;;  %v3756_v27 = vpop.permute.xlu1 %3755 }
 0x488   : > { %15488 = sst [smem:[#allocation120_spill]] %s11794_s7  ;;  %s11808_s19 = spop %5873  ;;  %15499 = vst [vmem:[#allocation229_spill] sm:$0xff] %v11823_v53  ;;  %v2833_v0 = vmul.f32 %v11823_v53, %v2738_v20  ;;  %15507 = vst [vmem:[#allocation322_spill] sm:$0xff] %v11850_v45 }
 0x489   : > { %15493 = sst [smem:[#allocation121_spill]] %s11808_s19  ;;  %s11826_s19 = spop %5875  ;;  %15512 = vst [vmem:[#allocation312_spill] sm:$0xff] %v11863_v48  ;;  %v11866_v37 = vadd.f32 %v2832_v24, %v11410_v39  ;;  %v11882_v39 = vld [vmem:[%s15415_s14 + $0xe0] sm:$0xff]  ;;  %5997 = vpush %v3756_v27 }
 0x48a   : > { %v5192_v41 = vld [vmem:[%s15479_s20] ss:$0 sm:$0xff]  ;;  %s15495_s21 = sld [smem:[#allocation127_spill]]  ;;  %v5193_v62 = vld [vmem:[%s15479_s20 + $0x1] ss:$0 sm:$0xff]  ;;  %15518 = vst [vmem:[#allocation349_spill] sm:$0xff] %v11882_v39 }
 0x48b   : > { %v2741_v52 = vstv %s15480_s26  ;;  %s15494_s26 = sld [smem:[#allocation126_spill]]  ;;  %4781 = vperm.xlu0 %6136, %v5192_v41   ;;  %v5195_v11 = vld [vmem:[%s15479_s20 + $0x3] ss:$0 sm:$0xff]  ;;  %15513 = vst [vmem:[#allocation346_spill] sm:$0xff] %v11866_v37  ;;  %4785 = vperm.xlu1 %6137, %v5193_v62   ;;  %v5194_v44 = vld [vmem:[%s15479_s20 + $0x2] ss:$0 sm:$0xff]  ;;  %v11909_v37 = vpop.permute.xlu0 %3757 }
 0x48c   : > { %15500 = sst [smem:[#allocation122_spill]] %s11826_s19  ;;  %v2834_v8 = vmul.f32 %v11836_v22, %v2741_v52  ;;  %v2744_v50 = vstv %s15492_s12  ;;  %s11842_s19 = spop %5877  ;;  %v11853_v52 = vadd.f32 %v2829_v32, %v11386_v28  ;;  %v11856_v22 = vadd.f32 %v2830_v57, %v11395_v58  ;;  %v11874_v28 = vld [vmem:[%s15415_s14 + $0xd0] sm:$0xff]  ;;  %v5197_v24 = vld [vmem:[%s15479_s20 + $0x5] ss:$0 sm:$0xff]  ;;  %v5196_v54 = vld [vmem:[%s15479_s20 + $0x4] ss:$0 sm:$0xff]  ;;  %5999 = vpush %v11909_v37 }
 0x48d   : > { %s15501_s7 = sld [smem:[#allocation128_spill]]  ;;  %s11859_s25 = spop %5879  ;;  %15516 = vst [vmem:[#allocation347_spill] sm:$0xff] %v11874_v28  ;;  %v2835_v58 = vmul.f32 %v11874_v28, %v2744_v50  ;;  %v15521_v62 = vld [vmem:[#allocation324_spill] sm:$0xff]  ;;  %v5198_v9 = vld [vmem:[%s15479_s20 + $0x6] ss:$0 sm:$0xff]  ;;  %v15696_v28 = vld [vmem:[#allocation66_spill] sm:$0xff] }
 0x48e   : > { %s15503_s30 = sld [smem:[#allocation129_spill]]  ;;  %15508 = vst [vmem:[#allocation230_spill] sm:$0xff] %v11856_v22  ;;  %s11870_s24 = spop %5881  ;;  %v11899_v50 = vadd.f32 %v2834_v8, %v11421_v43  ;;  %v11916_v8 = vld [vmem:[%s15415_s14 + $0xf8] sm:$0xff] }
 0x48f   : > { %s15504_s23 = sld [smem:[#allocation130_spill]]  ;;  %4793 = vperm.xlu0 %6136, %v5195_v11   ;;  %v11896_v11 = vadd.f32 %v2833_v0, %v15521_v62  ;;  %v11912_v0 = vld [vmem:[%s15415_s14 + $0xf0] sm:$0xff]  ;;  %15530 = vst [vmem:[#allocation353_spill] sm:$0xff] %v11916_v8  ;;  %4789 = vperm.xlu1 %6137, %v5194_v44  }
 0x490   : > { %v2750_v41 = vstv %s15495_s21  ;;  %15505 = sst [smem:[#allocation123_spill]] %s11842_s19  ;;  %15523 = vst [vmem:[#allocation350_spill] sm:$0xff] %v11899_v50  ;;  %15529 = vst [vmem:[#allocation352_spill] sm:$0xff] %v11912_v0 }
 0x491   : > { %v2747_v20 = vstv %s15494_s26  ;;  %15509 = sst [smem:[#allocation124_spill]] %s11859_s25  ;;  %v2837_v57 = vmul.f32 %v11882_v39, %v2750_v41  ;;  %15522 = vst [vmem:[#allocation324_spill] sm:$0xff] %v11896_v11  ;;  %v11925_v11 = vld [vmem:[%s15415_s14 + $0x100] sm:$0xff] }
 0x492   : > { %s15510_s28 = sld [smem:[#allocation131_spill]]  ;;  %v2836_v32 = vmul.f32 %v11878_v29, %v2747_v20  ;;  %v11902_v20 = vld [vmem:[%s15415_s14 + $0xe8] sm:$0xff] }
 0x493   : > { %v2753_v53 = vstv %s15501_s7  ;;  %15514 = sst [smem:[#allocation91_spill]] %s11870_s24  ;;  %15524 = vst [vmem:[#allocation351_spill] sm:$0xff] %v11902_v20  ;;  %4801 = vperm.xlu0 %6136, %v5197_v24   ;;  %4797 = vperm.xlu1 %6137, %v5196_v54  }
 0x494   : > { %v2756_v6 = vstv %s15503_s30  ;;  %s15515_s7 = sld [smem:[#allocation132_spill]]  ;;  %v2838_v18 = vmul.f32 %v11902_v20, %v2753_v53 }
 0x495   : > { %v2759_v45 = vstv %s15504_s23  ;;  %s11886_s23 = spop %5883  ;;  %s15519_s26 = sld [smem:[#allocation133_spill]]  ;;  %v2839_v43 = vmul.f32 %v11912_v0, %v2756_v6  ;;  %v11944_v0 = vld [vmem:[%s15415_s14 + $0x108] sm:$0xff] }
 0x496   : > { %s15520_s24 = sld [smem:[#allocation134_spill]]  ;;  %s11906_s12 = spop %5885  ;;  %v2840_v62 = vmul.f32 %v11916_v8, %v2759_v45  ;;  %v15533_v45 = vld [vmem:[#allocation326_spill] sm:$0xff]  ;;  %v11938_v8 = vadd.f32 %v2836_v32, %v15535_v5  ;;  %15538 = vst [vmem:[#allocation355_spill] sm:$0xff] %v11944_v0  ;;  %v11970_v5 = vadd.f32 %v2838_v18, %v11441_v30  ;;  %v15542_v30 = vld [vmem:[#allocation231_spill] sm:$0xff] }
 0x497   : > { %s15526_s30 = sld [smem:[#allocation136_spill]]  ;;  %v11935_v6 = vadd.f32 %v2835_v58, %v15533_v45  ;;  %v5199_v58 = vld [vmem:[%s15479_s20 + $0x7] ss:$0 sm:$0xff]  ;;  %v3762_v45 = vpop.permute.xlu0 %3761  ;;  %v11988_v18 = vadd.f32 %v2839_v43, %v15542_v30  ;;  %4805 = vperm.xlu1 %6137, %v5198_v9   ;;  %v15570_v9 = vld [vmem:[#allocation9_spill] sm:$0xff] }
 0x498   : > { %v2762_v2 = vstv %s15510_s28  ;;  %s15525_s28 = sld [smem:[#allocation135_spill]]  ;;  %15536 = vst [vmem:[#allocation318_spill] sm:$0xff] %v11938_v8  ;;  %15539 = vst [vmem:[#allocation356_spill] sm:$0xff] %v11970_v5  ;;  %v11977_v8 = vld [vmem:[%s15415_s14 + $0x128] sm:$0xff]  ;;  %v15544_v5 = vld [vmem:[#allocation232_spill] sm:$0xff]  ;;  %4809 = vperm.xlu0 %6136, %v5199_v58  }
 0x499   : > { %15527 = sst [smem:[#allocation92_spill]] %s11906_s12  ;;  %v2841_v31 = vmul.f32 %v11925_v11, %v2762_v2  ;;  %15534 = vst [vmem:[#allocation326_spill] sm:$0xff] %v11935_v6  ;;  %v11941_v2 = vadd.f32 %v2837_v57, %v11438_v19  ;;  %v11957_v19 = vld [vmem:[%s15415_s14 + $0x110] sm:$0xff]  ;;  %v11961_v57 = vld [vmem:[%s15415_s14 + $0x118] sm:$0xff]  ;;  %15543 = vst [vmem:[#allocation231_spill] sm:$0xff] %v11988_v18 }
 0x49a   : > { %v2765_v41 = vstv %s15515_s7  ;;  %s15528_s21 = sld [smem:[#allocation137_spill]]  ;;  %s11921_s7 = spop %5887  ;;  %v11981_v6 = vld [vmem:[%s15415_s14 + $0x130] sm:$0xff]  ;;  %v15552_v58 = vld [vmem:[#allocation327_spill] sm:$0xff] }
 0x49b   : > { %v2768_v53 = vstv %s15519_s26  ;;  %s11931_s18 = spop %5889  ;;  %s15531_s26 = sld [smem:[#allocation138_spill]]  ;;  %15537 = vst [vmem:[#allocation354_spill] sm:$0xff] %v11941_v2  ;;  %v2842_v48 = vmul.f32 %v11944_v0, %v2765_v41  ;;  %v3760_v41 = vpop.permute.xlu1 %3759  ;;  %v11973_v2 = vld [vmem:[%s15415_s14 + $0x120] sm:$0xff]  ;;  %v15546_v0 = vld [vmem:[#allocation319_spill] sm:$0xff] }
 0x49c   : > { %v2771_v50 = vstv %s15520_s24  ;;  %s15532_s24 = sld [smem:[#allocation139_spill]]  ;;  %v2843_v32 = vmul.f32 %v11957_v19, %v2768_v53  ;;  %v11994_v22 = vadd.f32 %v2841_v31, %v15546_v0  ;;  %v5201_v0 = vld [vmem:[%s15479_s20 + $0x9] ss:$0 sm:$0xff]  ;;  %v15550_v31 = vld [vmem:[#allocation233_spill] sm:$0xff]  ;;  %6001 = vpush %v3760_v41 }
 0x49d   : > { %v2777_v39 = vstv %s15526_s30  ;;  %v2844_v44 = vmul.f32 %v11961_v57, %v2771_v50  ;;  %s15540_s25 = sld [smem:[#allocation140_spill]]  ;;  %v12018_v54 = vadd.f32 %v2842_v48, %v15550_v31  ;;  %v12047_v31 = vld [vmem:[%s15415_s14 + $0x150] sm:$0xff]  ;;  %6003 = vpush %v3762_v45  ;;  %4817 = vperm.xlu0 %6136, %v5201_v0   ;;  %v5200_v45 = vld [vmem:[%s15479_s20 + $0x8] ss:$0 sm:$0xff] }
 0x49e   : > { %v2774_v20 = vstv %s15525_s28  ;;  %s11947_s28 = spop %5891  ;;  %v2846_v50 = vmul.f32 %v11977_v8, %v2777_v39  ;;  %s15541_s12 = sld [smem:[#allocation141_spill]]  ;;  %15547 = vst [vmem:[#allocation319_spill] sm:$0xff] %v11994_v22  ;;  %v12004_v39 = vld [vmem:[%s15415_s14 + $0x140] sm:$0xff]  ;;  %v3766_v22 = vpop.permute.xlu0 %3765  ;;  %4813 = vperm.xlu1 %6137, %v5200_v45   ;;  %v12112_v45 = vld [vmem:[%s15415_s14 + $0x168] sm:$0xff] }
 0x49f   : > { %s11966_s19 = spop %5893  ;;  %v2845_v53 = vmul.f32 %v11973_v2, %v2774_v20  ;;  %v11991_v20 = vadd.f32 %v2840_v62, %v15544_v5  ;;  %s15548_s30 = sld [smem:[#allocation142_spill]]  ;;  %15551 = vst [vmem:[#allocation233_spill] sm:$0xff] %v12018_v54  ;;  %v3764_v30 = vpop.permute.xlu1 %3763  ;;  %15585 = vst [vmem:[#allocation361_spill] sm:$0xff] %v12112_v45 }
 0x4a0   : > { %v2780_v29 = vstv %s15528_s21  ;;  %s15549_s21 = sld [smem:[#allocation147_spill]]  ;;  %v12034_v48 = vadd.f32 %v2846_v50, %v11499_v59  ;;  %v15566_v50 = vld [vmem:[#allocation336_spill] sm:$0xff]  ;;  %6005 = vpush %v3764_v30  ;;  %v15571_v30 = vld [vmem:[#allocation10_spill] sm:$0xff] }
 0x4a1   : > { %v2783_v24 = vstv %s15531_s26  ;;  %v2847_v13 = vmul.f32 %v11981_v6, %v2780_v29  ;;  %s11984_s26 = spop %5895  ;;  %15545 = vst [vmem:[#allocation232_spill] sm:$0xff] %v11991_v20  ;;  %v12000_v29 = vld [vmem:[%s15415_s14 + $0x138] sm:$0xff]  ;;  %v12031_v20 = vadd.f32 %v2845_v53, %v11491_v51  ;;  %s15560_s27 = sld [smem:[#allocation143_spill]]  ;;  %6007 = vpush %v3766_v22  ;;  %v12092_v22 = vld [vmem:[%s15415_s14 + $0x160] sm:$0xff] }
 0x4a2   : > { %v2786_v35 = vstv %s15532_s24  ;;  %s11996_s24 = spop %5897  ;;  %v2848_v3 = vmul.f32 %v12000_v29, %v2783_v24  ;;  %v12021_v24 = vadd.f32 %v2843_v32, %v15552_v58  ;;  %15558 = vst [vmem:[#allocation359_spill] sm:$0xff] %v12034_v48  ;;  %s15561_s6 = sld [smem:[#allocation144_spill]] }
 0x4a3   : > { %v2849_v43 = vmul.f32 %v12004_v39, %v2786_v35  ;;  %v2789_v62 = vstv %s15540_s25  ;;  %s12009_s29 = spop %5899  ;;  %v12024_v35 = vadd.f32 %v2844_v44, %v11488_v46  ;;  %s15555_s25 = sld [smem:[#allocation148_spill]]  ;;  %15557 = vst [vmem:[#allocation358_spill] sm:$0xff] %v12031_v20  ;;  %v12037_v32 = vadd.f32 %v2847_v13, %v11502_v21  ;;  %v12043_v44 = vld [vmem:[%s15415_s14 + $0x148] sm:$0xff] }
 0x4a4   : > { %v2792_v5 = vstv %s15541_s12  ;;  %15553 = vst [vmem:[#allocation327_spill] sm:$0xff] %v12021_v24  ;;  %s15556_s12 = sld [smem:[#allocation149_spill]]  ;;  %s12027_s22 = spop %5901  ;;  %v2850_v37 = vmul.f32 %v12043_v44, %v2789_v62  ;;  %v15564_v21 = vld [vmem:[#allocation328_spill] sm:$0xff]  ;;  %v12061_v62 = vld [vmem:[%s15415_s14 + $0x158] sm:$0xff]  ;;  %v15574_v24 = vld [vmem:[#allocation234_spill] sm:$0xff] }
 0x4a5   : > { %15554 = vst [vmem:[#allocation357_spill] sm:$0xff] %v12024_v35  ;;  %v2795_v27 = vstv %s15548_s30  ;;  %15559 = vst [vmem:[#allocation360_spill] sm:$0xff] %v12037_v32  ;;  %s12040_s17 = spop %5903  ;;  %v2851_v51 = vmul.f32 %v12047_v31, %v2792_v5  ;;  %s15562_s30 = sld [smem:[#allocation150_spill]]  ;;  %v12055_v41 = vadd.f32 %v2848_v3, %v15564_v21  ;;  %v12058_v13 = vadd.f32 %v2849_v43, %v15566_v50  ;;  %v5203_v3 = vld [vmem:[%s15479_s20 + $0xb] ss:$0 sm:$0xff]  ;;  %v3768_v50 = vpop.permute.xlu1 %3767 }
 0x4a6   : > { %v3002_v46 = vstv %s15549_s21  ;;  %s12052_s11 = spop %5905  ;;  %s15563_s10 = sld [smem:[#allocation151_spill]]  ;;  %v2852_v5 = vmul.f32 %v12061_v62, %v2795_v27  ;;  %v15572_v32 = vld [vmem:[#allocation80_spill] sm:$0xff]  ;;  %6009 = vpush %v3768_v50  ;;  %4825 = vperm.xlu0 %6136, %v5203_v3   ;;  %v15581_v50 = vld [vmem:[#allocation11_spill] sm:$0xff] }
 0x4a7   : > { %15565 = vst [vmem:[#allocation328_spill] sm:$0xff] %v12055_v41  ;;  %15567 = vst [vmem:[#allocation336_spill] sm:$0xff] %v12058_v13  ;;  %s15568_s21 = sld [smem:[#allocation152_spill]]  ;;  %v2798_v58 = vstv %s15560_s27  ;;  %v3145_v0 = vmul.f32 %v3002_v46, %v15570_v9  ;;  %v4058_v13 = vpop.permute.xlu0 %4057  ;;  %v12086_v46 = vadd.f32 %v2850_v37, %v15574_v24  ;;  %v15576_v9 = vld [vmem:[#allocation337_spill] sm:$0xff]  ;;  %v15586_v3 = vld [vmem:[#allocation12_spill] sm:$0xff] }
 0x4a8   : > { %v2801_v43 = vstv %s15561_s6  ;;  %s15573_s8 = sld [smem:[#allocation154_spill]]  ;;  %v12089_v54 = vadd.f32 %v2851_v51, %v15576_v9  ;;  %v2853_v18 = vmul.f32 %v12092_v22, %v2798_v58  ;;  %6011 = vpush %v4058_v13  ;;  %v15582_v37 = vld [vmem:[#allocation81_spill] sm:$0xff]  ;;  %v5202_v58 = vld [vmem:[%s15479_s20 + $0xa] ss:$0 sm:$0xff]  ;;  %v5205_v13 = vld [vmem:[%s15479_s20 + $0xd] ss:$0 sm:$0xff] }
 0x4a9   : > { %v3005_v59 = vstv %s15555_s25  ;;  %s15569_s25 = sld [smem:[#allocation153_spill]]  ;;  %15575 = vst [vmem:[#allocation234_spill] sm:$0xff] %v12086_v46  ;;  %4821 = vperm.xlu1 %6137, %v5202_v58  }
 0x4aa   : > { %v3008_v53 = vstv %s15556_s12  ;;  %s12065_s12 = spop %5907  ;;  %v3146_v41 = vmul.f32 %v3005_v59, %v15571_v30  ;;  %15577 = vst [vmem:[#allocation337_spill] sm:$0xff] %v12089_v54  ;;  %v15578_v59 = vld [vmem:[#allocation340_spill] sm:$0xff]  ;;  %s15579_s15 = sld [smem:[#allocation146_spill]]  ;;  %4833 = vperm.xlu0 %6136, %v5205_v13  }
 0x4ab   : > { %v3011_v21 = vstv %s15562_s30  ;;  %s12077_s9 = spop %5909  ;;  %v3147_v48 = vmul.f32 %v3008_v53, %v15572_v32  ;;  %v12098_v53 = vadd.f32 %v2852_v5, %v15578_v59  ;;  %v2854_v5 = vmul.f32 %v12112_v45, %v2801_v43  ;;  %v4062_v54 = vpop.permute.xlu0 %4061  ;;  %s15589_s27 = sld [smem:[#allocation155_spill]]  ;;  %v15591_v43 = vld [vmem:[#allocation235_spill] sm:$0xff] }
 0x4ac   : > { %v3014_v27 = vstv %s15563_s10  ;;  %s12083_s2 = spop %5911  ;;  %v3148_v24 = vmul.f32 %v3011_v21, %v15581_v50  ;;  %v15587_v21 = vld [vmem:[#allocation13_spill] sm:$0xff]  ;;  %v3026_v59 = vstv %s10702_s4  ;;  %v3193_v32 = vadd.f32 %v3145_v0, %v11627_v42  ;;  %v5207_v0 = vld [vmem:[%s15479_s20 + $0xf] ss:$0 sm:$0xff]  ;;  %s15610_s30 = sld [smem:[#allocation158_spill]] }
 0x4ad   : > { %v3017_v20 = vstv %s15568_s21  ;;  %s12095_s3 = spop %5913  ;;  %15580 = vst [vmem:[#allocation340_spill] sm:$0xff] %v12098_v53  ;;  %v3149_v46 = vmul.f32 %v3014_v27, %v15582_v37  ;;  %v4060_v53 = vpop.permute.xlu1 %4059  ;;  %v3194_v50 = vadd.f32 %v3146_v41, %v11630_v15  ;;  %v3195_v30 = vadd.f32 %v3147_v48, %v11633_v4  ;;  %v15595_v4 = vld [vmem:[#allocation15_spill] sm:$0xff]  ;;  %v15603_v13 = vld [vmem:[#allocation16_spill] sm:$0xff] }
 0x4ae   : > { %v3023_v51 = vstv %s15573_s8  ;;  %s12103_s10 = spop %5915  ;;  %v3150_v9 = vmul.f32 %v3017_v20, %v15586_v3  ;;  %6013 = vpush %v4060_v53  ;;  %v12127_v20 = vadd.f32 %v2853_v18, %v15591_v43  ;;  %v3029_v45 = vstv %s10708_s0  ;;  %v5204_v18 = vld [vmem:[%s15479_s20 + $0xc] ss:$0 sm:$0xff]  ;;  %4841 = vperm.xlu0 %6136, %v5207_v0   ;;  %s15613_s0 = sld [smem:[#allocation159_spill]] }
 0x4af   : > { %v3020_v35 = vstv %s15569_s25  ;;  %15583 = sst [smem:[#allocation93_spill]] %s12103_s10  ;;  %s12118_s8 = spop %5917  ;;  %6015 = vpush %v4062_v54  ;;  %v3196_v42 = vadd.f32 %v3148_v24, %v11643_v1  ;;  %v3197_v15 = vadd.f32 %v3149_v46, %v11646_v16  ;;  %v3153_v48 = vmul.f32 %v3026_v59, %v15595_v4  ;;  %v15597_v54 = vld [vmem:[#allocation221_spill] sm:$0xff]  ;;  %v4066_v58 = vpop.permute.xlu0 %4065  ;;  %4829 = vperm.xlu1 %6137, %v5204_v18   ;;  %v15616_v18 = vld [vmem:[#allocation332_spill] sm:$0xff] }
 0x4b0   : > { %v3151_v27 = vmul.f32 %v3020_v35, %v15587_v21  ;;  %15588 = sst [smem:[#allocation94_spill]] %s12118_s8  ;;  %v2807_v37 = vstv %s15579_s15  ;;  %s12124_s6 = spop %5919  ;;  %15592 = vst [vmem:[#allocation235_spill] sm:$0xff] %v12127_v20  ;;  %v15593_v21 = vld [vmem:[#allocation14_spill] sm:$0xff]  ;;  %v12147_v53 = vadd.f32 %v2854_v5, %v15597_v54  ;;  %v3198_v46 = vadd.f32 %v3150_v9, %v11674_v33  ;;  %v15605_v5 = vld [vmem:[#allocation329_spill] sm:$0xff] }
 0x4b1   : > { %15590 = sst [smem:[#allocation95_spill]] %s12124_s6  ;;  %v3152_v3 = vmul.f32 %v3023_v51, %v15593_v21  ;;  %s12132_s4 = spop %5921  ;;  %v3032_v41 = vstv %s15589_s27  ;;  %v12150_v1 = vld [vmem:[%s15415_s14 + $0x178] sm:$0xff]  ;;  %v4064_v51 = vpop.permute.xlu1 %4063  ;;  %v3154_v59 = vmul.f32 %v3029_v45, %v15603_v13  ;;  %v12163_v43 = vadd.f32 %v3193_v32, %v15605_v5  ;;  %v15612_v45 = vld [vmem:[#allocation341_spill] sm:$0xff]  ;;  %v15704_v13 = vld [vmem:[#allocation71_spill] sm:$0xff] }
 0x4b2   : > { %15594 = sst [smem:[#allocation96_spill]] %s12132_s4  ;;  %s12138_s15 = spop %5923  ;;  %15598 = vst [vmem:[#allocation221_spill] sm:$0xff] %v12147_v53  ;;  %v12153_v16 = vmul.f32 %v12150_v1, %v2807_v37  ;;  %v3199_v24 = vadd.f32 %v3151_v27, %v11677_v40  ;;  %6017 = vpush %v4064_v51  ;;  %v15606_v54 = vld [vmem:[#allocation237_spill] sm:$0xff]  ;;  %v15608_v37 = vld [vmem:[#allocation240_spill] sm:$0xff]  ;;  %v3201_v32 = vadd.f32 %v3153_v48, %v11690_v17  ;;  %v3041_v17 = vstv %s15610_s30 }
 0x4b3   : > { %15596 = sst [smem:[#allocation97_spill]] %s12138_s15  ;;  %s12157_s27 = spop %5925  ;;  %v12166_v35 = vadd.f32 %v3194_v50, %v15606_v54  ;;  %v12169_v20 = vadd.f32 %v3195_v30, %v15608_v37  ;;  %v3200_v33 = vadd.f32 %v3152_v3, %v11680_v36  ;;  %v15611_v40 = vld [vmem:[#allocation17_spill] sm:$0xff]  ;;  %6019 = vpush %v4066_v58  ;;  %v5206_v36 = vld [vmem:[%s15479_s20 + $0xe] ss:$0 sm:$0xff]  ;;  %v15614_v3 = vld [vmem:[#allocation330_spill] sm:$0xff]  ;;  %v12191_v0 = vadd.f32 %v3197_v15, %v15616_v18  ;;  %v4070_v5 = vpop.permute.xlu0 %4069 }
 0x4b4   : > { %s15599_s4 = sld [smem:[#allocation156_spill]]  ;;  %15601 = vst [vmem:[#allocation362_spill] sm:$0xff] %v12153_v16  ;;  %s12160_s25 = spop %5927  ;;  %v3155_v9 = vmul.f32 %v3032_v41, %v15611_v40  ;;  %v5209_v30 = vld [vmem:[%s15479_s20 + $0x11] ss:$0 sm:$0xff]  ;;  %v12188_v41 = vadd.f32 %v3196_v42, %v15614_v3  ;;  %v15620_v54 = vld [vmem:[#allocation331_spill] sm:$0xff]  ;;  %v15622_v50 = vld [vmem:[#allocation334_spill] sm:$0xff]  ;;  %v3202_v42 = vadd.f32 %v3154_v59, %v11719_v49  ;;  %4837 = vperm.xlu1 %6137, %v5206_v36  }
 0x4b5   : > { %s15600_s6 = sld [smem:[#allocation157_spill]]  ;;  %15607 = vst [vmem:[#allocation329_spill] sm:$0xff] %v12166_v35  ;;  %15609 = vst [vmem:[#allocation237_spill] sm:$0xff] %v12169_v20  ;;  %s12175_s21 = spop %5929  ;;  %v15618_v48 = vld [vmem:[#allocation216_spill] sm:$0xff]  ;;  %v4068_v58 = vpop.permute.xlu1 %4067  ;;  %v12198_v37 = vadd.f32 %v3198_v46, %v15620_v54  ;;  %v12201_v53 = vadd.f32 %v3199_v24, %v15622_v50  ;;  %v15625_v3 = vld [vmem:[#allocation18_spill] sm:$0xff]  ;;  %4849 = vperm.xlu0 %6136, %v5209_v30   ;;  %v3059_v46 = vstv %s10875_s1 }
 0x4b6   : > { %15602 = sst [smem:[#allocation98_spill]] %s12157_s27  ;;  %15615 = vst [vmem:[#allocation240_spill] sm:$0xff] %v12188_v41  ;;  %15617 = vst [vmem:[#allocation341_spill] sm:$0xff] %v12191_v0  ;;  %v15626_v15 = vld [vmem:[#allocation19_spill] sm:$0xff]  ;;  %v3044_v0 = vstv %s15613_s0  ;;  %v3203_v51 = vadd.f32 %v3155_v9, %v11722_v14  ;;  %v15628_v4 = vld [vmem:[#allocation217_spill] sm:$0xff]  ;;  %v15705_v41 = vrot.slane %v15704_v13, 1 }
 0x4b7   : > { %15604 = sst [smem:[#allocation99_spill]] %s12160_s25  ;;  %s12179_s25 = spop %5931  ;;  %15621 = vst [vmem:[#allocation330_spill] sm:$0xff] %v12198_v37  ;;  %15623 = vst [vmem:[#allocation332_spill] sm:$0xff] %v12201_v53  ;;  %v15630_v54 = vld [vmem:[#allocation222_spill] sm:$0xff]  ;;  %v15633_v49 = vld [vmem:[#allocation333_spill] sm:$0xff] }
 0x4b8   : > { %s15624_s10 = sld [smem:[#allocation160_spill]]  ;;  %6021 = vpush %v4068_v58  ;;  %v12215_v59 = vadd.f32 %v3200_v33, %v15633_v49  ;;  %v15636_v58 = vld [vmem:[#allocation48_spill] sm:$0xff]  ;;  %v5208_v9 = vld [vmem:[%s15479_s20 + $0x10] ss:$0 sm:$0xff]  ;;  %v5211_v36 = vld [vmem:[%s15479_s20 + $0x13] ss:$0 sm:$0xff] }
 0x4b9   : > { %s15631_s15 = sld [smem:[#allocation162_spill]]  ;;  %6023 = vpush %v4070_v5  ;;  %v15637_v30 = vld [vmem:[#allocation335_spill] sm:$0xff]  ;;  %v15639_v33 = vld [vmem:[#allocation21_spill] sm:$0xff]  ;;  %v4072_v14 = vpop.permute.xlu1 %4071  ;;  %4845 = vperm.xlu1 %6137, %v5208_v9   ;;  %4857 = vperm.xlu0 %6136, %v5211_v36   ;;  %v3062_v36 = vstv %s10894_s13 }
 0x4ba   : > { %v3035_v27 = vstv %s15599_s4  ;;  %s15629_s4 = sld [smem:[#allocation161_spill]]  ;;  %15634 = vst [vmem:[#allocation216_spill] sm:$0xff] %v12215_v59  ;;  %v12229_v5 = vadd.f32 %v3201_v32, %v15637_v30  ;;  %v3159_v49 = vmul.f32 %v3044_v0, %v15639_v33  ;;  %v3056_v59 = vstv %s10867_s16  ;;  %6025 = vpush %v4072_v14  ;;  %v15640_v32 = vld [vmem:[#allocation238_spill] sm:$0xff]  ;;  %v15642_v0 = vld [vmem:[#allocation22_spill] sm:$0xff] }
 0x4bb   : > { %v3038_v16 = vstv %s15600_s6  ;;  %s12195_s6 = spop %5933  ;;  %v3156_v40 = vmul.f32 %v3035_v27, %v15625_v3  ;;  %v12243_v30 = vadd.f32 %v3202_v42, %v15640_v32  ;;  %v15647_v14 = vld [vmem:[#allocation24_spill] sm:$0xff] }
 0x4bc   : > { %15619 = sst [smem:[#allocation100_spill]] %s12195_s6  ;;  %v3157_v18 = vmul.f32 %v3038_v16, %v15626_v15  ;;  %s12207_s8 = spop %5935  ;;  %v15635_v16 = vld [vmem:[#allocation20_spill] sm:$0xff]  ;;  %15638 = vst [vmem:[#allocation331_spill] sm:$0xff] %v12229_v5  ;;  %v4074_v15 = vpop.permute.xlu0 %4073  ;;  %v3207_v9 = vadd.f32 %v3159_v49, %v11771_v26  ;;  %v15655_v26 = vld [vmem:[#allocation242_spill] sm:$0xff] }
 0x4bd   : > { %15627 = sst [smem:[#allocation101_spill]] %s12207_s8  ;;  %s12212_s27 = spop %5937  ;;  %v3158_v27 = vmul.f32 %v3041_v17, %v15635_v16  ;;  %v3204_v53 = vadd.f32 %v3156_v40, %v11725_v63  ;;  %15641 = vst [vmem:[#allocation334_spill] sm:$0xff] %v12243_v30  ;;  %6027 = vpush %v4074_v15  ;;  %v15644_v63 = vld [vmem:[#allocation239_spill] sm:$0xff]  ;;  %v5210_v15 = vld [vmem:[%s15479_s20 + $0x12] ss:$0 sm:$0xff] }
 0x4be   : > { %15632 = sst [smem:[#allocation103_spill]] %s12212_s27  ;;  %v3047_v50 = vstv %s15624_s10  ;;  %s12220_s30 = spop %5939  ;;  %v3205_v16 = vadd.f32 %v3157_v18, %v11765_v47  ;;  %v12251_v47 = vadd.f32 %v3203_v51, %v15644_v63  ;;  %v15646_v18 = vld [vmem:[#allocation23_spill] sm:$0xff]  ;;  %v5213_v51 = vld [vmem:[%s15479_s20 + $0x15] ss:$0 sm:$0xff]  ;;  %v4076_v63 = vpop.permute.xlu1 %4075  ;;  %v15651_v5 = vld [vmem:[#allocation304_spill] sm:$0xff]  ;;  %4853 = vperm.xlu1 %6137, %v5210_v15  }
 0x4bf   : > { %v3053_v24 = vstv %s15631_s15  ;;  %s12235_s10 = spop %5941  ;;  %v3160_v33 = vmul.f32 %v3047_v50, %v15642_v0  ;;  %v3206_v40 = vadd.f32 %v3158_v27, %v11768_v23  ;;  %v15648_v23 = vld [vmem:[#allocation25_spill] sm:$0xff]  ;;  %6029 = vpush %v4076_v63  ;;  %4865 = vperm.xlu0 %6136, %v5213_v51   ;;  %s15676_s27 = sld [smem:[#allocation163_spill]] }
 0x4c0   : > { %v3050_v17 = vstv %s15629_s4  ;;  %s12240_s6 = spop %5943  ;;  %15645 = vst [vmem:[#allocation217_spill] sm:$0xff] %v12251_v47  ;;  %v3162_v32 = vmul.f32 %v3053_v24, %v15647_v14  ;;  %v3163_v27 = vmul.f32 %v3056_v59, %v15648_v23  ;;  %v15649_v24 = vld [vmem:[#allocation342_spill] sm:$0xff]  ;;  %v4078_v50 = vpop.permute.xlu0 %4077  ;;  %v12279_v49 = vadd.f32 %v3205_v16, %v15655_v26  ;;  %v15658_v0 = vld [vmem:[#allocation305_spill] sm:$0xff]  ;;  %v15669_v23 = vld [vmem:[#allocation27_spill] sm:$0xff] }
 0x4c1   : > { %s12248_s8 = spop %5945  ;;  %v3161_v42 = vmul.f32 %v3050_v17, %v15646_v18  ;;  %v15653_v47 = vld [vmem:[#allocation241_spill] sm:$0xff]  ;;  %v3208_v59 = vadd.f32 %v3160_v33, %v11798_v25  ;;  %v15657_v17 = vld [vmem:[#allocation343_spill] sm:$0xff]  ;;  %6031 = vpush %v4078_v50  ;;  %v5212_v25 = vld [vmem:[%s15479_s20 + $0x14] ss:$0 sm:$0xff] }
 0x4c2   : > { %15643 = sst [smem:[#allocation107_spill]] %s12248_s8  ;;  %s12257_s16 = spop %5947  ;;  %v12276_v14 = vadd.f32 %v3204_v53, %v15653_v47  ;;  %15656 = vst [vmem:[#allocation333_spill] sm:$0xff] %v12279_v49  ;;  %v3210_v53 = vadd.f32 %v3162_v32, %v11817_v61  ;;  %v15660_v47 = vld [vmem:[#allocation344_spill] sm:$0xff]  ;;  %v5215_v16 = vld [vmem:[%s15479_s20 + $0x17] ss:$0 sm:$0xff]  ;;  %v3211_v15 = vadd.f32 %v3163_v27, %v11820_v34  ;;  %v4080_v51 = vpop.permute.xlu1 %4079  ;;  %v15667_v18 = vld [vmem:[#allocation246_spill] sm:$0xff]  ;;  %v3165_v49 = vmul.f32 %v3062_v36, %v15669_v23 }
 0x4c3   : > { %s12269_s8 = spop %5949  ;;  %v3209_v63 = vadd.f32 %v3161_v42, %v11814_v12  ;;  %v15662_v33 = vld [vmem:[#allocation243_spill] sm:$0xff]  ;;  %v15664_v12 = vld [vmem:[#allocation26_spill] sm:$0xff]  ;;  %v12307_v30 = vadd.f32 %v3207_v9, %v15667_v18  ;;  %6033 = vpush %v4080_v51  ;;  %4861 = vperm.xlu1 %6137, %v5212_v25   ;;  %4873 = vperm.xlu0 %6136, %v5215_v16   ;;  %v5214_v27 = vld [vmem:[%s15479_s20 + $0x16] ss:$0 sm:$0xff]  ;;  %v3065_v51 = vstv %s10905_s5  ;;  %v3512_v61 = vstv %s12040_s17  ;;  %s15764_s17 = sld [smem:[#allocation170_spill]] }
 0x4c4   : > { %15650 = sst [smem:[#allocation110_spill]] %s12269_s8  ;;  %s12273_s4 = spop %5951  ;;  %15654 = vst [vmem:[#allocation222_spill] sm:$0xff] %v12276_v14  ;;  %v12299_v50 = vadd.f32 %v3206_v40, %v15662_v33  ;;  %v3164_v42 = vmul.f32 %v3059_v46, %v15664_v12  ;;  %v4082_v26 = vpop.permute.xlu0 %4081  ;;  %v15677_v9 = vld [vmem:[#allocation247_spill] sm:$0xff]  ;;  %v5217_v18 = vld [vmem:[%s15479_s20 + $0x19] ss:$0 sm:$0xff]  ;;  %v15684_v16 = vld [vmem:[#allocation248_spill] sm:$0xff]  ;;  %v12350_v12 = vadd.f32 %v3165_v49, %v11853_v52  ;;  %v3488_v52 = vstv %s11921_s7 }
 0x4c5   : > { %15652 = sst [smem:[#allocation111_spill]] %s12273_s4  ;;  %s12285_s15 = spop %5953  ;;  %15668 = vst [vmem:[#allocation335_spill] sm:$0xff] %v12307_v30  ;;  %6035 = vpush %v4082_v26  ;;  %v12321_v36 = vadd.f32 %v3208_v59, %v15677_v9  ;;  %v15682_v26 = vld [vmem:[#allocation249_spill] sm:$0xff]  ;;  %v12337_v59 = vadd.f32 %v3209_v63, %v15684_v16  ;;  %v15686_v9 = vld [vmem:[#allocation322_spill] sm:$0xff]  ;;  %v3068_v46 = vstv %s15676_s27 }
 0x4c6   : > { %15659 = sst [smem:[#allocation112_spill]] %s12285_s15  ;;  %s12290_s1 = spop %5955  ;;  %15663 = vst [vmem:[#allocation48_spill] sm:$0xff] %v12299_v50  ;;  %v12334_v25 = vadd.f32 %v3210_v53, %v15682_v26  ;;  %v12340_v40 = vadd.f32 %v3164_v42, %v15686_v9  ;;  %v4084_v23 = vpop.permute.xlu1 %4083  ;;  %v3657_v42 = vrot.slane %v11925_v11, 1  ;;  %v15693_v49 = vld [vmem:[#allocation28_spill] sm:$0xff]  ;;  %v15695_v11 = vld [vmem:[#allocation361_spill] sm:$0xff]  ;;  %v3506_v50 = vstv %s12009_s29  ;;  %v15702_v33 = vld [vmem:[#allocation70_spill] sm:$0xff] }
 0x4c7   : > { %15661 = sst [smem:[#allocation113_spill]] %s12290_s1  ;;  %s12304_s15 = spop %5957  ;;  %15678 = vst [vmem:[#allocation238_spill] sm:$0xff] %v12321_v36  ;;  %15685 = vst [vmem:[#allocation342_spill] sm:$0xff] %v12337_v59  ;;  %v15687_v36 = vld [vmem:[#allocation244_spill] sm:$0xff]  ;;  %4869 = vperm.xlu1 %6137, %v5214_v27   ;;  %4881 = vperm.xlu0 %6136, %v5217_v18   ;;  %v12364_v9 = vmul.f32 %v3065_v51, %v15693_v49  ;;  %v5219_v27 = vld [vmem:[%s15479_s20 + $0x1b] ss:$0 sm:$0xff]  ;;  %v3482_v18 = vstv %s11886_s23  ;;  %v3497_v59 = vstv %s11966_s19  ;;  %v3500_v49 = vstv %s11984_s26 }
 0x4c8   : > { %15666 = sst [smem:[#allocation116_spill]] %s12304_s15  ;;  %s12313_s4 = spop %5959  ;;  %15683 = vst [vmem:[#allocation239_spill] sm:$0xff] %v12334_v25  ;;  %v4086_v30 = vpop.permute.xlu0 %4085  ;;  %v12347_v3 = vadd.f32 %v3211_v15, %v15687_v36  ;;  %6037 = vpush %v4084_v23  ;;  %v15694_v23 = vld [vmem:[#allocation29_spill] sm:$0xff]  ;;  %v3491_v36 = vstv %s11931_s18  ;;  %v15697_v25 = vrot.slane %v15696_v28, 1  ;;  %v3503_v15 = vstv %s11996_s24  ;;  %v15698_v26 = vld [vmem:[#allocation68_spill] sm:$0xff] }
 0x4c9   : > { %15673 = sst [smem:[#allocation117_spill]] %s12313_s4  ;;  %s12318_s0 = spop %5961  ;;  %6039 = vpush %v4086_v30  ;;  %v12367_v16 = vmul.f32 %v3068_v46, %v15694_v23  ;;  %v5216_v30 = vld [vmem:[%s15479_s20 + $0x18] ss:$0 sm:$0xff]  ;;  %v3494_v23 = vstv %s11947_s28  ;;  %v15699_v63 = vrot.slane %v15698_v26, 1  ;;  %v15703_v20 = vrot.slane %v15702_v33, 1  ;;  %v15706_v26 = vld [vmem:[#allocation72_spill] sm:$0xff] }
 0x4ca   : > { %s12325_s13 = spop %5963  ;;  %15688 = vst [vmem:[#allocation304_spill] sm:$0xff] %v12347_v3  ;;  %v4088_v46 = vpop.permute.xlu1 %4087  ;;  %v5218_v3 = vld [vmem:[%s15479_s20 + $0x1a] ss:$0 sm:$0xff]  ;;  %v3566_v35 = vmul.f32 %v3497_v59, %v15705_v41 }
 0x4cb   : > { %15681 = sst [smem:[#allocation118_spill]] %s12325_s13  ;;  %s12344_s13 = spop %5965  ;;  %6041 = vpush %v4088_v46  ;;  %4877 = vperm.xlu1 %6137, %v5216_v30   ;;  %4889 = vperm.xlu0 %6136, %v5219_v27   ;;  %v3561_v46 = vmul.f32 %v3482_v18, %v15697_v25  ;;  %v5221_v30 = vld [vmem:[%s15479_s20 + $0x1d] ss:$0 sm:$0xff]  ;;  %v12408_v27 = vld [vmem:[%s15415_s14 + $0x170] sm:$0xff]  ;;  %v3563_v28 = vmul.f32 %v3488_v52, %v15699_v63  ;;  %v15707_v63 = vrot.slane %v15706_v26, 1 }
 0x4cc   : > { %s12355_s8 = spop %5967  ;;  %v4090_v51 = vpop.permute.xlu0 %4089  ;;  %v15700_v25 = vld [vmem:[#allocation69_spill] sm:$0xff]  ;;  %v3565_v37 = vmul.f32 %v3494_v23, %v15703_v20  ;;  %v15710_v20 = vld [vmem:[#allocation74_spill] sm:$0xff] }
 0x4cd   : > { %15691 = sst [smem:[#allocation254_spill]] %s12355_s8  ;;  %s12357_s5 = spop %5969  ;;  %6043 = vpush %v4090_v51  ;;  %v15701_v18 = vrot.slane %v15700_v25, 1  ;;  %v3509_v51 = vstv %s12027_s22  ;;  %v3567_v52 = vmul.f32 %v3500_v49, %v15707_v63  ;;  %v15711_v13 = vrot.slane %v15710_v20, 1 }
 0x4ce   : > { %15692 = sst [smem:[#allocation256_spill]] %s12357_s5  ;;  %s12369_s15 = spop %5971  ;;  %v4092_v38 = vpop.permute.xlu1 %4091 }
 0x4cf   : > { %s12380_s8 = spop %5973  ;;  %v3564_v53 = vmul.f32 %v3491_v36, %v15701_v18  ;;  %6045 = vpush %v4092_v38  ;;  %v15708_v36 = vld [vmem:[#allocation73_spill] sm:$0xff]  ;;  %4885 = vperm.xlu1 %6137, %v5218_v3   ;;  %4897 = vperm.xlu0 %6136, %v5221_v30   ;;  %v3569_v41 = vmul.f32 %v3506_v50, %v15711_v13  ;;  %v15713_v38 = vrot.slane %v11957_v19, 1  ;;  %v5223_v3 = vld [vmem:[%s15479_s20 + $0x1f] ss:$0 sm:$0xff]  ;;  %v3515_v50 = vstv %s12052_s11  ;;  %v15717_v30 = vld [vmem:[#allocation76_spill] sm:$0xff]  ;;  %s15779_s5 = sld [smem:[#allocation172_spill]] }
 0x4d0   : > { %s12387_s1 = spop %5975  ;;  %v4094_v34 = vpop.permute.xlu0 %4093  ;;  %v15709_v25 = vrot.slane %v15708_v36, 1  ;;  %v15718_v26 = vrot.slane %v15717_v30, 1 }
 0x4d1   : > { %s12393_s23 = spop %5977  ;;  %6047 = vpush %v4094_v34  ;;  %v15714_v34 = vld [vmem:[#allocation75_spill] sm:$0xff] }
 0x4d2   : > { %s5980_s7 = spop %5979  ;;  %v3568_v18 = vmul.f32 %v3503_v15, %v15709_v25  ;;  %v15715_v15 = vrot.slane %v15714_v34, 1  ;;  %v3571_v63 = vmul.f32 %v3512_v61, %v15718_v26  ;;  %v15720_v25 = vrot.slane %v11973_v2, 1  ;;  %v15723_v61 = vld [vmem:[#allocation77_spill] sm:$0xff] }
 0x4d3   : > { %v3866_v32 = vstv %s5980_s7  ;;  %s12416_s26 = spop %5981  ;;  %4905 = vperm.xlu0 %6136, %v5223_v3   ;;  %s15797_s7 = sld [smem:[#allocation179_spill]] }
 0x4d4   : > { %v3945_v14 = vmul.f32 %v3866_v32, %v3657_v42  ;;  %s5984_s24 = spop %5983  ;;  %v5220_v42 = vld [vmem:[%s15479_s20 + $0x1c] ss:$0 sm:$0xff]  ;;  %v3570_v49 = vmul.f32 %v3509_v51, %v15715_v15  ;;  %v3518_v51 = vstv %s12065_s12  ;;  %v15726_v15 = vrot.slane %v11981_v6, 1 }
 0x4d5   : > { %v3872_v21 = vstv %s5984_s24  ;;  %s5986_s29 = spop %5985  ;;  %4893 = vperm.xlu1 %6137, %v5220_v42   ;;  %v3521_v42 = vstv %s12077_s9  ;;  %s15782_s24 = sld [smem:[#allocation173_spill]] }
 0x4d6   : > { %v12430_v33 = vadd.f32 %v3945_v14, %v3561_v46  ;;  %v3947_v32 = vmul.f32 %v3872_v21, %v15713_v38  ;;  %v3875_v59 = vstv %s5986_s29  ;;  %s5988_s22 = spop %5987  ;;  %v15716_v14 = vrot.slane %v11961_v57, 1  ;;  %v4096_v21 = vpop.permute.xlu1 %4095  ;;  %v4098_v46 = vpop.permute.xlu0 %4097  ;;  %s15785_s29 = sld [smem:[#allocation177_spill]] }
 0x4d7   : > { %v3878_v19 = vstv %s5988_s22  ;;  %s5990_s18 = spop %5989  ;;  %6049 = vpush %v4096_v21  ;;  %v15722_v57 = vrot.slane %v11977_v8, 1  ;;  %v5222_v8 = vld [vmem:[%s15479_s20 + $0x1e] ss:$0 sm:$0xff] }
 0x4d8   : > { %15712 = vst [vmem:[#allocation241_spill] sm:$0xff] %v12430_v33  ;;  %v3948_v23 = vmul.f32 %v3875_v59, %v15716_v14  ;;  %v12447_v36 = vadd.f32 %v3947_v32, %v3563_v28  ;;  %v3949_v20 = vmul.f32 %v3878_v19, %v15720_v25  ;;  %v3881_v13 = vstv %s5990_s18  ;;  %s5992_s28 = spop %5991  ;;  %6051 = vpush %v4098_v46  ;;  %v15729_v46 = vld [vmem:[#allocation78_spill] sm:$0xff]  ;;  %s15739_s18 = sld [smem:[#allocation164_spill]]  ;;  %v15798_v33 = vld [vmem:[#allocation41_spill] sm:$0xff] }
 0x4d9   : > { %v3950_v59 = vmul.f32 %v3881_v13, %v15722_v57  ;;  %v3884_v34 = vstv %s5992_s28  ;;  %s5994_s11 = spop %5993  ;;  %v15724_v28 = vrot.slane %v15723_v61, 1  ;;  %v15730_v30 = vrot.slane %v15729_v46, 1  ;;  %4901 = vperm.xlu1 %6137, %v5222_v8   ;;  %s15769_s28 = sld [smem:[#allocation171_spill]] }
 0x4da   : > { %15719 = vst [vmem:[#allocation242_spill] sm:$0xff] %v12447_v36  ;;  %v12452_v38 = vadd.f32 %v3948_v23, %v3564_v53  ;;  %v12458_v2 = vadd.f32 %v3949_v20, %v3565_v37  ;;  %v3951_v14 = vmul.f32 %v3884_v34, %v15726_v15  ;;  %v3887_v19 = vstv %s5994_s11  ;;  %s5996_s12 = spop %5995  ;;  %v5225_v53 = vld [vmem:[%s15479_s20 + $0x21] ss:$0 sm:$0xff]  ;;  %v4100_v6 = vpop.permute.xlu1 %4099  ;;  %v4102_v21 = vpop.permute.xlu0 %4101  ;;  %s15878_s11 = sld [smem:[#allocation102_spill]] }
 0x4db   : > { %v3572_v32 = vmul.f32 %v3515_v50, %v15724_v28  ;;  %v12469_v3 = vadd.f32 %v3950_v59, %v3566_v35  ;;  %v15728_v50 = vrot.slane %v12000_v29, 1  ;;  %v3890_v23 = vstv %s5996_s12  ;;  %s5998_s22 = spop %5997  ;;  %6053 = vpush %v4100_v6  ;;  %4913 = vperm.xlu0 %6136, %v5225_v53  }
 0x4dc   : > { %15721 = vst [vmem:[#allocation343_spill] sm:$0xff] %v12452_v38  ;;  %15725 = vst [vmem:[#allocation305_spill] sm:$0xff] %v12458_v2  ;;  %v3573_v26 = vmul.f32 %v3518_v51, %v15730_v30  ;;  %v12475_v25 = vadd.f32 %v3951_v14, %v3567_v52  ;;  %v15732_v20 = vrot.slane %v12004_v39, 1  ;;  %v3893_v57 = vstv %s5998_s22  ;;  %s6000_s4 = spop %5999  ;;  %v15735_v51 = vld [vmem:[#allocation7_spill] sm:$0xff]  ;;  %s15786_s22 = sld [smem:[#allocation178_spill]]  ;;  %v15796_v38 = vld [vmem:[#allocation40_spill] sm:$0xff] }
 0x4dd   : > { %15727 = vst [vmem:[#allocation344_spill] sm:$0xff] %v12469_v3  ;;  %v3952_v37 = vmul.f32 %v3887_v19, %v15728_v50  ;;  %v15734_v29 = vrot.slane %v12043_v44, 1  ;;  %v3896_v34 = vstv %s6000_s4  ;;  %s6002_s9 = spop %6001  ;;  %6055 = vpush %v4102_v21  ;;  %v3672_v52 = vrot.slane %v12150_v1, 1  ;;  %v5224_v44 = vld [vmem:[%s15479_s20 + $0x20] ss:$0 sm:$0xff]  ;;  %s15755_s4 = sld [smem:[#allocation166_spill]] }
 0x4de   : > { %15731 = vst [vmem:[#allocation243_spill] sm:$0xff] %v12475_v25  ;;  %v3953_v13 = vmul.f32 %v3890_v23, %v15732_v20  ;;  %v15736_v39 = vrot.slane %v15735_v51, 1  ;;  %v15738_v15 = vrot.slane %v12047_v31, 1  ;;  %v3899_v14 = vstv %s6002_s9  ;;  %s6004_s27 = spop %6003  ;;  %v5227_v19 = vld [vmem:[%s15479_s20 + $0x23] ss:$0 sm:$0xff]  ;;  %v4104_v31 = vpop.permute.xlu1 %4103  ;;  %v4106_v50 = vpop.permute.xlu0 %4105  ;;  %4909 = vperm.xlu1 %6137, %v5224_v44   ;;  %s15759_s9 = sld [smem:[#allocation168_spill]] }
 0x4df   : > { %v12479_v35 = vadd.f32 %v3952_v37, %v3568_v18  ;;  %v3954_v59 = vmul.f32 %v3893_v57, %v15734_v29  ;;  %v3524_v1 = vstv %s12083_s2  ;;  %s6006_s12 = spop %6005  ;;  %v3527_v37 = vstv %s12095_s3  ;;  %6057 = vpush %v4104_v31  ;;  %4921 = vperm.xlu0 %6136, %v5227_v19   ;;  %s15746_s2 = sld [smem:[#allocation165_spill]]  ;;  %v15795_v3 = vld [vmem:[#allocation39_spill] sm:$0xff] }
 0x4e0   : > { %v3574_v61 = vmul.f32 %v3521_v42, %v15736_v39  ;;  %v12486_v28 = vadd.f32 %v3953_v13, %v3569_v41  ;;  %v3955_v18 = vmul.f32 %v3896_v34, %v15738_v15  ;;  %v15741_v41 = vrot.slane %v12061_v62, 1  ;;  %s6008_s19 = spop %6007  ;;  %6059 = vpush %v4106_v50  ;;  %v15751_v39 = vld [vmem:[#allocation230_spill] sm:$0xff] }
 0x4e1   : > { %15733 = vst [vmem:[#allocation246_spill] sm:$0xff] %v12479_v35  ;;  %v12497_v8 = vadd.f32 %v3954_v59, %v3570_v49  ;;  %v3902_v42 = vstv %s6004_s27  ;;  %v15743_v6 = vrot.slane %v12092_v22, 1  ;;  %v3905_v46 = vstv %s6006_s12  ;;  %s6010_s3 = spop %6009  ;;  %s15761_s27 = sld [smem:[#allocation169_spill]]  ;;  %v15794_v35 = vld [vmem:[#allocation38_spill] sm:$0xff] }
 0x4e2   : > { %15737 = vst [vmem:[#allocation247_spill] sm:$0xff] %v12486_v28  ;;  %v3956_v53 = vmul.f32 %v3899_v14, %v15741_v41  ;;  %v12502_v23 = vadd.f32 %v3955_v18, %v3571_v63  ;;  %v3071_v30 = vstv %s15739_s18  ;;  %v15745_v49 = vrot.slane %v15695_v11, 1  ;;  %v15747_v63 = vld [vmem:[#allocation79_spill] sm:$0xff]  ;;  %v15752_v18 = vld [vmem:[#allocation8_spill] sm:$0xff]  ;;  %v4108_v19 = vpop.permute.xlu1 %4107  ;;  %v15756_v41 = vld [vmem:[#allocation312_spill] sm:$0xff]  ;;  %s15799_s18 = sld [smem:[#allocation180_spill]] }
 0x4e3   : > { %15740 = vst [vmem:[#allocation249_spill] sm:$0xff] %v12497_v8  ;;  %v3957_v21 = vmul.f32 %v3902_v42, %v15743_v6  ;;  %v3908_v13 = vstv %s6008_s19  ;;  %v15748_v57 = vrot.slane %v15747_v63, 1  ;;  %v15750_v59 = vrot.slane %v12408_v27, 1  ;;  %v5226_v11 = vld [vmem:[%s15479_s20 + $0x22] ss:$0 sm:$0xff]  ;;  %v15757_v42 = vld [vmem:[#allocation30_spill] sm:$0xff]  ;;  %6061 = vpush %v4108_v19 }
 0x4e4   : > { %15742 = vst [vmem:[#allocation248_spill] sm:$0xff] %v12502_v23  ;;  %v12507_v20 = vadd.f32 %v3956_v53, %v3572_v32  ;;  %v3958_v62 = vmul.f32 %v3905_v46, %v15745_v49  ;;  %v3911_v51 = vstv %s6010_s3  ;;  %v5229_v32 = vld [vmem:[%s15479_s20 + $0x25] ss:$0 sm:$0xff]  ;;  %v3214_v15 = vadd.f32 %v12364_v9, %v15751_v39  ;;  %4917 = vperm.xlu1 %6137, %v5226_v11   ;;  %s15770_s19 = sld [smem:[#allocation174_spill]] }
 0x4e5   : > { %v3575_v29 = vmul.f32 %v3524_v1, %v15748_v57  ;;  %v12513_v22 = vadd.f32 %v3957_v21, %v3573_v26  ;;  %v3959_v34 = vmul.f32 %v3908_v13, %v15750_v59  ;;  %v15753_v14 = vrot.slane %v15752_v18, 1  ;;  %v4110_v1 = vpop.permute.xlu0 %4109  ;;  %4929 = vperm.xlu0 %6136, %v5229_v32   ;;  %v5228_v57 = vld [vmem:[%s15479_s20 + $0x24] ss:$0 sm:$0xff]  ;;  %v15771_v59 = vld [vmem:[#allocation252_spill] sm:$0xff]  ;;  %s15776_s3 = sld [smem:[#allocation176_spill]] }
 0x4e6   : > { %15744 = vst [vmem:[#allocation322_spill] sm:$0xff] %v12507_v20  ;;  %v12527_v26 = vadd.f32 %v3958_v62, %v3574_v61  ;;  %v3960_v27 = vmul.f32 %v3911_v51, %v3672_v52  ;;  %v3215_v53 = vadd.f32 %v12367_v16, %v15756_v41  ;;  %v3168_v31 = vmul.f32 %v3071_v30, %v15757_v42  ;;  %v15765_v52 = vld [vmem:[#allocation245_spill] sm:$0xff]  ;;  %v4112_v39 = vpop.permute.xlu1 %4111  ;;  %v15781_v63 = vld [vmem:[#allocation250_spill] sm:$0xff]  ;;  %v15792_v20 = vld [vmem:[#allocation37_spill] sm:$0xff]  ;;  %s15883_s12 = sld [smem:[#allocation104_spill]] }
 0x4e7   : > { %15749 = vst [vmem:[#allocation244_spill] sm:$0xff] %v12513_v22  ;;  %v3576_v44 = vmul.f32 %v3527_v37, %v15753_v14  ;;  %v3074_v50 = vstv %s15746_s2  ;;  %v12533_v6 = vadd.f32 %v3959_v34, %v3575_v29  ;;  %6063 = vpush %v4110_v1  ;;  %v12541_v16 = vadd.f32 %v12340_v40, %v15765_v52  ;;  %v5231_v29 = vld [vmem:[%s15479_s20 + $0x27] ss:$0 sm:$0xff]  ;;  %s15772_s2 = sld [smem:[#allocation175_spill]]  ;;  %v15775_v14 = vld [vmem:[#allocation338_spill] sm:$0xff] }
 0x4e8   : > { %15754 = vst [vmem:[#allocation361_spill] sm:$0xff] %v12527_v26  ;;  %v3077_v30 = vstv %s15755_s4  ;;  %v12554_v40 = vadd.f32 %v12350_v12, %v15771_v59  ;;  %v15774_v34 = vld [vmem:[#allocation31_spill] sm:$0xff]  ;;  %v3080_v11 = vstv %s15759_s9  ;;  %v3083_v32 = vstv %s15761_s27  ;;  %6065 = vpush %v4112_v39  ;;  %4925 = vperm.xlu1 %6137, %v5228_v57   ;;  %s15834_s4 = sld [smem:[#allocation192_spill]] }
 0x4e9   : > { %15758 = vst [vmem:[#allocation66_spill] sm:$0xff] %v12533_v6  ;;  %v12537_v46 = vadd.f32 %v3960_v27, %v3576_v44  ;;  %15766 = vst [vmem:[#allocation69_spill] sm:$0xff] %v12541_v16  ;;  %v3169_v51 = vmul.f32 %v3074_v50, %v15774_v34  ;;  %v4114_v18 = vpop.permute.xlu0 %4113  ;;  %v12560_v44 = vadd.f32 %v3214_v15, %v15775_v14  ;;  %v15778_v27 = vld [vmem:[#allocation346_spill] sm:$0xff]  ;;  %v3086_v1 = vstv %s15764_s17  ;;  %v15784_v50 = vld [vmem:[#allocation32_spill] sm:$0xff]  ;;  %s15836_s9 = sld [smem:[#allocation181_spill]] }
 0x4ea   : > { %15773 = vst [vmem:[#allocation70_spill] sm:$0xff] %v12554_v40  ;;  %v3216_v19 = vadd.f32 %v3168_v31, %v15778_v27  ;;  %v12566_v12 = vadd.f32 %v3215_v53, %v15781_v63  ;;  %v3170_v59 = vmul.f32 %v3077_v30, %v15784_v50  ;;  %v3089_v62 = vstv %s15769_s28  ;;  %6067 = vpush %v4114_v18  ;;  %v15787_v15 = vld [vmem:[#allocation33_spill] sm:$0xff]  ;;  %v15788_v14 = vld [vmem:[#allocation34_spill] sm:$0xff]  ;;  %s15839_s27 = sld [smem:[#allocation193_spill]] }
 0x4eb   : > { %15763 = vst [vmem:[#allocation68_spill] sm:$0xff] %v12537_v46  ;;  %15777 = vst [vmem:[#allocation71_spill] sm:$0xff] %v12560_v44  ;;  %v3092_v61 = vstv %s15770_s19  ;;  %4937 = vperm.xlu0 %6136, %v5231_v29   ;;  %v3171_v31 = vmul.f32 %v3080_v11, %v15787_v15  ;;  %v3172_v27 = vmul.f32 %v3083_v32, %v15788_v14  ;;  %v3098_v52 = vstv %s15776_s3  ;;  %v5230_v53 = vld [vmem:[%s15479_s20 + $0x26] ss:$0 sm:$0xff]  ;;  %v5233_v30 = vld [vmem:[%s15479_s20 + $0x29] ss:$0 sm:$0xff]  ;;  %v4116_v29 = vpop.permute.xlu1 %4115 }
 0x4ec   : > { %15783 = vst [vmem:[#allocation72_spill] sm:$0xff] %v12566_v12  ;;  %v3101_v39 = vstv %s15779_s5  ;;  %v15789_v63 = vld [vmem:[#allocation35_spill] sm:$0xff]  ;;  %v3104_v46 = vstv %s15782_s24  ;;  %v3107_v18 = vstv %s15785_s29  ;;  %v3110_v57 = vstv %s15786_s22  ;;  %v15790_v11 = vld [vmem:[#allocation324_spill] sm:$0xff]  ;;  %v15791_v32 = vld [vmem:[#allocation36_spill] sm:$0xff]  ;;  %4933 = vperm.xlu1 %6137, %v5230_v53   ;;  %s15820_s29 = sld [smem:[#allocation190_spill]] }
 0x4ed   : > { %v3095_v21 = vstv %s15772_s2  ;;  %v3173_v6 = vmul.f32 %v3086_v1, %v15789_v63  ;;  %v4118_v22 = vpop.permute.xlu0 %4117  ;;  %v3217_v26 = vadd.f32 %v3169_v51, %v15790_v11  ;;  %v3174_v23 = vmul.f32 %v3089_v62, %v15791_v32  ;;  %6069 = vpush %v4116_v29  ;;  %v15800_v11 = vld [vmem:[#allocation42_spill] sm:$0xff]  ;;  %v15801_v13 = vld [vmem:[#allocation43_spill] sm:$0xff]  ;;  %v5232_v29 = vld [vmem:[%s15479_s20 + $0x28] ss:$0 sm:$0xff]  ;;  %s15832_s22 = sld [smem:[#allocation191_spill]] }
 0x4ee   : > { %v3175_v28 = vmul.f32 %v3092_v61, %v15792_v20  ;;  %v3176_v2 = vmul.f32 %v3095_v21, %v15794_v35  ;;  %v3177_v36 = vmul.f32 %v3098_v52, %v15795_v3  ;;  %v3178_v1 = vmul.f32 %v3101_v39, %v15796_v38  ;;  %6071 = vpush %v4118_v22  ;;  %v5235_v21 = vld [vmem:[%s15479_s20 + $0x2b] ss:$0 sm:$0xff]  ;;  %v15802_v52 = vld [vmem:[#allocation339_spill] sm:$0xff]  ;;  %v15804_v39 = vld [vmem:[#allocation350_spill] sm:$0xff]  ;;  %s15842_s17 = sld [smem:[#allocation194_spill]] }
 0x4ef   : > { %4945 = vperm.xlu0 %6136, %v5233_v30   ;;  %v3179_v51 = vmul.f32 %v3104_v46, %v15798_v33  ;;  %v3180_v62 = vmul.f32 %v3107_v18, %v15800_v11  ;;  %v3181_v61 = vmul.f32 %v3110_v57, %v15801_v13  ;;  %v12603_v22 = vadd.f32 %v3216_v19, %v15802_v52  ;;  %v15805_v30 = vld [vmem:[#allocation326_spill] sm:$0xff]  ;;  %v15806_v46 = vld [vmem:[#allocation318_spill] sm:$0xff]  ;;  %v4120_v57 = vpop.permute.xlu1 %4119  ;;  %v15810_v12 = vld [vmem:[#allocation232_spill] sm:$0xff]  ;;  %s15846_s19 = sld [smem:[#allocation196_spill]] }
 0x4f0   : > { %v3218_v53 = vadd.f32 %v3170_v59, %v15804_v39  ;;  %v3219_v25 = vadd.f32 %v3171_v31, %v15805_v30  ;;  %v3220_v33 = vadd.f32 %v3172_v27, %v15806_v46  ;;  %v15807_v18 = vld [vmem:[#allocation354_spill] sm:$0xff]  ;;  %v15808_v3 = vld [vmem:[#allocation356_spill] sm:$0xff]  ;;  %v3113_v35 = vstv %s15797_s7  ;;  %6073 = vpush %v4120_v57  ;;  %v15811_v52 = vld [vmem:[#allocation319_spill] sm:$0xff]  ;;  %4941 = vperm.xlu1 %6137, %v5232_v29   ;;  %s15844_s7 = sld [smem:[#allocation195_spill]] }
 0x4f1   : > { %15803 = vst [vmem:[#allocation73_spill] sm:$0xff] %v12603_v22  ;;  %v3221_v11 = vadd.f32 %v3173_v6, %v15807_v18  ;;  %v4122_v13 = vpop.permute.xlu0 %4121  ;;  %v3222_v38 = vadd.f32 %v3174_v23, %v15808_v3  ;;  %v15809_v20 = vld [vmem:[#allocation231_spill] sm:$0xff]  ;;  %v3116_v63 = vstv %s15799_s18  ;;  %v3224_v19 = vadd.f32 %v3176_v2, %v15810_v12  ;;  %v15812_v59 = vld [vmem:[#allocation233_spill] sm:$0xff]  ;;  %v15813_v31 = vld [vmem:[#allocation327_spill] sm:$0xff]  ;;  %s15849_s2 = sld [smem:[#allocation197_spill]] }
 0x4f2   : > { %v3223_v8 = vadd.f32 %v3175_v28, %v15809_v20  ;;  %v3225_v41 = vadd.f32 %v3177_v36, %v15811_v52  ;;  %v3226_v39 = vadd.f32 %v3178_v1, %v15812_v59  ;;  %6075 = vpush %v4122_v13  ;;  %v3227_v6 = vadd.f32 %v3179_v51, %v15813_v31  ;;  %v15814_v27 = vld [vmem:[#allocation357_spill] sm:$0xff]  ;;  %v15815_v46 = vld [vmem:[#allocation358_spill] sm:$0xff]  ;;  %v5234_v28 = vld [vmem:[%s15479_s20 + $0x2a] ss:$0 sm:$0xff]  ;;  %s15852_s3 = sld [smem:[#allocation198_spill]] }
 0x4f3   : > { %4953 = vperm.xlu0 %6136, %v5235_v21   ;;  %v3228_v30 = vadd.f32 %v3180_v62, %v15814_v27  ;;  %v3229_v3 = vadd.f32 %v3181_v61, %v15815_v46  ;;  %v5237_v2 = vld [vmem:[%s15479_s20 + $0x2d] ss:$0 sm:$0xff]  ;;  %v15816_v36 = vld [vmem:[#allocation253_spill] sm:$0xff]  ;;  %v4124_v51 = vpop.permute.xlu1 %4123  ;;  %v15825_v57 = vld [vmem:[#allocation255_spill] sm:$0xff]  ;;  %s15858_s5 = sld [smem:[#allocation199_spill]] }
 0x4f4   : > { %v12626_v23 = vadd.f32 %v3217_v26, %v15816_v36  ;;  %v15818_v20 = vld [vmem:[#allocation44_spill] sm:$0xff]  ;;  %v15819_v12 = vld [vmem:[#allocation82_spill] sm:$0xff]  ;;  %6077 = vpush %v4124_v51  ;;  %v12637_v52 = vadd.f32 %v3220_v33, %v15825_v57  ;;  %v15829_v31 = vld [vmem:[#allocation259_spill] sm:$0xff]  ;;  %4949 = vperm.xlu1 %6137, %v5234_v28   ;;  %v3386_v36 = vstv %s15820_s29  ;;  %s15859_s24 = sld [smem:[#allocation200_spill]] }
 0x4f5   : > { %v3182_v13 = vmul.f32 %v3113_v35, %v15818_v20  ;;  %v3183_v1 = vmul.f32 %v3116_v63, %v15819_v12  ;;  %v4126_v62 = vpop.permute.xlu0 %4125  ;;  %v15821_v29 = vld [vmem:[#allocation251_spill] sm:$0xff]  ;;  %v15827_v59 = vld [vmem:[#allocation264_spill] sm:$0xff]  ;;  %v12643_v35 = vadd.f32 %v3221_v11, %v15829_v31  ;;  %v15831_v63 = vld [vmem:[#allocation265_spill] sm:$0xff]  ;;  %v3389_v31 = vstv %s15832_s22  ;;  %s15862_s29 = sld [smem:[#allocation201_spill]] }
 0x4f6   : > { %15817 = vst [vmem:[#allocation74_spill] sm:$0xff] %v12626_v23  ;;  %v12631_v61 = vadd.f32 %v3218_v53, %v15821_v29  ;;  %v15823_v21 = vld [vmem:[#allocation258_spill] sm:$0xff]  ;;  %15826 = vst [vmem:[#allocation77_spill] sm:$0xff] %v12637_v52  ;;  %v12640_v26 = vadd.f32 %v3222_v38, %v15827_v59  ;;  %v12646_v27 = vadd.f32 %v3223_v8, %v15831_v63  ;;  %v15838_v33 = vld [vmem:[#allocation274_spill] sm:$0xff]  ;;  %v3392_v63 = vstv %s15834_s4  ;;  %s15863_s22 = sld [smem:[#allocation202_spill]] }
 0x4f7   : > { %v12634_v18 = vadd.f32 %v3219_v25, %v15823_v21  ;;  %15830 = vst [vmem:[#allocation7_spill] sm:$0xff] %v12643_v35  ;;  %6079 = vpush %v4126_v62  ;;  %4961 = vperm.xlu0 %6136, %v5237_v2   ;;  %v15835_v25 = vld [vmem:[#allocation270_spill] sm:$0xff]  ;;  %v12652_v46 = vadd.f32 %v3226_v39, %v15838_v33  ;;  %v15841_v38 = vld [vmem:[#allocation271_spill] sm:$0xff]  ;;  %s15868_s4 = sld [smem:[#allocation203_spill]] }
 0x4f8   : > { %15822 = vst [vmem:[#allocation75_spill] sm:$0xff] %v12631_v61  ;;  %15828 = vst [vmem:[#allocation78_spill] sm:$0xff] %v12640_v26  ;;  %v12649_v53 = vadd.f32 %v3224_v19, %v15835_v25  ;;  %v12655_v11 = vadd.f32 %v3225_v41, %v15841_v38  ;;  %v5236_v8 = vld [vmem:[%s15479_s20 + $0x2c] ss:$0 sm:$0xff]  ;;  %v5239_v28 = vld [vmem:[%s15479_s20 + $0x2f] ss:$0 sm:$0xff]  ;;  %v4128_v25 = vpop.permute.xlu1 %4127  ;;  %v3395_v38 = vstv %s15839_s27 }
 0x4f9   : > { %15824 = vst [vmem:[#allocation76_spill] sm:$0xff] %v12634_v18  ;;  %15833 = vst [vmem:[#allocation79_spill] sm:$0xff] %v12646_v27  ;;  %v15845_v19 = vld [vmem:[#allocation275_spill] sm:$0xff]  ;;  %v15848_v39 = vld [vmem:[#allocation279_spill] sm:$0xff]  ;;  %4957 = vperm.xlu1 %6137, %v5236_v8   ;;  %s15876_s18 = sld [smem:[#allocation205_spill]] }
 0x4fa   : > { %15837 = vst [vmem:[#allocation230_spill] sm:$0xff] %v12649_v53  ;;  %15840 = vst [vmem:[#allocation8_spill] sm:$0xff] %v12652_v46  ;;  %v12665_v2 = vadd.f32 %v3228_v30, %v15845_v19  ;;  %v12668_v51 = vadd.f32 %v3227_v6, %v15848_v39  ;;  %v15851_v41 = vld [vmem:[#allocation280_spill] sm:$0xff]  ;;  %v15854_v29 = vld [vmem:[#allocation359_spill] sm:$0xff]  ;;  %v4130_v30 = vpop.permute.xlu0 %4129  ;;  %v3398_v6 = vstv %s15842_s17  ;;  %v3401_v19 = vstv %s15844_s7  ;;  %s15869_s7 = sld [smem:[#allocation204_spill]] }
 0x4fb   : > { %15843 = vst [vmem:[#allocation312_spill] sm:$0xff] %v12655_v11  ;;  %v12671_v62 = vadd.f32 %v3229_v3, %v15851_v41  ;;  %v12674_v21 = vadd.f32 %v3182_v13, %v15854_v29  ;;  %v15856_v57 = vld [vmem:[#allocation360_spill] sm:$0xff]  ;;  %6081 = vpush %v4128_v25  ;;  %v3404_v13 = vstv %s15846_s19  ;;  %v3407_v29 = vstv %s15849_s2  ;;  %4969 = vperm.xlu0 %6136, %v5239_v28   ;;  %v15866_v33 = vld [vmem:[#allocation209_spill] sm:$0xff]  ;;  %s15877_s28 = sld [smem:[#allocation206_spill]] }
 0x4fc   : > { %15847 = vst [vmem:[#allocation30_spill] sm:$0xff] %v12665_v2  ;;  %15850 = vst [vmem:[#allocation245_spill] sm:$0xff] %v12668_v51  ;;  %v12677_v59 = vadd.f32 %v3183_v1, %v15856_v57  ;;  %v15860_v39 = vld [vmem:[#allocation207_spill] sm:$0xff]  ;;  %v3410_v1 = vstv %s15852_s3  ;;  %v15864_v57 = vld [vmem:[#allocation208_spill] sm:$0xff]  ;;  %v15867_v2 = vrot.slane %v15866_v33, 1  ;;  %v3413_v25 = vstv %s15858_s5  ;;  %v4132_v11 = vpop.permute.xlu1 %4131  ;;  %s15886_s19 = sld [smem:[#allocation105_spill]] }
 0x4fd   : > { %15853 = vst [vmem:[#allocation252_spill] sm:$0xff] %v12671_v62  ;;  %15855 = vst [vmem:[#allocation338_spill] sm:$0xff] %v12674_v21  ;;  %v15861_v3 = vrot.slane %v15860_v39, 1  ;;  %v15865_v62 = vrot.slane %v15864_v57, 1  ;;  %v3416_v39 = vstv %s15859_s24  ;;  %v15872_v28 = vld [vmem:[#allocation211_spill] sm:$0xff]  ;;  %v15879_v27 = vld [vmem:[#allocation213_spill] sm:$0xff] }
 0x4fe   : > { %15857 = vst [vmem:[#allocation346_spill] sm:$0xff] %v12677_v59  ;;  %6083 = vpush %v4130_v30  ;;  %v12698_v12 = vmul.f32 %v3392_v63, %v15867_v2  ;;  %v15870_v30 = vld [vmem:[#allocation210_spill] sm:$0xff]  ;;  %v15873_v57 = vrot.slane %v15872_v28, 1  ;;  %v3419_v63 = vstv %s15862_s29  ;;  %v4134_v46 = vpop.permute.xlu0 %4133  ;;  %v15880_v20 = vrot.slane %v15879_v27, 1  ;;  %s15887_s2 = sld [smem:[#allocation106_spill]]  ;;  %v15890_v27 = vld [vmem:[#allocation219_spill] sm:$0xff] }
 0x4ff   : > { %v12687_v41 = vmul.f32 %v3386_v36, %v15861_v3  ;;  %v12694_v51 = vmul.f32 %v3389_v31, %v15865_v62  ;;  %v5238_v36 = vld [vmem:[%s15479_s20 + $0x2e] ss:$0 sm:$0xff]  ;;  %v15871_v8 = vrot.slane %v15870_v30, 1  ;;  %v15874_v31 = vld [vmem:[#allocation212_spill] sm:$0xff]  ;;  %6085 = vpush %v4132_v11  ;;  %s15892_s3 = sld [smem:[#allocation108_spill]]  ;;  %v15908_v61 = vld [vmem:[#allocation50_spill] sm:$0xff] }
 0x500   : > { %v12711_v62 = vmul.f32 %v3398_v6, %v15873_v57  ;;  %v15875_v33 = vrot.slane %v15874_v31, 1  ;;  %v12720_v53 = vmul.f32 %v3404_v13, %v15880_v20  ;;  %v15884_v6 = vld [vmem:[#allocation215_spill] sm:$0xff]  ;;  %v3422_v57 = vstv %s15863_s22  ;;  %v15888_v31 = vld [vmem:[#allocation218_spill] sm:$0xff]  ;;  %s15893_s5 = sld [smem:[#allocation109_spill]]  ;;  %6087 = vpush %v4134_v46  ;;  %4965 = vperm.xlu1 %6137, %v5238_v36   ;;  %v4136_v21 = vpop.permute.xlu1 %4135 }
 0x501   : > { %v12707_v3 = vmul.f32 %v3395_v38, %v15871_v8  ;;  %v15881_v38 = vld [vmem:[#allocation214_spill] sm:$0xff]  ;;  %v15885_v28 = vrot.slane %v15884_v6, 1  ;;  %v15891_v20 = vrot.slane %v15890_v27, 1  ;;  %v3434_v11 = vstv %s15877_s28  ;;  %s15896_s24 = sld [smem:[#allocation114_spill]]  ;;  %6089 = vpush %v4136_v21 }
 0x502   : > { %v12715_v2 = vmul.f32 %v3401_v19, %v15875_v33  ;;  %v15882_v30 = vrot.slane %v15881_v38, 1  ;;  %v15889_v33 = vrot.slane %v15888_v31, 1  ;;  %v3425_v38 = vstv %s15868_s4  ;;  %s15899_s29 = sld [smem:[#allocation115_spill]]  ;;  %v4138_v26 = vpop.permute.xlu0 %4137  ;;  %v15900_v46 = vld [vmem:[#allocation167_spill] sm:$0xff] }
 0x503   : > { %v12728_v19 = vmul.f32 %v3410_v1, %v15885_v28  ;;  %v12737_v13 = vmul.f32 %v3416_v39, %v15891_v20  ;;  %v3431_v28 = vstv %s15876_s18  ;;  %v3437_v31 = vstv %s15878_s11  ;;  %s15904_s22 = sld [smem:[#allocation119_spill]]  ;;  %6091 = vpush %v4138_v26  ;;  %v15926_v26 = vld [vmem:[#allocation56_spill] sm:$0xff]  ;;  %v15935_v44 = vld [vmem:[#allocation59_spill] sm:$0xff] }
 0x504   : > { %v12724_v8 = vmul.f32 %v3407_v29, %v15882_v30  ;;  %v12733_v59 = vmul.f32 %v3413_v25, %v15889_v33  ;;  %v3428_v29 = vstv %s15869_s7  ;;  %v15894_v30 = vld [vmem:[#allocation220_spill] sm:$0xff]  ;;  %v15897_v25 = vld [vmem:[#allocation46_spill] sm:$0xff]  ;;  %v3440_v39 = vstv %s15883_s12  ;;  %s15905_s4 = sld [smem:[#allocation93_spill]] }
 0x505   : > { %v15895_v1 = vrot.slane %v15894_v30, 1  ;;  %v15898_v33 = vrot.slane %v15897_v25, 1  ;;  %v3443_v27 = vstv %s15886_s19  ;;  %v3446_v20 = vstv %s15887_s2  ;;  %s15910_s27 = sld [smem:[#allocation120_spill]] }
 0x506   : > { %v15901_v36 = vrot.slane %v15900_v46, 1  ;;  %v3449_v52 = vstv %s15892_s3  ;;  %v3452_v25 = vstv %s15893_s5  ;;  %v15909_v32 = vrot.slane %v15908_v61, 1  ;;  %s15913_s17 = sld [smem:[#allocation121_spill]]  ;;  %v15920_v61 = vld [vmem:[#allocation54_spill] sm:$0xff] }
 0x507   : > { %v12743_v6 = vmul.f32 %v3419_v63, %v15895_v1  ;;  %v12750_v35 = vmul.f32 %v3422_v57, %v15898_v33  ;;  %v15902_v63 = vld [vmem:[#allocation47_spill] sm:$0xff]  ;;  %v15906_v57 = vld [vmem:[#allocation49_spill] sm:$0xff]  ;;  %s15914_s7 = sld [smem:[#allocation94_spill]]  ;;  %v15936_v34 = vrot.slane %v15935_v44, 1 }
 0x508   : > { %v12757_v18 = vmul.f32 %v3425_v38, %v15901_v36  ;;  %v15903_v30 = vrot.slane %v15902_v63, 1  ;;  %v15907_v33 = vrot.slane %v15906_v57, 1  ;;  %v12771_v22 = vmul.f32 %v3434_v11, %v15909_v32  ;;  %v15911_v38 = vld [vmem:[#allocation51_spill] sm:$0xff]  ;;  %v15915_v63 = vld [vmem:[#allocation52_spill] sm:$0xff]  ;;  %v15917_v57 = vld [vmem:[#allocation53_spill] sm:$0xff]  ;;  %s15919_s18 = sld [smem:[#allocation122_spill]] }
 0x509   : > { %v15912_v46 = vrot.slane %v15911_v38, 1  ;;  %v15921_v32 = vrot.slane %v15920_v61, 1  ;;  %s15922_s28 = sld [smem:[#allocation123_spill]]  ;;  %v15924_v38 = vld [vmem:[#allocation55_spill] sm:$0xff]  ;;  %v15930_v61 = vld [vmem:[#allocation57_spill] sm:$0xff] }
 0x50a   : > { %v12761_v1 = vmul.f32 %v3428_v29, %v15903_v30  ;;  %v12767_v23 = vmul.f32 %v3431_v28, %v15907_v33  ;;  %v3455_v29 = vstv %s15896_s24  ;;  %v15916_v30 = vrot.slane %v15915_v63, 1  ;;  %s15923_s11 = sld [smem:[#allocation124_spill]]  ;;  %s12823_s24 = spop %6011 }
 0x50b   : > { %v12775_v36 = vmul.f32 %v3437_v31, %v15912_v46  ;;  %v15918_v28 = vrot.slane %v15917_v57, 1  ;;  %v12788_v11 = vmul.f32 %v3446_v20, %v15921_v32  ;;  %v3458_v31 = vstv %s15899_s29  ;;  %s15928_s12 = sld [smem:[#allocation95_spill]]  ;;  %s12836_s29 = spop %6013 }
 0x50c   : > { %v12780_v21 = vmul.f32 %v3440_v39, %v15916_v30  ;;  %v15925_v46 = vrot.slane %v15924_v38, 1  ;;  %v15927_v63 = vrot.slane %v15926_v26, 1  ;;  %v3461_v30 = vstv %s15904_s22  ;;  %s15929_s19 = sld [smem:[#allocation96_spill]] }
 0x50d   : > { %v12784_v33 = vmul.f32 %v3443_v27, %v15918_v28  ;;  %v3770_v57 = vstv %s15905_s4  ;;  %v4140_v27 = vpop.permute.xlu1 %4139  ;;  %v4142_v28 = vpop.permute.xlu0 %4141  ;;  %v15931_v40 = vrot.slane %v15930_v61, 1  ;;  %v3464_v32 = vstv %s15910_s27  ;;  %s15932_s2 = sld [smem:[#allocation91_spill]] }
 0x50e   : > { %v12793_v15 = vmul.f32 %v3449_v52, %v15925_v46  ;;  %v12797_v39 = vmul.f32 %v3452_v25, %v15927_v63  ;;  %v3467_v49 = vstv %s15913_s17  ;;  %v3773_v38 = vstv %s15914_s7  ;;  %6093 = vpush %v4140_v27  ;;  %v15933_v52 = vld [vmem:[#allocation58_spill] sm:$0xff]  ;;  %s15937_s3 = sld [smem:[#allocation97_spill]]  ;;  %v15940_v27 = vld [vmem:[#allocation60_spill] sm:$0xff]  ;;  %s12857_s17 = spop %6015 }
 0x50f   : > { %v12803_v20 = vmul.f32 %v3455_v29, %v15931_v40  ;;  %v15934_v46 = vrot.slane %v15933_v52, 1  ;;  %v3470_v25 = vstv %s15919_s18  ;;  %v3473_v63 = vstv %s15922_s28  ;;  %6095 = vpush %v4142_v28  ;;  %s15939_s5 = sld [smem:[#allocation98_spill]]  ;;  %s12867_s7 = spop %6017 }
 0x510   : > { %v3476_v14 = vstv %s15923_s11  ;;  %v12817_v37 = vmul.f32 %v3461_v30, %v15936_v34  ;;  %v15938_v40 = vrot.slane %v15612_v45, 1  ;;  %v15946_v34 = vrot.slane %v15618_v48, 1  ;;  %s15947_s22 = sld [smem:[#allocation92_spill]] }
 0x511   : > { %v12810_v26 = vmul.f32 %v3458_v31, %v15934_v46  ;;  %v3776_v61 = vstv %s15928_s12  ;;  %v15941_v31 = vrot.slane %v15940_v27, 1  ;;  %v15943_v46 = vld [vmem:[#allocation61_spill] sm:$0xff]  ;;  %v4144_v45 = vpop.permute.xlu1 %4143  ;;  %s15950_s4 = sld [smem:[#allocation99_spill]] }
 0x512   : > { %v3913_v29 = vmul.f32 %v3770_v57, %v15938_v40  ;;  %v3779_v9 = vstv %s15929_s19  ;;  %v15944_v28 = vrot.slane %v15943_v46, 1  ;;  %v3914_v30 = vmul.f32 %v3773_v38, %v15946_v34  ;;  %v4146_v57 = vpop.permute.xlu0 %4145  ;;  %v15948_v40 = vld [vmem:[#allocation62_spill] sm:$0xff]  ;;  %6097 = vpush %v4144_v45  ;;  %s15958_s27 = sld [smem:[#allocation100_spill]] }
 0x513   : > { %v12827_v52 = vmul.f32 %v3464_v32, %v15941_v31  ;;  %v3479_v44 = vstv %s15932_s2  ;;  %v15949_v16 = vrot.slane %v15948_v40, 1  ;;  %v15951_v32 = vld [vmem:[#allocation63_spill] sm:$0xff]  ;;  %v15956_v38 = vrot.slane %v15628_v4, 1  ;;  %6099 = vpush %v4146_v57  ;;  %s15963_s18 = sld [smem:[#allocation101_spill]] }
 0x514   : > { %v12831_v50 = vmul.f32 %v3467_v49, %v15944_v28  ;;  %v15952_v31 = vrot.slane %v15951_v32, 1  ;;  %v15953_v49 = vld [vmem:[#allocation64_spill] sm:$0xff]  ;;  %v3782_v48 = vstv %s15937_s3  ;;  %v15957_v40 = vrot.slane %v15630_v54, 1  ;;  %s15964_s28 = sld [smem:[#allocation103_spill]] }
 0x515   : > { %15942 = vst [vmem:[#allocation250_spill] sm:$0xff] %v12827_v52  ;;  %v12840_v27 = vmul.f32 %v3470_v25, %v15949_v16  ;;  %v15954_v46 = vrot.slane %v15953_v49, 1  ;;  %v3915_v34 = vmul.f32 %v3776_v61, %v15956_v38  ;;  %v3785_v16 = vstv %s15939_s5  ;;  %v4148_v38 = vpop.permute.xlu1 %4147  ;;  %s15979_s12 = sld [smem:[#allocation107_spill]] }
 0x516   : > { %15945 = vst [vmem:[#allocation324_spill] sm:$0xff] %v12831_v50  ;;  %v12844_v52 = vmul.f32 %v3473_v63, %v15952_v31  ;;  %v3916_v50 = vmul.f32 %v3779_v9, %v15957_v40  ;;  %v4154_v25 = vstv %s12823_s24  ;;  %v15959_v63 = vld [vmem:[#allocation308_spill] sm:$0xff]  ;;  %v3961_v4 = vadd.f32 %v3913_v29, %v12687_v41  ;;  %v4150_v40 = vpop.permute.xlu0 %4149  ;;  %v15966_v41 = vld [vmem:[#allocation9_spill] sm:$0xff]  ;;  %6101 = vpush %v4148_v38  ;;  %s15989_s2 = sld [smem:[#allocation110_spill]] }
 0x517   : > { %v12848_v28 = vmul.f32 %v3476_v14, %v15954_v46  ;;  %vm4393_vm4 = vcmp.le.s32.totalorder %v15959_v63, 6  ;;  %v15960_v14 = vld [vmem:[#allocation65_spill] sm:$0xff]  ;;  %v3788_v61 = vstv %s15950_s4  ;;  %v3962_v54 = vadd.f32 %v3914_v30, %v12694_v51  ;;  %6103 = vpush %v4150_v40 }
 0x518   : > { %v15961_v32 = vrot.slane %v15960_v14, 1  ;;  %v15962_v9 = vrot.slane %v15636_v58, 1  ;;  %v3791_v57 = vstv %s12175_s21  ;;  %v3794_v46 = vstv %s12179_s25  ;;  %s12885_s25 = spop %6019 }
 0x519   : > { %15955 = vst [vmem:[#allocation339_spill] sm:$0xff] %v12848_v28  ;;  %v15967_v29 = vrot.slane %v15966_v41, 1  ;;  %v4157_v28 = vstv %s12836_s29  ;;  %v3963_v51 = vadd.f32 %v3915_v34, %v12698_v12  ;;  %v3964_v58 = vadd.f32 %v3916_v50, %v12707_v3  ;;  %s6022_s21 = spop %6021  ;;  %v15972_v34 = vld [vmem:[#allocation10_spill] sm:$0xff]  ;;  %v4152_v40 = vpop.permute.xlu1 %4151 }
 0x51a   : > { %v12862_v31 = vmul.f32 %v3479_v44, %v15961_v32  ;;  %v3917_v49 = vmul.f32 %v3782_v48, %v15962_v9  ;;  %v15965_v44 = vrot.slane %v11602_v56, 1  ;;  %v3797_v32 = vstv %s15958_s27  ;;  %6105 = vpush %v4152_v40 }
 0x51b   : > { %v4297_v45 = vmul.f32 %v4154_v25, %v15967_v29  ;;  %v15968_v30 = vrot.slane %v11610_v7, 1  ;;  %v4163_v9 = vstv %s12867_s7  ;;  %v15969_v56 = vrot.slane %v11614_v60, 1 }
 0x51c   : > { %v3918_v14 = vmul.f32 %v3785_v16, %v15965_v44  ;;  %v15970_v25 = vrot.slane %v11636_v10, 1  ;;  %v3800_v41 = vstv %s15963_s18  ;;  %v3803_v38 = vstv %s15964_s28  ;;  %s16010_s28 = sld [smem:[#allocation112_spill]] }
 0x51d   : > { %v3919_v48 = vmul.f32 %v3788_v61, %v15968_v30  ;;  %v3920_v16 = vmul.f32 %v3791_v57, %v15969_v56  ;;  %v3965_v12 = vadd.f32 %v3917_v49, %v12711_v62  ;;  %v15971_v50 = vrot.slane %v11649_v55, 1 }
 0x51e   : > { %v3921_v44 = vmul.f32 %v3794_v46, %v15970_v25  ;;  %v3806_v3 = vstv %s12220_s30  ;;  %v15973_v61 = vrot.slane %v15972_v34, 1  ;;  %v3966_v60 = vadd.f32 %v3918_v14, %v12715_v2  ;;  %v15974_v46 = vld [vmem:[#allocation11_spill] sm:$0xff]  ;;  %s12910_s30 = spop %6023 }
 0x51f   : > { %v3922_v7 = vmul.f32 %v3797_v32, %v15971_v50  ;;  %v4345_v57 = vadd.f32 %v4297_v45, %v3961_v4  ;;  %v4160_v10 = vstv %s12857_s17  ;;  %v15975_v30 = vrot.slane %v15974_v46, 1  ;;  %s6026_s11 = spop %6025  ;;  %s16002_s17 = sld [smem:[#allocation111_spill]] }
 0x520   : > { %v4298_v29 = vmul.f32 %v4157_v28, %v15973_v61  ;;  %v12904_v55 = vadd.f32 %v3919_v48, %v12720_v53  ;;  %v15976_v62 = vrot.slane %v15649_v24, 1  ;;  %v15977_v28 = vrot.slane %v15651_v5, 1  ;;  %v15980_v48 = vld [vmem:[#allocation80_spill] sm:$0xff] }
 0x521   : > { %v4300_v56 = vmul.f32 %v4163_v9, %v15975_v30  ;;  %v4169_v25 = vstv %s6022_s21  ;;  %v3968_v2 = vadd.f32 %v3920_v16, %v12724_v8  ;;  %v12914_v45 = vadd.f32 %v3921_v44, %v12728_v19  ;;  %v15982_v16 = vld [vmem:[#allocation12_spill] sm:$0xff] }
 0x522   : > { %v3923_v49 = vmul.f32 %v3800_v41, %v15976_v62  ;;  %v3924_v32 = vmul.f32 %v3803_v38, %v15977_v28  ;;  %v15978_v4 = vrot.slane %v15657_v17, 1  ;;  %v3809_v9 = vstv %s12235_s10  ;;  %s15985_s10 = sld [smem:[#allocation5_spill]] }
 0x523   : > { %v12920_v24 = vadd.f32 %v3922_v7, %v12733_v59  ;;  %v3812_v5 = vstv %s12240_s6  ;;  %v4346_v53 = vadd.f32 %v4298_v29, %v3962_v54  ;;  %v15981_v41 = vrot.slane %v15980_v48, 1  ;;  %s12938_s6 = spop %6027 }
 0x524   : > { %v3925_v14 = vmul.f32 %v3806_v3, %v15978_v4  ;;  %v4348_v50 = vadd.f32 %v4300_v56, %v3964_v58  ;;  %v4166_v8 = vstv %s12885_s25  ;;  %v15983_v19 = vrot.slane %v15982_v16, 1  ;;  %s6030_s19 = spop %6029  ;;  %s16012_s25 = sld [smem:[#allocation113_spill]] }
 0x525   : > { %v4299_v38 = vmul.f32 %v4160_v10, %v15981_v41  ;;  %v4396_v17 = vsel %vm4393_vm4, %v4345_v57, 0.0  ;;  %v12931_v3 = vadd.f32 %v3923_v49, %v12737_v13  ;;  %v12934_v59 = vadd.f32 %v3924_v32, %v12743_v6  ;;  %v15987_v10 = vld [vmem:[#allocation81_spill] sm:$0xff]  ;;  %s12969_s4 = spop %6031 }
 0x526   : > { %v4302_v44 = vmul.f32 %v4169_v25, %v15983_v19  ;;  %v15984_v54 = vrot.slane %v15658_v0, 1  ;;  %v4175_v34 = vstv %s6026_s11  ;;  %v12941_v58 = vadd.f32 %v3925_v14, %v12750_v35  ;;  %v15990_v35 = vld [vmem:[#allocation14_spill] sm:$0xff]  ;;  %v15994_v32 = vld [vmem:[#allocation299_spill] sm:$0xff]  ;;  %s12977_s27 = spop %6033  ;;  %s16021_s11 = sld [smem:[#allocation116_spill]] }
 0x527   : > { %v15986_v61 = vrot.slane %v15660_v47, 1  ;;  %v3815_v40 = vstv %s15979_s12  ;;  %v3818_v57 = vstv %s12257_s16  ;;  %v4347_v13 = vadd.f32 %v4299_v38, %v3963_v51  ;;  %s15993_s16 = sld [smem:[#allocation366_spill]]  ;;  %v4782_v47 = vpop.permute.xlu0 %4781  ;;  %v15998_v38 = vld [vmem:[#allocation329_spill] sm:$0xff]  ;;  %s12996_s7 = spop %6035 }
 0x528   : > { %v3926_v7 = vmul.f32 %v3809_v9, %v15984_v54  ;;  %v15988_v6 = vrot.slane %v15987_v10, 1  ;;  %v4444_v0 = vadd.f32 %v4396_v17, %v12163_v43  ;;  %v4397_v30 = vsel %vm4393_vm4, %v4346_v53, 0.0  ;;  %s15992_s3 = smul.u32 384, %s15985_s10  ;;  %s13004_s18 = spop %6037 }
 0x529   : > { %v3927_v29 = vmul.f32 %v3812_v5, %v15986_v61  ;;  %v4350_v56 = vadd.f32 %v4302_v44, %v3966_v60  ;;  %v4172_v62 = vstv %s12910_s30  ;;  %v15991_v49 = vrot.slane %v15990_v35, 1  ;;  %v15996_v5 = vld [vmem:[#allocation320_spill] sm:$0xff]  ;;  %v16001_v44 = vld [vmem:[#allocation240_spill] sm:$0xff]  ;;  %s13026_s21 = spop %6039 }
 0x52a   : > { %v4301_v46 = vmul.f32 %v4166_v8, %v15988_v6  ;;  %v4399_v51 = vsel %vm4393_vm4, %v4348_v50, 0.0  ;;  %v12965_v43 = vadd.f32 %v3926_v7, %v12757_v18  ;;  %v15995_v60 = vrot.slane %v15994_v32, 1  ;;  %v15999_v8 = vld [vmem:[#allocation13_spill] sm:$0xff]  ;;  %s13033_s30 = spop %6041 }
 0x52b   : > { %v4304_v28 = vmul.f32 %v4175_v34, %v15991_v49  ;;  %v4181_v4 = vstv %s6030_s19  ;;  %v4972_v14 = vadd.f32 %v4782_v47, %v4444_v0  ;;  %v12972_v9 = vadd.f32 %v3927_v29, %v12761_v1  ;;  %v16003_v34 = vld [vmem:[#allocation16_spill] sm:$0xff]  ;;  %v16005_v0 = vld [vmem:[#allocation294_spill] sm:$0xff]  ;;  %v16007_v49 = vld [vmem:[#allocation237_spill] sm:$0xff]  ;;  %s13055_s12 = spop %6043 }
 0x52c   : > { %v3928_v25 = vmul.f32 %v3815_v40, %v15995_v60  ;;  %v15997_v53 = vrot.slane %v15996_v5, 1  ;;  %v3821_v41 = vstv %s15989_s2  ;;  %v4445_v18 = vadd.f32 %v4397_v30, %v15998_v38  ;;  %v4786_v40 = vpop.permute.xlu1 %4785  ;;  %v16015_v38 = vld [vmem:[#allocation298_spill] sm:$0xff]  ;;  %s13063_s10 = spop %6045 }
 0x52d   : > { %s12960_s29 = scalar_lea.vmem %s15993_s16, %s15992_s3  ;;  %v4349_v50 = vadd.f32 %v4301_v46, %v3965_v12  ;;  %v16000_v16 = vrot.slane %v15999_v8, 1  ;;  %v4447_v17 = vadd.f32 %v4399_v51, %v16001_v44  ;;  %v4398_v1 = vsel %vm4393_vm4, %v4347_v13, 0.0  ;;  %v4794_v12 = vpop.permute.xlu0 %4793  ;;  %s13084_s19 = spop %6047 }
 0x52e   : > { %v3929_v48 = vmul.f32 %v3818_v57, %v15997_v53  ;;  %5021 = vst.msk [vmem:[%s12960_s29] sm:$0xff] %vm5020_vm5, %v4972_v14  ;;  %v4352_v54 = vadd.f32 %v4304_v28, %v3968_v2  ;;  %v4178_v7 = vstv %s12938_s6  ;;  %v16004_v61 = vrot.slane %v16003_v34, 1  ;;  %v16008_v28 = vld [vmem:[#allocation15_spill] sm:$0xff]  ;;  %v16013_v14 = vld [vmem:[#allocation18_spill] sm:$0xff]  ;;  %v16018_v34 = vld [vmem:[#allocation17_spill] sm:$0xff]  ;;  %s16032_s6 = sld [smem:[#allocation117_spill]]  ;;  %s13092_s2 = spop %6049 }
 0x52f   : > { %v4303_v19 = vmul.f32 %v4172_v62, %v16000_v16  ;;  %v4401_v57 = vsel %vm4393_vm4, %v4350_v56, 0.0  ;;  %v12993_v10 = vadd.f32 %v3928_v25, %v12767_v23  ;;  %v4187_v6 = vstv %s12977_s27  ;;  %s16041_s3 = sld [smem:[#allocation118_spill]]  ;;  %s13114_s5 = spop %6051 }
 0x530   : > { %v4306_v29 = vmul.f32 %v4181_v4, %v16004_v61  ;;  %v4973_v13 = vadd.f32 %v4786_v40, %v4445_v18  ;;  %v4975_v2 = vadd.f32 %v4794_v12, %v4447_v17  ;;  %v12999_v46 = vadd.f32 %v3929_v48, %v12771_v22  ;;  %v16011_v22 = vld [vmem:[#allocation330_spill] sm:$0xff]  ;;  %v4790_v53 = vpop.permute.xlu1 %4789  ;;  %v16020_v40 = vld [vmem:[#allocation216_spill] sm:$0xff]  ;;  %s13119_s24 = spop %6053 }
 0x531   : > { %v16006_v30 = vrot.slane %v16005_v0, 1  ;;  %v3824_v35 = vstv %s16002_s17  ;;  %v4446_v56 = vadd.f32 %v4398_v1, %v16007_v49  ;;  %v4351_v23 = vadd.f32 %v4303_v19, %v12904_v55  ;;  %v4802_v48 = vpop.permute.xlu0 %4801  ;;  %v16017_v1 = vld [vmem:[#allocation341_spill] sm:$0xff]  ;;  %s16068_s17 = sld [smem:[#allocation256_spill]] }
 0x532   : > { %v16009_v47 = vrot.slane %v16008_v28, 1  ;;  %5022 = vst.msk [vmem:[%s12960_s29 + $0x8] sm:$0xff] %vm5020_vm5, %v4973_v13  ;;  %5024 = vst.msk [vmem:[%s12960_s29 + $0x18] sm:$0xff] %vm5020_vm5, %v4975_v2  ;;  %v4449_v32 = vadd.f32 %v4401_v57, %v16011_v22  ;;  %v4400_v60 = vsel %vm4393_vm4, %v4349_v50, 0.0  ;;  %v4354_v25 = vadd.f32 %v4306_v29, %v12920_v24  ;;  %v16022_v13 = vld [vmem:[#allocation20_spill] sm:$0xff] }
 0x533   : > { %v3930_v62 = vmul.f32 %v3821_v41, %v16006_v30  ;;  %v4184_v4 = vstv %s12969_s4  ;;  %v16014_v5 = vrot.slane %v16013_v14, 1  ;;  %v4403_v41 = vsel %vm4393_vm4, %v4352_v54, 0.0  ;;  %s16060_s4 = sld [smem:[#allocation254_spill]] }
 0x534   : > { %v4305_v51 = vmul.f32 %v4178_v7, %v16009_v47  ;;  %v16016_v18 = vrot.slane %v16015_v38, 1  ;;  %v4193_v16 = vstv %s13004_s18  ;;  %v4974_v50 = vadd.f32 %v4790_v53, %v4446_v56 }
 0x535   : > { %v4308_v55 = vmul.f32 %v4187_v6, %v16014_v5  ;;  %v4977_v24 = vadd.f32 %v4802_v48, %v4449_v32  ;;  %v13029_v19 = vadd.f32 %v3930_v62, %v12775_v36  ;;  %v3827_v44 = vstv %s16010_s28  ;;  %v4810_v30 = vpop.permute.xlu0 %4809  ;;  %v16029_v5 = vld [vmem:[#allocation19_spill] sm:$0xff] }
 0x536   : > { %v3931_v8 = vmul.f32 %v3824_v35, %v16016_v18  ;;  %v3830_v17 = vstv %s16012_s25  ;;  %v4448_v7 = vadd.f32 %v4400_v60, %v16017_v1  ;;  %v4353_v54 = vadd.f32 %v4305_v51, %v12914_v45  ;;  %5023 = vst.msk [vmem:[%s12960_s29 + $0x10] sm:$0xff] %vm5020_vm5, %v4974_v50  ;;  %v4798_v45 = vpop.permute.xlu1 %4797  ;;  %v16024_v35 = vld [vmem:[#allocation321_spill] sm:$0xff]  ;;  %v16026_v51 = vld [vmem:[#allocation302_spill] sm:$0xff] }
 0x537   : > { %v16019_v61 = vrot.slane %v16018_v34, 1  ;;  %5026 = vst.msk [vmem:[%s12960_s29 + $0x28] sm:$0xff] %vm5020_vm5, %v4977_v24  ;;  %v4451_v36 = vadd.f32 %v4403_v41, %v16020_v40  ;;  %v4402_v12 = vsel %vm4393_vm4, %v4351_v23, 0.0  ;;  %v4356_v57 = vadd.f32 %v4308_v55, %v12934_v59  ;;  %v16035_v34 = vld [vmem:[#allocation227_spill] sm:$0xff] }
 0x538   : > { %v4190_v6 = vstv %s12996_s7  ;;  %v16023_v2 = vrot.slane %v16022_v13, 1  ;;  %v4405_v62 = vsel %vm4393_vm4, %v4354_v25, 0.0  ;;  %v16025_v49 = vrot.slane %v16024_v35, 1 }
 0x539   : > { %v4307_v29 = vmul.f32 %v4184_v4, %v16019_v61  ;;  %v4199_v28 = vstv %s13033_s30  ;;  %v4976_v23 = vadd.f32 %v4798_v45, %v4448_v7  ;;  %v4979_v59 = vadd.f32 %v4810_v30, %v4451_v36  ;;  %v16028_v4 = vld [vmem:[#allocation332_spill] sm:$0xff]  ;;  %v4818_v24 = vpop.permute.xlu0 %4817  ;;  %v16037_v36 = vld [vmem:[#allocation331_spill] sm:$0xff] }
 0x53a   : > { %v4310_v0 = vmul.f32 %v4193_v16, %v16023_v2  ;;  %v3932_v56 = vmul.f32 %v3827_v44, %v16025_v49  ;;  %v13058_v47 = vadd.f32 %v3931_v8, %v12780_v21  ;;  %v16027_v22 = vrot.slane %v16026_v51, 1  ;;  %v16031_v21 = vld [vmem:[#allocation334_spill] sm:$0xff] }
 0x53b   : > { %v3833_v60 = vstv %s16021_s11  ;;  %v4450_v25 = vadd.f32 %v4402_v12, %v16028_v4  ;;  %v4355_v14 = vadd.f32 %v4307_v29, %v12931_v3  ;;  %v16030_v55 = vrot.slane %v16029_v5, 1  ;;  %5025 = vst.msk [vmem:[%s12960_s29 + $0x20] sm:$0xff] %vm5020_vm5, %v4976_v23  ;;  %5028 = vst.msk [vmem:[%s12960_s29 + $0x38] sm:$0xff] %vm5020_vm5, %v4979_v59  ;;  %v16033_v8 = vld [vmem:[#allocation22_spill] sm:$0xff]  ;;  %v4806_v3 = vpop.permute.xlu1 %4805  ;;  %v16044_v23 = vld [vmem:[#allocation303_spill] sm:$0xff] }
 0x53c   : > { %v3933_v32 = vmul.f32 %v3830_v17, %v16027_v22  ;;  %v4453_v48 = vadd.f32 %v4405_v62, %v16031_v21  ;;  %v4404_v41 = vsel %vm4393_vm4, %v4353_v54, 0.0  ;;  %v4358_v38 = vadd.f32 %v4310_v0, %v12965_v43  ;;  %v16042_v62 = vld [vmem:[#allocation24_spill] sm:$0xff] }
 0x53d   : > { %v4309_v53 = vmul.f32 %v4190_v6, %v16030_v55  ;;  %v4196_v18 = vstv %s13026_s21  ;;  %v16034_v16 = vrot.slane %v16033_v8, 1  ;;  %v4407_v44 = vsel %vm4393_vm4, %v4356_v57, 0.0  ;;  %v16038_v57 = vld [vmem:[#allocation21_spill] sm:$0xff] }
 0x53e   : > { %v3980_v17 = vadd.f32 %v3932_v56, %v12784_v33  ;;  %v4205_v1 = vstv %s13063_s10  ;;  %v4978_v7 = vadd.f32 %v4806_v3, %v4450_v25  ;;  %v4981_v54 = vadd.f32 %v4818_v24, %v4453_v48  ;;  %v4826_v56 = vpop.permute.xlu0 %4825 }
 0x53f   : > { %v4312_v50 = vmul.f32 %v4199_v28, %v16034_v16  ;;  %v13087_v43 = vadd.f32 %v3933_v32, %v12788_v11  ;;  %v16036_v61 = vrot.slane %v16035_v34, 1  ;;  %v3836_v40 = vstv %s16032_s6  ;;  %v16040_v11 = vld [vmem:[#allocation222_spill] sm:$0xff]  ;;  %v4814_v49 = vpop.permute.xlu1 %4813  ;;  %v16050_v16 = vld [vmem:[#allocation26_spill] sm:$0xff]  ;;  %s16141_s6 = sld [smem:[#allocation184_spill]] }
 0x540   : > { %v4452_v12 = vadd.f32 %v4404_v41, %v16037_v36  ;;  %v4357_v33 = vadd.f32 %v4309_v53, %v12941_v58  ;;  %v16039_v6 = vrot.slane %v16038_v57, 1  ;;  %5027 = vst.msk [vmem:[%s12960_s29 + $0x30] sm:$0xff] %vm5020_vm5, %v4978_v7  ;;  %5030 = vst.msk [vmem:[%s12960_s29 + $0x48] sm:$0xff] %vm5020_vm5, %v4981_v54  ;;  %v4455_v2 = vadd.f32 %v4407_v44, %v16040_v11  ;;  %v16047_v53 = vld [vmem:[#allocation23_spill] sm:$0xff]  ;;  %v16049_v41 = vld [vmem:[#allocation48_spill] sm:$0xff] }
 0x541   : > { %v3934_v29 = vmul.f32 %v3833_v60, %v16036_v61  ;;  %v4406_v0 = vsel %vm4393_vm4, %v4355_v14, 0.0  ;;  %v4360_v45 = vadd.f32 %v4312_v50, %v12993_v10  ;;  %v4202_v30 = vstv %s13055_s12  ;;  %v16046_v14 = vld [vmem:[#allocation217_spill] sm:$0xff]  ;;  %v16056_v57 = vld [vmem:[#allocation333_spill] sm:$0xff]  ;;  %s16127_s12 = sld [smem:[#allocation183_spill]] }
 0x542   : > { %v4311_v13 = vmul.f32 %v4196_v18, %v16039_v6  ;;  %v16043_v35 = vrot.slane %v16042_v62, 1  ;;  %v4409_v28 = vsel %vm4393_vm4, %v4358_v38, 0.0  ;;  %v16045_v59 = vrot.slane %v16044_v23, 1  ;;  %v4834_v24 = vpop.permute.xlu0 %4833  ;;  %v16057_v11 = vld [vmem:[#allocation25_spill] sm:$0xff] }
 0x543   : > { %v4211_v22 = vstv %s13092_s2  ;;  %v4980_v32 = vadd.f32 %v4814_v49, %v4452_v12  ;;  %v4983_v10 = vadd.f32 %v4826_v56, %v4455_v2  ;;  %v3982_v60 = vadd.f32 %v3934_v29, %v12793_v15 }
 0x544   : > { %v4314_v58 = vmul.f32 %v4205_v1, %v16043_v35  ;;  %v3935_v51 = vmul.f32 %v3836_v40, %v16045_v59  ;;  %v3839_v4 = vstv %s12318_s0  ;;  %v3842_v25 = vstv %s16041_s3  ;;  %v16052_v1 = vld [vmem:[#allocation345_spill] sm:$0xff]  ;;  %s13141_s0 = spop %6055  ;;  %v16054_v40 = vld [vmem:[#allocation229_spill] sm:$0xff]  ;;  %s16152_s3 = sld [smem:[#allocation185_spill]] }
 0x545   : > { %v4454_v5 = vadd.f32 %v4406_v0, %v16046_v14  ;;  %v4359_v55 = vadd.f32 %v4311_v13, %v12972_v9  ;;  %v16048_v21 = vrot.slane %v16047_v53, 1  ;;  %5029 = vst.msk [vmem:[%s12960_s29 + $0x40] sm:$0xff] %vm5020_vm5, %v4980_v32  ;;  %5032 = vst.msk [vmem:[%s12960_s29 + $0x58] sm:$0xff] %vm5020_vm5, %v4983_v10  ;;  %v4457_v38 = vadd.f32 %v4409_v28, %v16049_v41  ;;  %v4822_v9 = vpop.permute.xlu1 %4821  ;;  %s13149_s16 = spop %6057  ;;  %v16063_v10 = vld [vmem:[#allocation311_spill] sm:$0xff]  ;;  %v16066_v53 = vld [vmem:[#allocation27_spill] sm:$0xff] }
 0x546   : > { %v4408_v15 = vsel %vm4393_vm4, %v4357_v33, 0.0  ;;  %v4362_v18 = vadd.f32 %v4314_v58, %v13029_v19  ;;  %v4208_v8 = vstv %s13084_s19  ;;  %v16051_v50 = vrot.slane %v16050_v16, 1  ;;  %v16061_v58 = vld [vmem:[#allocation28_spill] sm:$0xff]  ;;  %v4842_v28 = vpop.permute.xlu0 %4841 }
 0x547   : > { %v4313_v48 = vmul.f32 %v4202_v30, %v16048_v21  ;;  %v4411_v44 = vsel %vm4393_vm4, %v4360_v45, 0.0  ;;  %v16053_v7 = vrot.slane %v16052_v1, 1  ;;  %v4217_v34 = vstv %s13119_s24 }
 0x548   : > { %v4316_v3 = vmul.f32 %v4211_v22, %v16051_v50  ;;  %v4982_v61 = vadd.f32 %v4822_v9, %v4454_v5  ;;  %v4985_v19 = vadd.f32 %v4834_v24, %v4457_v38  ;;  %v13144_v29 = vadd.f32 %v3935_v51, %v12797_v39  ;;  %v16059_v39 = vld [vmem:[#allocation238_spill] sm:$0xff] }
 0x549   : > { %v3936_v54 = vmul.f32 %v3839_v4, %v16053_v7  ;;  %v16055_v36 = vrot.slane %v16054_v40, 1  ;;  %v3845_v33 = vstv %s12344_s13  ;;  %v4456_v6 = vadd.f32 %v4408_v15, %v16056_v57  ;;  %s13169_s13 = spop %6059  ;;  %v16065_v5 = vld [vmem:[#allocation335_spill] sm:$0xff]  ;;  %v16076_v57 = vld [vmem:[#allocation69_spill] sm:$0xff] }
 0x54a   : > { %v4361_v13 = vadd.f32 %v4313_v48, %v12999_v46  ;;  %v16058_v2 = vrot.slane %v16057_v11, 1  ;;  %5031 = vst.msk [vmem:[%s12960_s29 + $0x50] sm:$0xff] %vm5020_vm5, %v4982_v61  ;;  %5034 = vst.msk [vmem:[%s12960_s29 + $0x68] sm:$0xff] %vm5020_vm5, %v4985_v19  ;;  %v4459_v45 = vadd.f32 %v4411_v44, %v16059_v39  ;;  %v4410_v30 = vsel %vm4393_vm4, %v4359_v55, 0.0  ;;  %v4830_v46 = vpop.permute.xlu1 %4829  ;;  %s13177_s27 = spop %6061  ;;  %v4850_v50 = vpop.permute.xlu0 %4849  ;;  %v16071_v9 = vld [vmem:[#allocation347_spill] sm:$0xff]  ;;  %v16073_v61 = vld [vmem:[#allocation342_spill] sm:$0xff] }
 0x54b   : > { %v3937_v12 = vmul.f32 %v3842_v25, %v16055_v36  ;;  %v4364_v62 = vadd.f32 %v4316_v3, %v3980_v17  ;;  %v4214_v35 = vstv %s13114_s5  ;;  %v16062_v49 = vrot.slane %v16061_v58, 1  ;;  %s13198_s7 = spop %6063  ;;  %v16074_v36 = vld [vmem:[#allocation29_spill] sm:$0xff] }
 0x54c   : > { %v4315_v0 = vmul.f32 %v4208_v8, %v16058_v2  ;;  %v4413_v23 = vsel %vm4393_vm4, %v4362_v18, 0.0  ;;  %v3984_v59 = vadd.f32 %v3936_v54, %v12803_v20  ;;  %v4223_v51 = vstv %s13149_s16  ;;  %s13203_s18 = spop %6065  ;;  %v16077_v2 = vld [vmem:[#allocation32_spill] sm:$0xff]  ;;  %s16165_s16 = sld [smem:[#allocation187_spill]] }
 0x54d   : > { %v4318_v56 = vmul.f32 %v4217_v34, %v16062_v49  ;;  %v4984_v22 = vadd.f32 %v4830_v46, %v4456_v6  ;;  %v4987_v32 = vadd.f32 %v4842_v28, %v4459_v45  ;;  %v13172_v17 = vadd.f32 %v3937_v12, %v12810_v26  ;;  %v16069_v26 = vld [vmem:[#allocation239_spill] sm:$0xff]  ;;  %v16081_v28 = vld [vmem:[#allocation250_spill] sm:$0xff] }
 0x54e   : > { %v16064_v4 = vrot.slane %v16063_v10, 1  ;;  %v3848_v14 = vstv %s16060_s4  ;;  %v4458_v55 = vadd.f32 %v4410_v30, %v16065_v5  ;;  %v4363_v20 = vadd.f32 %v4315_v0, %v13058_v47  ;;  %v4838_v47 = vpop.permute.xlu1 %4837  ;;  %v4858_v45 = vpop.permute.xlu0 %4857  ;;  %v16084_v10 = vld [vmem:[#allocation304_spill] sm:$0xff] }
 0x54f   : > { %v16067_v21 = vrot.slane %v16066_v53, 1  ;;  %5033 = vst.msk [vmem:[%s12960_s29 + $0x60] sm:$0xff] %vm5020_vm5, %v4984_v22  ;;  %5036 = vst.msk [vmem:[%s12960_s29 + $0x78] sm:$0xff] %vm5020_vm5, %v4987_v32  ;;  %v4461_v41 = vadd.f32 %v4413_v23, %v16069_v26  ;;  %v4412_v38 = vsel %vm4393_vm4, %v4361_v13, 0.0  ;;  %v4366_v15 = vadd.f32 %v4318_v56, %v3982_v60 }
 0x550   : > { %v3938_v25 = vmul.f32 %v3845_v33, %v16064_v4  ;;  %v4220_v18 = vstv %s13141_s0  ;;  %v16070_v8 = vrot.slane %v15757_v42, 1  ;;  %v4415_v3 = vsel %vm4393_vm4, %v4364_v62, 0.0  ;;  %v16079_v62 = vld [vmem:[#allocation348_spill] sm:$0xff]  ;;  %s16163_s0 = sld [smem:[#allocation186_spill]] }
 0x551   : > { %v4317_v48 = vmul.f32 %v4214_v35, %v16067_v21  ;;  %v16072_v24 = vrot.slane %v16071_v9, 1  ;;  %v4229_v1 = vstv %s13177_s27  ;;  %v4986_v7 = vadd.f32 %v4838_v47, %v4458_v55 }
 0x552   : > { %v4320_v16 = vmul.f32 %v4223_v51, %v16070_v8  ;;  %v4989_v60 = vadd.f32 %v4850_v50, %v4461_v41  ;;  %v3986_v54 = vadd.f32 %v3938_v25, %v12817_v37  ;;  %v3851_v42 = vstv %s16068_s17  ;;  %v16088_v41 = vld [vmem:[#allocation34_spill] sm:$0xff] }
 0x553   : > { %v3939_v44 = vmul.f32 %v3848_v14, %v16072_v24  ;;  %v3854_v34 = vstv %s12369_s15  ;;  %v4460_v19 = vadd.f32 %v4412_v38, %v16073_v61  ;;  %v4365_v40 = vadd.f32 %v4317_v48, %v13087_v43  ;;  %5035 = vst.msk [vmem:[%s12960_s29 + $0x70] sm:$0xff] %vm5020_vm5, %v4986_v7  ;;  %v4846_v43 = vpop.permute.xlu1 %4845  ;;  %s13224_s15 = spop %6067  ;;  %v16085_v14 = vld [vmem:[#allocation31_spill] sm:$0xff]  ;;  %v16094_v61 = vld [vmem:[#allocation33_spill] sm:$0xff] }
 0x554   : > { %v16075_v12 = vrot.slane %v16074_v36, 1  ;;  %5038 = vst.msk [vmem:[%s12960_s29 + $0x88] sm:$0xff] %vm5020_vm5, %v4989_v60  ;;  %v4463_v6 = vadd.f32 %v4415_v3, %v16076_v57  ;;  %v4414_v37 = vsel %vm4393_vm4, %v4363_v20, 0.0  ;;  %v4368_v13 = vadd.f32 %v4320_v16, %v3984_v59  ;;  %v16082_v59 = vld [vmem:[#allocation349_spill] sm:$0xff]  ;;  %s13230_s28 = spop %6069  ;;  %v16087_v20 = vld [vmem:[#allocation71_spill] sm:$0xff] }
 0x555   : > { %v4226_v11 = vstv %s13169_s13  ;;  %v16078_v0 = vrot.slane %v16077_v2, 1  ;;  %v4417_v30 = vsel %vm4393_vm4, %v4366_v15, 0.0  ;;  %v16080_v35 = vrot.slane %v16079_v62, 1  ;;  %v16090_v16 = vld [vmem:[#allocation324_spill] sm:$0xff]  ;;  %v16091_v24 = vld [vmem:[#allocation351_spill] sm:$0xff] }
 0x556   : > { %v4319_v33 = vmul.f32 %v4220_v18, %v16075_v12  ;;  %v4235_v49 = vstv %s13203_s18  ;;  %v4988_v56 = vadd.f32 %v4846_v43, %v4460_v19  ;;  %v4991_v46 = vadd.f32 %v4858_v45, %v4463_v6  ;;  %v4866_v18 = vpop.permute.xlu0 %4865  ;;  %v16096_v36 = vld [vmem:[#allocation73_spill] sm:$0xff]  ;;  %s16183_s18 = sld [smem:[#allocation189_spill]] }
 0x557   : > { %v4322_v39 = vmul.f32 %v4229_v1, %v16078_v0  ;;  %v3940_v58 = vmul.f32 %v3851_v42, %v16080_v35  ;;  %v3987_v23 = vadd.f32 %v3939_v44, %v16081_v28  ;;  %v16083_v51 = vrot.slane %v16082_v59, 1  ;;  %v16099_v35 = vld [vmem:[#allocation353_spill] sm:$0xff] }
 0x558   : > { %v3857_v32 = vstv %s12380_s8  ;;  %v4462_v4 = vadd.f32 %v4414_v37, %v16084_v10  ;;  %v4367_v25 = vadd.f32 %v4319_v33, %v13144_v29  ;;  %v16086_v5 = vrot.slane %v16085_v14, 1  ;;  %5037 = vst.msk [vmem:[%s12960_s29 + $0x80] sm:$0xff] %vm5020_vm5, %v4988_v56  ;;  %5040 = vst.msk [vmem:[%s12960_s29 + $0x98] sm:$0xff] %vm5020_vm5, %v4991_v46  ;;  %v4854_v29 = vpop.permute.xlu1 %4853  ;;  %s13250_s8 = spop %6071  ;;  %v16097_v37 = vld [vmem:[#allocation36_spill] sm:$0xff]  ;;  %v16105_v14 = vld [vmem:[#allocation38_spill] sm:$0xff] }
 0x559   : > { %v3941_v22 = vmul.f32 %v3854_v34, %v16083_v51  ;;  %v4465_v53 = vadd.f32 %v4417_v30, %v16087_v20  ;;  %v4416_v21 = vsel %vm4393_vm4, %v4365_v40, 0.0  ;;  %v4370_v48 = vadd.f32 %v4322_v39, %v3986_v54  ;;  %s13256_s25 = spop %6073  ;;  %v16093_v54 = vld [vmem:[#allocation70_spill] sm:$0xff]  ;;  %v16101_v46 = vld [vmem:[#allocation72_spill] sm:$0xff]  ;;  %v16102_v51 = vld [vmem:[#allocation35_spill] sm:$0xff] }
 0x55a   : > { %v4321_v55 = vmul.f32 %v4226_v11, %v16086_v5  ;;  %v4232_v26 = vstv %s13198_s7  ;;  %v16089_v38 = vrot.slane %v16088_v41, 1  ;;  %v4419_v8 = vsel %vm4393_vm4, %v4368_v13, 0.0  ;;  %v4874_v2 = vpop.permute.xlu0 %4873  ;;  %s16182_s7 = sld [smem:[#allocation188_spill]] }
 0x55b   : > { %v3988_v47 = vadd.f32 %v3940_v58, %v16090_v16  ;;  %v4241_v50 = vstv %s13230_s28  ;;  %v4990_v3 = vadd.f32 %v4854_v29, %v4462_v4  ;;  %v4993_v9 = vadd.f32 %v4866_v18, %v4465_v53  ;;  %v16109_v29 = vld [vmem:[#allocation67_spill] sm:$0xff] }
 0x55c   : > { %v4324_v15 = vmul.f32 %v4235_v49, %v16089_v38  ;;  %v16092_v44 = vrot.slane %v16091_v24, 1  ;;  %v3860_v7 = vstv %s12387_s1  ;;  %v3863_v60 = vstv %s12393_s23  ;;  %s13276_s1 = spop %6075  ;;  %v16114_v24 = vld [vmem:[#allocation74_spill] sm:$0xff] }
 0x55d   : > { %v4464_v42 = vadd.f32 %v4416_v21, %v16093_v54  ;;  %v4369_v34 = vadd.f32 %v4321_v55, %v13172_v17  ;;  %v16095_v19 = vrot.slane %v16094_v61, 1  ;;  %5039 = vst.msk [vmem:[%s12960_s29 + $0x90] sm:$0xff] %vm5020_vm5, %v4990_v3  ;;  %5042 = vst.msk [vmem:[%s12960_s29 + $0xa8] sm:$0xff] %vm5020_vm5, %v4993_v9  ;;  %v4467_v12 = vadd.f32 %v4419_v8, %v16096_v36  ;;  %v4862_v17 = vpop.permute.xlu1 %4861  ;;  %s13282_s23 = spop %6077  ;;  %v16107_v21 = vld [vmem:[#allocation352_spill] sm:$0xff] }
 0x55e   : > { %v3942_v1 = vmul.f32 %v3857_v32, %v16092_v44  ;;  %v4418_v33 = vsel %vm4393_vm4, %v4367_v25, 0.0  ;;  %v4372_v57 = vadd.f32 %v4324_v15, %v3988_v47  ;;  %v4238_v6 = vstv %s13224_s15  ;;  %v16104_v32 = vld [vmem:[#allocation75_spill] sm:$0xff]  ;;  %v4882_v20 = vpop.permute.xlu0 %4881  ;;  %s16190_s15 = sld [smem:[#allocation145_spill]] }
 0x55f   : > { %v4323_v40 = vmul.f32 %v4232_v26, %v16095_v19  ;;  %v16098_v13 = vrot.slane %v16097_v37, 1  ;;  %v4421_v0 = vsel %vm4393_vm4, %v4370_v48, 0.0  ;;  %v3989_v39 = vadd.f32 %v3941_v22, %v12840_v27  ;;  %v16121_v37 = vld [vmem:[#allocation339_spill] sm:$0xff] }
 0x560   : > { %v4247_v43 = vstv %s13256_s25  ;;  %v4992_v45 = vadd.f32 %v4862_v17, %v4464_v42  ;;  %v4995_v30 = vadd.f32 %v4874_v2, %v4467_v12  ;;  %v3990_v62 = vadd.f32 %v3942_v1, %v12844_v52  ;;  %v16118_v42 = vld [vmem:[#allocation77_spill] sm:$0xff] }
 0x561   : > { %v4326_v11 = vmul.f32 %v4241_v50, %v16098_v13  ;;  %v16100_v58 = vrot.slane %v16099_v35, 1  ;;  %v3869_v56 = vstv %s12416_s26  ;;  %v4466_v28 = vadd.f32 %v4418_v33, %v16101_v46  ;;  %s13302_s26 = spop %6079  ;;  %v16112_v50 = vld [vmem:[#allocation355_spill] sm:$0xff] }
 0x562   : > { %v4371_v59 = vadd.f32 %v4323_v40, %v3987_v23  ;;  %v16103_v27 = vrot.slane %v16102_v51, 1  ;;  %5041 = vst.msk [vmem:[%s12960_s29 + $0xa0] sm:$0xff] %vm5020_vm5, %v4992_v45  ;;  %5044 = vst.msk [vmem:[%s12960_s29 + $0xb8] sm:$0xff] %vm5020_vm5, %v4995_v30  ;;  %v4469_v52 = vadd.f32 %v4421_v0, %v16104_v32  ;;  %v4420_v10 = vsel %vm4393_vm4, %v4369_v34, 0.0  ;;  %v4870_v23 = vpop.permute.xlu1 %4869  ;;  %s13311_s21 = spop %6081  ;;  %v16119_v40 = vld [vmem:[#allocation40_spill] sm:$0xff]  ;;  %v16122_v0 = vld [vmem:[#allocation45_spill] sm:$0xff] }
 0x563   : > { %v3944_v49 = vmul.f32 %v3863_v60, %v16100_v58  ;;  %v4374_v4 = vadd.f32 %v4326_v11, %v3990_v62  ;;  %v4244_v25 = vstv %s13250_s8  ;;  %v16106_v5 = vrot.slane %v16105_v14, 1  ;;  %s13330_s30 = spop %6083  ;;  %v16124_v62 = vld [vmem:[#allocation76_spill] sm:$0xff]  ;;  %v16129_v32 = vld [vmem:[#allocation42_spill] sm:$0xff] }
 0x564   : > { %v4325_v22 = vmul.f32 %v4238_v6, %v16103_v27  ;;  %v4423_v53 = vsel %vm4393_vm4, %v4372_v57, 0.0  ;;  %v16108_v48 = vrot.slane %v16107_v21, 1  ;;  %v4253_v41 = vstv %s13282_s23  ;;  %v4890_v57 = vpop.permute.xlu0 %4889  ;;  %s13336_s11 = spop %6085 }
 0x565   : > { %v4328_v55 = vmul.f32 %v4247_v43, %v16106_v5  ;;  %v4994_v38 = vadd.f32 %v4870_v23, %v4466_v28  ;;  %v4997_v15 = vadd.f32 %v4882_v20, %v4469_v52  ;;  %v16110_v18 = vrot.slane %v16109_v29, 1  ;;  %v16128_v28 = vld [vmem:[#allocation78_spill] sm:$0xff] }
 0x566   : > { %v3943_v26 = vmul.f32 %v3860_v7, %v16108_v48  ;;  %v16111_v8 = vstv %s15947_s22  ;;  %v3992_v47 = vadd.f32 %v3944_v49, %v12862_v31  ;;  %v16113_v3 = vrot.slane %v16112_v50, 1  ;;  %v16115_v7 = vld [vmem:[#allocation37_spill] sm:$0xff]  ;;  %s16117_s22 = sld [smem:[#allocation182_spill]]  ;;  %v4878_v33 = vpop.permute.xlu1 %4877  ;;  %v16125_v49 = vld [vmem:[#allocation39_spill] sm:$0xff]  ;;  %v16131_v20 = vld [vmem:[#allocation225_spill] sm:$0xff] }
 0x567   : > { %v3562_v16 = vmul.f32 %v16111_v8, %v16110_v18  ;;  %v4468_v44 = vadd.f32 %v4420_v10, %v16114_v24  ;;  %v4373_v1 = vadd.f32 %v4325_v22, %v3989_v39  ;;  %v16116_v60 = vrot.slane %v16115_v7, 1  ;;  %5043 = vst.msk [vmem:[%s12960_s29 + $0xb0] sm:$0xff] %vm5020_vm5, %v4994_v38  ;;  %5046 = vst.msk [vmem:[%s12960_s29 + $0xc8] sm:$0xff] %vm5020_vm5, %v4997_v15  ;;  %v16133_v48 = vld [vmem:[#allocation83_spill] sm:$0xff]  ;;  %v16135_v29 = vld [vmem:[#allocation284_spill] sm:$0xff] }
 0x568   : > { %v3946_v9 = vmul.f32 %v3869_v56, %v16113_v3  ;;  %v4471_v31 = vadd.f32 %v4423_v53, %v16118_v42  ;;  %v4422_v34 = vsel %vm4393_vm4, %v4371_v59, 0.0  ;;  %v4376_v61 = vadd.f32 %v4328_v55, %v3992_v47  ;;  %v16132_v53 = vld [vmem:[#allocation338_spill] sm:$0xff]  ;;  %v16134_v38 = vld [vmem:[#allocation7_spill] sm:$0xff]  ;;  %v16138_v50 = vld [vmem:[#allocation41_spill] sm:$0xff] }
 0x569   : > { %v4327_v54 = vmul.f32 %v4244_v25, %v16116_v60  ;;  %v4250_v19 = vstv %s13276_s1  ;;  %v16120_v36 = vrot.slane %v16119_v40, 1  ;;  %v4425_v6 = vsel %vm4393_vm4, %v4374_v4, 0.0  ;;  %v4898_v25 = vpop.permute.xlu0 %4897  ;;  %v16136_v18 = vld [vmem:[#allocation346_spill] sm:$0xff]  ;;  %v16140_v24 = vld [vmem:[#allocation230_spill] sm:$0xff]  ;;  %v16143_v42 = vld [vmem:[#allocation44_spill] sm:$0xff] }
 0x56a   : > { %v3991_v13 = vadd.f32 %v3943_v26, %v16121_v37  ;;  %v4259_v11 = vstv %s13311_s21  ;;  %v4996_v17 = vadd.f32 %v4878_v33, %v4468_v44  ;;  %v4999_v2 = vadd.f32 %v4890_v57, %v4471_v31  ;;  %v4886_v4 = vpop.permute.xlu1 %4885  ;;  %v16142_v7 = vld [vmem:[#allocation343_spill] sm:$0xff]  ;;  %v16146_v37 = vld [vmem:[#allocation336_spill] sm:$0xff] }
 0x56b   : > { %v4330_v12 = vmul.f32 %v4253_v41, %v16120_v36  ;;  %v16123_v39 = vstv %s15836_s9  ;;  %v3994_v30 = vadd.f32 %v3946_v9, %v3562_v16  ;;  %v4470_v35 = vadd.f32 %v4422_v34, %v16124_v62  ;;  %s13354_s9 = spop %6087  ;;  %v16137_v16 = vld [vmem:[#allocation241_spill] sm:$0xff]  ;;  %v16145_v36 = vld [vmem:[#allocation328_spill] sm:$0xff] }
 0x56c   : > { %v3184_v43 = vmul.f32 %v16123_v39, %v16122_v0  ;;  %v3122_v45 = vstv %s16117_s22  ;;  %v4375_v58 = vadd.f32 %v4327_v54, %v3991_v13  ;;  %v16126_v56 = vrot.slane %v16125_v49, 1  ;;  %5045 = vst.msk [vmem:[%s12960_s29 + $0xc0] sm:$0xff] %vm5020_vm5, %v4996_v17  ;;  %5048 = vst.msk [vmem:[%s12960_s29 + $0xd8] sm:$0xff] %vm5020_vm5, %v4999_v2  ;;  %s13362_s10 = spop %6089  ;;  %v16148_v39 = vld [vmem:[#allocation79_spill] sm:$0xff]  ;;  %v16153_v49 = vld [vmem:[#allocation8_spill] sm:$0xff] }
 0x56d   : > { %v4473_v59 = vadd.f32 %v4425_v6, %v16128_v28  ;;  %v4424_v51 = vsel %vm4393_vm4, %v4373_v1, 0.0  ;;  %v4378_v27 = vadd.f32 %v4330_v12, %v3994_v30  ;;  %v4256_v22 = vstv %s13302_s26  ;;  %s13387_s19 = spop %6091  ;;  %v16149_v30 = vld [vmem:[#allocation242_spill] sm:$0xff]  ;;  %v16154_v28 = vld [vmem:[#allocation344_spill] sm:$0xff] }
 0x56e   : > { %v4329_v46 = vmul.f32 %v4250_v19, %v16126_v56  ;;  %v16130_v52 = vrot.slane %v16129_v32, 1  ;;  %v4427_v14 = vsel %vm4393_vm4, %v4376_v61, 0.0  ;;  %v4265_v5 = vstv %s13336_s11  ;;  %v4894_v61 = vpop.permute.xlu1 %4893  ;;  %v4906_v19 = vpop.permute.xlu0 %4905  ;;  %s13392_s2 = spop %6093 }
 0x56f   : > { %v4998_v55 = vadd.f32 %v4886_v4, %v4470_v35  ;;  %v5001_v23 = vadd.f32 %v4898_v25, %v4473_v59  ;;  %v13358_v21 = vadd.f32 %v16132_v53, %v16131_v20  ;;  %v3185_v26 = vmul.f32 %v3122_v45, %v16133_v48  ;;  %v16150_v35 = vld [vmem:[#allocation43_spill] sm:$0xff]  ;;  %s13412_s5 = spop %6095 }
 0x570   : > { %v4332_v10 = vmul.f32 %v4259_v11, %v16130_v52  ;;  %v3125_v41 = vstv %s16127_s12  ;;  %v4472_v15 = vadd.f32 %v4424_v51, %v16134_v38  ;;  %v13367_v8 = vadd.f32 %v16136_v18, %v16135_v29  ;;  %v16147_v11 = vld [vmem:[#allocation84_spill] sm:$0xff]  ;;  %s13417_s24 = spop %6097  ;;  %v16161_v18 = vld [vmem:[#allocation82_spill] sm:$0xff] }
 0x571   : > { %v4377_v47 = vadd.f32 %v4329_v46, %v16137_v16  ;;  %v16139_v3 = vrot.slane %v16138_v50, 1  ;;  %5047 = vst.msk [vmem:[%s12960_s29 + $0xd0] sm:$0xff] %vm5020_vm5, %v4998_v55  ;;  %5050 = vst.msk [vmem:[%s12960_s29 + $0xe8] sm:$0xff] %vm5020_vm5, %v5001_v23  ;;  %v4475_v44 = vadd.f32 %v4427_v14, %v16140_v24  ;;  %v4426_v1 = vsel %vm4393_vm4, %v4375_v58, 0.0  ;;  %v16157_v23 = vld [vmem:[#allocation85_spill] sm:$0xff]  ;;  %v16164_v50 = vld [vmem:[#allocation30_spill] sm:$0xff]  ;;  %s13441_s4 = spop %6099 }
 0x572   : > { %v4380_v60 = vadd.f32 %v4332_v10, %v16142_v7  ;;  %v4262_v54 = vstv %s13330_s30  ;;  %v16144_v31 = vrot.slane %v16143_v42, 1  ;;  %v4429_v40 = vsel %vm4393_vm4, %v4378_v27, 0.0  ;;  %v4902_v32 = vpop.permute.xlu1 %4901  ;;  %v4914_v52 = vpop.permute.xlu0 %4913  ;;  %v16166_v24 = vld [vmem:[#allocation246_spill] sm:$0xff]  ;;  %s13446_s13 = spop %6101 }
 0x573   : > { %v4331_v9 = vmul.f32 %v4256_v22, %v16139_v3  ;;  %v3232_v12 = vadd.f32 %v3184_v43, %v16145_v36  ;;  %v4271_v33 = vstv %s13362_s10  ;;  %v5000_v57 = vadd.f32 %v4894_v61, %v4472_v15  ;;  %v16160_v15 = vld [vmem:[#allocation305_spill] sm:$0xff]  ;;  %s13467_s27 = spop %6103 }
 0x574   : > { %v4334_v34 = vmul.f32 %v4265_v5, %v16144_v31  ;;  %v5003_v6 = vadd.f32 %v4906_v19, %v4475_v44  ;;  %v3233_v13 = vadd.f32 %v3185_v26, %v16146_v37  ;;  %v3186_v17 = vmul.f32 %v3125_v41, %v16147_v11  ;;  %v16156_v5 = vld [vmem:[#allocation285_spill] sm:$0xff]  ;;  %v16170_v37 = vld [vmem:[#allocation245_spill] sm:$0xff]  ;;  %s6106_s17 = spop %6105 }
 0x575   : > { %v3128_v2 = vstv %s16141_s6  ;;  %v4474_v45 = vadd.f32 %v4426_v1, %v16148_v39  ;;  %v4379_v62 = vadd.f32 %v4331_v9, %v16149_v30  ;;  %v16151_v43 = vrot.slane %v16150_v35, 1  ;;  %5049 = vst.msk [vmem:[%s12960_s29 + $0xe0] sm:$0xff] %vm5020_vm5, %v5000_v57  ;;  %v16159_v41 = vld [vmem:[#allocation226_spill] sm:$0xff] }
 0x576   : > { %5052 = vst.msk [vmem:[%s12960_s29 + $0xf8] sm:$0xff] %vm5020_vm5, %v5003_v6  ;;  %v4477_v56 = vadd.f32 %v4429_v40, %v16153_v49  ;;  %v4428_v46 = vsel %vm4393_vm4, %v4377_v47, 0.0  ;;  %v4382_v59 = vadd.f32 %v4334_v34, %v16154_v28  ;;  %v4268_v51 = vstv %s13354_s9  ;;  %v4922_v42 = vpop.permute.xlu0 %4921  ;;  %v16168_v34 = vld [vmem:[#allocation234_spill] sm:$0xff]  ;;  %v16175_v28 = vld [vmem:[#allocation337_spill] sm:$0xff] }
 0x577   : > { %v4333_v58 = vmul.f32 %v4262_v54, %v16151_v43  ;;  %v16155_v27 = vrot.slane %v16122_v0, 1  ;;  %v4431_v10 = vsel %vm4393_vm4, %v4380_v60, 0.0  ;;  %v4277_v4 = vstv %s13392_s2  ;;  %v16158_v0 = vld [vmem:[#allocation312_spill] sm:$0xff]  ;;  %v4910_v54 = vpop.permute.xlu1 %4909 }
 0x578   : > { %v5002_v25 = vadd.f32 %v4902_v32, %v4474_v45  ;;  %v5005_v14 = vadd.f32 %v4914_v52, %v4477_v56  ;;  %v3280_v55 = vadd.f32 %v3232_v12, %v16156_v5  ;;  %v3187_v20 = vmul.f32 %v3128_v2, %v16157_v23  ;;  %v16169_v12 = vld [vmem:[#allocation86_spill] sm:$0xff]  ;;  %v16177_v52 = vld [vmem:[#allocation87_spill] sm:$0xff] }
 0x579   : > { %v4336_v22 = vmul.f32 %v4271_v33, %v16155_v27  ;;  %v3131_v53 = vstv %s16152_s3  ;;  %v4476_v26 = vadd.f32 %v4428_v46, %v16158_v0  ;;  %v13421_v38 = vadd.f32 %v3233_v13, %v16159_v41  ;;  %v16184_v41 = vld [vmem:[#allocation252_spill] sm:$0xff] }
 0x57a   : > { %v4381_v29 = vadd.f32 %v4333_v58, %v16160_v15  ;;  %v16162_v16 = vrot.slane %v16161_v18, 1  ;;  %5051 = vst.msk [vmem:[%s12960_s29 + $0xf0] sm:$0xff] %vm5020_vm5, %v5002_v25  ;;  %5054 = vst.msk [vmem:[%s12960_s29 + $0x108] sm:$0xff] %vm5020_vm5, %v5005_v14  ;;  %v4479_v3 = vadd.f32 %v4431_v10, %v16164_v50  ;;  %v4430_v9 = vsel %vm4393_vm4, %v4379_v62, 0.0  ;;  %v16173_v62 = vld [vmem:[#allocation249_spill] sm:$0xff]  ;;  %v16179_v14 = vld [vmem:[#allocation309_spill] sm:$0xff] }
 0x57b   : > { %v4384_v44 = vadd.f32 %v4336_v22, %v16166_v24  ;;  %v4274_v1 = vstv %s13387_s19  ;;  %v16167_v7 = vrot.slane %v16147_v11, 1  ;;  %v4433_v31 = vsel %vm4393_vm4, %v4382_v59, 0.0  ;;  %v16171_v11 = vld [vmem:[#allocation243_spill] sm:$0xff]  ;;  %v4918_v56 = vpop.permute.xlu1 %4917 }
 0x57c   : > { %v4335_v47 = vmul.f32 %v4268_v51, %v16162_v16  ;;  %v3234_v61 = vadd.f32 %v3186_v17, %v16168_v34  ;;  %v4283_v19 = vstv %s13417_s24  ;;  %v5004_v40 = vadd.f32 %v4910_v54, %v4476_v26  ;;  %v16176_v22 = vld [vmem:[#allocation340_spill] sm:$0xff]  ;;  %v16188_v34 = vld [vmem:[#allocation315_spill] sm:$0xff] }
 0x57d   : > { %v4338_v60 = vmul.f32 %v4277_v4, %v16167_v7  ;;  %v5007_v36 = vadd.f32 %v4922_v42, %v4479_v3  ;;  %v3188_v33 = vmul.f32 %v3131_v53, %v16169_v12  ;;  %v3134_v57 = vstv %s16163_s0  ;;  %v16178_v4 = vld [vmem:[#allocation88_spill] sm:$0xff] }
 0x57e   : > { %v3137_v6 = vstv %s16165_s16  ;;  %v4478_v13 = vadd.f32 %v4430_v9, %v16170_v37  ;;  %v4383_v2 = vadd.f32 %v4335_v47, %v16171_v11  ;;  %v16172_v39 = vrot.slane %v16133_v48, 1  ;;  %5053 = vst.msk [vmem:[%s12960_s29 + $0x100] sm:$0xff] %vm5020_vm5, %v5004_v40  ;;  %v4930_v48 = vpop.permute.xlu0 %4929  ;;  %v16180_v53 = vld [vmem:[#allocation247_spill] sm:$0xff]  ;;  %v16192_v37 = vld [vmem:[#allocation361_spill] sm:$0xff]  ;;  %v16193_v11 = vld [vmem:[#allocation90_spill] sm:$0xff] }
 0x57f   : > { %5056 = vst.msk [vmem:[%s12960_s29 + $0x118] sm:$0xff] %vm5020_vm5, %v5007_v36  ;;  %v4481_v45 = vadd.f32 %v4433_v31, %v13358_v21  ;;  %v4432_v30 = vsel %vm4393_vm4, %v4381_v29, 0.0  ;;  %v4386_v35 = vadd.f32 %v4338_v60, %v16173_v62  ;;  %v4280_v43 = vstv %s13412_s5  ;;  %v16185_v18 = vld [vmem:[#allocation322_spill] sm:$0xff]  ;;  %v4926_v3 = vpop.permute.xlu1 %4925 }
 0x580   : > { %v4337_v17 = vmul.f32 %v4274_v1, %v16172_v39  ;;  %v16174_v58 = vrot.slane %v16169_v12, 1  ;;  %v4435_v46 = vsel %vm4393_vm4, %v4384_v44, 0.0  ;;  %v3235_v59 = vadd.f32 %v3187_v20, %v16175_v28 }
 0x581   : > { %v4289_v51 = vstv %s13446_s13  ;;  %v5006_v21 = vadd.f32 %v4918_v56, %v4478_v13  ;;  %v5009_v27 = vadd.f32 %v4930_v48, %v4481_v45  ;;  %v3236_v32 = vadd.f32 %v3188_v33, %v16176_v22  ;;  %v16196_v48 = vld [vmem:[#allocation224_spill] sm:$0xff] }
 0x582   : > { %v4340_v49 = vmul.f32 %v4283_v19, %v16174_v58  ;;  %v3189_v10 = vmul.f32 %v3134_v57, %v16177_v52  ;;  %v3190_v25 = vmul.f32 %v3137_v6, %v16178_v4  ;;  %v3282_v5 = vadd.f32 %v3234_v61, %v16179_v14  ;;  %v4938_v9 = vpop.permute.xlu0 %4937  ;;  %v16189_v19 = vld [vmem:[#allocation248_spill] sm:$0xff] }
 0x583   : > { %v4385_v0 = vadd.f32 %v4337_v17, %v16180_v53  ;;  %v16181_v26 = vrot.slane %v16157_v23, 1  ;;  %5055 = vst.msk [vmem:[%s12960_s29 + $0x110] sm:$0xff] %vm5020_vm5, %v5006_v21  ;;  %5058 = vst.msk [vmem:[%s12960_s29 + $0x128] sm:$0xff] %vm5020_vm5, %v5009_v27  ;;  %v4480_v15 = vadd.f32 %v4432_v30, %v16184_v41  ;;  %v4483_v29 = vadd.f32 %v4435_v46, %v3280_v55  ;;  %v16187_v55 = vld [vmem:[#allocation221_spill] sm:$0xff]  ;;  %v4934_v17 = vpop.permute.xlu1 %4933  ;;  %v6330_v58 = vld [vmem:[%s15415_s14 + $0x170] sm:$0xff] }
 0x584   : > { %v4388_v16 = vadd.f32 %v4340_v49, %v16185_v18  ;;  %v16186_v47 = vrot.slane %v16178_v4, 1  ;;  %v4434_v23 = vsel %vm4393_vm4, %v4383_v2, 0.0  ;;  %v4437_v24 = vsel %vm4393_vm4, %v4386_v35, 0.0  ;;  %v16197_v46 = vld [vmem:[#allocation362_spill] sm:$0xff] }
 0x585   : > { %v4339_v20 = vmul.f32 %v4280_v43, %v16181_v26  ;;  %v4286_v44 = vstv %s13441_s4  ;;  %v4295_v1 = vstv %s6106_s17  ;;  %v5008_v7 = vadd.f32 %v4926_v3, %v4480_v15  ;;  %v16199_v27 = vld [vmem:[#allocation314_spill] sm:$0xff]  ;;  %v16206_v3 = vld [vmem:[#allocation289_spill] sm:$0xff] }
 0x586   : > { %v4342_v50 = vmul.f32 %v4289_v51, %v16186_v47  ;;  %v5011_v60 = vadd.f32 %v4938_v9, %v4483_v29  ;;  %v3238_v54 = vadd.f32 %v3190_v25, %v16187_v55  ;;  %v3140_v42 = vstv %s16182_s7  ;;  %v4946_v45 = vpop.permute.xlu0 %4945  ;;  %v16198_v51 = vld [vmem:[#allocation235_spill] sm:$0xff]  ;;  %v16209_v55 = vld [vmem:[#allocation293_spill] sm:$0xff] }
 0x587   : > { %v3143_v31 = vstv %s16183_s18  ;;  %v3284_v61 = vadd.f32 %v3236_v32, %v16188_v34  ;;  %v4387_v40 = vadd.f32 %v4339_v20, %v16189_v19  ;;  %5057 = vst.msk [vmem:[%s12960_s29 + $0x120] sm:$0xff] %vm5020_vm5, %v5008_v7  ;;  %v4482_v36 = vadd.f32 %v4434_v23, %v13367_v8  ;;  %v16200_v32 = vld [vmem:[#allocation89_spill] sm:$0xff]  ;;  %v4942_v20 = vpop.permute.xlu1 %4941  ;;  %v16207_v23 = vld [vmem:[#allocation288_spill] sm:$0xff] }
 0x588   : > { %5060 = vst.msk [vmem:[%s12960_s29 + $0x138] sm:$0xff] %vm5020_vm5, %v5011_v60  ;;  %v4485_v12 = vadd.f32 %v4437_v24, %v3282_v5  ;;  %v4436_v33 = vsel %vm4393_vm4, %v4385_v0, 0.0  ;;  %v16191_v57 = vrot.slane %v16177_v52, 1  ;;  %v4390_v13 = vadd.f32 %v4342_v50, %v16192_v37  ;;  %v16201_v5 = vld [vmem:[#allocation244_spill] sm:$0xff] }
 0x589   : > { %v16194_v2 = vrot.slane %v16193_v11, 1  ;;  %v4439_v30 = vsel %vm4393_vm4, %v4388_v16, 0.0  ;;  %v3192_v8 = vmul.f32 %v3143_v31, %v16193_v11  ;;  %v4292_v62 = vstv %s13467_s27  ;;  %v16204_v16 = vld [vmem:[#allocation228_spill] sm:$0xff] }
 0x58a   : > { %v4341_v6 = vmul.f32 %v4286_v44, %v16191_v57  ;;  %v5010_v35 = vadd.f32 %v4934_v17, %v4482_v36  ;;  %v5013_v43 = vadd.f32 %v4946_v45, %v4485_v12  ;;  %v16195_v49 = vstv %s16190_s15  ;;  %v4954_v41 = vpop.permute.xlu0 %4953  ;;  %v16205_v50 = vld [vmem:[#allocation236_spill] sm:$0xff]  ;;  %v16208_v44 = vld [vmem:[#allocation223_spill] sm:$0xff] }
 0x58b   : > { %v4344_v39 = vmul.f32 %v4295_v1, %v16194_v2  ;;  %v2855_v56 = vmul.f32 %v6330_v58, %v16195_v49  ;;  %v2904_v28 = vadd.f32 %v16197_v46, %v16196_v48  ;;  %v3237_v21 = vadd.f32 %v3189_v10, %v16198_v51  ;;  %v4950_v34 = vpop.permute.xlu1 %4949 }
 0x58c   : > { %v3283_v22 = vadd.f32 %v3235_v59, %v16199_v27  ;;  %v3191_v52 = vmul.f32 %v3140_v42, %v16200_v32  ;;  %5059 = vst.msk [vmem:[%s12960_s29 + $0x130] sm:$0xff] %vm5020_vm5, %v5010_v35  ;;  %5062 = vst.msk [vmem:[%s12960_s29 + $0x148] sm:$0xff] %vm5020_vm5, %v5013_v43  ;;  %v4484_v4 = vadd.f32 %v4436_v33, %v13421_v38  ;;  %v4438_v14 = vsel %vm4393_vm4, %v4387_v40, 0.0  ;;  %v16203_v59 = vld [vmem:[#allocation68_spill] sm:$0xff]  ;;  %v16210_v42 = vld [vmem:[#allocation66_spill] sm:$0xff] }
 0x58d   : > { %v4487_v25 = vadd.f32 %v4439_v30, %v3284_v61  ;;  %v4389_v53 = vadd.f32 %v4341_v6, %v16201_v5  ;;  %v16202_v10 = vrot.slane %v16200_v32, 1  ;;  %v4392_v26 = vadd.f32 %v4344_v39, %v16203_v59 }
 0x58e   : > { %v4441_v15 = vsel %vm4393_vm4, %v4390_v13, 0.0  ;;  %v3240_v29 = vadd.f32 %v3192_v8, %v2904_v28  ;;  %v5012_v38 = vadd.f32 %v4942_v20, %v4484_v4  ;;  %v3286_v47 = vadd.f32 %v3238_v54, %v16204_v16  ;;  %v4962_v61 = vpop.permute.xlu0 %4961 }
 0x58f   : > { %v4343_v0 = vmul.f32 %v4292_v62, %v16202_v10  ;;  %v5015_v18 = vadd.f32 %v4954_v41, %v4487_v25  ;;  %v2180_v9 = vadd.f32 %v16206_v3, %v16205_v50  ;;  %v2229_v24 = vsel %vm2182_vm3, %v16207_v23, 0.0  ;;  %v4958_v11 = vpop.permute.xlu1 %4957 }
 0x590   : > { %v2903_v1 = vadd.f32 %v2855_v56, %v16208_v44  ;;  %5061 = vst.msk [vmem:[%s12960_s29 + $0x140] sm:$0xff] %vm5020_vm5, %v5012_v38  ;;  %v4486_v7 = vadd.f32 %v4438_v14, %v3283_v22  ;;  %v4489_v60 = vadd.f32 %v4441_v15, %v3286_v47  ;;  %v2232_v54 = vsel %vm2182_vm3, %v16209_v55, 0.0 }
 0x591   : > { %5064 = vst.msk [vmem:[%s12960_s29 + $0x158] sm:$0xff] %vm5020_vm5, %v5015_v18  ;;  %v4391_v31 = vadd.f32 %v4343_v0, %v16210_v42  ;;  %v3285_v19 = vadd.f32 %v3237_v21, %v2229_v24  ;;  %v4440_v40 = vsel %vm4393_vm4, %v4389_v53, 0.0  ;;  %v4443_v36 = vsel %vm4393_vm4, %v4392_v26, 0.0 }
 0x592   : > { %v3239_v12 = vadd.f32 %v3191_v52, %v2903_v1  ;;  %v5014_v33 = vadd.f32 %v4950_v34, %v4486_v7  ;;  %v5017_v57 = vadd.f32 %v4962_v61, %v4489_v60  ;;  %v3288_v6 = vadd.f32 %v3240_v29, %v2232_v54  ;;  %v4970_v2 = vpop.permute.xlu0 %4969 }
 0x593   : > { %v4488_v37 = vadd.f32 %v4440_v40, %v3285_v19  ;;  %v2231_v39 = vsel %vm2182_vm3, %v2180_v9, 0.0  ;;  %v4442_v17 = vsel %vm4393_vm4, %v4391_v31, 0.0  ;;  %v4966_v35 = vpop.permute.xlu1 %4965 }
 0x594   : > { %5063 = vst.msk [vmem:[%s12960_s29 + $0x150] sm:$0xff] %vm5020_vm5, %v5014_v33  ;;  %5066 = vst.msk [vmem:[%s12960_s29 + $0x168] sm:$0xff] %vm5020_vm5, %v5017_v57  ;;  %v4491_v13 = vadd.f32 %v4443_v36, %v3288_v6  ;;  %v3287_v8 = vadd.f32 %v3239_v12, %v2231_v39 }
 0x595   : > { %v5016_v45 = vadd.f32 %v4958_v11, %v4488_v37 }
 0x596   : > { %v5019_v30 = vadd.f32 %v4970_v2, %v4491_v13  ;;  %v4490_v62 = vadd.f32 %v4442_v17, %v3287_v8 }
 0x597   : > { %5065 = vst.msk [vmem:[%s12960_s29 + $0x160] sm:$0xff] %vm5020_vm5, %v5016_v45 }
 0x598   : > { %5068 = vst.msk [vmem:[%s12960_s29 + $0x178] sm:$0xff] %vm5020_vm5, %v5019_v30  ;;  %v5018_v43 = vadd.f32 %v4966_v35, %v4490_v62 }
 0x59a   : > { %5067 = vst.msk [vmem:[%s12960_s29 + $0x170] sm:$0xff] %vm5020_vm5, %v5018_v43 }
 0x59b PF: > { %s16211_s14 = sld [smem:[#allocation3_spill]] }
 0x59c   : > { %s16212_s12 = sld [smem:[#allocation2_spill]] }
 0x59d   : > { %s16213_s13 = sld [smem:[#allocation4_spill]] }
 0x5a1   : > { %s13_s14 = sadd.s32 1, %s16211_s14  }
 0x5a2   : > { %p10_p5 = scmp.ge.s32.totalorder %s13_s14, 4  }
 0x5a4   :  { %12 = sbr.rel (!%p10_p5) target bundleno = 5 (0x5), region = 68 }

</bundles_post_ra>
